<compile_context>
chip_gen: v6e
topology: v6e:2x2x1
jax: 0.10.0
libtpu: 0.0.40
codegen_flags: <defaults>
</compile_context>

<pallas_src>
import math

import jax
import jax.numpy as jnp
from jax.experimental import pallas as pl
from jax.experimental.pallas import tpu as pltpu


def _make_kernel(H, W, C_in, C_out, learned_shortcut):
    HW = H * W
    EPS = 1e-5            # nn.InstanceNorm2d default eps
    SLOPE = 0.2           # nn.LeakyReLU(0.2)
    INV_SQRT2 = 1.0 / math.sqrt(2.0)

    def kernel(*refs):
        if learned_shortcut:
            (x_ref, s_ref,
             g1w, g1b, b1w, b1b, w1, cb1,
             g2w, g2b, b2w, b2b, w2, cb2, wsc,
             out_ref, pad1, pad2) = refs
        else:
            (x_ref, s_ref,
             g1w, g1b, b1w, b1b, w1, cb1,
             g2w, g2b, b2w, b2b, w2, cb2,
             out_ref, pad1, pad2) = refs
            wsc = None

        xf = x_ref[...]            # (HW, C_in) -- one image, spatial flattened
        s = s_ref[...]             # (1, style_dim)

        # Column index of every flattened pixel; used to zero the wrap-around
        # rows that appear when a 3x3 shift crosses the left/right image edge.
        row_iota = jax.lax.broadcasted_iota(jnp.int32, (HW, 1), 0)
        if W & (W - 1) == 0:
            col = jnp.bitwise_and(row_iota, W - 1)
        else:
            col = row_iota % W
        not_first_col = col != 0
        not_last_col = col != (W - 1)

        def adain_lrelu(v, gw, gb, bw, bb):
            # AdaIN: InstanceNorm (biased var over H*W, eps=1e-5) modulated by
            # the style projection, followed by LeakyReLU(0.2).
            gamma = jnp.dot(s, gw[...], preferred_element_type=jnp.float32) + gb[...]
            beta = jnp.dot(s, bw[...], preferred_element_type=jnp.float32) + bb[...]
            mean = jnp.mean(v, axis=0, keepdims=True)
            var = jnp.mean((v - mean) ** 2, axis=0, keepdims=True)
            o = (1.0 + gamma) * ((v - mean) * jax.lax.rsqrt(var + EPS)) + beta
            return jnp.where(o >= 0.0, o, SLOPE * o)

        def conv3x3(pad_ref, v, w_ref, b_ref):
            # 3x3 / stride 1 / pad 1 conv as 9 shifted MXU matmuls against a
            # row-padded scratch: pad_ref holds 2 zero rows, the image, 2 zero rows.
            c_dst = w_ref.shape[-1]
            pad_ref[...] = jnp.zeros_like(pad_ref)
            pad_ref[2 * W:2 * W + HW, :] = v
            acc = jnp.zeros((HW, c_dst), jnp.float32)
            for k in range(9):
                dy, dx = k // 3, k % 3
                start = (dy + 1) * W + (dx - 1)          # flattened shift
                sl = pad_ref[start:start + HW, :]
                if dx == 0:
                    sl = jnp.where(not_first_col, sl, 0.0)
                elif dx == 2:
                    sl = jnp.where(not_last_col, sl, 0.0)
                acc = acc + jnp.dot(sl, w_ref[k], preferred_element_type=jnp.float32)
            return acc + b_ref[...]

        # Residual path: norm1 -> actv -> conv1 -> norm2 -> actv -> conv2.
        t = adain_lrelu(xf, g1w, g1b, b1w, b1b)
        t = conv3x3(pad1, t, w1, cb1)
        t = adain_lrelu(t, g2w, g2b, b2w, b2b)
        t = conv3x3(pad2, t, w2, cb2)

        # Shortcut path: 1x1 conv (no bias) iff dim_in != dim_out.
        sc = (jnp.dot(xf, wsc[...], preferred_element_type=jnp.float32)
              if learned_shortcut else xf)

        out_ref[...] = ((t + sc) * INV_SQRT2).astype(out_ref.dtype)

    return kernel


def adain_resblock_pallas(x, s, params, *, upsample=False):
    """AdainResidualBlock.forward.  x: (B,H,W,C_in) f32 NHWC, s: (B,style_dim) f32."""
    if upsample:
        # TODO(synk): the upsample=True (F.interpolate nearest 2x) branch is not
        # implemented in the Pallas kernel; the module default upsample=False is.
        raise NotImplementedError("upsample=True is not supported by this kernel")

    B, H, W, C_in = x.shape
    S = s.shape[-1]
    C_out = params["conv1_w"].shape[-1]
    HW = H * W
    learned_shortcut = C_in != C_out

    x2 = x.reshape(B, HW, C_in)     # flatten spatial dims; channels stay on lanes
    s3 = s.reshape(B, 1, S)

    const2 = lambda r, c: pl.BlockSpec((r, c), lambda b: (0, 0))
    const3 = lambda a, r, c: pl.BlockSpec((a, r, c), lambda b: (0, 0, 0))

    in_specs = [
        pl.BlockSpec((None, HW, C_in), lambda b: (b, 0, 0)),    # x: one image / step
        pl.BlockSpec((None, 1, S), lambda b: (b, 0, 0)),        # s: one style row / step
        const2(S, C_in), const2(1, C_in),                       # AdaIN1 gamma W, b
        const2(S, C_in), const2(1, C_in),                       # AdaIN1 beta  W, b
        const3(9, C_in, C_out), const2(1, C_out),               # conv1 W, b
        const2(S, C_out), const2(1, C_out),                     # AdaIN2 gamma W, b
        const2(S, C_out), const2(1, C_out),                     # AdaIN2 beta  W, b
        const3(9, C_out, C_out), const2(1, C_out),              # conv2 W, b
    ]
    args = [
        x2, s3,
        params["fc1_gw"], params["fc1_gb"], params["fc1_bw"], params["fc1_bb"],
        params["conv1_w"], params["conv1_b"],
        params["fc2_gw"], params["fc2_gb"], params["fc2_bw"], params["fc2_bb"],
        params["conv2_w"], params["conv2_b"],
    ]
    if learned_shortcut:
        in_specs.append(const2(C_in, C_out))
        args.append(params["sc_w"])

    kernel = _make_kernel(H, W, C_in, C_out, learned_shortcut)

    out2 = pl.pallas_call(
        kernel,
        out_shape=jax.ShapeDtypeStruct((B, HW, C_out), jnp.float32),
        grid_spec=pltpu.PrefetchScalarGridSpec(
            num_scalar_prefetch=0,
            grid=(B,),
            in_specs=in_specs,
            out_specs=pl.BlockSpec((None, HW, C_out), lambda b: (b, 0, 0)),
            scratch_shapes=[
                pltpu.VMEM(((H + 4) * W, C_in), jnp.float32),   # row-padded conv1 input
                pltpu.VMEM(((H + 4) * W, C_out), jnp.float32),  # row-padded conv2 input
            ],
        ),
        compiler_params=pltpu.CompilerParams(
            # Distinct output block per grid step -> batch axis is embarrassingly
            # parallel (lets v7x megacore split the batch across its two TCs).
            dimension_semantics=("parallel",),
            # Working set is ~2 MiB; keep the cap well below v7x's 64 MiB VMEM.
            vmem_limit_bytes=32 << 20,
        ),
    )(*args)
    return out2.reshape(B, H, W, C_out)


def init_params(key, C_in, C_out, style_dim):
    """Deterministic PyTorch-default-style init: U(-1/sqrt(fan_in), 1/sqrt(fan_in))."""
    ks = jax.random.split(key, 13)

    def unif(k, shape, fan_in):
        b = 1.0 / math.sqrt(fan_in)
        return jax.random.uniform(k, shape, jnp.float32, -b, b)

    p = {
        # AdaIN #1: Linear(style_dim, 2*C_in), stored transposed & split gamma/beta.
        "fc1_gw": unif(ks[0], (style_dim, C_in), style_dim),
        "fc1_gb": unif(ks[1], (1, C_in), style_dim),
        "fc1_bw": unif(ks[2], (style_dim, C_in), style_dim),
        "fc1_bb": unif(ks[3], (1, C_in), style_dim),
        # conv1: Conv2d(C_in, C_out, 3, 1, 1); weight stored as (ky*3+kx, C_in, C_out).
        "conv1_w": unif(ks[4], (9, C_in, C_out), 9 * C_in),
        "conv1_b": unif(ks[5], (1, C_out), 9 * C_in),
        # AdaIN #2: Linear(style_dim, 2*C_out).
        "fc2_gw": unif(ks[6], (style_dim, C_out), style_dim),
        "fc2_gb": unif(ks[7], (1, C_out), style_dim),
        "fc2_bw": unif(ks[8], (style_dim, C_out), style_dim),
        "fc2_bb": unif(ks[9], (1, C_out), style_dim),
        # conv2: Conv2d(C_out, C_out, 3, 1, 1).
        "conv2_w": unif(ks[10], (9, C_out, C_out), 9 * C_out),
        "conv2_b": unif(ks[11], (1, C_out), 9 * C_out),
    }
    if C_in != C_out:
        # Learned shortcut: Conv2d(C_in, C_out, 1, bias=False) stored as (C_in, C_out).
        p["sc_w"] = unif(ks[12], (C_in, C_out), C_in)
    return p


def reference(x, s, params):
    """Pure-JAX NHWC reference matching AdainResidualBlock.forward (upsample=False)."""
    P = jax.lax.Precision.HIGHEST
    eps = 1e-5
    C_in = x.shape[-1]
    C_out = params["conv1_w"].shape[-1]

    def adain(v, gw, gb, bw, bb):
        gamma = (jnp.dot(s, gw, precision=P) + gb)[:, None, None, :]
        beta = (jnp.dot(s, bw, precision=P) + bb)[:, None, None, :]
        mean = v.mean(axis=(1, 2), keepdims=True)
        var = ((v - mean) ** 2).mean(axis=(1, 2), keepdims=True)
        return (1.0 + gamma) * ((v - mean) * jax.lax.rsqrt(var + eps)) + beta

    def lrelu(v):
        return jnp.where(v >= 0.0, v, 0.2 * v)

    def conv3x3(v, w, b):
        w4 = w.reshape(3, 3, w.shape[-2], w.shape[-1])        # (ky, kx, Cin, Cout)
        o = jax.lax.conv_general_dilated(
            v, w4, window_strides=(1, 1), padding="SAME",
            dimension_numbers=("NHWC", "HWIO", "NHWC"), precision=P)
        return o + b

    t = lrelu(adain(x, params["fc1_gw"], params["fc1_gb"],
                    params["fc1_bw"], params["fc1_bb"]))
    t = conv3x3(t, params["conv1_w"], params["conv1_b"])
    t = lrelu(adain(t, params["fc2_gw"], params["fc2_gb"],
                    params["fc2_bw"], params["fc2_bb"]))
    t = conv3x3(t, params["conv2_w"], params["conv2_b"])

    if C_in != C_out:
        sc = jnp.einsum("bhwc,cd->bhwd", x, params["sc_w"], precision=P)
    else:
        sc = x
    return (t + sc) / math.sqrt(2.0)


if __name__ == "__main__":
    key = jax.random.PRNGKey(0)
    kp, kx, ks = jax.random.split(key, 3)

    B, H, W = 2, 16, 16
    C_IN, C_OUT, STYLE = 64, 128, 64      # C_in != C_out -> learned 1x1 shortcut

    params = init_params(kp, C_IN, C_OUT, STYLE)
    x = jax.random.normal(kx, (B, H, W, C_IN), jnp.float32)
    s = jax.random.normal(ks, (B, STYLE), jnp.float32)

    out = adain_resblock_pallas(x, s, params, upsample=False)
    out = jax.block_until_ready(out)

    ref = reference(x, s, params)
    max_err = float(jnp.max(jnp.abs(out - ref)))
    assert out.shape == (B, H, W, C_OUT), out.shape
    assert max_err < 5e-2, f"max abs error {max_err}"

    print("KERNEL_OK")
</pallas_src>

<mosaic_0001>
module attributes {stable_mosaic.version = 11 : i64} {
  func.func @kernel(%arg0: i32, %arg1: memref<1x256x64xf32, #tpu.memory_space<vmem>>, %arg2: memref<1x1x64xf32, #tpu.memory_space<vmem>>, %arg3: memref<64x64xf32, #tpu.memory_space<vmem>>, %arg4: memref<1x64xf32, #tpu.memory_space<vmem>>, %arg5: memref<64x64xf32, #tpu.memory_space<vmem>>, %arg6: memref<1x64xf32, #tpu.memory_space<vmem>>, %arg7: memref<9x64x128xf32, #tpu.memory_space<vmem>>, %arg8: memref<1x128xf32, #tpu.memory_space<vmem>>, %arg9: memref<64x128xf32, #tpu.memory_space<vmem>>, %arg10: memref<1x128xf32, #tpu.memory_space<vmem>>, %arg11: memref<64x128xf32, #tpu.memory_space<vmem>>, %arg12: memref<1x128xf32, #tpu.memory_space<vmem>>, %arg13: memref<9x128x128xf32, #tpu.memory_space<vmem>>, %arg14: memref<1x128xf32, #tpu.memory_space<vmem>>, %arg15: memref<64x128xf32, #tpu.memory_space<vmem>>, %arg16: memref<1x256x128xf32, #tpu.memory_space<vmem>>, %arg17: memref<320x64xf32, #tpu.memory_space<vmem>>, %arg18: memref<320x128xf32, #tpu.memory_space<vmem>>) attributes {dimension_semantics = [#tpu.dimension_semantics<parallel>], iteration_bounds = array<i64: 2>, scalar_prefetch = 0 : i64, scratch_operands = 2 : i64, tpu.core_type = #tpu.core_type<tc>, window_params = [{transform_indices = @transform_0, window_bounds = array<i64: 1, 256, 64>}, {transform_indices = @transform_1, window_bounds = array<i64: 1, 1, 64>}, {pipeline_mode = #tpu.pipeline_mode<synchronous>, transform_indices = @transform_2, window_bounds = array<i64: 64, 64>}, {pipeline_mode = #tpu.pipeline_mode<synchronous>, transform_indices = @transform_3, window_bounds = array<i64: 1, 64>}, {pipeline_mode = #tpu.pipeline_mode<synchronous>, transform_indices = @transform_4, window_bounds = array<i64: 64, 64>}, {pipeline_mode = #tpu.pipeline_mode<synchronous>, transform_indices = @transform_5, window_bounds = array<i64: 1, 64>}, {pipeline_mode = #tpu.pipeline_mode<synchronous>, transform_indices = @transform_6, window_bounds = array<i64: 9, 64, 128>}, {pipeline_mode = #tpu.pipeline_mode<synchronous>, transform_indices = @transform_7, window_bounds = array<i64: 1, 128>}, {pipeline_mode = #tpu.pipeline_mode<synchronous>, transform_indices = @transform_8, window_bounds = array<i64: 64, 128>}, {pipeline_mode = #tpu.pipeline_mode<synchronous>, transform_indices = @transform_9, window_bounds = array<i64: 1, 128>}, {pipeline_mode = #tpu.pipeline_mode<synchronous>, transform_indices = @transform_10, window_bounds = array<i64: 64, 128>}, {pipeline_mode = #tpu.pipeline_mode<synchronous>, transform_indices = @transform_11, window_bounds = array<i64: 1, 128>}, {pipeline_mode = #tpu.pipeline_mode<synchronous>, transform_indices = @transform_12, window_bounds = array<i64: 9, 128, 128>}, {pipeline_mode = #tpu.pipeline_mode<synchronous>, transform_indices = @transform_13, window_bounds = array<i64: 1, 128>}, {pipeline_mode = #tpu.pipeline_mode<synchronous>, transform_indices = @transform_14, window_bounds = array<i64: 64, 128>}, {transform_indices = @transform_15, window_bounds = array<i64: 1, 256, 128>}]} {
    %c0 = arith.constant 0 : index
    %c0_0 = arith.constant 0 : index
    %c0_1 = arith.constant 0 : index
    %0 = vector.load %arg1[%c0, %c0_0, %c0_1] : memref<1x256x64xf32, #tpu.memory_space<vmem>>, vector<1x256x64xf32>
    %1 = vector.shape_cast %0 : vector<1x256x64xf32> to vector<256x64xf32>
    %c0_2 = arith.constant 0 : index
    %c0_3 = arith.constant 0 : index
    %c0_4 = arith.constant 0 : index
    %2 = vector.load %arg2[%c0_2, %c0_3, %c0_4] : memref<1x1x64xf32, #tpu.memory_space<vmem>>, vector<1x1x64xf32>
    %3 = vector.shape_cast %2 : vector<1x1x64xf32> to vector<1x64xf32>
    %4 = tpu.iota {dimensions = array<i32: 0>} : vector<256x1xi32>
    %c15_i32 = arith.constant 15 : i32
    %5 = vector.broadcast %c15_i32 : i32 to vector<256x1xi32>
    %6 = arith.andi %4, %5 : vector<256x1xi32>
    %c0_i32 = arith.constant 0 : i32
    %7 = vector.broadcast %c0_i32 : i32 to vector<256x1xi32>
    %8 = arith.cmpi ne, %6, %7 : vector<256x1xi32>
    %c15_i32_5 = arith.constant 15 : i32
    %9 = vector.broadcast %c15_i32_5 : i32 to vector<256x1xi32>
    %10 = arith.cmpi ne, %6, %9 : vector<256x1xi32>
    %c0_6 = arith.constant 0 : index
    %c0_7 = arith.constant 0 : index
    %11 = vector.load %arg3[%c0_6, %c0_7] : memref<64x64xf32, #tpu.memory_space<vmem>>, vector<64x64xf32>
    %cst = arith.constant dense<0.000000e+00> : vector<1x64xf32>
    %12 = tpu.matmul %3, %11, %cst {dimension_numbers = #tpu.dot_dimension_numbers<[1], [0], [0], [1], [0, 0, 1, 1], [], []>} : vector<1x64xf32>, vector<64x64xf32>, vector<1x64xf32> -> vector<1x64xf32>
    %c0_8 = arith.constant 0 : index
    %c0_9 = arith.constant 0 : index
    %13 = vector.load %arg4[%c0_8, %c0_9] : memref<1x64xf32, #tpu.memory_space<vmem>>, vector<1x64xf32>
    %14 = arith.addf %12, %13 : vector<1x64xf32>
    %c0_10 = arith.constant 0 : index
    %c0_11 = arith.constant 0 : index
    %15 = vector.load %arg5[%c0_10, %c0_11] : memref<64x64xf32, #tpu.memory_space<vmem>>, vector<64x64xf32>
    %cst_12 = arith.constant dense<0.000000e+00> : vector<1x64xf32>
    %16 = tpu.matmul %3, %15, %cst_12 {dimension_numbers = #tpu.dot_dimension_numbers<[1], [0], [0], [1], [0, 0, 1, 1], [], []>} : vector<1x64xf32>, vector<64x64xf32>, vector<1x64xf32> -> vector<1x64xf32>
    %c0_13 = arith.constant 0 : index
    %c0_14 = arith.constant 0 : index
    %17 = vector.load %arg6[%c0_13, %c0_14] : memref<1x64xf32, #tpu.memory_space<vmem>>, vector<1x64xf32>
    %18 = arith.addf %16, %17 : vector<1x64xf32>
    %cst_15 = arith.constant dense<0.000000e+00> : vector<64xf32>
    %19 = vector.multi_reduction <add>, %1, %cst_15 [0] : vector<256x64xf32> to vector<64xf32>
    %20 = vector.shape_cast %19 : vector<64xf32> to vector<1x64xf32>
    %cst_16 = arith.constant 2.560000e+02 : f32
    %21 = vector.broadcast %cst_16 : f32 to vector<1x64xf32>
    %22 = arith.divf %20, %21 : vector<1x64xf32>
    %23 = vector.broadcast %22 : vector<1x64xf32> to vector<256x64xf32>
    %24 = arith.subf %1, %23 : vector<256x64xf32>
    %25 = arith.mulf %24, %24 : vector<256x64xf32>
    %cst_17 = arith.constant dense<0.000000e+00> : vector<64xf32>
    %26 = vector.multi_reduction <add>, %25, %cst_17 [0] : vector<256x64xf32> to vector<64xf32>
    %27 = vector.shape_cast %26 : vector<64xf32> to vector<1x64xf32>
    %cst_18 = arith.constant 2.560000e+02 : f32
    %28 = vector.broadcast %cst_18 : f32 to vector<1x64xf32>
    %29 = arith.divf %27, %28 : vector<1x64xf32>
    %cst_19 = arith.constant 1.000000e+00 : f32
    %30 = vector.broadcast %cst_19 : f32 to vector<1x64xf32>
    %31 = arith.addf %30, %14 : vector<1x64xf32>
    %32 = vector.broadcast %22 : vector<1x64xf32> to vector<256x64xf32>
    %33 = arith.subf %1, %32 : vector<256x64xf32>
    %cst_20 = arith.constant 9.99999974E-6 : f32
    %34 = vector.broadcast %cst_20 : f32 to vector<1x64xf32>
    %35 = arith.addf %29, %34 : vector<1x64xf32>
    %36 = math.rsqrt %35 : vector<1x64xf32>
    %37 = vector.broadcast %36 : vector<1x64xf32> to vector<256x64xf32>
    %38 = arith.mulf %33, %37 : vector<256x64xf32>
    %39 = vector.broadcast %31 : vector<1x64xf32> to vector<256x64xf32>
    %40 = arith.mulf %39, %38 : vector<256x64xf32>
    %41 = vector.broadcast %18 : vector<1x64xf32> to vector<256x64xf32>
    %42 = arith.addf %40, %41 : vector<256x64xf32>
    %cst_21 = arith.constant 0.000000e+00 : f32
    %43 = vector.broadcast %cst_21 : f32 to vector<256x64xf32>
    %44 = arith.cmpf oge, %42, %43 : vector<256x64xf32>
    %cst_22 = arith.constant 2.000000e-01 : f32
    %45 = vector.broadcast %cst_22 : f32 to vector<256x64xf32>
    %46 = arith.mulf %45, %42 : vector<256x64xf32>
    %47 = arith.select %44, %42, %46 : vector<256x64xi1>, vector<256x64xf32>
    %cst_23 = arith.constant 0.000000e+00 : f32
    %48 = vector.broadcast %cst_23 : f32 to vector<320x64xf32>
    %c0_24 = arith.constant 0 : index
    %c0_25 = arith.constant 0 : index
    %49 = vector.load %arg17[%c0_24, %c0_25] : memref<320x64xf32, #tpu.memory_space<vmem>>, vector<320x64xf32>
    tpu.vector_store %arg17[%c0_24, %c0_25], %48 {strides = array<i32>} : memref<320x64xf32, #tpu.memory_space<vmem>>, vector<320x64xf32>,
    %c32 = arith.constant 32 : index
    %c0_26 = arith.constant 0 : index
    %50 = vector.load %arg17[%c32, %c0_26] : memref<320x64xf32, #tpu.memory_space<vmem>>, vector<256x64xf32>
    tpu.vector_store %arg17[%c32, %c0_26], %47 {strides = array<i32>} : memref<320x64xf32, #tpu.memory_space<vmem>>, vector<256x64xf32>,
    %cst_27 = arith.constant 0.000000e+00 : f32
    %51 = vector.broadcast %cst_27 : f32 to vector<256x128xf32>
    %c15 = arith.constant 15 : index
    %c0_28 = arith.constant 0 : index
    %52 = vector.load %arg17[%c15, %c0_28] : memref<320x64xf32, #tpu.memory_space<vmem>>, vector<256x64xf32>
    %cst_29 = arith.constant 0.000000e+00 : f32
    %53 = vector.shape_cast %8 : vector<256x1xi1> to vector<256x1xi1>
    %54 = vector.broadcast %53 : vector<256x1xi1> to vector<256x64xi1>
    %55 = vector.broadcast %cst_29 : f32 to vector<256x64xf32>
    %56 = arith.select %54, %52, %55 : vector<256x64xi1>, vector<256x64xf32>
    %c0_30 = arith.constant 0 : index
    %c0_31 = arith.constant 0 : index
    %c0_32 = arith.constant 0 : index
    %57 = vector.load %arg7[%c0_30, %c0_31, %c0_32] : memref<9x64x128xf32, #tpu.memory_space<vmem>>, vector<1x64x128xf32>
    %58 = vector.shape_cast %57 : vector<1x64x128xf32> to vector<64x128xf32>
    %cst_33 = arith.constant dense<0.000000e+00> : vector<256x128xf32>
    %59 = tpu.matmul %56, %58, %cst_33 {dimension_numbers = #tpu.dot_dimension_numbers<[1], [0], [0], [1], [0, 0, 1, 1], [], []>} : vector<256x64xf32>, vector<64x128xf32>, vector<256x128xf32> -> vector<256x128xf32>
    %60 = arith.addf %51, %59 : vector<256x128xf32>
    %c16 = arith.constant 16 : index
    %c0_34 = arith.constant 0 : index
    %61 = vector.load %arg17[%c16, %c0_34] : memref<320x64xf32, #tpu.memory_space<vmem>>, vector<256x64xf32>
    %c1 = arith.constant 1 : index
    %c0_35 = arith.constant 0 : index
    %c0_36 = arith.constant 0 : index
    %62 = vector.load %arg7[%c1, %c0_35, %c0_36] : memref<9x64x128xf32, #tpu.memory_space<vmem>>, vector<1x64x128xf32>
    %63 = vector.shape_cast %62 : vector<1x64x128xf32> to vector<64x128xf32>
    %cst_37 = arith.constant dense<0.000000e+00> : vector<256x128xf32>
    %64 = tpu.matmul %61, %63, %cst_37 {dimension_numbers = #tpu.dot_dimension_numbers<[1], [0], [0], [1], [0, 0, 1, 1], [], []>} : vector<256x64xf32>, vector<64x128xf32>, vector<256x128xf32> -> vector<256x128xf32>
    %65 = arith.addf %60, %64 : vector<256x128xf32>
    %c17 = arith.constant 17 : index
    %c0_38 = arith.constant 0 : index
    %66 = vector.load %arg17[%c17, %c0_38] : memref<320x64xf32, #tpu.memory_space<vmem>>, vector<256x64xf32>
    %cst_39 = arith.constant 0.000000e+00 : f32
    %67 = vector.shape_cast %10 : vector<256x1xi1> to vector<256x1xi1>
    %68 = vector.broadcast %67 : vector<256x1xi1> to vector<256x64xi1>
    %69 = vector.broadcast %cst_39 : f32 to vector<256x64xf32>
    %70 = arith.select %68, %66, %69 : vector<256x64xi1>, vector<256x64xf32>
    %c2 = arith.constant 2 : index
    %c0_40 = arith.constant 0 : index
    %c0_41 = arith.constant 0 : index
    %71 = vector.load %arg7[%c2, %c0_40, %c0_41] : memref<9x64x128xf32, #tpu.memory_space<vmem>>, vector<1x64x128xf32>
    %72 = vector.shape_cast %71 : vector<1x64x128xf32> to vector<64x128xf32>
    %cst_42 = arith.constant dense<0.000000e+00> : vector<256x128xf32>
    %73 = tpu.matmul %70, %72, %cst_42 {dimension_numbers = #tpu.dot_dimension_numbers<[1], [0], [0], [1], [0, 0, 1, 1], [], []>} : vector<256x64xf32>, vector<64x128xf32>, vector<256x128xf32> -> vector<256x128xf32>
    %74 = arith.addf %65, %73 : vector<256x128xf32>
    %c31 = arith.constant 31 : index
    %c0_43 = arith.constant 0 : index
    %75 = vector.load %arg17[%c31, %c0_43] : memref<320x64xf32, #tpu.memory_space<vmem>>, vector<256x64xf32>
    %cst_44 = arith.constant 0.000000e+00 : f32
    %76 = vector.shape_cast %8 : vector<256x1xi1> to vector<256x1xi1>
    %77 = vector.broadcast %76 : vector<256x1xi1> to vector<256x64xi1>
    %78 = vector.broadcast %cst_44 : f32 to vector<256x64xf32>
    %79 = arith.select %77, %75, %78 : vector<256x64xi1>, vector<256x64xf32>
    %c3 = arith.constant 3 : index
    %c0_45 = arith.constant 0 : index
    %c0_46 = arith.constant 0 : index
    %80 = vector.load %arg7[%c3, %c0_45, %c0_46] : memref<9x64x128xf32, #tpu.memory_space<vmem>>, vector<1x64x128xf32>
    %81 = vector.shape_cast %80 : vector<1x64x128xf32> to vector<64x128xf32>
    %cst_47 = arith.constant dense<0.000000e+00> : vector<256x128xf32>
    %82 = tpu.matmul %79, %81, %cst_47 {dimension_numbers = #tpu.dot_dimension_numbers<[1], [0], [0], [1], [0, 0, 1, 1], [], []>} : vector<256x64xf32>, vector<64x128xf32>, vector<256x128xf32> -> vector<256x128xf32>
    %83 = arith.addf %74, %82 : vector<256x128xf32>
    %c32_48 = arith.constant 32 : index
    %c0_49 = arith.constant 0 : index
    %84 = vector.load %arg17[%c32_48, %c0_49] : memref<320x64xf32, #tpu.memory_space<vmem>>, vector<256x64xf32>
    %c4 = arith.constant 4 : index
    %c0_50 = arith.constant 0 : index
    %c0_51 = arith.constant 0 : index
    %85 = vector.load %arg7[%c4, %c0_50, %c0_51] : memref<9x64x128xf32, #tpu.memory_space<vmem>>, vector<1x64x128xf32>
    %86 = vector.shape_cast %85 : vector<1x64x128xf32> to vector<64x128xf32>
    %cst_52 = arith.constant dense<0.000000e+00> : vector<256x128xf32>
    %87 = tpu.matmul %84, %86, %cst_52 {dimension_numbers = #tpu.dot_dimension_numbers<[1], [0], [0], [1], [0, 0, 1, 1], [], []>} : vector<256x64xf32>, vector<64x128xf32>, vector<256x128xf32> -> vector<256x128xf32>
    %88 = arith.addf %83, %87 : vector<256x128xf32>
    %c33 = arith.constant 33 : index
    %c0_53 = arith.constant 0 : index
    %89 = vector.load %arg17[%c33, %c0_53] : memref<320x64xf32, #tpu.memory_space<vmem>>, vector<256x64xf32>
    %cst_54 = arith.constant 0.000000e+00 : f32
    %90 = vector.shape_cast %10 : vector<256x1xi1> to vector<256x1xi1>
    %91 = vector.broadcast %90 : vector<256x1xi1> to vector<256x64xi1>
    %92 = vector.broadcast %cst_54 : f32 to vector<256x64xf32>
    %93 = arith.select %91, %89, %92 : vector<256x64xi1>, vector<256x64xf32>
    %c5 = arith.constant 5 : index
    %c0_55 = arith.constant 0 : index
    %c0_56 = arith.constant 0 : index
    %94 = vector.load %arg7[%c5, %c0_55, %c0_56] : memref<9x64x128xf32, #tpu.memory_space<vmem>>, vector<1x64x128xf32>
    %95 = vector.shape_cast %94 : vector<1x64x128xf32> to vector<64x128xf32>
    %cst_57 = arith.constant dense<0.000000e+00> : vector<256x128xf32>
    %96 = tpu.matmul %93, %95, %cst_57 {dimension_numbers = #tpu.dot_dimension_numbers<[1], [0], [0], [1], [0, 0, 1, 1], [], []>} : vector<256x64xf32>, vector<64x128xf32>, vector<256x128xf32> -> vector<256x128xf32>
    %97 = arith.addf %88, %96 : vector<256x128xf32>
    %c47 = arith.constant 47 : index
    %c0_58 = arith.constant 0 : index
    %98 = vector.load %arg17[%c47, %c0_58] : memref<320x64xf32, #tpu.memory_space<vmem>>, vector<256x64xf32>
    %cst_59 = arith.constant 0.000000e+00 : f32
    %99 = vector.shape_cast %8 : vector<256x1xi1> to vector<256x1xi1>
    %100 = vector.broadcast %99 : vector<256x1xi1> to vector<256x64xi1>
    %101 = vector.broadcast %cst_59 : f32 to vector<256x64xf32>
    %102 = arith.select %100, %98, %101 : vector<256x64xi1>, vector<256x64xf32>
    %c6 = arith.constant 6 : index
    %c0_60 = arith.constant 0 : index
    %c0_61 = arith.constant 0 : index
    %103 = vector.load %arg7[%c6, %c0_60, %c0_61] : memref<9x64x128xf32, #tpu.memory_space<vmem>>, vector<1x64x128xf32>
    %104 = vector.shape_cast %103 : vector<1x64x128xf32> to vector<64x128xf32>
    %cst_62 = arith.constant dense<0.000000e+00> : vector<256x128xf32>
    %105 = tpu.matmul %102, %104, %cst_62 {dimension_numbers = #tpu.dot_dimension_numbers<[1], [0], [0], [1], [0, 0, 1, 1], [], []>} : vector<256x64xf32>, vector<64x128xf32>, vector<256x128xf32> -> vector<256x128xf32>
    %106 = arith.addf %97, %105 : vector<256x128xf32>
    %c48 = arith.constant 48 : index
    %c0_63 = arith.constant 0 : index
    %107 = vector.load %arg17[%c48, %c0_63] : memref<320x64xf32, #tpu.memory_space<vmem>>, vector<256x64xf32>
    %c7 = arith.constant 7 : index
    %c0_64 = arith.constant 0 : index
    %c0_65 = arith.constant 0 : index
    %108 = vector.load %arg7[%c7, %c0_64, %c0_65] : memref<9x64x128xf32, #tpu.memory_space<vmem>>, vector<1x64x128xf32>
    %109 = vector.shape_cast %108 : vector<1x64x128xf32> to vector<64x128xf32>
    %cst_66 = arith.constant dense<0.000000e+00> : vector<256x128xf32>
    %110 = tpu.matmul %107, %109, %cst_66 {dimension_numbers = #tpu.dot_dimension_numbers<[1], [0], [0], [1], [0, 0, 1, 1], [], []>} : vector<256x64xf32>, vector<64x128xf32>, vector<256x128xf32> -> vector<256x128xf32>
    %111 = arith.addf %106, %110 : vector<256x128xf32>
    %c49 = arith.constant 49 : index
    %c0_67 = arith.constant 0 : index
    %112 = vector.load %arg17[%c49, %c0_67] : memref<320x64xf32, #tpu.memory_space<vmem>>, vector<256x64xf32>
    %cst_68 = arith.constant 0.000000e+00 : f32
    %113 = vector.shape_cast %10 : vector<256x1xi1> to vector<256x1xi1>
    %114 = vector.broadcast %113 : vector<256x1xi1> to vector<256x64xi1>
    %115 = vector.broadcast %cst_68 : f32 to vector<256x64xf32>
    %116 = arith.select %114, %112, %115 : vector<256x64xi1>, vector<256x64xf32>
    %c8 = arith.constant 8 : index
    %c0_69 = arith.constant 0 : index
    %c0_70 = arith.constant 0 : index
    %117 = vector.load %arg7[%c8, %c0_69, %c0_70] : memref<9x64x128xf32, #tpu.memory_space<vmem>>, vector<1x64x128xf32>
    %118 = vector.shape_cast %117 : vector<1x64x128xf32> to vector<64x128xf32>
    %cst_71 = arith.constant dense<0.000000e+00> : vector<256x128xf32>
    %119 = tpu.matmul %116, %118, %cst_71 {dimension_numbers = #tpu.dot_dimension_numbers<[1], [0], [0], [1], [0, 0, 1, 1], [], []>} : vector<256x64xf32>, vector<64x128xf32>, vector<256x128xf32> -> vector<256x128xf32>
    %120 = arith.addf %111, %119 : vector<256x128xf32>
    %c0_72 = arith.constant 0 : index
    %c0_73 = arith.constant 0 : index
    %121 = vector.load %arg8[%c0_72, %c0_73] : memref<1x128xf32, #tpu.memory_space<vmem>>, vector<1x128xf32>
    %122 = vector.broadcast %121 : vector<1x128xf32> to vector<256x128xf32>
    %123 = arith.addf %120, %122 : vector<256x128xf32>
    %c0_74 = arith.constant 0 : index
    %c0_75 = arith.constant 0 : index
    %124 = vector.load %arg9[%c0_74, %c0_75] : memref<64x128xf32, #tpu.memory_space<vmem>>, vector<64x128xf32>
    %cst_76 = arith.constant dense<0.000000e+00> : vector<1x128xf32>
    %125 = tpu.matmul %3, %124, %cst_76 {dimension_numbers = #tpu.dot_dimension_numbers<[1], [0], [0], [1], [0, 0, 1, 1], [], []>} : vector<1x64xf32>, vector<64x128xf32>, vector<1x128xf32> -> vector<1x128xf32>
    %c0_77 = arith.constant 0 : index
    %c0_78 = arith.constant 0 : index
    %126 = vector.load %arg10[%c0_77, %c0_78] : memref<1x128xf32, #tpu.memory_space<vmem>>, vector<1x128xf32>
    %127 = arith.addf %125, %126 : vector<1x128xf32>
    %c0_79 = arith.constant 0 : index
    %c0_80 = arith.constant 0 : index
    %128 = vector.load %arg11[%c0_79, %c0_80] : memref<64x128xf32, #tpu.memory_space<vmem>>, vector<64x128xf32>
    %cst_81 = arith.constant dense<0.000000e+00> : vector<1x128xf32>
    %129 = tpu.matmul %3, %128, %cst_81 {dimension_numbers = #tpu.dot_dimension_numbers<[1], [0], [0], [1], [0, 0, 1, 1], [], []>} : vector<1x64xf32>, vector<64x128xf32>, vector<1x128xf32> -> vector<1x128xf32>
    %c0_82 = arith.constant 0 : index
    %c0_83 = arith.constant 0 : index
    %130 = vector.load %arg12[%c0_82, %c0_83] : memref<1x128xf32, #tpu.memory_space<vmem>>, vector<1x128xf32>
    %131 = arith.addf %129, %130 : vector<1x128xf32>
    %cst_84 = arith.constant dense<0.000000e+00> : vector<128xf32>
    %132 = vector.multi_reduction <add>, %123, %cst_84 [0] : vector<256x128xf32> to vector<128xf32>
    %133 = vector.shape_cast %132 : vector<128xf32> to vector<1x128xf32>
    %cst_85 = arith.constant 2.560000e+02 : f32
    %134 = vector.broadcast %cst_85 : f32 to vector<1x128xf32>
    %135 = arith.divf %133, %134 : vector<1x128xf32>
    %136 = vector.broadcast %135 : vector<1x128xf32> to vector<256x128xf32>
    %137 = arith.subf %123, %136 : vector<256x128xf32>
    %138 = arith.mulf %137, %137 : vector<256x128xf32>
    %cst_86 = arith.constant dense<0.000000e+00> : vector<128xf32>
    %139 = vector.multi_reduction <add>, %138, %cst_86 [0] : vector<256x128xf32> to vector<128xf32>
    %140 = vector.shape_cast %139 : vector<128xf32> to vector<1x128xf32>
    %cst_87 = arith.constant 2.560000e+02 : f32
    %141 = vector.broadcast %cst_87 : f32 to vector<1x128xf32>
    %142 = arith.divf %140, %141 : vector<1x128xf32>
    %cst_88 = arith.constant 1.000000e+00 : f32
    %143 = vector.broadcast %cst_88 : f32 to vector<1x128xf32>
    %144 = arith.addf %143, %127 : vector<1x128xf32>
    %145 = vector.broadcast %135 : vector<1x128xf32> to vector<256x128xf32>
    %146 = arith.subf %123, %145 : vector<256x128xf32>
    %cst_89 = arith.constant 9.99999974E-6 : f32
    %147 = vector.broadcast %cst_89 : f32 to vector<1x128xf32>
    %148 = arith.addf %142, %147 : vector<1x128xf32>
    %149 = math.rsqrt %148 : vector<1x128xf32>
    %150 = vector.broadcast %149 : vector<1x128xf32> to vector<256x128xf32>
    %151 = arith.mulf %146, %150 : vector<256x128xf32>
    %152 = vector.broadcast %144 : vector<1x128xf32> to vector<256x128xf32>
    %153 = arith.mulf %152, %151 : vector<256x128xf32>
    %154 = vector.broadcast %131 : vector<1x128xf32> to vector<256x128xf32>
    %155 = arith.addf %153, %154 : vector<256x128xf32>
    %cst_90 = arith.constant 0.000000e+00 : f32
    %156 = vector.broadcast %cst_90 : f32 to vector<256x128xf32>
    %157 = arith.cmpf oge, %155, %156 : vector<256x128xf32>
    %cst_91 = arith.constant 2.000000e-01 : f32
    %158 = vector.broadcast %cst_91 : f32 to vector<256x128xf32>
    %159 = arith.mulf %158, %155 : vector<256x128xf32>
    %160 = arith.select %157, %155, %159 : vector<256x128xi1>, vector<256x128xf32>
    %cst_92 = arith.constant 0.000000e+00 : f32
    %161 = vector.broadcast %cst_92 : f32 to vector<320x128xf32>
    %c0_93 = arith.constant 0 : index
    %c0_94 = arith.constant 0 : index
    %162 = vector.load %arg18[%c0_93, %c0_94] : memref<320x128xf32, #tpu.memory_space<vmem>>, vector<320x128xf32>
    tpu.vector_store %arg18[%c0_93, %c0_94], %161 {strides = array<i32>} : memref<320x128xf32, #tpu.memory_space<vmem>>, vector<320x128xf32>,
    %c32_95 = arith.constant 32 : index
    %c0_96 = arith.constant 0 : index
    %163 = vector.load %arg18[%c32_95, %c0_96] : memref<320x128xf32, #tpu.memory_space<vmem>>, vector<256x128xf32>
    tpu.vector_store %arg18[%c32_95, %c0_96], %160 {strides = array<i32>} : memref<320x128xf32, #tpu.memory_space<vmem>>, vector<256x128xf32>,
    %cst_97 = arith.constant 0.000000e+00 : f32
    %164 = vector.broadcast %cst_97 : f32 to vector<256x128xf32>
    %c15_98 = arith.constant 15 : index
    %c0_99 = arith.constant 0 : index
    %165 = vector.load %arg18[%c15_98, %c0_99] : memref<320x128xf32, #tpu.memory_space<vmem>>, vector<256x128xf32>
    %cst_100 = arith.constant 0.000000e+00 : f32
    %166 = vector.shape_cast %8 : vector<256x1xi1> to vector<256x1xi1>
    %167 = vector.broadcast %166 : vector<256x1xi1> to vector<256x128xi1>
    %168 = vector.broadcast %cst_100 : f32 to vector<256x128xf32>
    %169 = arith.select %167, %165, %168 : vector<256x128xi1>, vector<256x128xf32>
    %c0_101 = arith.constant 0 : index
    %c0_102 = arith.constant 0 : index
    %c0_103 = arith.constant 0 : index
    %170 = vector.load %arg13[%c0_101, %c0_102, %c0_103] : memref<9x128x128xf32, #tpu.memory_space<vmem>>, vector<1x128x128xf32>
    %171 = vector.shape_cast %170 : vector<1x128x128xf32> to vector<128x128xf32>
    %cst_104 = arith.constant dense<0.000000e+00> : vector<256x128xf32>
    %172 = tpu.matmul %169, %171, %cst_104 {dimension_numbers = #tpu.dot_dimension_numbers<[1], [0], [0], [1], [0, 0, 1, 1], [], []>} : vector<256x128xf32>, vector<128x128xf32>, vector<256x128xf32> -> vector<256x128xf32>
    %173 = arith.addf %164, %172 : vector<256x128xf32>
    %c16_105 = arith.constant 16 : index
    %c0_106 = arith.constant 0 : index
    %174 = vector.load %arg18[%c16_105, %c0_106] : memref<320x128xf32, #tpu.memory_space<vmem>>, vector<256x128xf32>
    %c1_107 = arith.constant 1 : index
    %c0_108 = arith.constant 0 : index
    %c0_109 = arith.constant 0 : index
    %175 = vector.load %arg13[%c1_107, %c0_108, %c0_109] : memref<9x128x128xf32, #tpu.memory_space<vmem>>, vector<1x128x128xf32>
    %176 = vector.shape_cast %175 : vector<1x128x128xf32> to vector<128x128xf32>
    %cst_110 = arith.constant dense<0.000000e+00> : vector<256x128xf32>
    %177 = tpu.matmul %174, %176, %cst_110 {dimension_numbers = #tpu.dot_dimension_numbers<[1], [0], [0], [1], [0, 0, 1, 1], [], []>} : vector<256x128xf32>, vector<128x128xf32>, vector<256x128xf32> -> vector<256x128xf32>
    %178 = arith.addf %173, %177 : vector<256x128xf32>
    %c17_111 = arith.constant 17 : index
    %c0_112 = arith.constant 0 : index
    %179 = vector.load %arg18[%c17_111, %c0_112] : memref<320x128xf32, #tpu.memory_space<vmem>>, vector<256x128xf32>
    %cst_113 = arith.constant 0.000000e+00 : f32
    %180 = vector.shape_cast %10 : vector<256x1xi1> to vector<256x1xi1>
    %181 = vector.broadcast %180 : vector<256x1xi1> to vector<256x128xi1>
    %182 = vector.broadcast %cst_113 : f32 to vector<256x128xf32>
    %183 = arith.select %181, %179, %182 : vector<256x128xi1>, vector<256x128xf32>
    %c2_114 = arith.constant 2 : index
    %c0_115 = arith.constant 0 : index
    %c0_116 = arith.constant 0 : index
    %184 = vector.load %arg13[%c2_114, %c0_115, %c0_116] : memref<9x128x128xf32, #tpu.memory_space<vmem>>, vector<1x128x128xf32>
    %185 = vector.shape_cast %184 : vector<1x128x128xf32> to vector<128x128xf32>
    %cst_117 = arith.constant dense<0.000000e+00> : vector<256x128xf32>
    %186 = tpu.matmul %183, %185, %cst_117 {dimension_numbers = #tpu.dot_dimension_numbers<[1], [0], [0], [1], [0, 0, 1, 1], [], []>} : vector<256x128xf32>, vector<128x128xf32>, vector<256x128xf32> -> vector<256x128xf32>
    %187 = arith.addf %178, %186 : vector<256x128xf32>
    %c31_118 = arith.constant 31 : index
    %c0_119 = arith.constant 0 : index
    %188 = vector.load %arg18[%c31_118, %c0_119] : memref<320x128xf32, #tpu.memory_space<vmem>>, vector<256x128xf32>
    %cst_120 = arith.constant 0.000000e+00 : f32
    %189 = vector.shape_cast %8 : vector<256x1xi1> to vector<256x1xi1>
    %190 = vector.broadcast %189 : vector<256x1xi1> to vector<256x128xi1>
    %191 = vector.broadcast %cst_120 : f32 to vector<256x128xf32>
    %192 = arith.select %190, %188, %191 : vector<256x128xi1>, vector<256x128xf32>
    %c3_121 = arith.constant 3 : index
    %c0_122 = arith.constant 0 : index
    %c0_123 = arith.constant 0 : index
    %193 = vector.load %arg13[%c3_121, %c0_122, %c0_123] : memref<9x128x128xf32, #tpu.memory_space<vmem>>, vector<1x128x128xf32>
    %194 = vector.shape_cast %193 : vector<1x128x128xf32> to vector<128x128xf32>
    %cst_124 = arith.constant dense<0.000000e+00> : vector<256x128xf32>
    %195 = tpu.matmul %192, %194, %cst_124 {dimension_numbers = #tpu.dot_dimension_numbers<[1], [0], [0], [1], [0, 0, 1, 1], [], []>} : vector<256x128xf32>, vector<128x128xf32>, vector<256x128xf32> -> vector<256x128xf32>
    %196 = arith.addf %187, %195 : vector<256x128xf32>
    %c32_125 = arith.constant 32 : index
    %c0_126 = arith.constant 0 : index
    %197 = vector.load %arg18[%c32_125, %c0_126] : memref<320x128xf32, #tpu.memory_space<vmem>>, vector<256x128xf32>
    %c4_127 = arith.constant 4 : index
    %c0_128 = arith.constant 0 : index
    %c0_129 = arith.constant 0 : index
    %198 = vector.load %arg13[%c4_127, %c0_128, %c0_129] : memref<9x128x128xf32, #tpu.memory_space<vmem>>, vector<1x128x128xf32>
    %199 = vector.shape_cast %198 : vector<1x128x128xf32> to vector<128x128xf32>
    %cst_130 = arith.constant dense<0.000000e+00> : vector<256x128xf32>
    %200 = tpu.matmul %197, %199, %cst_130 {dimension_numbers = #tpu.dot_dimension_numbers<[1], [0], [0], [1], [0, 0, 1, 1], [], []>} : vector<256x128xf32>, vector<128x128xf32>, vector<256x128xf32> -> vector<256x128xf32>
    %201 = arith.addf %196, %200 : vector<256x128xf32>
    %c33_131 = arith.constant 33 : index
    %c0_132 = arith.constant 0 : index
    %202 = vector.load %arg18[%c33_131, %c0_132] : memref<320x128xf32, #tpu.memory_space<vmem>>, vector<256x128xf32>
    %cst_133 = arith.constant 0.000000e+00 : f32
    %203 = vector.shape_cast %10 : vector<256x1xi1> to vector<256x1xi1>
    %204 = vector.broadcast %203 : vector<256x1xi1> to vector<256x128xi1>
    %205 = vector.broadcast %cst_133 : f32 to vector<256x128xf32>
    %206 = arith.select %204, %202, %205 : vector<256x128xi1>, vector<256x128xf32>
    %c5_134 = arith.constant 5 : index
    %c0_135 = arith.constant 0 : index
    %c0_136 = arith.constant 0 : index
    %207 = vector.load %arg13[%c5_134, %c0_135, %c0_136] : memref<9x128x128xf32, #tpu.memory_space<vmem>>, vector<1x128x128xf32>
    %208 = vector.shape_cast %207 : vector<1x128x128xf32> to vector<128x128xf32>
    %cst_137 = arith.constant dense<0.000000e+00> : vector<256x128xf32>
    %209 = tpu.matmul %206, %208, %cst_137 {dimension_numbers = #tpu.dot_dimension_numbers<[1], [0], [0], [1], [0, 0, 1, 1], [], []>} : vector<256x128xf32>, vector<128x128xf32>, vector<256x128xf32> -> vector<256x128xf32>
    %210 = arith.addf %201, %209 : vector<256x128xf32>
    %c47_138 = arith.constant 47 : index
    %c0_139 = arith.constant 0 : index
    %211 = vector.load %arg18[%c47_138, %c0_139] : memref<320x128xf32, #tpu.memory_space<vmem>>, vector<256x128xf32>
    %cst_140 = arith.constant 0.000000e+00 : f32
    %212 = vector.shape_cast %8 : vector<256x1xi1> to vector<256x1xi1>
    %213 = vector.broadcast %212 : vector<256x1xi1> to vector<256x128xi1>
    %214 = vector.broadcast %cst_140 : f32 to vector<256x128xf32>
    %215 = arith.select %213, %211, %214 : vector<256x128xi1>, vector<256x128xf32>
    %c6_141 = arith.constant 6 : index
    %c0_142 = arith.constant 0 : index
    %c0_143 = arith.constant 0 : index
    %216 = vector.load %arg13[%c6_141, %c0_142, %c0_143] : memref<9x128x128xf32, #tpu.memory_space<vmem>>, vector<1x128x128xf32>
    %217 = vector.shape_cast %216 : vector<1x128x128xf32> to vector<128x128xf32>
    %cst_144 = arith.constant dense<0.000000e+00> : vector<256x128xf32>
    %218 = tpu.matmul %215, %217, %cst_144 {dimension_numbers = #tpu.dot_dimension_numbers<[1], [0], [0], [1], [0, 0, 1, 1], [], []>} : vector<256x128xf32>, vector<128x128xf32>, vector<256x128xf32> -> vector<256x128xf32>
    %219 = arith.addf %210, %218 : vector<256x128xf32>
    %c48_145 = arith.constant 48 : index
    %c0_146 = arith.constant 0 : index
    %220 = vector.load %arg18[%c48_145, %c0_146] : memref<320x128xf32, #tpu.memory_space<vmem>>, vector<256x128xf32>
    %c7_147 = arith.constant 7 : index
    %c0_148 = arith.constant 0 : index
    %c0_149 = arith.constant 0 : index
    %221 = vector.load %arg13[%c7_147, %c0_148, %c0_149] : memref<9x128x128xf32, #tpu.memory_space<vmem>>, vector<1x128x128xf32>
    %222 = vector.shape_cast %221 : vector<1x128x128xf32> to vector<128x128xf32>
    %cst_150 = arith.constant dense<0.000000e+00> : vector<256x128xf32>
    %223 = tpu.matmul %220, %222, %cst_150 {dimension_numbers = #tpu.dot_dimension_numbers<[1], [0], [0], [1], [0, 0, 1, 1], [], []>} : vector<256x128xf32>, vector<128x128xf32>, vector<256x128xf32> -> vector<256x128xf32>
    %224 = arith.addf %219, %223 : vector<256x128xf32>
    %c49_151 = arith.constant 49 : index
    %c0_152 = arith.constant 0 : index
    %225 = vector.load %arg18[%c49_151, %c0_152] : memref<320x128xf32, #tpu.memory_space<vmem>>, vector<256x128xf32>
    %cst_153 = arith.constant 0.000000e+00 : f32
    %226 = vector.shape_cast %10 : vector<256x1xi1> to vector<256x1xi1>
    %227 = vector.broadcast %226 : vector<256x1xi1> to vector<256x128xi1>
    %228 = vector.broadcast %cst_153 : f32 to vector<256x128xf32>
    %229 = arith.select %227, %225, %228 : vector<256x128xi1>, vector<256x128xf32>
    %c8_154 = arith.constant 8 : index
    %c0_155 = arith.constant 0 : index
    %c0_156 = arith.constant 0 : index
    %230 = vector.load %arg13[%c8_154, %c0_155, %c0_156] : memref<9x128x128xf32, #tpu.memory_space<vmem>>, vector<1x128x128xf32>
    %231 = vector.shape_cast %230 : vector<1x128x128xf32> to vector<128x128xf32>
    %cst_157 = arith.constant dense<0.000000e+00> : vector<256x128xf32>
    %232 = tpu.matmul %229, %231, %cst_157 {dimension_numbers = #tpu.dot_dimension_numbers<[1], [0], [0], [1], [0, 0, 1, 1], [], []>} : vector<256x128xf32>, vector<128x128xf32>, vector<256x128xf32> -> vector<256x128xf32>
    %233 = arith.addf %224, %232 : vector<256x128xf32>
    %c0_158 = arith.constant 0 : index
    %c0_159 = arith.constant 0 : index
    %234 = vector.load %arg14[%c0_158, %c0_159] : memref<1x128xf32, #tpu.memory_space<vmem>>, vector<1x128xf32>
    %235 = vector.broadcast %234 : vector<1x128xf32> to vector<256x128xf32>
    %236 = arith.addf %233, %235 : vector<256x128xf32>
    %c0_160 = arith.constant 0 : index
    %c0_161 = arith.constant 0 : index
    %237 = vector.load %arg15[%c0_160, %c0_161] : memref<64x128xf32, #tpu.memory_space<vmem>>, vector<64x128xf32>
    %cst_162 = arith.constant dense<0.000000e+00> : vector<256x128xf32>
    %238 = tpu.matmul %1, %237, %cst_162 {dimension_numbers = #tpu.dot_dimension_numbers<[1], [0], [0], [1], [0, 0, 1, 1], [], []>} : vector<256x64xf32>, vector<64x128xf32>, vector<256x128xf32> -> vector<256x128xf32>
    %239 = arith.addf %236, %238 : vector<256x128xf32>
    %cst_163 = arith.constant 0.707106769 : f32
    %240 = vector.broadcast %cst_163 : f32 to vector<256x128xf32>
    %241 = arith.mulf %239, %240 : vector<256x128xf32>
    %c0_164 = arith.constant 0 : index
    %c0_165 = arith.constant 0 : index
    %c0_166 = arith.constant 0 : index
    %242 = vector.load %arg16[%c0_164, %c0_165, %c0_166] : memref<1x256x128xf32, #tpu.memory_space<vmem>>, vector<1x256x128xf32>
    %243 = vector.shape_cast %242 : vector<1x256x128xf32> to vector<256x128xf32>
    %244 = vector.shape_cast %241 : vector<256x128xf32> to vector<1x256x128xf32>
    tpu.vector_store %arg16[%c0_164, %c0_165, %c0_166], %244 {strides = array<i32>} : memref<1x256x128xf32, #tpu.memory_space<vmem>>, vector<1x256x128xf32>,
    return
  }
  func.func @transform_0(%arg0: i32) -> (i32, i32, i32) {
    %c0_i32 = arith.constant 0 : i32
    %c0_i32_0 = arith.constant 0 : i32
    %c0_i32_1 = arith.constant 0 : i32
    return %arg0, %c0_i32, %c0_i32_0 : i32, i32, i32
  }
  func.func @transform_1(%arg0: i32) -> (i32, i32, i32) {
    %c0_i32 = arith.constant 0 : i32
    %c0_i32_0 = arith.constant 0 : i32
    %c0_i32_1 = arith.constant 0 : i32
    return %arg0, %c0_i32, %c0_i32_0 : i32, i32, i32
  }
  func.func @transform_2(%arg0: i32) -> (i32, i32) {
    %c0_i32 = arith.constant 0 : i32
    %c0_i32_0 = arith.constant 0 : i32
    %c0_i32_1 = arith.constant 0 : i32
    return %c0_i32, %c0_i32_0 : i32, i32
  }
  func.func @transform_3(%arg0: i32) -> (i32, i32) {
    %c0_i32 = arith.constant 0 : i32
    %c0_i32_0 = arith.constant 0 : i32
    %c0_i32_1 = arith.constant 0 : i32
    return %c0_i32, %c0_i32_0 : i32, i32
  }
  func.func @transform_4(%arg0: i32) -> (i32, i32) {
    %c0_i32 = arith.constant 0 : i32
    %c0_i32_0 = arith.constant 0 : i32
    %c0_i32_1 = arith.constant 0 : i32
    return %c0_i32, %c0_i32_0 : i32, i32
  }
  func.func @transform_5(%arg0: i32) -> (i32, i32) {
    %c0_i32 = arith.constant 0 : i32
    %c0_i32_0 = arith.constant 0 : i32
    %c0_i32_1 = arith.constant 0 : i32
    return %c0_i32, %c0_i32_0 : i32, i32
  }
  func.func @transform_6(%arg0: i32) -> (i32, i32, i32) {
    %c0_i32 = arith.constant 0 : i32
    %c0_i32_0 = arith.constant 0 : i32
    %c0_i32_1 = arith.constant 0 : i32
    %c0_i32_2 = arith.constant 0 : i32
    return %c0_i32, %c0_i32_0, %c0_i32_1 : i32, i32, i32
  }
  func.func @transform_7(%arg0: i32) -> (i32, i32) {
    %c0_i32 = arith.constant 0 : i32
    %c0_i32_0 = arith.constant 0 : i32
    %c0_i32_1 = arith.constant 0 : i32
    return %c0_i32, %c0_i32_0 : i32, i32
  }
  func.func @transform_8(%arg0: i32) -> (i32, i32) {
    %c0_i32 = arith.constant 0 : i32
    %c0_i32_0 = arith.constant 0 : i32
    %c0_i32_1 = arith.constant 0 : i32
    return %c0_i32, %c0_i32_0 : i32, i32
  }
  func.func @transform_9(%arg0: i32) -> (i32, i32) {
    %c0_i32 = arith.constant 0 : i32
    %c0_i32_0 = arith.constant 0 : i32
    %c0_i32_1 = arith.constant 0 : i32
    return %c0_i32, %c0_i32_0 : i32, i32
  }
  func.func @transform_10(%arg0: i32) -> (i32, i32) {
    %c0_i32 = arith.constant 0 : i32
    %c0_i32_0 = arith.constant 0 : i32
    %c0_i32_1 = arith.constant 0 : i32
    return %c0_i32, %c0_i32_0 : i32, i32
  }
  func.func @transform_11(%arg0: i32) -> (i32, i32) {
    %c0_i32 = arith.constant 0 : i32
    %c0_i32_0 = arith.constant 0 : i32
    %c0_i32_1 = arith.constant 0 : i32
    return %c0_i32, %c0_i32_0 : i32, i32
  }
  func.func @transform_12(%arg0: i32) -> (i32, i32, i32) {
    %c0_i32 = arith.constant 0 : i32
    %c0_i32_0 = arith.constant 0 : i32
    %c0_i32_1 = arith.constant 0 : i32
    %c0_i32_2 = arith.constant 0 : i32
    return %c0_i32, %c0_i32_0, %c0_i32_1 : i32, i32, i32
  }
  func.func @transform_13(%arg0: i32) -> (i32, i32) {
    %c0_i32 = arith.constant 0 : i32
    %c0_i32_0 = arith.constant 0 : i32
    %c0_i32_1 = arith.constant 0 : i32
    return %c0_i32, %c0_i32_0 : i32, i32
  }
  func.func @transform_14(%arg0: i32) -> (i32, i32) {
    %c0_i32 = arith.constant 0 : i32
    %c0_i32_0 = arith.constant 0 : i32
    %c0_i32_1 = arith.constant 0 : i32
    return %c0_i32, %c0_i32_0 : i32, i32
  }
  func.func @transform_15(%arg0: i32) -> (i32, i32, i32) {
    %c0_i32 = arith.constant 0 : i32
    %c0_i32_0 = arith.constant 0 : i32
    %c0_i32_1 = arith.constant 0 : i32
    return %arg0, %c0_i32, %c0_i32_0 : i32, i32, i32
  }
}

</mosaic_0001>

<bundles_post_ra>
// kernel: tpu_custom_call.1
= control target key start
LH: loop header
LB: loop body
LE: loop exit
PB: predicated region body
PF: predicated region fallthrough
CT: control target
= control target key end

     0   :  { %20 = vsyncpa [#allocation5], 0  ;;  %s17269_s0 = inlined_call_operand.vmem [shape: f32[2,256,64], index: 0, kind: input, shape index: {}]   ;;  %s17270_s1 = inlined_call_operand.vmem [shape: f32[2,1,64], index: 1, kind: input, shape index: {}]   ;;  %s17271_s2 = inlined_call_operand.vmem [shape: f32[64,64], index: 2, kind: input, shape index: {}]   ;;  %s17272_s3 = inlined_call_operand.vmem [shape: f32[1,64], index: 3, kind: input, shape index: {}]   ;;  %s17273_s4 = inlined_call_operand.vmem [shape: f32[64,64], index: 4, kind: input, shape index: {}]   ;;  %s17274_s5 = inlined_call_operand.vmem [shape: f32[1,64], index: 5, kind: input, shape index: {}]   ;;  %s17275_s6 = inlined_call_operand.vmem [shape: f32[9,64,128], index: 6, kind: input, shape index: {}]   ;;  %s17276_s7 = inlined_call_operand.vmem [shape: f32[1,128], index: 7, kind: input, shape index: {}]   ;;  %s17277_s8 = inlined_call_operand.vmem [shape: f32[64,128], index: 8, kind: input, shape index: {}]   ;;  %s17278_s9 = inlined_call_operand.vmem [shape: f32[1,128], index: 9, kind: input, shape index: {}]   ;;  %s17279_s10 = inlined_call_operand.hbm [shape: f32[64,128], index: 10, kind: input, shape index: {}]   ;;  %s17280_s11 = inlined_call_operand.vmem [shape: f32[1,128], index: 11, kind: input, shape index: {}]   ;;  %s17281_s12 = inlined_call_operand.hbm [shape: f32[9,128,128], index: 12, kind: input, shape index: {}]   ;;  %s17282_s13 = inlined_call_operand.vmem [shape: f32[1,128], index: 13, kind: input, shape index: {}]   ;;  %s17283_s14 = inlined_call_operand.hbm [shape: f32[64,128], index: 14, kind: input, shape index: {}]   ;;  %s17284_s15 = inlined_call_operand.hbm [shape: f32[2,256,128], index: 15, kind: output, shape index: {}]  }
   0x1   :  { %21 = vsyncpa [#allocation8], 0 }
   0x2   :  { %22 = vsyncpa [#allocation6], 0 }
   0x3   :  { %24 = vsyncpa [#allocation6 + $0x1], 0  ;;  %s12409_s18 = smov 0   ;;  %s12411_s19 = smov 0  }
   0x4   :  { %s12413_s20 = smov 0   ;;  %s12415_s21 = smov 0  }
   0x5 LB: > { %17450 = sst [smem:[#allocation14_spill]] %s12305_s18  ;;  %s12430_s22 = sadd.s32 4294967295, %s12317_s21   ;;  %s12317_s21 = sphi %s12415_s21, %s17976_s21   ;;  %s12313_s20 = sphi %s12413_s20, %s17978_s20   ;;  %s12309_s19 = sphi %s12411_s19, %s17980_s19   ;;  %s12305_s18 = sphi %s12409_s18, %s17979_s18  }
   0x6   : > { %17451 = sst [smem:[#allocation15_spill]] %s12313_s20  ;;  %s9229_s23 = sadd.s32 4294967294, %s12317_s21  }
   0x7   : > { %17452 = sst [smem:[#allocation16_spill]] %s12317_s21  ;;  %s12434_s24 = sadd.s32 1, %s12317_s21  }
   0x8   : > { %17453 = sst [smem:[#allocation17_spill]] %s12434_s24  ;;  %s362_s25 = sadd.s32 1, %s12313_s20 }
   0x9   : > { %s359_s26 = ssub.s32 %s12317_s21, %s12434_s24  ;;  %p372_p0 = scmp.ne.s32.totalorder %s12313_s20, %s12309_s19 }
   0xa   : > { %p360_p1 = scmp.eq.s32.totalorder %s359_s26, 0  ;;  %p373_p2 = scmp.eq.s32.totalorder %s12430_s22, 1 }
   0xb   : > { %p378_p3 = scmp.ne.s32.totalorder %s12309_s19, %s12305_s18  ;;  %p379_p4 = scmp.eq.s32.totalorder %s9229_s23, 1 }
   0xc   : > { %s12445_s27 = scalar_select %p360_p1, %s12313_s20, %s362_s25  }
   0xd   : > { %p12447_p5 = por %p373_p2, %p372_p0  ;;  %p12451_p6 = por %p379_p4, %p378_p3 }
   0xe   : > { %17454 = sst [smem:[#allocation18_spill]] %s12445_s27  ;;  %p9230_p7 = scmp.ge.s32.totalorder %s12317_s21, 1 }
   0xf   : > { %s17455_s28 = scalar_select %p12447_p5, 1, 0 }
  0x10   : > { %s17456_s29 = scalar_select %p12451_p6, 1, 0 }
  0x11   : > { %p386_p8 = scmp.lt.s32.totalorder %s12317_s21, 3  ;;  %p17290_p9 = scmp.eq.s32.totalorder %s12430_s22, 0 }
  0x12   : > { %17457 = sst [smem:[#allocation19_spill]] %s17456_s29  ;;  %s12319_s16 = smov [#allocation7]  }
  0x13   : > { %p12458_p10 = pnand %p9230_p7, %p386_p8  ;;  %s438_s17 = sshll.u32 %s12319_s16, 4  ;;  %s439_s17 = int_to_ptr.vmem [resolvable:$true] %s438_s17 }
  0x14   : > { %s12320_s25 = smov [#allocation4]   ;;  %s12321_s27 = smov [#allocation9]  }
  0x15   : > { %p12069_p11 = pneg %p12458_p10  ;;  %s422_s26 = sshll.u32 %s12320_s25, 4  ;;  %s423_s26 = int_to_ptr.vmem [resolvable:$true] %s422_s26 }
  0x16   : > { %s454_s20 = sshll.u32 %s12321_s27, 4  ;;  %s12182_s24 = scalar_lea.vmem %s439_s17, 18432  ;;  %s455_s20 = int_to_ptr.vmem [resolvable:$true] %s454_s20 }
  0x17   : > { %p12466_p12 = pnand %p17290_p9, %p12069_p11  ;;  %p12183_p0 = scmp.ne.s32.totalorder %s439_s17, %s12182_s24 }
  0x18   : > { %p12190_p3 = scmp.lt.s32.totalorder %s439_s17, %s439_s17  ;;  %p12191_p4 = scmp.lt.s32.totalorder %s12182_s24, %s12182_s24 }
  0x19   : > { %p12173_p13 = pneg %p12466_p12 }
  0x1a   : > { %p12192_p7 = por %p12191_p4, %p12190_p3 }
  0x1b   : > { %p12185_p1 = pnand %p12183_p0, %p12173_p13 }
  0x1d   : > { %p12186_p2 = pneg %p12185_p1 }
  0x1f   : > { %p12193_p8 = pnand %p12192_p7, %p12186_p2 }
  0x21   : > { %12196 = shalt.err (!%p12193_p8)
}
  0x22   : > { %s12322_s16 = smov 128   ;;  %s12323_s25 = smov 8  }
  0x23   : > { %12075 = dma.hbm_to_vmem [thread:$0]  (!%p12466_p12), %s17281_s12, 18432, %s439_s17, [#allocation8], %s12322_s16, %s12322_s16, %s12323_s25  }
  0x24   : > { %s12208_s18 = scalar_lea.vmem %s423_s26, 1024  ;;  %p12216_p9 = scmp.lt.s32.totalorder %s423_s26, %s423_s26 }
  0x25   : > { %p12209_p11 = scmp.ne.s32.totalorder %s423_s26, %s12208_s18  ;;  %p12217_p6 = scmp.lt.s32.totalorder %s12208_s18, %s12208_s18 }
  0x27   : > { %p12211_p0 = pnand %p12209_p11, %p12173_p13  ;;  %p12218_p3 = por %p12217_p6, %p12216_p9 }
  0x29   : > { %p12212_p1 = pneg %p12211_p0 }
  0x2b   : > { %p12219_p2 = pnand %p12218_p3, %p12212_p1 }
  0x2d   : > { %12222 = shalt.err (!%p12219_p2)
}
  0x2e   : > { %12072 = dma.hbm_to_vmem [thread:$0]  (!%p12466_p12), %s17279_s10, 1024, %s423_s26, [#allocation5], %s12322_s16, %s12322_s16, %s12323_s25  }
  0x2f   : > { %s12234_s29 = scalar_lea.vmem %s455_s20, 1024  ;;  %p12242_p11 = scmp.lt.s32.totalorder %s455_s20, %s455_s20 }
  0x30   : > { %p12235_p4 = scmp.ne.s32.totalorder %s455_s20, %s12234_s29  ;;  %p12243_p0 = scmp.lt.s32.totalorder %s12234_s29, %s12234_s29 }
  0x32   : > { %p12237_p7 = pnand %p12235_p4, %p12173_p13  ;;  %p12244_p5 = por %p12243_p0, %p12242_p11 }
  0x34   : > { %p12238_p8 = pneg %p12237_p7 }
  0x36   : > { %p12245_p6 = pnand %p12244_p5, %p12238_p8 }
  0x38   : > { %12248 = shalt.err (!%p12245_p6)
}
  0x39   : > { %12078 = dma.hbm_to_vmem [thread:$0]  (!%p12466_p12), %s17283_s14, 1024, %s455_s20, [#allocation8], %s12322_s16, %s12322_s16, %s12323_s25  }
  0x3a   : > { %484 = sbr.rel (%p12458_p10) target bundleno = 1508 (0x5e4), region = 80 }
  0x3f   : > { %p17460_p9 = scmp.eq.s32.totalorder %s12430_s22, 0 }
  0x41   : > { %12292 = dma.done.wait (%p17460_p9), [#allocation5], 1024   ;;  %p17461_p13 = pmov %p17460_p9 }
  0x42   : > { %p17462_p1 = pmov %p17460_p9 }
  0x43   : > { %12294 = vsyncadd (%p17461_p13), [#allocation5], 4294966272 }
  0x44   : > { %12296 = dma.done.wait (%p17462_p1), [#allocation8], 19456   ;;  %p17463_p5 = pmov %p17462_p1 }
  0x45   : > { %vm17406_vm0 = vcmask 523264   ;;  %v12324_v0 = vmov 0.0   ;;  %p543_p10 = scmp.lt.s32.totalorder %s12430_s22, 1  ;;  %vm17293_vm1 = vmmov 0   ;;  %v720_v1 = vld [vmem:[%s17271_s2 + $0x38] sm:$0xff]  ;;  %v719_v2 = vld [vmem:[%s17271_s2 + $0x30] sm:$0xff] }
  0x46   : > { %12298 = vsyncadd (%p17463_p5), [#allocation8], 4294947840  ;;  %5696 = vst [vmem:[#allocation3] sm:$0xff] %v12324_v0  ;;  %10603 = vmatprep.subr.mxu0 %v12324_v0  ;;  %10622 = vmatprep.subr.mxu1 %v12324_v0  ;;  %v803_v3 = vld [vmem:[%s17273_s4 + $0x38] sm:$0xff]  ;;  %v802_v4 = vld [vmem:[%s17273_s4 + $0x30] sm:$0xff]  ;;  %s9734_s17 = sshll.u32 %s12430_s22, 12 }
  0x47   : > { %1284 = vst.msk [vmem:[#allocation2 + $0x8] sm:$0xff] %vm17406_vm0, %v12324_v0  ;;  %1285 = vst.msk [vmem:[#allocation2 + $0x10] sm:$0xff] %vm17406_vm0, %v12324_v0  ;;  %10619 = vmatprep.mubr.msk.f32.mxu0 %vm17293_vm1, %v12324_v0  ;;  %10638 = vmatprep.mubr.msk.f32.mxu1 %vm17293_vm1, %v12324_v0  ;;  %s12597_s20 = scalar_select %p543_p10, %s12430_s22, 1  ;;  %v718_v5 = vld [vmem:[%s17271_s2 + $0x28] sm:$0xff]  ;;  %v717_v7 = vld [vmem:[%s17271_s2 + $0x20] sm:$0xff] }
  0x48   : > { %1286 = vst.msk [vmem:[#allocation2 + $0x18] sm:$0xff] %vm17406_vm0, %v12324_v0  ;;  %1287 = vst.msk [vmem:[#allocation2 + $0x20] sm:$0xff] %vm17406_vm0, %v12324_v0  ;;  %10604 = vmatpush3.msra.mxu0 %v720_v1  ;;  %10623 = vmatpush3.msra.mxu1 %v803_v3  ;;  %v801_v6 = vld [vmem:[%s17273_s4 + $0x28] sm:$0xff]  ;;  %v800_v8 = vld [vmem:[%s17273_s4 + $0x20] sm:$0xff]  ;;  %s17221_s26 = scalar_lea.hbm %s17284_s15, %s9734_s17  ;;  %p17971_p3 = scmp.ne.s32.totalorder %s17455_s28, 0 }
  0x49   : > { %1288 = vst.msk [vmem:[#allocation2 + $0x28] sm:$0xff] %vm17406_vm0, %v12324_v0  ;;  %1289 = vst.msk [vmem:[#allocation2 + $0x30] sm:$0xff] %vm17406_vm0, %v12324_v0  ;;  %s9733_s27 = sshll.u32 %s12597_s20, 8  ;;  %10605 = vmatprep.subr.mxu0 %v12324_v0  ;;  %10624 = vmatprep.subr.mxu1 %v12324_v0  ;;  %v716_v9 = vld [vmem:[%s17271_s2 + $0x18] sm:$0xff]  ;;  %v715_v18 = vld [vmem:[%s17271_s2 + $0x10] sm:$0xff]  ;;  %s12684_s23 = scalar_lea.vmem %s17270_s1, %s12597_s20 }
  0x4a   : > { %1290 = vst.msk [vmem:[#allocation2 + $0x38] sm:$0xff] %vm17406_vm0, %v12324_v0  ;;  %1291 = vst.msk [vmem:[#allocation2 + $0x40] sm:$0xff] %vm17406_vm0, %v12324_v0  ;;  %10606 = vmatpush3.msra.mxu0 %v719_v2  ;;  %10625 = vmatpush3.msra.mxu1 %v802_v4  ;;  %s12623_s16 = scalar_lea.vmem %s17269_s0, %s9733_s27  ;;  %v799_v10 = vld [vmem:[%s17273_s4 + $0x18] sm:$0xff]  ;;  %v798_v19 = vld [vmem:[%s17273_s4 + $0x10] sm:$0xff]  ;;  %s12326_s20 = smov [#allocation10]  }
  0x4b   : > { %1292 = vst.msk [vmem:[#allocation2 + $0x48] sm:$0xff] %vm17406_vm0, %v12324_v0  ;;  %1293 = vst.msk [vmem:[#allocation2 + $0x50] sm:$0xff] %vm17406_vm0, %v12324_v0  ;;  %10607 = vmatprep.subr.mxu0 %v12324_v0  ;;  %10626 = vmatprep.subr.mxu1 %v12324_v0  ;;  %v12642_v11 = vld [vmem:[%s12623_s16] sm:$0xff]  ;;  %v12645_v12 = vld [vmem:[%s12623_s16 + $0x8] sm:$0xff]  ;;  %s12253_s24 = sshll.u32 %s12326_s20, 4  ;;  %s12254_s24 = int_to_ptr.vmem [resolvable:$false] %s12253_s24 }
  0x4c   : > { %1294 = vst.msk [vmem:[#allocation2 + $0x58] sm:$0xff] %vm17406_vm0, %v12324_v0  ;;  %1295 = vst.msk [vmem:[#allocation2 + $0x60] sm:$0xff] %vm17406_vm0, %v12324_v0  ;;  %10608 = vmatpush3.msra.mxu0 %v718_v5  ;;  %10627 = vmatpush3.msra.mxu1 %v801_v6  ;;  %v12648_v13 = vld [vmem:[%s12623_s16 + $0x10] sm:$0xff]  ;;  %v12651_v14 = vld [vmem:[%s12623_s16 + $0x18] sm:$0xff]  ;;  %v875_v15 = vsel %vm17406_vm0, %v12642_v11, 0.0  ;;  %v876_v16 = vsel %vm17406_vm0, %v12645_v12, 0.0 }
  0x4d   : > { %1296 = vst.msk [vmem:[#allocation2 + $0x68] sm:$0xff] %vm17406_vm0, %v12324_v0  ;;  %1297 = vst.msk [vmem:[#allocation2 + $0x70] sm:$0xff] %vm17406_vm0, %v12324_v0  ;;  %10609 = vmatprep.subr.mxu0 %v12324_v0  ;;  %10628 = vmatprep.subr.mxu1 %v12324_v0  ;;  %v878_v17 = vsel %vm17406_vm0, %v12648_v13, 0.0  ;;  %v12668_v20 = vld [vmem:[%s12623_s16 + $0x20] sm:$0xff]  ;;  %v877_v21 = vadd.f32 %v876_v16, %v875_v15  ;;  %v880_v22 = vsel %vm17406_vm0, %v12651_v14, 0.0  ;;  %v714_v23 = vld [vmem:[%s17271_s2 + $0x8] sm:$0xff] }
  0x4e   : > { %1298 = vst.msk [vmem:[#allocation2 + $0x78] sm:$0xff] %vm17406_vm0, %v12324_v0  ;;  %1299 = vst.msk [vmem:[#allocation2 + $0x80] sm:$0xff] %vm17406_vm0, %v12324_v0  ;;  %10610 = vmatpush3.msra.mxu0 %v717_v7  ;;  %10629 = vmatpush3.msra.mxu1 %v800_v8  ;;  %v797_v24 = vld [vmem:[%s17273_s4 + $0x8] sm:$0xff]  ;;  %v882_v27 = vsel %vm17406_vm0, %v12668_v20, 0.0  ;;  %v713_v28 = vld [vmem:[%s17271_s2] sm:$0xff]  ;;  %s12255_s29 = scalar_lea.vmem %s12254_s24, 8192 }
  0x4f   : > { %1300 = vst.msk [vmem:[#allocation2 + $0x88] sm:$0xff] %vm17406_vm0, %v12324_v0  ;;  %1301 = vst.msk [vmem:[#allocation2 + $0x90] sm:$0xff] %vm17406_vm0, %v12324_v0  ;;  %10611 = vmatprep.subr.mxu0 %v12324_v0  ;;  %10630 = vmatprep.subr.mxu1 %v12324_v0  ;;  %v12687_v25 = vld [vmem:[%s12623_s16 + $0x28] sm:$0xff]  ;;  %v879_v26 = vadd.f32 %v878_v17, %v877_v21  ;;  %v796_v29 = vld [vmem:[%s17273_s4] sm:$0xff] }
  0x50   : > { %1302 = vst.msk [vmem:[#allocation2 + $0x98] sm:$0xff] %vm17406_vm0, %v12324_v0  ;;  %1303 = vst.msk [vmem:[#allocation2 + $0xa0] sm:$0xff] %vm17406_vm0, %v12324_v0  ;;  %10612 = vmatpush3.msra.mxu0 %v716_v9  ;;  %10631 = vmatpush3.msra.mxu1 %v799_v10  ;;  %v12700_v30 = vld [vmem:[%s12623_s16 + $0x30] sm:$0xff]  ;;  %v583_v32 = vld [vmem:[%s12684_s23] sm:$0x1]  ;;  %v884_v33 = vsel %vm17406_vm0, %v12687_v25, 0.0 }
  0x51   : > { %1304 = vst.msk [vmem:[#allocation2 + $0xa8] sm:$0xff] %vm17406_vm0, %v12324_v0  ;;  %1305 = vst.msk [vmem:[#allocation2 + $0xb0] sm:$0xff] %vm17406_vm0, %v12324_v0  ;;  %10613 = vmatprep.subr.mxu0 %v12324_v0  ;;  %10632 = vmatprep.subr.mxu1 %v12324_v0  ;;  %v881_v31 = vadd.f32 %v880_v22, %v879_v26  ;;  %v12708_v34 = vld [vmem:[%s12623_s16 + $0x38] sm:$0xff]  ;;  %v886_v36 = vsel %vm17406_vm0, %v12700_v30, 0.0  ;;  %v12715_v37 = vld [vmem:[%s12623_s16 + $0x40] sm:$0xff] }
  0x52   : > { %1306 = vst.msk [vmem:[#allocation2 + $0xb8] sm:$0xff] %vm17406_vm0, %v12324_v0  ;;  %1307 = vst.msk [vmem:[#allocation2 + $0xc0] sm:$0xff] %vm17406_vm0, %v12324_v0  ;;  %10614 = vmatpush3.msra.mxu0 %v715_v18  ;;  %10633 = vmatpush3.msra.mxu1 %v798_v19  ;;  %v888_v39 = vsel %vm17406_vm0, %v12708_v34, 0.0  ;;  %v12720_v40 = vld [vmem:[%s12623_s16 + $0x48] sm:$0xff]  ;;  %v890_v42 = vsel %vm17406_vm0, %v12715_v37, 0.0  ;;  %v12725_v43 = vld [vmem:[%s12623_s16 + $0x50] sm:$0xff] }
  0x53   : > { %1308 = vst.msk [vmem:[#allocation2 + $0xc8] sm:$0xff] %vm17406_vm0, %v12324_v0  ;;  %1309 = vst.msk [vmem:[#allocation2 + $0xd0] sm:$0xff] %vm17406_vm0, %v12324_v0  ;;  %10615 = vmatprep.subr.mxu0 %v12324_v0  ;;  %10634 = vmatprep.subr.mxu1 %v12324_v0  ;;  %v883_v35 = vadd.f32 %v882_v27, %v881_v31  ;;  %v892_v45 = vsel %vm17406_vm0, %v12720_v40, 0.0  ;;  %v12730_v46 = vld [vmem:[%s12623_s16 + $0x58] sm:$0xff]  ;;  %v894_v48 = vsel %vm17406_vm0, %v12725_v43, 0.0  ;;  %v12735_v49 = vld [vmem:[%s12623_s16 + $0x60] sm:$0xff] }
  0x54   : > { %1310 = vst.msk [vmem:[#allocation2 + $0xd8] sm:$0xff] %vm17406_vm0, %v12324_v0  ;;  %1311 = vst.msk [vmem:[#allocation2 + $0xe0] sm:$0xff] %vm17406_vm0, %v12324_v0  ;;  %10616 = vmatpush3.msra.mxu0 %v714_v23  ;;  %10635 = vmatpush3.msra.mxu1 %v797_v24  ;;  %v896_v51 = vsel %vm17406_vm0, %v12730_v46, 0.0  ;;  %v12740_v52 = vld [vmem:[%s12623_s16 + $0x68] sm:$0xff]  ;;  %v898_v54 = vsel %vm17406_vm0, %v12735_v49, 0.0  ;;  %v12745_v55 = vld [vmem:[%s12623_s16 + $0x70] sm:$0xff] }
  0x55   : > { %1312 = vst.msk [vmem:[#allocation2 + $0xe8] sm:$0xff] %vm17406_vm0, %v12324_v0  ;;  %1313 = vst.msk [vmem:[#allocation2 + $0xf0] sm:$0xff] %vm17406_vm0, %v12324_v0  ;;  %10617 = vmatprep.subr.mxu0 %v12324_v0  ;;  %10636 = vmatprep.subr.mxu1 %v12324_v0  ;;  %v885_v38 = vadd.f32 %v884_v33, %v883_v35  ;;  %v900_v57 = vsel %vm17406_vm0, %v12740_v52, 0.0  ;;  %v12750_v58 = vld [vmem:[%s12623_s16 + $0x78] sm:$0xff]  ;;  %v902_v60 = vsel %vm17406_vm0, %v12745_v55, 0.0  ;;  %v12755_v61 = vld [vmem:[%s12623_s16 + $0x80] sm:$0xff] }
  0x56   : > { %1314 = vst.msk [vmem:[#allocation2 + $0xf8] sm:$0xff] %vm17406_vm0, %v12324_v0  ;;  %1315 = vst.msk [vmem:[#allocation2 + $0x100] sm:$0xff] %vm17406_vm0, %v12324_v0  ;;  %10618 = vmatpush3.msra.mxu0 %v713_v28  ;;  %10637 = vmatpush3.msra.mxu1 %v796_v29  ;;  %v904_v63 = vsel %vm17406_vm0, %v12750_v58, 0.0  ;;  %v906_v2 = vsel %vm17406_vm0, %v12755_v61, 0.0  ;;  %v12765_v3 = vld [vmem:[%s12623_s16 + $0x90] sm:$0xff]  ;;  %v12770_v6 = vld [vmem:[%s12623_s16 + $0x98] sm:$0xff] }
  0x57   : > { %1316 = vst.msk [vmem:[#allocation2 + $0x108] sm:$0xff] %vm17406_vm0, %v12324_v0  ;;  %1317 = vst.msk [vmem:[#allocation2 + $0x110] sm:$0xff] %vm17406_vm0, %v12324_v0  ;;  %10620 = vmatmul.mubr.msk.f32.vlgmr.msra.gmra.mxu0 %vm17406_vm0, %v583_v32  ;;  %10639 = vmatmul.mubr.msk.f32.vlgmr.msra.gmra.mxu1 %vm17406_vm0, %v583_v32  ;;  %v887_v41 = vadd.f32 %v886_v36, %v885_v38  ;;  %v910_v8 = vsel %vm17406_vm0, %v12765_v3, 0.0  ;;  %v12775_v9 = vld [vmem:[%s12623_s16 + $0xa0] sm:$0xff]  ;;  %v912_v15 = vsel %vm17406_vm0, %v12770_v6, 0.0  ;;  %v12780_v16 = vld [vmem:[%s12623_s16 + $0xa8] sm:$0xff] }
  0x58   : > { %1318 = vst.msk [vmem:[#allocation2 + $0x118] sm:$0xff] %vm17406_vm0, %v12324_v0  ;;  %1319 = vst.msk [vmem:[#allocation2 + $0x120] sm:$0xff] %vm17406_vm0, %v12324_v0  ;;  %v914_v18 = vsel %vm17406_vm0, %v12775_v9, 0.0  ;;  %v12785_v19 = vld [vmem:[%s12623_s16 + $0xb0] sm:$0xff]  ;;  %v916_v22 = vsel %vm17406_vm0, %v12780_v16, 0.0  ;;  %v12790_v23 = vld [vmem:[%s12623_s16 + $0xb8] sm:$0xff] }
  0x59   : > { %1320 = vst.msk [vmem:[#allocation2 + $0x128] sm:$0xff] %vm17406_vm0, %v12324_v0  ;;  %1321 = vst.msk [vmem:[#allocation2 + $0x130] sm:$0xff] %vm17406_vm0, %v12324_v0  ;;  %v889_v44 = vadd.f32 %v888_v39, %v887_v41  ;;  %v918_v26 = vsel %vm17406_vm0, %v12785_v19, 0.0  ;;  %v12795_v27 = vld [vmem:[%s12623_s16 + $0xc0] sm:$0xff]  ;;  %v920_v29 = vsel %vm17406_vm0, %v12790_v23, 0.0  ;;  %v12800_v31 = vld [vmem:[%s12623_s16 + $0xc8] sm:$0xff] }
  0x5a   : > { %5697 = vst [vmem:[#allocation3 + $0x8] sm:$0xff] %v12324_v0  ;;  %5698 = vst [vmem:[#allocation3 + $0x10] sm:$0xff] %v12324_v0  ;;  %v922_v33 = vsel %vm17406_vm0, %v12795_v27, 0.0  ;;  %v12805_v35 = vld [vmem:[%s12623_s16 + $0xd0] sm:$0xff]  ;;  %v924_v38 = vsel %vm17406_vm0, %v12800_v31, 0.0  ;;  %v12810_v39 = vld [vmem:[%s12623_s16 + $0xd8] sm:$0xff] }
  0x5b   : > { %5699 = vst [vmem:[#allocation3 + $0x18] sm:$0xff] %v12324_v0  ;;  %5732 = vst [vmem:[#allocation3 + $0x120] sm:$0xff] %v12324_v0  ;;  %v891_v47 = vadd.f32 %v890_v42, %v889_v44  ;;  %v926_v42 = vsel %vm17406_vm0, %v12805_v35, 0.0  ;;  %v12815_v44 = vld [vmem:[%s12623_s16 + $0xe0] sm:$0xff] }
  0x5c   : > { %5733 = vst [vmem:[#allocation3 + $0x128] sm:$0xff] %v12324_v0  ;;  %5734 = vst [vmem:[#allocation3 + $0x130] sm:$0xff] %v12324_v0  ;;  %v12760_v0 = vld [vmem:[%s12623_s16 + $0x88] sm:$0xff] }
  0x5d   : > { %v893_v50 = vadd.f32 %v892_v45, %v891_v47  ;;  %v908_v5 = vsel %vm17406_vm0, %v12760_v0, 0.0  ;;  %v928_v47 = vsel %vm17406_vm0, %v12810_v39, 0.0 }
  0x5f   : > { %v895_v53 = vadd.f32 %v894_v48, %v893_v50  ;;  %v12820_v48 = vld [vmem:[%s12623_s16 + $0xe8] sm:$0xff] }
  0x61   : > { %v897_v56 = vadd.f32 %v896_v51, %v895_v53  ;;  %v930_v51 = vsel %vm17406_vm0, %v12815_v44, 0.0  ;;  %v12825_v53 = vld [vmem:[%s12623_s16 + $0xf0] sm:$0xff] }
  0x63   : > { %v899_v59 = vadd.f32 %v898_v54, %v897_v56  ;;  %v932_v56 = vsel %vm17406_vm0, %v12820_v48, 0.0 }
  0x65   : > { %v901_v62 = vadd.f32 %v900_v57, %v899_v59  ;;  %v12830_v57 = vld [vmem:[%s12623_s16 + $0xf8] sm:$0xff] }
  0x67   : > { %v903_v1 = vadd.f32 %v902_v60, %v901_v62  ;;  %v934_v60 = vsel %vm17406_vm0, %v12825_v53, 0.0 }
  0x69   : > { %v905_v4 = vadd.f32 %v904_v63, %v903_v1  ;;  %v936_v63 = vsel %vm17406_vm0, %v12830_v57, 0.0 }
  0x6b   : > { %v907_v7 = vadd.f32 %v906_v2, %v905_v4 }
  0x6d   : > { %v909_v10 = vadd.f32 %v908_v5, %v907_v7 }
  0x6f   : > { %v911_v17 = vadd.f32 %v910_v8, %v909_v10  ;;  %v9251_v10 = vld [vmem:[%s17275_s6 + $0x78] sm:$0xff] }
  0x70   : > { %10641 = vmatprep.subr.mxu0 %v9251_v10 }
  0x71   : > { %v913_v21 = vadd.f32 %v912_v15, %v911_v17  ;;  %v1490_v15 = vld [vmem:[%s17275_s6 + $0x38] sm:$0xff]  ;;  %10642 = vmatpush3.msra.mxu0 %v9251_v10 }
  0x72   : > { %10705 = vmatprep.subr.mxu1 %v1490_v15 }
  0x73   : > { %v915_v24 = vadd.f32 %v914_v18, %v913_v21  ;;  %v584_v18 = vlaneseq  ;;  %10706 = vmatpush3.msra.mxu1 %v1490_v15  ;;  %v9250_v21 = vld [vmem:[%s17275_s6 + $0x70] sm:$0xff] }
  0x74   : > { %10643 = vmatprep.subr.mxu0 %v9250_v21 }
  0x75   : > { %v917_v28 = vadd.f32 %v916_v22, %v915_v24  ;;  %v1489_v22 = vld [vmem:[%s17275_s6 + $0x30] sm:$0xff]  ;;  %10644 = vmatpush3.msra.mxu0 %v9250_v21  ;;  %v9249_v24 = vld [vmem:[%s17275_s6 + $0x68] sm:$0xff] }
  0x76   : > { %10707 = vmatprep.subr.mxu1 %v1489_v22  ;;  %10645 = vmatprep.subr.mxu0 %v9249_v24 }
  0x77   : > { %v919_v32 = vadd.f32 %v918_v26, %v917_v28  ;;  %10708 = vmatpush3.msra.mxu1 %v1489_v22  ;;  %v1488_v26 = vld [vmem:[%s17275_s6 + $0x28] sm:$0xff]  ;;  %10646 = vmatpush3.msra.mxu0 %v9249_v24 }
  0x78   : > { %10709 = vmatprep.subr.mxu1 %v1488_v26 }
  0x79   : > { %v921_v36 = vadd.f32 %v920_v29, %v919_v32  ;;  %v12854_v29 = vshrl.u32 %v584_v18, 7  ;;  %v9248_v32 = vld [vmem:[%s17275_s6 + $0x60] sm:$0xff]  ;;  %10710 = vmatpush3.msra.mxu1 %v1488_v26 }
  0x7a   : > { %10647 = vmatprep.subr.mxu0 %v9248_v32 }
  0x7b   : > { %v923_v41 = vadd.f32 %v922_v33, %v921_v36  ;;  %v1487_v33 = vld [vmem:[%s17275_s6 + $0x20] sm:$0xff]  ;;  %v9247_v36 = vld [vmem:[%s17275_s6 + $0x58] sm:$0xff]  ;;  %10648 = vmatpush3.msra.mxu0 %v9248_v32 }
  0x7c   : > { %10711 = vmatprep.subr.mxu1 %v1487_v33  ;;  %10649 = vmatprep.subr.mxu0 %v9247_v36 }
  0x7d   : > { %v925_v45 = vadd.f32 %v924_v38, %v923_v41  ;;  %v1486_v38 = vld [vmem:[%s17275_s6 + $0x18] sm:$0xff]  ;;  %v617_v41 = vand.u32 15, %v12854_v29  ;;  %10712 = vmatpush3.msra.mxu1 %v1487_v33  ;;  %10650 = vmatpush3.msra.mxu0 %v9247_v36 }
  0x7e   : > { %10713 = vmatprep.subr.mxu1 %v1486_v38 }
  0x7f   : > { %v927_v50 = vadd.f32 %v926_v42, %v925_v45  ;;  %v9246_v42 = vld [vmem:[%s17275_s6 + $0x50] sm:$0xff]  ;;  %10714 = vmatpush3.msra.mxu1 %v1486_v38  ;;  %vm12883_vm2 = vcmp.ne.s32.totalorder %v617_v41, 0 }
  0x80   : > { %v1485_v45 = vld [vmem:[%s17275_s6 + $0x10] sm:$0xff]  ;;  %10651 = vmatprep.subr.mxu0 %v9246_v42 }
  0x81   : > { %v929_v54 = vadd.f32 %v928_v47, %v927_v50  ;;  %v9245_v50 = vld [vmem:[%s17275_s6 + $0x48] sm:$0xff]  ;;  %10715 = vmatprep.subr.mxu1 %v1485_v45  ;;  %10652 = vmatpush3.msra.mxu0 %v9246_v42 }
  0x82   : > { %10716 = vmatpush3.msra.mxu1 %v1485_v45  ;;  %10653 = vmatprep.subr.mxu0 %v9245_v50 }
  0x83   : > { %v931_v59 = vadd.f32 %v930_v51, %v929_v54  ;;  %v1484_v51 = vld [vmem:[%s17275_s6 + $0x8] sm:$0xff]  ;;  %v17464_v54 = vmov 0  ;;  %10654 = vmatpush3.msra.mxu0 %v9245_v50 }
  0x84   : > { %v17465_v54 = vsel %vm12883_vm2, 4294967295, %v17464_v54  ;;  %10717 = vmatprep.subr.mxu1 %v1484_v51 }
  0x85   : > { %v933_v62 = vadd.f32 %v932_v56, %v931_v59  ;;  %17466 = vst [vmem:[#allocation20_spill] sm:$0xff] %v17465_v54  ;;  %v1355_v56 = vld [vmem:[#allocation2 + $0xf] sm:$0xff]  ;;  %v9244_v59 = vld [vmem:[%s17275_s6 + $0x40] sm:$0xff]  ;;  %10718 = vmatpush3.msra.mxu1 %v1484_v51  ;;  %v17521_v54 = vmov 0 }
  0x86   : > { %10655 = vmatprep.subr.mxu0 %v9244_v59 }
  0x87   : > { %v935_v1 = vadd.f32 %v934_v60, %v933_v62  ;;  %v1483_v60 = vld [vmem:[%s17275_s6] sm:$0xff]  ;;  %10656 = vmatpush3.msra.mxu0 %v9244_v59 }
  0x88   : > { %10719 = vmatprep.subr.mxu1 %v1483_v60 }
  0x89   : > { %v937_v2 = vadd.f32 %v936_v63, %v935_v1  ;;  %v1491_v1 = vld [vmem:[#allocation2 + $0x10] sm:$0xff]  ;;  %10720 = vmatpush3.msra.mxu1 %v1483_v60 }
  0x8a   : > { %10657 = vmatprep.mubr.msk.f32.mxu0 %vm17406_vm0, %v1491_v1 }
  0x8b   : > { %v938_v4 = vrot.slane %v937_v2, 4 }
  0x8d   : > { %v939_v5 = vadd.f32 %v938_v4, %v937_v2  ;;  %v1451_v2 = vsel %vm12883_vm2, %v1355_v56, 0.0 }
  0x8e   : > { %10721 = vmatprep.mubr.msk.f32.mxu1 %vm17406_vm0, %v1451_v2 }
  0x8f   : > { %v940_v7 = vrot.slane %v939_v5, 2 }
  0x91   : > { %v941_v8 = vadd.f32 %v940_v7, %v939_v5  ;;  %v1356_v5 = vld [vmem:[#allocation2 + $0x17] sm:$0xff] }
  0x92   : > { %10722 = vmatmul.mubr.msk.f32.vlgmr.msra.gmra.mxu1 %vm17406_vm0, %v1356_v5 }
  0x93   : > { %v942_v17 = vrot.slane %v941_v8, 1 }
  0x95   : > { %v943_v28 = vadd.f32 %v942_v17, %v941_v8 }
  0x97   : > { %v12875_v47 = vmul.f32 0.00390625, %v943_v28 }
  0x99   : > { %v12895_v62 = vsub.f32 %v12642_v11, %v12875_v47  ;;  %v12899_v63 = vsub.f32 %v12645_v12, %v12875_v47  ;;  %v12905_v4 = vsub.f32 %v12648_v13, %v12875_v47  ;;  %v1492_v11 = vld [vmem:[#allocation2 + $0x18] sm:$0xff]  ;;  %v12913_v7 = vsub.f32 %v12651_v14, %v12875_v47 }
  0x9a   : > { %v9323_v12 = vld [vmem:[%s17275_s6 + $0xb8] sm:$0xff]  ;;  %10658 = vmatmul.mubr.msk.f32.vlgmr.msra.gmra.mxu0 %vm17406_vm0, %v1492_v11  ;;  %v12924_v10 = vsub.f32 %v12668_v20, %v12875_v47  ;;  %v12930_v15 = vsub.f32 %v12687_v25, %v12875_v47  ;;  %v12938_v20 = vsub.f32 %v12700_v30, %v12875_v47  ;;  %v12945_v25 = vsub.f32 %v12708_v34, %v12875_v47  ;;  %v9322_v30 = vld [vmem:[%s17275_s6 + $0xb0] sm:$0xff] }
  0x9b   : > { %v978_v8 = vmul.f32 %v12895_v62, %v12895_v62  ;;  %v979_v13 = vmul.f32 %v12899_v63, %v12899_v63  ;;  %v980_v14 = vmul.f32 %v12905_v4, %v12905_v4  ;;  %10769 = vmatprep.subr.mxu0 %v9323_v12  ;;  %v981_v17 = vmul.f32 %v12913_v7, %v12913_v7 }
  0x9c   : > { %10770 = vmatpush3.msra.mxu0 %v9323_v12  ;;  %v982_v22 = vmul.f32 %v12924_v10, %v12924_v10  ;;  %v983_v28 = vmul.f32 %v12930_v15, %v12930_v15  ;;  %v12955_v36 = vsub.f32 %v12715_v37, %v12875_v47  ;;  %v984_v38 = vmul.f32 %v12938_v20, %v12938_v20 }
  0x9d   : > { %v1010_v18 = vsel %vm17406_vm0, %v978_v8, 0.0  ;;  %v1011_v21 = vsel %vm17406_vm0, %v979_v13, 0.0  ;;  %v1013_v24 = vsel %vm17406_vm0, %v980_v14, 0.0  ;;  %v1015_v32 = vsel %vm17406_vm0, %v981_v17, 0.0  ;;  %10771 = vmatprep.subr.mxu0 %v9322_v30 }
  0x9e   : > { %v1012_v26 = vadd.f32 %v1011_v21, %v1010_v18  ;;  %v1017_v34 = vsel %vm17406_vm0, %v982_v22, 0.0  ;;  %10772 = vmatpush3.msra.mxu0 %v9322_v30  ;;  %v12962_v42 = vsub.f32 %v12720_v40, %v12875_v47  ;;  %v985_v45 = vmul.f32 %v12945_v25, %v12945_v25 }
  0x9f   : > { %v1019_v50 = vsel %vm17406_vm0, %v983_v28, 0.0  ;;  %v12969_v37 = vsub.f32 %v12725_v43, %v12875_v47  ;;  %v986_v56 = vmul.f32 %v12955_v36, %v12955_v36  ;;  %v1021_v59 = vsel %vm17406_vm0, %v984_v38, 0.0  ;;  %v9321_v43 = vld [vmem:[%s17275_s6 + $0xa8] sm:$0xff] }
  0xa0   : > { %v1014_v33 = vadd.f32 %v1013_v24, %v1012_v26  ;;  %v12976_v40 = vsub.f32 %v12730_v46, %v12875_v47  ;;  %v987_v1 = vmul.f32 %v12962_v42, %v12962_v42  ;;  %v1023_v2 = vsel %vm17406_vm0, %v985_v45, 0.0  ;;  %10773 = vmatprep.subr.mxu0 %v9321_v43 }
  0xa1   : > { %v12986_v5 = vsub.f32 %v12735_v49, %v12875_v47  ;;  %v988_v12 = vmul.f32 %v12969_v37, %v12969_v37  ;;  %v1025_v46 = vsel %vm17406_vm0, %v986_v56, 0.0  ;;  %10774 = vmatpush3.msra.mxu0 %v9321_v43  ;;  %v12993_v13 = vsub.f32 %v12740_v52, %v12875_v47 }
  0xa2   : > { %v1016_v41 = vadd.f32 %v1015_v32, %v1014_v33  ;;  %v989_v14 = vmul.f32 %v12976_v40, %v12976_v40  ;;  %v1027_v17 = vsel %vm17406_vm0, %v987_v1, 0.0  ;;  %v13000_v49 = vsub.f32 %v12745_v55, %v12875_v47  ;;  %v9320_v55 = vld [vmem:[%s17275_s6 + $0xa0] sm:$0xff] }
  0xa3   : > { %v990_v21 = vmul.f32 %v12986_v5, %v12986_v5  ;;  %v1029_v22 = vsel %vm17406_vm0, %v988_v12, 0.0  ;;  %v13007_v52 = vsub.f32 %v12750_v58, %v12875_v47  ;;  %v991_v26 = vmul.f32 %v12993_v13, %v12993_v13  ;;  %10775 = vmatprep.subr.mxu0 %v9320_v55 }
  0xa4   : > { %v1018_v51 = vadd.f32 %v1017_v34, %v1016_v41  ;;  %v1031_v28 = vsel %vm17406_vm0, %v989_v14, 0.0  ;;  %v13017_v33 = vsub.f32 %v12755_v61, %v12875_v47  ;;  %v992_v30 = vmul.f32 %v13000_v49, %v13000_v49  ;;  %10776 = vmatpush3.msra.mxu0 %v9320_v55 }
  0xa5   : > { %v1033_v58 = vsel %vm17406_vm0, %v990_v21, 0.0  ;;  %v13024_v34 = vsub.f32 %v12760_v0, %v12875_v47  ;;  %v993_v41 = vmul.f32 %v13007_v52, %v13007_v52  ;;  %v1035_v45 = vsel %vm17406_vm0, %v991_v26, 0.0 }
  0xa6   : > { %v1020_v60 = vadd.f32 %v1019_v50, %v1018_v51  ;;  %v13031_v61 = vsub.f32 %v12765_v3, %v12875_v47  ;;  %v994_v51 = vmul.f32 %v13017_v33, %v13017_v33  ;;  %v1037_v56 = vsel %vm17406_vm0, %v992_v30, 0.0  ;;  %v9319_v3 = vld [vmem:[%s17275_s6 + $0x98] sm:$0xff] }
  0xa7   : > { %v13038_v0 = vsub.f32 %v12770_v6, %v12875_v47  ;;  %v1039_v1 = vsel %vm17406_vm0, %v993_v41, 0.0  ;;  %10777 = vmatprep.subr.mxu0 %v9319_v3 }
  0xa8   : > { %v1022_v11 = vadd.f32 %v1021_v59, %v1020_v60  ;;  %v995_v60 = vmul.f32 %v13024_v34, %v13024_v34  ;;  %v996_v43 = vmul.f32 %v13031_v61, %v13031_v61  ;;  %v1041_v6 = vsel %vm17406_vm0, %v994_v51, 0.0  ;;  %10778 = vmatpush3.msra.mxu0 %v9319_v3 }
  0xaa   : > { %v1024_v8 = vadd.f32 %v1023_v2, %v1022_v11  ;;  %v13048_v11 = vsub.f32 %v12775_v9, %v12875_v47  ;;  %v1043_v14 = vsel %vm17406_vm0, %v995_v60, 0.0  ;;  %v13062_v9 = vsub.f32 %v12785_v19, %v12875_v47  ;;  %v9318_v19 = vld [vmem:[%s17275_s6 + $0x90] sm:$0xff] }
  0xab   : > { %v1045_v21 = vsel %vm17406_vm0, %v996_v43, 0.0  ;;  %10779 = vmatprep.subr.mxu0 %v9318_v19 }
  0xac   : > { %v1026_v18 = vadd.f32 %v1025_v46, %v1024_v8  ;;  %v13055_v46 = vsub.f32 %v12780_v16, %v12875_v47  ;;  %v997_v8 = vmul.f32 %v13038_v0, %v13038_v0  ;;  %v13069_v16 = vsub.f32 %v12790_v23, %v12875_v47  ;;  %10780 = vmatpush3.msra.mxu0 %v9318_v19 }
  0xad   : > { %v1000_v55 = vmul.f32 %v13062_v9, %v13062_v9 }
  0xae   : > { %v1028_v24 = vadd.f32 %v1027_v17, %v1026_v18  ;;  %v998_v18 = vmul.f32 %v13048_v11, %v13048_v11  ;;  %v1047_v26 = vsel %vm17406_vm0, %v997_v8, 0.0 }
  0xaf   : > { %v1053_v51 = vsel %vm17406_vm0, %v1000_v55, 0.0  ;;  %v9316_v55 = vld [vmem:[%s17275_s6 + $0x80] sm:$0xff] }
  0xb0   : > { %v1030_v32 = vadd.f32 %v1029_v22, %v1028_v24  ;;  %v999_v24 = vmul.f32 %v13055_v46, %v13055_v46  ;;  %v1049_v23 = vsel %vm17406_vm0, %v998_v18, 0.0  ;;  %v13130_v18 = vsub.f32 %v12825_v53, %v12875_v47  ;;  %v9361_v53 = vld [vmem:[%s17275_s6 + $0xe8] sm:$0xff] }
  0xb2   : > { %v1032_v38 = vadd.f32 %v1031_v28, %v1030_v32  ;;  %v13079_v32 = vsub.f32 %v12795_v27, %v12875_v47  ;;  %v1051_v41 = vsel %vm17406_vm0, %v999_v24, 0.0  ;;  %v13093_v27 = vsub.f32 %v12805_v35, %v12875_v47  ;;  %v9317_v35 = vld [vmem:[%s17275_s6 + $0x88] sm:$0xff] }
  0xb3   : > { %10781 = vmatprep.subr.mxu0 %v9317_v35  ;;  %v13137_v24 = vsub.f32 %v12830_v57, %v12875_v47  ;;  %v9360_v57 = vld [vmem:[%s17275_s6 + $0xe0] sm:$0xff] }
  0xb4   : > { %v1034_v50 = vadd.f32 %v1033_v58, %v1032_v38  ;;  %v13086_v58 = vsub.f32 %v12800_v31, %v12875_v47  ;;  %v1001_v38 = vmul.f32 %v13069_v16, %v13069_v16  ;;  %v13100_v31 = vsub.f32 %v12810_v39, %v12875_v47  ;;  %10782 = vmatpush3.msra.mxu0 %v9317_v35 }
  0xb5   : > { %v1004_v3 = vmul.f32 %v13093_v27, %v13093_v27  ;;  %10783 = vmatprep.subr.mxu0 %v9316_v55 }
  0xb6   : > { %v1036_v59 = vadd.f32 %v1035_v45, %v1034_v50  ;;  %v1002_v50 = vmul.f32 %v13079_v32, %v13079_v32  ;;  %v1055_v60 = vsel %vm17406_vm0, %v1001_v38, 0.0  ;;  %10784 = vmatpush3.msra.mxu0 %v9316_v55  ;;  %v1009_v38 = vmul.f32 %v13137_v24, %v13137_v24 }
  0xb7   : > { %v13190_v55 = vadd.s32 80, %v12854_v29 }
  0xb8   : > { %v1038_v2 = vadd.f32 %v1037_v56, %v1036_v59  ;;  %v1003_v59 = vmul.f32 %v13086_v58, %v13086_v58  ;;  %v1057_v39 = vsel %vm17406_vm0, %v1002_v50, 0.0 }
  0xba   : > { %v1040_v12 = vadd.f32 %v1039_v1, %v1038_v2  ;;  %v13110_v2 = vsub.f32 %v12815_v44, %v12875_v47  ;;  %v1059_v8 = vsel %vm17406_vm0, %v1003_v59, 0.0  ;;  %v9363_v44 = vld [vmem:[%s17275_s6 + $0xf8] sm:$0xff] }
  0xbb   : > { %10833 = vmatprep.subr.mxu1 %v9363_v44 }
  0xbc   : > { %v1042_v17 = vadd.f32 %v1041_v6, %v1040_v12  ;;  %v13117_v6 = vsub.f32 %v12820_v48, %v12875_v47  ;;  %v1005_v12 = vmul.f32 %v13100_v31, %v13100_v31  ;;  %v1006_v48 = vmul.f32 %v13110_v2, %v13110_v2  ;;  %10834 = vmatpush3.msra.mxu1 %v9363_v44 }
  0xbd   : > { %v1008_v47 = vmul.f32 %v13130_v18, %v13130_v18 }
  0xbe   : > { %v1044_v22 = vadd.f32 %v1043_v14, %v1042_v17  ;;  %v9362_v17 = vld [vmem:[%s17275_s6 + $0xf0] sm:$0xff] }
  0xbf   : > { %10835 = vmatprep.subr.mxu1 %v9362_v17 }
  0xc0   : > { %v1046_v28 = vadd.f32 %v1045_v21, %v1044_v22  ;;  %v1061_v21 = vsel %vm17406_vm0, %v1004_v3, 0.0  ;;  %10836 = vmatpush3.msra.mxu1 %v9362_v17  ;;  %v9356_v3 = vld [vmem:[%s17275_s6 + $0xc0] sm:$0xff] }
  0xc1   : > { %10837 = vmatprep.subr.mxu1 %v9361_v53 }
  0xc2   : > { %v1048_v30 = vadd.f32 %v1047_v26, %v1046_v28  ;;  %v1007_v26 = vmul.f32 %v13117_v6, %v13117_v6  ;;  %v1063_v28 = vsel %vm17406_vm0, %v1005_v12, 0.0  ;;  %10838 = vmatpush3.msra.mxu1 %v9361_v53  ;;  %v13184_v53 = vadd.s32 48, %v12854_v29 }
  0xc3   : > { %10839 = vmatprep.subr.mxu1 %v9360_v57 }
  0xc4   : > { %v1050_v45 = vadd.f32 %v1049_v23, %v1048_v30  ;;  %v1065_v23 = vsel %vm17406_vm0, %v1006_v48, 0.0  ;;  %10840 = vmatpush3.msra.mxu1 %v9360_v57  ;;  %v13193_v57 = vadd.s32 96, %v12854_v29 }
  0xc6   : > { %v1052_v56 = vadd.f32 %v1051_v41, %v1050_v45  ;;  %v1067_v41 = vsel %vm17406_vm0, %v1007_v26, 0.0  ;;  %v9359_v45 = vld [vmem:[%s17275_s6 + $0xd8] sm:$0xff]  ;;  %v13178_v26 = vadd.s32 16, %v12854_v29 }
  0xc7   : > { %10841 = vmatprep.subr.mxu1 %v9359_v45 }
  0xc8   : > { %v1054_v1 = vadd.f32 %v1053_v51, %v1052_v56  ;;  %v9358_v51 = vld [vmem:[%s17275_s6 + $0xd0] sm:$0xff]  ;;  %v1069_v56 = vsel %vm17406_vm0, %v1008_v47, 0.0  ;;  %10842 = vmatpush3.msra.mxu1 %v9359_v45  ;;  %v13196_v47 = vadd.s32 112, %v12854_v29 }
  0xc9   : > { %10843 = vmatprep.subr.mxu1 %v9358_v51 }
  0xca   : > { %v1056_v43 = vadd.f32 %v1055_v60, %v1054_v1  ;;  %v1071_v60 = vsel %vm17406_vm0, %v1009_v38, 0.0  ;;  %10844 = vmatpush3.msra.mxu1 %v9358_v51  ;;  %v9357_v1 = vld [vmem:[%s17275_s6 + $0xc8] sm:$0xff]  ;;  %v721_v38 = vld [vmem:[%s17272_s3] sm:$0x1] }
  0xcb   : > { %10845 = vmatprep.subr.mxu1 %v9357_v1 }
  0xcc   : > { %v1058_v14 = vadd.f32 %v1057_v39, %v1056_v43  ;;  %v13174_v39 = vld [vmem:[%s17275_s6 + $0x138] sm:$0xff]  ;;  %10846 = vmatpush3.msra.mxu1 %v9357_v1 }
  0xcd   : > { %10897 = vmatprep.subr.mxu0 %v13174_v39  ;;  %10847 = vmatprep.subr.mxu1 %v9356_v3 }
  0xce   : > { %v1060_v22 = vadd.f32 %v1059_v8, %v1058_v14  ;;  %10848 = vmatpush3.msra.mxu1 %v9356_v3 }
  0xd0   : > { %v1062_v19 = vadd.f32 %v1061_v21, %v1060_v22 }
  0xd2   : > { %v1064_v30 = vadd.f32 %v1063_v28, %v1062_v19  ;;  %v13181_v28 = vadd.s32 32, %v12854_v29  ;;  %v13187_v19 = vadd.s32 64, %v12854_v29 }
  0xd4   : > { %v1066_v50 = vadd.f32 %v1065_v23, %v1064_v30  ;;  %v13201_v30 = vsub.s32 0, %v12854_v29  ;;  %v621_v45 = vand.u32 15, %v13181_v28  ;;  %v625_v51 = vand.u32 15, %v13187_v19 }
  0xd6   : > { %v1068_v59 = vadd.f32 %v1067_v41, %v1066_v50  ;;  %17467 = vst [vmem:[#allocation21_spill] sm:$0xff] %v13201_v30  ;;  %v619_v41 = vand.u32 15, %v13178_v26  ;;  %v623_v50 = vand.u32 15, %v13184_v53  ;;  %vm13346_vm7 = vcmp.ne.s32.totalorder %v621_v45, 0 }
  0xd8   : > { %v1070_v35 = vadd.f32 %v1069_v56, %v1068_v59  ;;  %v804_v56 = vld [vmem:[%s17274_s5] sm:$0x1]  ;;  %v627_v59 = vand.u32 15, %v13190_v55  ;;  %vm13340_vm5 = vcmp.ne.s32.totalorder %v619_v41, 0  ;;  %vm13361_vm13 = vcmp.ne.s32.totalorder %v623_v50, 0 }
  0xda   : > { %v1072_v43 = vadd.f32 %v1071_v60, %v1070_v35  ;;  %v13217_v35 = vadd.s32 128, %v12854_v29 }
  0xdc   : > { %v1073_v12 = vrot.slane %v1072_v43, 4 }
  0xde   : > { %v1074_v8 = vadd.f32 %v1073_v12, %v1072_v43 }
  0xe0   : > { %v1075_v44 = vrot.slane %v1074_v8, 2 }
  0xe2   : > { %v1076_v14 = vadd.f32 %v1075_v44, %v1074_v8  ;;  %v13226_v8 = vadd.s32 144, %v12854_v29 }
  0xe4   : > { %v1077_v17 = vrot.slane %v1076_v14, 1 }
  0xe6   : > { %v1078_v48 = vadd.f32 %v1077_v17, %v1076_v14 }
  0xe8   : > { %v1079_v21 = vmul.f32 0.00390625, %v1078_v48 }
  0xea   : > { %v1081_v22 = vadd.f32 1e-05, %v1079_v21 }
  0xec   : > { %12131 = vrsqrt.f32 %v1081_v22 }
  0xf9   : > { %v13198_v23 = vpop.eup %12131 }
  0xfa   : > { %v1083_v3 = vmul.f32 %v13198_v23, %v12895_v62  ;;  %v1084_v43 = vmul.f32 %v13198_v23, %v12899_v63  ;;  %v1085_v12 = vmul.f32 %v13198_v23, %v12905_v4  ;;  %v1086_v17 = vmul.f32 %v13198_v23, %v12913_v7 }
  0xfb   : > { %v1087_v48 = vmul.f32 %v13198_v23, %v12924_v10  ;;  %v1088_v62 = vmul.f32 %v13198_v23, %v12930_v15  ;;  %v1089_v63 = vmul.f32 %v13198_v23, %v12938_v20  ;;  %v1090_v4 = vmul.f32 %v13198_v23, %v12945_v25 }
  0xfc   : > { %v13240_v1 = vmul.f32 %v13198_v23, %v12955_v36  ;;  %v13244_v10 = vmul.f32 %v13198_v23, %v12962_v42  ;;  %v13248_v15 = vmul.f32 %v13198_v23, %v12969_v37  ;;  %v13252_v20 = vmul.f32 %v13198_v23, %v12976_v40 }
  0xfd   : > { %v13256_v25 = vmul.f32 %v13198_v23, %v12986_v5  ;;  %v13264_v42 = vmul.f32 %v13198_v23, %v13000_v49  ;;  %v13268_v37 = vmul.f32 %v13198_v23, %v13007_v52  ;;  %v13272_v40 = vmul.f32 %v13198_v23, %v13017_v33 }
  0xfe   : > { %v13276_v5 = vmul.f32 %v13198_v23, %v13024_v34  ;;  %v13284_v49 = vmul.f32 %v13198_v23, %v13038_v0  ;;  %v13294_v33 = vmul.f32 %v13198_v23, %v13048_v11  ;;  %v13298_v34 = vmul.f32 %v13198_v23, %v13055_v46 }
  0xff   : > { %v13307_v0 = vmul.f32 %v13198_v23, %v13062_v9  ;;  %v13315_v11 = vmul.f32 %v13198_v23, %v13079_v32  ;;  %v13319_v46 = vmul.f32 %v13198_v23, %v13086_v58 }
 0x117   : > { %v792_v44 = vpop.f32.mrf.mxu0  ;;  %v871_v14 = vpop.f32.mrf.mxu1 }
 0x118   : > { %v793_v21 = vadd.f32 %v792_v44, %v721_v38  ;;  %v872_v22 = vadd.f32 %v871_v14, %v804_v56  ;;  %v13260_v38 = vmul.f32 %v13198_v23, %v12993_v13  ;;  %v13280_v13 = vmul.f32 %v13198_v23, %v13031_v61  ;;  %v13303_v61 = vld [vmem:[%s17275_s6 + $0x178] sm:$0xff] }
 0x119   : > { %v10621_v60 = vpop.f32.mrf.mxu0  ;;  %v10640_v7 = vpop.f32.mrf.mxu1  ;;  %10961 = vmatprep.subr.mxu1 %v13303_v61 }
 0x11a   : > { %v1080_v36 = vadd.f32 1.0, %v793_v21  ;;  %v13290_v52 = vrot.slane %v872_v22, %v13201_v30  ;;  %v13311_v60 = vmul.f32 %v13198_v23, %v13069_v16 }
 0x11c   : > { %v13287_v56 = vrot.slane %v1080_v36, %v13201_v30  ;;  %v590_v30 = vadd.s32 40, %v12854_v29 }
 0x11e   : > { %v1119_v44 = vmul.f32 %v13287_v56, %v1083_v3  ;;  %v1120_v14 = vmul.f32 %v13287_v56, %v1084_v43  ;;  %v1121_v9 = vmul.f32 %v13287_v56, %v1085_v12  ;;  %v1122_v21 = vmul.f32 %v13287_v56, %v1086_v17 }
 0x11f   : > { %v1123_v16 = vmul.f32 %v13287_v56, %v1087_v48  ;;  %v1124_v22 = vmul.f32 %v13287_v56, %v1088_v62  ;;  %v1125_v32 = vmul.f32 %v13287_v56, %v1089_v63  ;;  %v1126_v7 = vmul.f32 %v13287_v56, %v1090_v4 }
 0x120   : > { %v1155_v58 = vadd.f32 %v13290_v52, %v1119_v44  ;;  %v1156_v36 = vadd.f32 %v13290_v52, %v1120_v14  ;;  %v1157_v3 = vadd.f32 %v13290_v52, %v1121_v9  ;;  %v1158_v43 = vadd.f32 %v13290_v52, %v1122_v21 }
 0x121   : > { %v1159_v12 = vadd.f32 %v13290_v52, %v1123_v16  ;;  %v1160_v17 = vadd.f32 %v13290_v52, %v1124_v22  ;;  %v1161_v48 = vadd.f32 %v13290_v52, %v1125_v32  ;;  %v1162_v62 = vadd.f32 %v13290_v52, %v1126_v7 }
 0x122   : > { %vm1187_vm3 = vcmp.ge.f32.partialorder %v1155_v58, 0.0  ;;  %v1219_v63 = vmul.f32 0.2, %v1155_v58  ;;  %vm1188_vm4 = vcmp.ge.f32.partialorder %v1156_v36, 0.0  ;;  %v1220_v4 = vmul.f32 0.2, %v1156_v36 }
 0x123   : > { %v17468_v44 = vmov 0  ;;  %vm1189_vm6 = vcmp.ge.f32.partialorder %v1157_v3, 0.0  ;;  %v1221_v14 = vmul.f32 0.2, %v1157_v3  ;;  %v17471_v9 = vmov 0 }
 0x124   : > { %v17469_v44 = vsel %vm13340_vm5, 4294967295, %v17468_v44  ;;  %v17472_v9 = vsel %vm13346_vm7, 4294967295, %v17471_v9  ;;  %vm1190_vm8 = vcmp.ge.f32.partialorder %v1158_v43, 0.0  ;;  %v1222_v21 = vmul.f32 0.2, %v1158_v43 }
 0x125   : > { %17470 = vst [vmem:[#allocation22_spill] sm:$0xff] %v17469_v44  ;;  %17473 = vst [vmem:[#allocation23_spill] sm:$0xff] %v17472_v9  ;;  %v1251_v16 = vsel %vm1187_vm3, %v1155_v58, %v1219_v63  ;;  %v1252_v22 = vsel %vm1188_vm4, %v1156_v36, %v1220_v4  ;;  %vm1191_vm9 = vcmp.ge.f32.partialorder %v1159_v12, 0.0  ;;  %v1223_v32 = vmul.f32 0.2, %v1159_v12 }
 0x126   : > { %1323 = vst.msk [vmem:[#allocation2 + $0x20] sm:$0xff] %vm17406_vm0, %v1251_v16  ;;  %1324 = vst.msk [vmem:[#allocation2 + $0x28] sm:$0xff] %vm17406_vm0, %v1252_v22  ;;  %v1253_v26 = vsel %vm1189_vm6, %v1157_v3, %v1221_v14  ;;  %v1254_v41 = vsel %vm1190_vm8, %v1158_v43, %v1222_v21  ;;  %vm1192_vm10 = vcmp.ge.f32.partialorder %v1160_v17, 0.0  ;;  %v1224_v7 = vmul.f32 0.2, %v1160_v17 }
 0x127   : > { %1325 = vst.msk [vmem:[#allocation2 + $0x30] sm:$0xff] %vm17406_vm0, %v1253_v26  ;;  %1326 = vst.msk [vmem:[#allocation2 + $0x38] sm:$0xff] %vm17406_vm0, %v1254_v41  ;;  %v1255_v28 = vsel %vm1191_vm9, %v1159_v12, %v1223_v32  ;;  %vm1193_vm11 = vcmp.ge.f32.partialorder %v1161_v48, 0.0  ;;  %v1225_v45 = vmul.f32 0.2, %v1161_v48  ;;  %vm1194_vm12 = vcmp.ge.f32.partialorder %v1162_v62, 0.0 }
 0x128   : > { %1327 = vst.msk [vmem:[#allocation2 + $0x40] sm:$0xff] %vm17406_vm0, %v1255_v28  ;;  %v1256_v58 = vsel %vm1192_vm10, %v1160_v17, %v1224_v7  ;;  %v1226_v36 = vmul.f32 0.2, %v1162_v62  ;;  %v1127_v63 = vmul.f32 %v13287_v56, %v13240_v1  ;;  %v1128_v3 = vmul.f32 %v13287_v56, %v13244_v10 }
 0x129   : > { %v17474_v43 = vmov 0  ;;  %1328 = vst.msk [vmem:[#allocation2 + $0x48] sm:$0xff] %vm17406_vm0, %v1256_v58  ;;  %v1257_v12 = vsel %vm1193_vm11, %v1161_v48, %v1225_v45  ;;  %v1129_v4 = vmul.f32 %v13287_v56, %v13248_v15  ;;  %v1130_v17 = vmul.f32 %v13287_v56, %v13252_v20 }
 0x12a   : > { %v17475_v43 = vsel %vm13361_vm13, 4294967295, %v17474_v43  ;;  %v1131_v1 = vmul.f32 %v13287_v56, %v13256_v25  ;;  %1329 = vst.msk [vmem:[#allocation2 + $0x50] sm:$0xff] %vm17406_vm0, %v1257_v12  ;;  %v1258_v10 = vsel %vm1194_vm12, %v1162_v62, %v1226_v36  ;;  %v1163_v53 = vadd.f32 %v13290_v52, %v1127_v63 }
 0x12b   : > { %17476 = vst [vmem:[#allocation24_spill] sm:$0xff] %v17475_v43  ;;  %v1164_v50 = vadd.f32 %v13290_v52, %v1128_v3  ;;  %v1132_v14 = vmul.f32 %v13287_v56, %v13260_v38  ;;  %1330 = vst.msk [vmem:[#allocation2 + $0x58] sm:$0xff] %vm17406_vm0, %v1258_v10  ;;  %v1165_v15 = vadd.f32 %v13290_v52, %v1129_v4  ;;  %vm13387_vm3 = vcmp.ne.s32.totalorder %v625_v51, 0 }
 0x12c   : > { %v1166_v48 = vadd.f32 %v13290_v52, %v1130_v17  ;;  %v1167_v20 = vadd.f32 %v13290_v52, %v1131_v1  ;;  %v1133_v25 = vmul.f32 %v13287_v56, %v13264_v42  ;;  %vm1195_vm14 = vcmp.ge.f32.partialorder %v1163_v53, 0.0 }
 0x12d   : > { %v1227_v62 = vmul.f32 0.2, %v1163_v53  ;;  %vm1196_vm15 = vcmp.ge.f32.partialorder %v1164_v50, 0.0  ;;  %v1228_v21 = vmul.f32 0.2, %v1164_v50  ;;  %v1493_v16 = vld [vmem:[#allocation2 + $0x20] sm:$0xff]  ;;  %v1168_v41 = vadd.f32 %v13290_v52, %v1132_v14 }
 0x12e   : > { %v1494_v22 = vld [vmem:[#allocation2 + $0x28] sm:$0xff]  ;;  %v13383_v32 = vld [vmem:[#allocation2 + $0x1f] sm:$0xff]  ;;  %v17477_v38 = vmov 0  ;;  %vm1197_vm4 = vcmp.ge.f32.partialorder %v1165_v15, 0.0  ;;  %v1229_v26 = vmul.f32 0.2, %v1165_v15  ;;  %v1169_v42 = vadd.f32 %v13290_v52, %v1133_v25  ;;  %10660 = vmatprep.mubr.msk.f32.mxu0 %vm17406_vm0, %v1493_v16 }
 0x12f   : > { %v17478_v38 = vsel %vm13387_vm3, 4294967295, %v17477_v38  ;;  %v1453_v7 = vsel %vm13340_vm5, %v13383_v32, 0.0  ;;  %v13397_v28 = vld [vmem:[#allocation2 + $0x2f] sm:$0xff]  ;;  %v1259_v45 = vsel %vm1195_vm14, %v1163_v53, %v1227_v62  ;;  %v1260_v19 = vsel %vm1196_vm15, %v1164_v50, %v1228_v21  ;;  %10661 = vmatmul.mubr.msk.f32.gmra.mxu0 %vm17406_vm0, %v1494_v22  ;;  %v13401_v58 = vld [vmem:[#allocation2 + $0x27] sm:$0xff]  ;;  %v13420_v10 = vld [vmem:[#allocation2 + $0x3f] sm:$0xff] }
 0x130   : > { %17479 = vst [vmem:[#allocation25_spill] sm:$0xff] %v17478_v38  ;;  %vm1198_vm6 = vcmp.ge.f32.partialorder %v1166_v48, 0.0  ;;  %10724 = vmatprep.mubr.msk.f32.mxu1 %vm17406_vm0, %v1453_v7  ;;  %v1495_v51 = vld [vmem:[#allocation2 + $0x30] sm:$0xff]  ;;  %v1455_v36 = vsel %vm13346_vm7, %v13397_v28, 0.0  ;;  %1331 = vst.msk [vmem:[#allocation2 + $0x60] sm:$0xff] %vm17406_vm0, %v1259_v45  ;;  %v1261_v63 = vsel %vm1197_vm4, %v1165_v15, %v1229_v26  ;;  %v1134_v12 = vmul.f32 %v13287_v56, %v13268_v37  ;;  %v1496_v14 = vld [vmem:[#allocation2 + $0x38] sm:$0xff] }
 0x131   : > { %1332 = vst.msk [vmem:[#allocation2 + $0x68] sm:$0xff] %vm17406_vm0, %v1260_v19  ;;  %v1230_v3 = vmul.f32 0.2, %v1166_v48  ;;  %10663 = vmatprep.mubr.msk.f32.mxu0 %vm17406_vm0, %v1495_v51  ;;  %10725 = vmatmul.mubr.msk.f32.gmra.mxu1 %vm17406_vm0, %v13401_v58  ;;  %1333 = vst.msk [vmem:[#allocation2 + $0x70] sm:$0xff] %vm17406_vm0, %v1261_v63  ;;  %vm1199_vm8 = vcmp.ge.f32.partialorder %v1167_v20, 0.0  ;;  %v1135_v17 = vmul.f32 %v13287_v56, %v13272_v40  ;;  %vm13424_vm9 = vcmp.ne.s32.totalorder %v627_v59, 0 }
 0x132   : > { %v1231_v4 = vmul.f32 0.2, %v1167_v20  ;;  %v1136_v1 = vmul.f32 %v13287_v56, %v13276_v5  ;;  %10727 = vmatprep.mubr.msk.f32.mxu1 %vm17406_vm0, %v1455_v36  ;;  %v17480_v37 = vmov 0  ;;  %vm1200_vm10 = vcmp.ge.f32.partialorder %v1168_v41, 0.0  ;;  %v13445_v25 = vld [vmem:[#allocation2 + $0x37] sm:$0xff]  ;;  %v13457_v16 = vld [vmem:[#allocation2 + $0x4f] sm:$0xff] }
 0x133   : > { %v17481_v37 = vsel %vm13424_vm9, 4294967295, %v17480_v37  ;;  %v1262_v53 = vsel %vm1198_vm6, %v1166_v48, %v1230_v3  ;;  %v1232_v50 = vmul.f32 0.2, %v1168_v41  ;;  %v13431_v40 = vmul.f32 %v13198_v23, %v13093_v27  ;;  %10664 = vmatmul.mubr.msk.f32.gmra.mxu0 %vm17406_vm0, %v1496_v14  ;;  %v1497_v27 = vld [vmem:[#allocation2 + $0x40] sm:$0xff]  ;;  %v1498_v19 = vld [vmem:[#allocation2 + $0x48] sm:$0xff] }
 0x134   : > { %17482 = vst [vmem:[#allocation26_spill] sm:$0xff] %v17481_v37  ;;  %v17483_v5 = vand.u32 15, %v13193_v57  ;;  %v17484_v15 = vmov 0  ;;  %1334 = vst.msk [vmem:[#allocation2 + $0x78] sm:$0xff] %vm17406_vm0, %v1262_v53  ;;  %v1263_v55 = vsel %vm1199_vm8, %v1167_v20, %v1231_v4  ;;  %vm1201_vm12 = vcmp.ge.f32.partialorder %v1169_v42, 0.0  ;;  %10666 = vmatprep.mubr.msk.f32.mxu0 %vm17406_vm0, %v1497_v27  ;;  %v13470_v63 = vld [vmem:[#allocation2 + $0x47] sm:$0xff] }
 0x135   : > { %v1233_v59 = vmul.f32 0.2, %v1169_v42  ;;  %v13442_v48 = vmul.f32 %v13198_v23, %v13100_v31  ;;  %1335 = vst.msk [vmem:[#allocation2 + $0x80] sm:$0xff] %vm17406_vm0, %v1263_v55  ;;  %v1264_v57 = vsel %vm1200_vm10, %v1168_v41, %v1232_v50  ;;  %v1170_v62 = vadd.f32 %v13290_v52, %v1134_v12  ;;  %10728 = vmatmul.mubr.msk.f32.gmra.mxu1 %vm17406_vm0, %v13445_v25  ;;  %v1500_v55 = vld [vmem:[#allocation2 + $0x58] sm:$0xff] }
 0x136   : > { %vm13435_vm11 = vcmp.ne.s32.totalorder %v17483_v5, 0  ;;  %v1171_v21 = vadd.f32 %v13290_v52, %v1135_v17  ;;  %v1172_v20 = vadd.f32 %v13290_v52, %v1136_v1  ;;  %v1457_v31 = vsel %vm13361_vm13, %v13420_v10, 0.0  ;;  %1336 = vst.msk [vmem:[#allocation2 + $0x88] sm:$0xff] %vm17406_vm0, %v1264_v57 }
 0x137   : > { %v17485_v15 = vsel %vm13435_vm11, 4294967295, %v17484_v15  ;;  %v1265_v22 = vsel %vm1201_vm12, %v1169_v42, %v1233_v59  ;;  %v1137_v26 = vmul.f32 %v13287_v56, %v13280_v13  ;;  %v1138_v41 = vmul.f32 %v13287_v56, %v13284_v49  ;;  %10730 = vmatprep.mubr.msk.f32.mxu1 %vm17406_vm0, %v1457_v31  ;;  %10667 = vmatmul.mubr.msk.f32.gmra.mxu0 %vm17406_vm0, %v1498_v19  ;;  %v1499_v13 = vld [vmem:[#allocation2 + $0x50] sm:$0xff]  ;;  %v13494_v50 = vld [vmem:[#allocation2 + $0x5f] sm:$0xff] }
 0x138   : > { %17486 = vst [vmem:[#allocation27_spill] sm:$0xff] %v17485_v15  ;;  %1337 = vst.msk [vmem:[#allocation2 + $0x90] sm:$0xff] %vm17406_vm0, %v1265_v22  ;;  %vm1202_vm14 = vcmp.ge.f32.partialorder %v1170_v62, 0.0  ;;  %v1234_v7 = vmul.f32 0.2, %v1170_v62  ;;  %vm1203_vm15 = vcmp.ge.f32.partialorder %v1171_v21, 0.0  ;;  %v1139_v12 = vmul.f32 %v13287_v56, %v13294_v33  ;;  %10669 = vmatprep.mubr.msk.f32.mxu0 %vm17406_vm0, %v1499_v13 }
 0x139   : > { %v1235_v45 = vmul.f32 0.2, %v1171_v21  ;;  %vm1204_vm4 = vcmp.ge.f32.partialorder %v1172_v20, 0.0  ;;  %v1236_v51 = vmul.f32 0.2, %v1172_v20  ;;  %v1173_v36 = vadd.f32 %v13290_v52, %v1137_v26  ;;  %10731 = vmatmul.mubr.msk.f32.gmra.mxu1 %vm17406_vm0, %v13470_v63  ;;  %v13500_v59 = vld [vmem:[#allocation2 + $0x6f] sm:$0xff] }
 0x13a   : > { %v1174_v42 = vadd.f32 %v13290_v52, %v1138_v41  ;;  %v1266_v49 = vsel %vm1202_vm14, %v1170_v62, %v1234_v7  ;;  %v13476_v4 = vmul.f32 %v13198_v23, %v13110_v2  ;;  %v1459_v17 = vsel %vm13387_vm3, %v13457_v16, 0.0  ;;  %v13509_v31 = vld [vmem:[#allocation2 + $0x57] sm:$0xff] }
 0x13b   : > { %v1267_v3 = vsel %vm1203_vm15, %v1171_v21, %v1235_v45  ;;  %v17487_v1 = vand.u32 15, %v13196_v47  ;;  %v17488_v53 = vmov 0  ;;  %1338 = vst.msk [vmem:[#allocation2 + $0x98] sm:$0xff] %vm17406_vm0, %v1266_v49  ;;  %v1268_v2 = vsel %vm1204_vm4, %v1172_v20, %v1236_v51  ;;  %10733 = vmatprep.mubr.msk.f32.mxu1 %vm17406_vm0, %v1459_v17  ;;  %10670 = vmatmul.mubr.msk.f32.gmra.mxu0 %vm17406_vm0, %v1500_v55  ;;  %v1501_v20 = vld [vmem:[#allocation2 + $0x60] sm:$0xff]  ;;  %v1503_v13 = vld [vmem:[#allocation2 + $0x70] sm:$0xff] }
 0x13c   : > { %1339 = vst.msk [vmem:[#allocation2 + $0xa0] sm:$0xff] %vm17406_vm0, %v1267_v3  ;;  %vm1205_vm8 = vcmp.ge.f32.partialorder %v1173_v36, 0.0  ;;  %v1237_v33 = vmul.f32 0.2, %v1173_v36  ;;  %1340 = vst.msk [vmem:[#allocation2 + $0xa8] sm:$0xff] %vm17406_vm0, %v1268_v2  ;;  %vm1206_vm10 = vcmp.ge.f32.partialorder %v1174_v42, 0.0  ;;  %v1175_v14 = vadd.f32 %v13290_v52, %v1139_v12  ;;  %10672 = vmatprep.mubr.msk.f32.mxu0 %vm17406_vm0, %v1501_v20 }
 0x13d   : > { %vm13486_vm6 = vcmp.ne.s32.totalorder %v17487_v1, 0  ;;  %v1238_v47 = vmul.f32 0.2, %v1174_v42  ;;  %v1140_v5 = vmul.f32 %v13287_v56, %v13298_v34  ;;  %v1141_v57 = vmul.f32 %v13287_v56, %v13307_v0  ;;  %10734 = vmatmul.mubr.msk.f32.gmra.mxu1 %vm17406_vm0, %v13509_v31  ;;  %v13533_v49 = vld [vmem:[#allocation2 + $0x67] sm:$0xff] }
 0x13e   : > { %v17489_v53 = vsel %vm13486_vm6, 4294967295, %v17488_v53  ;;  %v1269_v27 = vsel %vm1205_vm8, %v1173_v36, %v1237_v33  ;;  %v1142_v62 = vmul.f32 %v13287_v56, %v13311_v60  ;;  %v1143_v21 = vmul.f32 %v13287_v56, %v13315_v11 }
 0x13f   : > { %17490 = vst [vmem:[#allocation28_spill] sm:$0xff] %v17489_v53  ;;  %1341 = vst.msk [vmem:[#allocation2 + $0xb0] sm:$0xff] %vm17406_vm0, %v1269_v27  ;;  %v1270_v34 = vsel %vm1206_vm10, %v1174_v42, %v1238_v47  ;;  %vm1207_vm12 = vcmp.ge.f32.partialorder %v1175_v14, 0.0  ;;  %v1239_v22 = vmul.f32 0.2, %v1175_v14  ;;  %v1112_v26 = vmul.f32 %v13198_v23, %v13117_v6  ;;  %v1502_v6 = vld [vmem:[#allocation2 + $0x68] sm:$0xff] }
 0x140   : > { %v1461_v0 = vsel %vm13424_vm9, %v13494_v50, 0.0  ;;  %1342 = vst.msk [vmem:[#allocation2 + $0xb8] sm:$0xff] %vm17406_vm0, %v1270_v34  ;;  %v1176_v60 = vadd.f32 %v13290_v52, %v1140_v5  ;;  %v1177_v11 = vadd.f32 %v13290_v52, %v1141_v57  ;;  %v1178_v41 = vadd.f32 %v13290_v52, %v1142_v62  ;;  %10673 = vmatmul.mubr.msk.f32.gmra.mxu0 %vm17406_vm0, %v1502_v6  ;;  %v1504_v5 = vld [vmem:[#allocation2 + $0x78] sm:$0xff] }
 0x141   : > { %10736 = vmatprep.mubr.msk.f32.mxu1 %vm17406_vm0, %v1461_v0  ;;  %v1463_v7 = vsel %vm13435_vm11, %v13500_v59, 0.0  ;;  %v1271_v45 = vsel %vm1207_vm12, %v1175_v14, %v1239_v22  ;;  %v1179_v19 = vadd.f32 %v13290_v52, %v1143_v21  ;;  %v1144_v51 = vmul.f32 %v13287_v56, %v13319_v46  ;;  %10675 = vmatprep.mubr.msk.f32.mxu0 %vm17406_vm0, %v1503_v13  ;;  %v13541_v46 = vld [vmem:[#allocation2 + $0x7f] sm:$0xff]  ;;  %v13554_v21 = vld [vmem:[#allocation2 + $0x77] sm:$0xff] }
 0x142   : > { %1343 = vst.msk [vmem:[#allocation2 + $0xc0] sm:$0xff] %vm17406_vm0, %v1271_v45  ;;  %vm1208_vm14 = vcmp.ge.f32.partialorder %v1176_v60, 0.0  ;;  %v1240_v36 = vmul.f32 0.2, %v1176_v60  ;;  %vm1209_vm15 = vcmp.ge.f32.partialorder %v1177_v11, 0.0  ;;  %vm1210_vm4 = vcmp.ge.f32.partialorder %v1178_v41, 0.0  ;;  %10737 = vmatmul.mubr.msk.f32.gmra.mxu1 %vm17406_vm0, %v13533_v49 }
 0x143   : > { %v1241_v42 = vmul.f32 0.2, %v1177_v11  ;;  %v1242_v3 = vmul.f32 0.2, %v1178_v41  ;;  %v1180_v12 = vadd.f32 %v13290_v52, %v1144_v51  ;;  %v1145_v17 = vmul.f32 %v13287_v56, %v13431_v40  ;;  %10739 = vmatprep.mubr.msk.f32.mxu1 %vm17406_vm0, %v1463_v7  ;;  %v1506_v7 = vld [vmem:[#allocation2 + $0x88] sm:$0xff]  ;;  %v1507_v45 = vld [vmem:[#allocation2 + $0x90] sm:$0xff] }
 0x144   : > { %v1272_v1 = vsel %vm1208_vm14, %v1176_v60, %v1240_v36  ;;  %vm1211_vm8 = vcmp.ge.f32.partialorder %v1179_v19, 0.0  ;;  %v1243_v33 = vmul.f32 0.2, %v1179_v19  ;;  %v633_v47 = vand.u32 15, %v13217_v35  ;;  %10676 = vmatmul.mubr.msk.f32.gmra.mxu0 %vm17406_vm0, %v1504_v5  ;;  %v1505_v35 = vld [vmem:[#allocation2 + $0x80] sm:$0xff] }
 0x145   : > { %v1273_v2 = vsel %vm1209_vm15, %v1177_v11, %v1241_v42  ;;  %1344 = vst.msk [vmem:[#allocation2 + $0xc8] sm:$0xff] %vm17406_vm0, %v1272_v1  ;;  %v1274_v40 = vsel %vm1210_vm4, %v1178_v41, %v1242_v3  ;;  %vm1212_vm10 = vcmp.ge.f32.partialorder %v1180_v12, 0.0  ;;  %v1244_v14 = vmul.f32 0.2, %v1180_v12  ;;  %10678 = vmatprep.mubr.msk.f32.mxu0 %vm17406_vm0, %v1505_v35  ;;  %v13592_v1 = vld [vmem:[#allocation2 + $0x9f] sm:$0xff]  ;;  %v1510_v35 = vld [vmem:[#allocation2 + $0xa8] sm:$0xff] }
 0x146   : > { %1345 = vst.msk [vmem:[#allocation2 + $0xd0] sm:$0xff] %vm17406_vm0, %v1273_v2  ;;  %1346 = vst.msk [vmem:[#allocation2 + $0xd8] sm:$0xff] %vm17406_vm0, %v1274_v40  ;;  %v1275_v55 = vsel %vm1211_vm8, %v1179_v19, %v1243_v33  ;;  %v1181_v27 = vadd.f32 %v13290_v52, %v1145_v17  ;;  %v1146_v57 = vmul.f32 %v13287_v56, %v13442_v48  ;;  %v1465_v20 = vsel %vm13486_vm6, %v13541_v46, 0.0  ;;  %v13577_v19 = vld [vmem:[#allocation2 + $0x87] sm:$0xff]  ;;  %v1508_v40 = vld [vmem:[#allocation2 + $0x98] sm:$0xff] }
 0x147   : > { %v1147_v62 = vmul.f32 %v13287_v56, %v13476_v4  ;;  %v605_v34 = vadd.s32 160, %v12854_v29  ;;  %1347 = vst.msk [vmem:[#allocation2 + $0xe0] sm:$0xff] %vm17406_vm0, %v1275_v55  ;;  %v1276_v22 = vsel %vm1212_vm10, %v1180_v12, %v1244_v14  ;;  %v1148_v0 = vmul.f32 %v13287_v56, %v1112_v26  ;;  %10740 = vmatmul.mubr.msk.f32.gmra.mxu1 %vm17406_vm0, %v13554_v21  ;;  %v13573_v26 = vld [vmem:[#allocation2 + $0x8f] sm:$0xff]  ;;  %v1509_v55 = vld [vmem:[#allocation2 + $0xa0] sm:$0xff] }
 0x148   : > { %1348 = vst.msk [vmem:[#allocation2 + $0xe8] sm:$0xff] %vm17406_vm0, %v1276_v22  ;;  %vm1213_vm12 = vcmp.ge.f32.partialorder %v1181_v27, 0.0  ;;  %v1245_v48 = vmul.f32 0.2, %v1181_v27  ;;  %v1182_v4 = vadd.f32 %v13290_v52, %v1146_v57  ;;  %10742 = vmatprep.mubr.msk.f32.mxu1 %vm17406_vm0, %v1465_v20  ;;  %vm13569_vm14 = vcmp.ne.s32.totalorder %v633_v47, 0  ;;  %10679 = vmatmul.mubr.msk.f32.gmra.mxu0 %vm17406_vm0, %v1506_v7  ;;  %v1511_v22 = vld [vmem:[#allocation2 + $0xb0] sm:$0xff] }
 0x149   : > { %v1183_v60 = vadd.f32 %v13290_v52, %v1147_v62  ;;  %v17491_v11 = vmov 0  ;;  %v635_v41 = vand.u32 15, %v13226_v8  ;;  %v1184_v6 = vadd.f32 %v13290_v52, %v1148_v0  ;;  %10681 = vmatprep.mubr.msk.f32.mxu0 %vm17406_vm0, %v1507_v45  ;;  %v13622_v0 = vld [vmem:[#allocation2 + $0xa7] sm:$0xff]  ;;  %v1512_v45 = vld [vmem:[#allocation2 + $0xb8] sm:$0xff] }
 0x14a   : > { %v17492_v11 = vsel %vm13569_vm14, 4294967295, %v17491_v11  ;;  %v1277_v51 = vsel %vm1213_vm12, %v1181_v27, %v1245_v48  ;;  %vm1214_vm15 = vcmp.ge.f32.partialorder %v1182_v4, 0.0  ;;  %v1246_v36 = vmul.f32 0.2, %v1182_v4  ;;  %v13603_v27 = vld [vmem:[#allocation2 + $0x97] sm:$0xff] }
 0x14b   : > { %17493 = vst [vmem:[#allocation29_spill] sm:$0xff] %v17492_v11  ;;  %1349 = vst.msk [vmem:[#allocation2 + $0xf0] sm:$0xff] %vm17406_vm0, %v1277_v51  ;;  %vm1215_vm4 = vcmp.ge.f32.partialorder %v1183_v60, 0.0  ;;  %v1247_v42 = vmul.f32 0.2, %v1183_v60  ;;  %vm1216_vm8 = vcmp.ge.f32.partialorder %v1184_v6, 0.0  ;;  %10743 = vmatmul.mubr.msk.f32.gmra.mxu1 %vm17406_vm0, %v13577_v19  ;;  %v1113_v14 = vmul.f32 %v13198_v23, %v13130_v18 }
 0x14c   : > { %v1248_v13 = vmul.f32 0.2, %v1184_v6  ;;  %v1467_v8 = vsel %vm13569_vm14, %v13573_v26, 0.0  ;;  %v637_v3 = vand.u32 15, %v605_v34  ;;  %v1278_v12 = vsel %vm1214_vm15, %v1182_v4, %v1246_v36  ;;  %10682 = vmatmul.mubr.msk.f32.gmra.mxu0 %vm17406_vm0, %v1508_v40  ;;  %v13640_v51 = vld [vmem:[#allocation2 + $0xb7] sm:$0xff]  ;;  %v1513_v36 = vld [vmem:[#allocation2 + $0xc0] sm:$0xff] }
 0x14d   : > { %10745 = vmatprep.mubr.msk.f32.mxu1 %vm17406_vm0, %v1467_v8  ;;  %vm13588_vm10 = vcmp.ne.s32.totalorder %v635_v41, 0  ;;  %v17494_v17 = vmov 0  ;;  %v607_v2 = vadd.s32 176, %v12854_v29  ;;  %1350 = vst.msk [vmem:[#allocation2 + $0xf8] sm:$0xff] %vm17406_vm0, %v1278_v12  ;;  %v1279_v33 = vsel %vm1215_vm4, %v1183_v60, %v1247_v42  ;;  %10684 = vmatprep.mubr.msk.f32.mxu0 %vm17406_vm0, %v1509_v55  ;;  %v1514_v40 = vld [vmem:[#allocation2 + $0xc8] sm:$0xff] }
 0x14e   : > { %v17495_v17 = vsel %vm13588_vm10, 4294967295, %v17494_v17  ;;  %v1280_v47 = vsel %vm1216_vm8, %v1184_v6, %v1248_v13  ;;  %1351 = vst.msk [vmem:[#allocation2 + $0x100] sm:$0xff] %vm17406_vm0, %v1279_v33  ;;  %v1114_v5 = vmul.f32 %v13198_v23, %v13137_v24  ;;  %v1469_v57 = vsel %vm13588_vm10, %v13592_v1, 0.0  ;;  %v13617_v24 = vld [vmem:[#allocation2 + $0xaf] sm:$0xff]  ;;  %v13637_v6 = vld [vmem:[#allocation2 + $0xbf] sm:$0xff] }
 0x14f   : > { %17496 = vst [vmem:[#allocation30_spill] sm:$0xff] %v17495_v17  ;;  %1352 = vst.msk [vmem:[#allocation2 + $0x108] sm:$0xff] %vm17406_vm0, %v1280_v47  ;;  %10746 = vmatmul.mubr.msk.f32.gmra.mxu1 %vm17406_vm0, %v13603_v27  ;;  %v609_v62 = vadd.s32 192, %v12854_v29  ;;  %vm13613_vm12 = vcmp.ne.s32.totalorder %v637_v3, 0  ;;  %v17497_v18 = vmov 0  ;;  %v639_v23 = vand.u32 15, %v607_v2 }
 0x150   : > { %10748 = vmatprep.mubr.msk.f32.mxu1 %vm17406_vm0, %v1469_v57  ;;  %v17498_v18 = vsel %vm13613_vm12, 4294967295, %v17497_v18  ;;  %v1149_v20 = vmul.f32 %v13287_v56, %v1113_v14  ;;  %v1150_v34 = vmul.f32 %v13287_v56, %v1114_v5  ;;  %10685 = vmatmul.mubr.msk.f32.gmra.mxu0 %vm17406_vm0, %v1510_v35  ;;  %v1471_v48 = vsel %vm13613_vm12, %v13617_v24, 0.0  ;;  %v13654_v3 = vld [vmem:[#allocation2 + $0xcf] sm:$0xff]  ;;  %v13660_v5 = vld [vmem:[#allocation2 + $0xc7] sm:$0xff] }
 0x151   : > { %17499 = vst [vmem:[#allocation31_spill] sm:$0xff] %v17498_v18  ;;  %10687 = vmatprep.mubr.msk.f32.mxu0 %vm17406_vm0, %v1511_v22  ;;  %v641_v4 = vand.u32 15, %v609_v62  ;;  %vm13633_vm15 = vcmp.ne.s32.totalorder %v639_v23, 0  ;;  %v17500_v56 = vmov 0  ;;  %v611_v7 = vadd.s32 208, %v12854_v29  ;;  %v1515_v14 = vld [vmem:[#allocation2 + $0xd0] sm:$0xff] }
 0x152   : > { %v1185_v60 = vadd.f32 %v13290_v52, %v1149_v20  ;;  %v1186_v41 = vadd.f32 %v13290_v52, %v1150_v34  ;;  %v17501_v56 = vsel %vm13633_vm15, 4294967295, %v17500_v56  ;;  %v1473_v13 = vsel %vm13633_vm15, %v13637_v6, 0.0  ;;  %v13673_v62 = vld [vmem:[#allocation2 + $0xdf] sm:$0xff]  ;;  %v13682_v22 = vld [vmem:[#allocation2 + $0xd7] sm:$0xff] }
 0x153   : > { %10749 = vmatmul.mubr.msk.f32.gmra.mxu1 %vm17406_vm0, %v13622_v0  ;;  %17502 = vst [vmem:[#allocation32_spill] sm:$0xff] %v17501_v56  ;;  %vm13649_vm1 = vcmp.ne.s32.totalorder %v641_v4, 0  ;;  %v17503_v8 = vmov 0  ;;  %v643_v12 = vand.u32 15, %v611_v7  ;;  %v613_v2 = vadd.s32 224, %v12854_v29  ;;  %v13676_v20 = vld [vmem:[#allocation2 + $0xd8] sm:$0xff] }
 0x154   : > { %10751 = vmatprep.mubr.msk.f32.mxu1 %vm17406_vm0, %v1471_v48  ;;  %vm1217_vm4 = vcmp.ge.f32.partialorder %v1185_v60, 0.0  ;;  %10688 = vmatmul.mubr.msk.f32.gmra.mxu0 %vm17406_vm0, %v1512_v45  ;;  %v1249_v42 = vmul.f32 0.2, %v1185_v60  ;;  %vm1218_vm8 = vcmp.ge.f32.partialorder %v1186_v41, 0.0  ;;  %v1250_v52 = vmul.f32 0.2, %v1186_v41 }
 0x155   : > { %10690 = vmatprep.mubr.msk.f32.mxu0 %vm17406_vm0, %v1513_v36  ;;  %v17504_v8 = vsel %vm13649_vm1, 4294967295, %v17503_v8  ;;  %v1475_v55 = vsel %vm13649_vm1, %v13654_v3, 0.0  ;;  %v17506_v57 = vmov 0  ;;  %v645_v23 = vand.u32 15, %v613_v2  ;;  %v13680_v34 = vld [vmem:[#allocation2 + $0xe0] sm:$0xff]  ;;  %v13698_v7 = vld [vmem:[#allocation2 + $0xe8] sm:$0xff] }
 0x156   : > { %17505 = vst [vmem:[#allocation33_spill] sm:$0xff] %v17504_v8  ;;  %v1281_v33 = vsel %vm1217_vm4, %v1185_v60, %v1249_v42  ;;  %v1282_v47 = vsel %vm1218_vm8, %v1186_v41, %v1250_v52  ;;  %vm13669_vm4 = vcmp.ne.s32.totalorder %v643_v12, 0  ;;  %v615_v35 = vadd.s32 240, %v12854_v29  ;;  %v13696_v60 = vld [vmem:[#allocation2 + $0xef] sm:$0xff]  ;;  %v13704_v36 = vld [vmem:[#allocation2 + $0xe7] sm:$0xff]  ;;  %v13719_v12 = vld [vmem:[#allocation2 + $0xff] sm:$0xff] }
 0x157   : > { %10752 = vmatmul.mubr.msk.f32.gmra.mxu1 %vm17406_vm0, %v13640_v51  ;;  %1353 = vst.msk [vmem:[#allocation2 + $0x110] sm:$0xff] %vm17406_vm0, %v1281_v33  ;;  %1354 = vst.msk [vmem:[#allocation2 + $0x118] sm:$0xff] %vm17406_vm0, %v1282_v47  ;;  %v17507_v57 = vsel %vm13669_vm4, 4294967295, %v17506_v57  ;;  %v1477_v48 = vsel %vm13669_vm4, %v13673_v62, 0.0  ;;  %vm13692_vm8 = vcmp.ne.s32.totalorder %v645_v23, 0  ;;  %v17509_v4 = vmov 0 }
 0x158   : > { %10754 = vmatprep.mubr.msk.f32.mxu1 %vm17406_vm0, %v1473_v13  ;;  %10691 = vmatmul.mubr.msk.f32.gmra.mxu0 %vm17406_vm0, %v1514_v40  ;;  %17508 = vst [vmem:[#allocation34_spill] sm:$0xff] %v17507_v57  ;;  %v17510_v4 = vsel %vm13692_vm8, 4294967295, %v17509_v4  ;;  %v647_v41 = vand.u32 15, %v615_v35  ;;  %v13702_v45 = vld [vmem:[#allocation2 + $0xf0] sm:$0xff]  ;;  %v586_v42 = vadd.s32 8, %v12854_v29  ;;  %v1479_v52 = vsel %vm13692_vm8, %v13696_v60, 0.0 }
 0x159   : > { %10693 = vmatprep.mubr.msk.f32.mxu0 %vm17406_vm0, %v1515_v14  ;;  %17511 = vst [vmem:[#allocation35_spill] sm:$0xff] %v17510_v4  ;;  %v17512_v13 = vmov 0  ;;  %v13721_v2 = vld [vmem:[#allocation2 + $0xf8] sm:$0xff]  ;;  %v13725_v33 = vld [vmem:[#allocation2 + $0x100] sm:$0xff]  ;;  %v588_v14 = vadd.s32 24, %v12854_v29  ;;  %v13738_v35 = vld [vmem:[#allocation2 + $0x108] sm:$0xff] }
 0x15a   : > { %vm13715_vm4 = vcmp.ne.s32.totalorder %v647_v41, 0  ;;  %17515 = vst [vmem:[#allocation37_spill] sm:$0xff] %v13721_v2  ;;  %17516 = vst [vmem:[#allocation38_spill] sm:$0xff] %v13725_v33  ;;  %v13727_v47 = vld [vmem:[#allocation2 + $0xf7] sm:$0xff]  ;;  %v618_v40 = vand.u32 15, %v586_v42  ;;  %v17518_v41 = vmov 0 }
 0x15b   : > { %10755 = vmatmul.mubr.msk.f32.gmra.mxu1 %vm17406_vm0, %v13660_v5  ;;  %v17513_v13 = vsel %vm13715_vm4, 4294967295, %v17512_v13  ;;  %v2174_v23 = vld [vmem:[#allocation2 + $0x11] sm:$0xff]  ;;  %17517 = vst [vmem:[#allocation39_spill] sm:$0xff] %v13738_v35  ;;  %v2175_v42 = vld [vmem:[#allocation2 + $0x19] sm:$0xff]  ;;  %v598_v43 = vadd.s32 104, %v12854_v29  ;;  %v600_v38 = vadd.s32 120, %v12854_v29 }
 0x15c   : > { %10757 = vmatprep.mubr.msk.f32.mxu1 %vm17406_vm0, %v1475_v55  ;;  %10694 = vmatmul.mubr.msk.f32.gmra.mxu0 %vm17406_vm0, %v13676_v20  ;;  %17514 = vst [vmem:[#allocation36_spill] sm:$0xff] %v17513_v13  ;;  %v1481_v55 = vsel %vm13715_vm4, %v13719_v12, 0.0  ;;  %vm13744_vm8 = vcmp.ne.s32.totalorder %v618_v40, 15  ;;  %v602_v37 = vadd.s32 136, %v12854_v29  ;;  %v604_v15 = vadd.s32 152, %v12854_v29 }
 0x15d   : > { %10696 = vmatprep.mubr.msk.f32.mxu0 %vm17406_vm0, %v13680_v34  ;;  %v17519_v41 = vsel %vm13744_vm8, 4294967295, %v17518_v41  ;;  %v2271_v40 = vsel %vm13744_vm8, %v2175_v42, 0.0  ;;  %v606_v53 = vadd.s32 168, %v12854_v29  ;;  %v610_v17 = vadd.s32 200, %v12854_v29 }
 0x15e   : > { %17520 = vst [vmem:[#allocation40_spill] sm:$0xff] %v17519_v41  ;;  %v612_v18 = vadd.s32 216, %v12854_v29  ;;  %v614_v56 = vadd.s32 232, %v12854_v29  ;;  %v616_v8 = vadd.s32 248, %v12854_v29 }
 0x15f   : > { %10758 = vmatmul.mubr.msk.f32.gmra.mxu1 %vm17406_vm0, %v13682_v22  ;;  %v638_v11 = vand.u32 15, %v606_v53 }
 0x160   : > { %10760 = vmatprep.mubr.msk.f32.mxu1 %vm17406_vm0, %v1477_v48  ;;  %10697 = vmatmul.mubr.msk.f32.gmra.mxu0 %vm17406_vm0, %v13698_v7  ;;  %v13742_v48 = vld [vmem:[#allocation2 + $0x107] sm:$0xff] }
 0x161   : > { %10699 = vmatprep.mubr.msk.f32.mxu0 %vm17406_vm0, %v13702_v45 }
 0x163   : > { %10761 = vmatmul.mubr.msk.f32.gmra.mxu1 %vm17406_vm0, %v13704_v36 }
 0x164   : > { %10763 = vmatprep.mubr.msk.f32.mxu1 %vm17406_vm0, %v1479_v52  ;;  %10700 = vmatmul.mubr.msk.f32.gmra.mxu0 %vm17406_vm0, %v13721_v2  ;;  %v620_v52 = vand.u32 15, %v588_v14  ;;  %v9402_v14 = vld [vmem:[%s17275_s6 + $0x130] sm:$0xff]  ;;  %v13762_v2 = vld [vmem:[#allocation2 + $0x21] sm:$0xff] }
 0x165   : > { %10702 = vmatprep.mubr.msk.f32.mxu0 %vm17406_vm0, %v13725_v33  ;;  %v10723_v33 = vpop.f32.mrf.mxu1 }
 0x166   : > { %vm13764_vm4 = vcmp.ne.s32.totalorder %v620_v52, 15 }
 0x167   : > { %10764 = vmatmul.mubr.msk.f32.gmra.mxu1 %vm17406_vm0, %v13727_v47  ;;  %v17522_v54 = vsel %vm13764_vm4, 4294967295, %v17521_v54 }
 0x168   : > { %10766 = vmatprep.mubr.msk.f32.mxu1 %vm17406_vm0, %v1481_v55  ;;  %10703 = vmatmul.mubr.msk.f32.gmra.mxu0 %vm17406_vm0, %v13738_v35  ;;  %v2696_v55 = vsel %vm12883_vm2, %v13383_v32, 0.0  ;;  %v10659_v35 = vpop.f32.mrf.mxu0  ;;  %17523 = vst [vmem:[#allocation41_spill] sm:$0xff] %v17522_v54  ;;  %v13768_v32 = vld [vmem:[#allocation2 + $0x29] sm:$0xff] }
 0x169   : > { %10785 = vmatprep.mubr.msk.f32.mxu0 %vm17406_vm0, %v2174_v23  ;;  %v622_v23 = vand.u32 15, %v590_v30  ;;  %v13771_v42 = vadd.f32 %v10723_v33, %v10659_v35  ;;  %v2698_v30 = vsel %vm13340_vm5, %v13397_v28, 0.0  ;;  %v9400_v33 = vld [vmem:[%s17275_s6 + $0x120] sm:$0xff]  ;;  %v13792_v35 = vld [vmem:[#allocation2 + $0x31] sm:$0xff] }
 0x16a   : > { %v13798_v28 = vld [vmem:[#allocation2 + $0x39] sm:$0xff] }
 0x16b   : > { %10767 = vmatmul.mubr.msk.f32.gmra.mxu1 %vm17406_vm0, %v13742_v48  ;;  %17524 = vst [vmem:[#allocation42_spill] sm:$0xff] %v13771_v42  ;;  %vm13794_vm2 = vcmp.ne.s32.totalorder %v622_v23, 15  ;;  %v2700_v23 = vsel %vm13346_vm7, %v13420_v10, 0.0  ;;  %v13825_v10 = vld [vmem:[#allocation2 + $0x49] sm:$0xff]  ;;  %v596_v42 = vadd.s32 88, %v12854_v29 }
 0x16c   : > { %10849 = vmatprep.mubr.msk.f32.mxu1 %vm17406_vm0, %v2696_v55  ;;  %10786 = vmatmul.mubr.msk.f32.vlgmr.msra.gmra.mxu0 %vm17406_vm0, %v2271_v40  ;;  %v592_v55 = vadd.s32 56, %v12854_v29  ;;  %v9401_v40 = vld [vmem:[%s17275_s6 + $0x128] sm:$0xff] }
 0x16d   : > { %10898 = vmatpush3.msra.mxu0 %v13174_v39  ;;  %10788 = vmatprep.mubr.msk.f32.mxu0 %vm17406_vm0, %v13762_v2  ;;  %v2273_v39 = vsel %vm13764_vm4, %v13768_v32, 0.0 }
 0x16e   : > { %10899 = vmatprep.subr.mxu0 %v9402_v14  ;;  %v624_v52 = vand.u32 15, %v592_v55  ;;  %v2275_v55 = vsel %vm13794_vm2, %v13798_v28, 0.0 }
 0x16f   : > { %10850 = vmatmul.mubr.msk.f32.vlgmr.msra.gmra.mxu1 %vm17406_vm0, %v13401_v58  ;;  %10900 = vmatpush3.msra.mxu0 %v9402_v14  ;;  %v17525_v58 = vmov 0  ;;  %v9399_v14 = vld [vmem:[%s17275_s6 + $0x118] sm:$0xff] }
 0x170   : > { %10852 = vmatprep.mubr.msk.f32.mxu1 %vm17406_vm0, %v2698_v30  ;;  %10789 = vmatmul.mubr.msk.f32.gmra.mxu0 %vm17406_vm0, %v2273_v39  ;;  %v17526_v58 = vsel %vm13794_vm2, 4294967295, %v17525_v58  ;;  %v594_v30 = vadd.s32 72, %v12854_v29  ;;  %v13819_v39 = vld [vmem:[#allocation2 + $0x41] sm:$0xff]  ;;  %vm13821_vm5 = vcmp.ne.s32.totalorder %v624_v52, 15  ;;  %v2702_v52 = vsel %vm13361_vm13, %v13457_v16, 0.0  ;;  %v13852_v16 = vld [vmem:[#allocation2 + $0x59] sm:$0xff] }
 0x171   : > { %17527 = vst [vmem:[#allocation43_spill] sm:$0xff] %v17526_v58  ;;  %10901 = vmatprep.subr.mxu0 %v9401_v40  ;;  %10791 = vmatprep.mubr.msk.f32.mxu0 %vm17406_vm0, %v13792_v35 }
 0x172   : > { %10902 = vmatpush3.msra.mxu0 %v9401_v40  ;;  %v9398_v40 = vld [vmem:[%s17275_s6 + $0x110] sm:$0xff]  ;;  %10962 = vmatpush3.msra.mxu1 %v13303_v61  ;;  %v9440_v61 = vld [vmem:[%s17275_s6 + $0x160] sm:$0xff] }
 0x173   : > { %10853 = vmatmul.mubr.msk.f32.gmra.mxu1 %vm17406_vm0, %v13445_v25  ;;  %10903 = vmatprep.subr.mxu0 %v9400_v33  ;;  %v17528_v25 = vmov 0 }
 0x174   : > { %10855 = vmatprep.mubr.msk.f32.mxu1 %vm17406_vm0, %v2700_v23  ;;  %10904 = vmatpush3.msra.mxu0 %v9400_v33  ;;  %v17529_v25 = vsel %vm13821_vm5, 4294967295, %v17528_v25  ;;  %v626_v23 = vand.u32 15, %v594_v30  ;;  %v9397_v33 = vld [vmem:[%s17275_s6 + $0x108] sm:$0xff]  ;;  %v2277_v30 = vsel %vm13821_vm5, %v13825_v10, 0.0 }
 0x175   : > { %10792 = vmatmul.mubr.msk.f32.gmra.mxu0 %vm17406_vm0, %v2275_v55  ;;  %17530 = vst [vmem:[#allocation44_spill] sm:$0xff] %v17529_v25  ;;  %10905 = vmatprep.subr.mxu0 %v9399_v14  ;;  %v13846_v55 = vld [vmem:[#allocation2 + $0x51] sm:$0xff] }
 0x176   : > { %10794 = vmatprep.mubr.msk.f32.mxu0 %vm17406_vm0, %v13819_v39  ;;  %10906 = vmatpush3.msra.mxu0 %v9399_v14  ;;  %v9396_v14 = vld [vmem:[%s17275_s6 + $0x100] sm:$0xff]  ;;  %vm13848_vm7 = vcmp.ne.s32.totalorder %v626_v23, 15  ;;  %v2704_v23 = vsel %vm13387_vm3, %v13494_v50, 0.0  ;;  %v13880_v50 = vld [vmem:[#allocation2 + $0x69] sm:$0xff] }
 0x177   : > { %10856 = vmatmul.mubr.msk.f32.gmra.mxu1 %vm17406_vm0, %v13470_v63  ;;  %10907 = vmatprep.subr.mxu0 %v9398_v40  ;;  %v17531_v63 = vmov 0 }
 0x178   : > { %10858 = vmatprep.mubr.msk.f32.mxu1 %vm17406_vm0, %v2702_v52  ;;  %10908 = vmatpush3.msra.mxu0 %v9398_v40  ;;  %v17532_v63 = vsel %vm13848_vm7, 4294967295, %v17531_v63  ;;  %v628_v52 = vand.u32 15, %v596_v42  ;;  %v9442_v40 = vld [vmem:[%s17275_s6 + $0x170] sm:$0xff]  ;;  %v2279_v42 = vsel %vm13848_vm7, %v13852_v16, 0.0 }
 0x179   : > { %10795 = vmatmul.mubr.msk.f32.gmra.mxu0 %vm17406_vm0, %v2277_v30  ;;  %17533 = vst [vmem:[#allocation45_spill] sm:$0xff] %v17532_v63  ;;  %10909 = vmatprep.subr.mxu0 %v9397_v33  ;;  %v17534_v30 = vmov 0 }
 0x17a   : > { %10797 = vmatprep.mubr.msk.f32.mxu0 %vm17406_vm0, %v13846_v55  ;;  %10910 = vmatpush3.msra.mxu0 %v9397_v33  ;;  %v9441_v33 = vld [vmem:[%s17275_s6 + $0x168] sm:$0xff]  ;;  %vm13876_vm13 = vcmp.ne.s32.totalorder %v628_v52, 15  ;;  %v2706_v52 = vsel %vm13424_vm9, %v13500_v59, 0.0  ;;  %v13909_v59 = vld [vmem:[#allocation2 + $0x79] sm:$0xff] }
 0x17b   : > { %10859 = vmatmul.mubr.msk.f32.gmra.mxu1 %vm17406_vm0, %v13509_v31  ;;  %10911 = vmatprep.subr.mxu0 %v9396_v14  ;;  %v13874_v31 = vld [vmem:[#allocation2 + $0x61] sm:$0xff]  ;;  %v17535_v30 = vsel %vm13876_vm13, 4294967295, %v17534_v30 }
 0x17c   : > { %10861 = vmatprep.mubr.msk.f32.mxu1 %vm17406_vm0, %v2704_v23  ;;  %17536 = vst [vmem:[#allocation46_spill] sm:$0xff] %v17535_v30  ;;  %v630_v23 = vand.u32 15, %v598_v43  ;;  %10963 = vmatprep.subr.mxu1 %v9442_v40  ;;  %v2281_v43 = vsel %vm13876_vm13, %v13880_v50, 0.0 }
 0x17d   : > { %10798 = vmatmul.mubr.msk.f32.gmra.mxu0 %vm17406_vm0, %v2279_v42  ;;  %10964 = vmatpush3.msra.mxu1 %v9442_v40  ;;  %v13900_v40 = vld [vmem:[%s17275_s6 + $0x1b8] sm:$0xff]  ;;  %v17537_v42 = vmov 0 }
 0x17e   : > { %10800 = vmatprep.mubr.msk.f32.mxu0 %vm17406_vm0, %v13874_v31  ;;  %10965 = vmatprep.subr.mxu1 %v9441_v33  ;;  %vm13905_vm3 = vcmp.ne.s32.totalorder %v630_v23, 15  ;;  %v2708_v23 = vsel %vm13435_vm11, %v13541_v46, 0.0  ;;  %v13937_v46 = vld [vmem:[#allocation2 + $0x89] sm:$0xff] }
 0x17f   : > { %10862 = vmatmul.mubr.msk.f32.gmra.mxu1 %vm17406_vm0, %v13533_v49  ;;  %v13903_v49 = vld [vmem:[#allocation2 + $0x71] sm:$0xff]  ;;  %v17538_v42 = vsel %vm13905_vm3, 4294967295, %v17537_v42  ;;  %10912 = vmatpush3.msra.mxu0 %v9396_v14 }
 0x180   : > { %10864 = vmatprep.mubr.msk.f32.mxu1 %vm17406_vm0, %v2706_v52  ;;  %10966 = vmatpush3.msra.mxu1 %v9441_v33  ;;  %17539 = vst [vmem:[#allocation47_spill] sm:$0xff] %v17538_v42  ;;  %v632_v52 = vand.u32 15, %v600_v38  ;;  %v9439_v33 = vld [vmem:[%s17275_s6 + $0x158] sm:$0xff]  ;;  %v2283_v38 = vsel %vm13905_vm3, %v13909_v59, 0.0  ;;  %v9438_v14 = vld [vmem:[%s17275_s6 + $0x150] sm:$0xff] }
 0x181   : > { %10801 = vmatmul.mubr.msk.f32.gmra.mxu0 %vm17406_vm0, %v2281_v43  ;;  %10967 = vmatprep.subr.mxu1 %v9440_v61  ;;  %v17540_v43 = vmov 0 }
 0x182   : > { %10803 = vmatprep.mubr.msk.f32.mxu0 %vm17406_vm0, %v13903_v49  ;;  %11025 = vmatprep.subr.mxu0 %v13900_v40  ;;  %vm13933_vm9 = vcmp.ne.s32.totalorder %v632_v52, 15  ;;  %v2710_v52 = vsel %vm13486_vm6, %v13573_v26, 0.0  ;;  %v13964_v26 = vld [vmem:[#allocation2 + $0x99] sm:$0xff] }
 0x183   : > { %10865 = vmatmul.mubr.msk.f32.gmra.mxu1 %vm17406_vm0, %v13554_v21  ;;  %v13931_v21 = vld [vmem:[#allocation2 + $0x81] sm:$0xff]  ;;  %v17541_v43 = vsel %vm13933_vm9, 4294967295, %v17540_v43 }
 0x184   : > { %10867 = vmatprep.mubr.msk.f32.mxu1 %vm17406_vm0, %v2708_v23  ;;  %10968 = vmatpush3.msra.mxu1 %v9440_v61  ;;  %17542 = vst [vmem:[#allocation48_spill] sm:$0xff] %v17541_v43  ;;  %v634_v23 = vand.u32 15, %v602_v37  ;;  %v9437_v61 = vld [vmem:[%s17275_s6 + $0x148] sm:$0xff]  ;;  %v2285_v37 = vsel %vm13933_vm9, %v13937_v46, 0.0  ;;  %v5281_v43 = vld [vmem:[#allocation4 + $0x38] sm:$0xff] }
 0x185   : > { %10804 = vmatmul.mubr.msk.f32.gmra.mxu0 %vm17406_vm0, %v2283_v38  ;;  %10969 = vmatprep.subr.mxu1 %v9439_v33  ;;  %v13958_v38 = vld [vmem:[#allocation2 + $0x91] sm:$0xff] }
 0x186   : > { %10806 = vmatprep.mubr.msk.f32.mxu0 %vm17406_vm0, %v13931_v21  ;;  %10970 = vmatpush3.msra.mxu1 %v9439_v33  ;;  %v9436_v33 = vld [vmem:[%s17275_s6 + $0x140] sm:$0xff]  ;;  %vm13960_vm11 = vcmp.ne.s32.totalorder %v634_v23, 15  ;;  %v2712_v23 = vsel %vm13569_vm14, %v13592_v1, 0.0  ;;  %v608_v1 = vadd.s32 184, %v12854_v29  ;;  %vm14008_vm14 = vcmp.ne.s32.totalorder %v638_v11, 15 }
 0x187   : > { %10868 = vmatmul.mubr.msk.f32.gmra.mxu1 %vm17406_vm0, %v13577_v19  ;;  %10971 = vmatprep.subr.mxu1 %v9438_v14  ;;  %v17543_v19 = vmov 0  ;;  %v17562_v29 = vmov 0 }
 0x188   : > { %10870 = vmatprep.mubr.msk.f32.mxu1 %vm17406_vm0, %v2710_v52  ;;  %10972 = vmatpush3.msra.mxu1 %v9438_v14  ;;  %v17544_v19 = vsel %vm13960_vm11, 4294967295, %v17543_v19  ;;  %v636_v52 = vand.u32 15, %v604_v15  ;;  %v13972_v14 = vld [vmem:[%s17275_s6 + $0x1f8] sm:$0xff]  ;;  %v2287_v15 = vsel %vm13960_vm11, %v13964_v26, 0.0 }
 0x189   : > { %10807 = vmatmul.mubr.msk.f32.gmra.mxu0 %vm17406_vm0, %v2285_v37  ;;  %17545 = vst [vmem:[#allocation49_spill] sm:$0xff] %v17544_v19  ;;  %10973 = vmatprep.subr.mxu1 %v9437_v61  ;;  %v17546_v37 = vmov 0 }
 0x18a   : > { %10809 = vmatprep.mubr.msk.f32.mxu0 %vm17406_vm0, %v13958_v38  ;;  %10974 = vmatpush3.msra.mxu1 %v9437_v61  ;;  %v13984_v61 = vld [vmem:[#allocation2 + $0xa1] sm:$0xff]  ;;  %vm13986_vm6 = vcmp.ne.s32.totalorder %v636_v52, 15  ;;  %v14006_v52 = vld [vmem:[#allocation2 + $0xb1] sm:$0xff] }
 0x18b   : > { %10871 = vmatmul.mubr.msk.f32.gmra.mxu1 %vm17406_vm0, %v13603_v27  ;;  %10975 = vmatprep.subr.mxu1 %v9436_v33  ;;  %v17547_v37 = vsel %vm13986_vm6, 4294967295, %v17546_v37  ;;  %v13990_v27 = vld [vmem:[#allocation2 + $0xa9] sm:$0xff] }
 0x18c   : > { %10873 = vmatprep.mubr.msk.f32.mxu1 %vm17406_vm0, %v2712_v23  ;;  %10976 = vmatpush3.msra.mxu1 %v9436_v33  ;;  %17548 = vst [vmem:[#allocation50_spill] sm:$0xff] %v17547_v37  ;;  %v2714_v33 = vsel %vm13588_vm10, %v13617_v24, 0.0  ;;  %v2289_v53 = vsel %vm13986_vm6, %v13990_v27, 0.0  ;;  %v17549_v23 = vmov 0  ;;  %v2716_v24 = vsel %vm13613_vm12, %v13637_v6, 0.0 }
 0x18d   : > { %10810 = vmatmul.mubr.msk.f32.gmra.mxu0 %vm17406_vm0, %v2287_v15  ;;  %11089 = vmatprep.subr.mxu1 %v13972_v14  ;;  %v17550_v23 = vsel %vm14008_vm14, 4294967295, %v17549_v23  ;;  %v14012_v15 = vld [vmem:[#allocation2 + $0xb9] sm:$0xff]  ;;  %v2718_v6 = vsel %vm13633_vm15, %v13654_v3, 0.0  ;;  %v2720_v3 = vsel %vm13649_vm1, %v13673_v62, 0.0  ;;  %vm17561_vm1 = vnez %v17507_v57 }
 0x18e   : > { %10812 = vmatprep.mubr.msk.f32.mxu0 %vm17406_vm0, %v13984_v61  ;;  %17551 = vst [vmem:[#allocation51_spill] sm:$0xff] %v17550_v23  ;;  %v2291_v11 = vsel %vm14008_vm14, %v14012_v15, 0.0  ;;  %v2722_v62 = vsel %vm17561_vm1, %v13696_v60, 0.0  ;;  %vm17565_vm1 = vnez %v17510_v4 }
 0x18f   : > { %10874 = vmatmul.mubr.msk.f32.gmra.mxu1 %vm17406_vm0, %v13622_v0  ;;  %v640_v0 = vand.u32 15, %v608_v1  ;;  %v14027_v1 = vld [vmem:[#allocation2 + $0xc1] sm:$0xff]  ;;  %v2724_v60 = vsel %vm17565_vm1, %v13719_v12, 0.0  ;;  %vm17569_vm1 = vnez %v17513_v13 }
 0x190   : > { %10876 = vmatprep.mubr.msk.f32.mxu1 %vm17406_vm0, %v2714_v33  ;;  %v17552_v33 = vmov 0 }
 0x191   : > { %10813 = vmatmul.mubr.msk.f32.gmra.mxu0 %vm17406_vm0, %v2289_v53  ;;  %vm14029_vm10 = vcmp.ne.s32.totalorder %v640_v0, 15  ;;  %v14033_v53 = vld [vmem:[#allocation2 + $0xc9] sm:$0xff] }
 0x192   : > { %10815 = vmatprep.mubr.msk.f32.mxu0 %vm17406_vm0, %v14006_v52  ;;  %v17553_v33 = vsel %vm14029_vm10, 4294967295, %v17552_v33  ;;  %v2293_v0 = vsel %vm14029_vm10, %v14033_v53, 0.0 }
 0x193   : > { %10877 = vmatmul.mubr.msk.f32.gmra.mxu1 %vm17406_vm0, %v13640_v51  ;;  %17554 = vst [vmem:[#allocation52_spill] sm:$0xff] %v17553_v33  ;;  %v642_v51 = vand.u32 15, %v610_v17  ;;  %v14048_v17 = vld [vmem:[#allocation2 + $0xd1] sm:$0xff] }
 0x194   : > { %10879 = vmatprep.mubr.msk.f32.mxu1 %vm17406_vm0, %v2716_v24  ;;  %v17555_v24 = vmov 0 }
 0x195   : > { %10816 = vmatmul.mubr.msk.f32.gmra.mxu0 %vm17406_vm0, %v2291_v11  ;;  %vm14050_vm12 = vcmp.ne.s32.totalorder %v642_v51, 15  ;;  %v14054_v11 = vld [vmem:[#allocation2 + $0xd9] sm:$0xff] }
 0x196   : > { %10818 = vmatprep.mubr.msk.f32.mxu0 %vm17406_vm0, %v14027_v1  ;;  %v17556_v24 = vsel %vm14050_vm12, 4294967295, %v17555_v24  ;;  %v2295_v51 = vsel %vm14050_vm12, %v14054_v11, 0.0 }
 0x197   : > { %10880 = vmatmul.mubr.msk.f32.gmra.mxu1 %vm17406_vm0, %v13660_v5  ;;  %17557 = vst [vmem:[#allocation53_spill] sm:$0xff] %v17556_v24  ;;  %v644_v5 = vand.u32 15, %v612_v18  ;;  %v14069_v18 = vld [vmem:[#allocation2 + $0xe1] sm:$0xff] }
 0x198   : > { %10882 = vmatprep.mubr.msk.f32.mxu1 %vm17406_vm0, %v2718_v6  ;;  %v17558_v6 = vmov 0 }
 0x199   : > { %10819 = vmatmul.mubr.msk.f32.gmra.mxu0 %vm17406_vm0, %v2293_v0  ;;  %vm14071_vm15 = vcmp.ne.s32.totalorder %v644_v5, 15  ;;  %v14075_v0 = vld [vmem:[#allocation2 + $0xe9] sm:$0xff] }
 0x19a   : > { %10821 = vmatprep.mubr.msk.f32.mxu0 %vm17406_vm0, %v14048_v17  ;;  %v17559_v6 = vsel %vm14071_vm15, 4294967295, %v17558_v6  ;;  %v2297_v5 = vsel %vm14071_vm15, %v14075_v0, 0.0 }
 0x19b   : > { %10883 = vmatmul.mubr.msk.f32.gmra.mxu1 %vm17406_vm0, %v13682_v22  ;;  %17560 = vst [vmem:[#allocation54_spill] sm:$0xff] %v17559_v6  ;;  %v646_v22 = vand.u32 15, %v614_v56  ;;  %v14090_v56 = vld [vmem:[#allocation2 + $0xf1] sm:$0xff] }
 0x19c   : > { %10885 = vmatprep.mubr.msk.f32.mxu1 %vm17406_vm0, %v2720_v3  ;;  %v14096_v3 = vld [vmem:[#allocation2 + $0xf9] sm:$0xff] }
 0x19d   : > { %10822 = vmatmul.mubr.msk.f32.gmra.mxu0 %vm17406_vm0, %v2295_v51  ;;  %vm14092_vm12 = vcmp.ne.s32.totalorder %v646_v22, 15  ;;  %v14109_v22 = vld [vmem:[#allocation2 + $0x10f] sm:$0xff] }
 0x19e   : > { %10824 = vmatprep.mubr.msk.f32.mxu0 %vm17406_vm0, %v14069_v18  ;;  %v17563_v29 = vsel %vm14092_vm12, 4294967295, %v17562_v29  ;;  %v2299_v51 = vsel %vm14092_vm12, %v14096_v3, 0.0  ;;  %v2726_v12 = vsel %vm17569_vm1, %v14109_v22, 0.0 }
 0x19f   : > { %10886 = vmatmul.mubr.msk.f32.gmra.mxu1 %vm17406_vm0, %v13704_v36  ;;  %17564 = vst [vmem:[#allocation55_spill] sm:$0xff] %v17563_v29  ;;  %v648_v36 = vand.u32 15, %v616_v8  ;;  %v14112_v8 = vld [vmem:[#allocation2 + $0x101] sm:$0xff] }
 0x1a0   : > { %10888 = vmatprep.mubr.msk.f32.mxu1 %vm17406_vm0, %v2722_v62  ;;  %v17566_v62 = vmov 0 }
 0x1a1   : > { %10825 = vmatmul.mubr.msk.f32.gmra.mxu0 %vm17406_vm0, %v2297_v5  ;;  %vm14114_vm15 = vcmp.ne.s32.totalorder %v648_v36, 15  ;;  %v3090_v36 = vld [vmem:[#allocation2 + $0x20] sm:$0xff] }
 0x1a2   : > { %10827 = vmatprep.mubr.msk.f32.mxu0 %vm17406_vm0, %v14090_v56  ;;  %v17567_v62 = vsel %vm14114_vm15, 4294967295, %v17566_v62 }
 0x1a3   : > { %10889 = vmatmul.mubr.msk.f32.gmra.mxu1 %vm17406_vm0, %v13727_v47  ;;  %17568 = vst [vmem:[#allocation56_spill] sm:$0xff] %v17567_v62  ;;  %v14118_v47 = vld [vmem:[#allocation2 + $0x109] sm:$0xff] }
 0x1a4   : > { %10891 = vmatprep.mubr.msk.f32.mxu1 %vm17406_vm0, %v2724_v60  ;;  %v2301_v5 = vsel %vm14114_vm15, %v14118_v47, 0.0  ;;  %v14132_v60 = vld [vmem:[#allocation2 + $0x117] sm:$0xff] }
 0x1a5   : > { %10828 = vmatmul.mubr.msk.f32.gmra.mxu0 %vm17406_vm0, %v2299_v51  ;;  %v9482_v51 = vld [vmem:[%s17275_s6 + $0x1b0] sm:$0xff] }
 0x1a6   : > { %10830 = vmatprep.mubr.msk.f32.mxu0 %vm17406_vm0, %v14112_v8 }
 0x1a7   : > { %10892 = vmatmul.mubr.msk.f32.gmra.mxu1 %vm17406_vm0, %v13742_v48  ;;  %v3091_v48 = vld [vmem:[#allocation2 + $0x28] sm:$0xff] }
 0x1a8   : > { %10894 = vmatprep.mubr.msk.f32.mxu1 %vm17406_vm0, %v2726_v12  ;;  %v14143_v12 = vld [vmem:[#allocation2 + $0x30] sm:$0xff] }
 0x1a9   : > { %10831 = vmatmul.mubr.msk.f32.gmra.mxu0 %vm17406_vm0, %v2301_v5  ;;  %v3517_v5 = vsel %vm13744_vm8, %v13768_v32, 0.0  ;;  %v14164_v32 = vld [vmem:[#allocation2 + $0x40] sm:$0xff] }
 0x1aa   : > { %10913 = vmatprep.mubr.msk.f32.mxu0 %vm17406_vm0, %v3090_v36  ;;  %v14157_v36 = vld [vmem:[#allocation2 + $0x38] sm:$0xff] }
 0x1ab   : > { %10895 = vmatmul.mubr.msk.f32.gmra.mxu1 %vm17406_vm0, %v14132_v60 }
 0x1ac   : > { %10977 = vmatprep.mubr.msk.f32.mxu1 %vm17406_vm0, %v13762_v2  ;;  %v9481_v2 = vld [vmem:[%s17275_s6 + $0x1a8] sm:$0xff] }
 0x1ad   : > { %10914 = vmatmul.mubr.msk.f32.vlgmr.msra.gmra.mxu0 %vm17406_vm0, %v3091_v48  ;;  %v9479_v48 = vld [vmem:[%s17275_s6 + $0x198] sm:$0xff] }
 0x1ae   : > { %11026 = vmatpush3.msra.mxu0 %v13900_v40  ;;  %10916 = vmatprep.mubr.msk.f32.mxu0 %vm17406_vm0, %v14143_v12  ;;  %v9480_v40 = vld [vmem:[%s17275_s6 + $0x1a0] sm:$0xff] }
 0x1af   : > { %10978 = vmatmul.mubr.msk.f32.vlgmr.msra.gmra.mxu1 %vm17406_vm0, %v3517_v5  ;;  %11027 = vmatprep.subr.mxu0 %v9482_v51  ;;  %v9478_v5 = vld [vmem:[%s17275_s6 + $0x190] sm:$0xff] }
 0x1b0   : > { %10980 = vmatprep.mubr.msk.f32.mxu1 %vm17406_vm0, %v13792_v35  ;;  %11028 = vmatpush3.msra.mxu0 %v9482_v51  ;;  %v3519_v35 = vsel %vm13764_vm4, %v13798_v28, 0.0  ;;  %v14177_v51 = vld [vmem:[#allocation2 + $0x48] sm:$0xff]  ;;  %v14184_v28 = vld [vmem:[#allocation2 + $0x50] sm:$0xff] }
 0x1b1   : > { %10917 = vmatmul.mubr.msk.f32.gmra.mxu0 %vm17406_vm0, %v14157_v36  ;;  %11029 = vmatprep.subr.mxu0 %v9481_v2 }
 0x1b2   : > { %10919 = vmatprep.mubr.msk.f32.mxu0 %vm17406_vm0, %v14164_v32  ;;  %11030 = vmatpush3.msra.mxu0 %v9481_v2  ;;  %v9477_v2 = vld [vmem:[%s17275_s6 + $0x188] sm:$0xff] }
 0x1b3   : > { %10981 = vmatmul.mubr.msk.f32.gmra.mxu1 %vm17406_vm0, %v3519_v35  ;;  %11031 = vmatprep.subr.mxu0 %v9480_v40  ;;  %v9476_v35 = vld [vmem:[%s17275_s6 + $0x180] sm:$0xff] }
 0x1b4   : > { %10983 = vmatprep.mubr.msk.f32.mxu1 %vm17406_vm0, %v13819_v39  ;;  %11032 = vmatpush3.msra.mxu0 %v9480_v40  ;;  %v3521_v39 = vsel %vm13794_vm2, %v13825_v10, 0.0  ;;  %v14197_v40 = vld [vmem:[#allocation2 + $0x58] sm:$0xff]  ;;  %v14204_v10 = vld [vmem:[#allocation2 + $0x60] sm:$0xff] }
 0x1b5   : > { %10920 = vmatmul.mubr.msk.f32.gmra.mxu0 %vm17406_vm0, %v14177_v51  ;;  %11033 = vmatprep.subr.mxu0 %v9479_v48 }
 0x1b6   : > { %10922 = vmatprep.mubr.msk.f32.mxu0 %vm17406_vm0, %v14184_v28  ;;  %11034 = vmatpush3.msra.mxu0 %v9479_v48  ;;  %v9522_v48 = vld [vmem:[%s17275_s6 + $0x1f0] sm:$0xff] }
 0x1b7   : > { %10984 = vmatmul.mubr.msk.f32.gmra.mxu1 %vm17406_vm0, %v3521_v39  ;;  %11035 = vmatprep.subr.mxu0 %v9478_v5  ;;  %v9521_v39 = vld [vmem:[%s17275_s6 + $0x1e8] sm:$0xff] }
 0x1b8   : > { %10986 = vmatprep.mubr.msk.f32.mxu1 %vm17406_vm0, %v13846_v55  ;;  %11036 = vmatpush3.msra.mxu0 %v9478_v5  ;;  %v3523_v55 = vsel %vm13821_vm5, %v13852_v16, 0.0  ;;  %v14217_v5 = vld [vmem:[#allocation2 + $0x68] sm:$0xff]  ;;  %v14225_v16 = vld [vmem:[#allocation2 + $0x70] sm:$0xff] }
 0x1b9   : > { %10923 = vmatmul.mubr.msk.f32.gmra.mxu0 %vm17406_vm0, %v14197_v40  ;;  %11037 = vmatprep.subr.mxu0 %v9477_v2 }
 0x1ba   : > { %10925 = vmatprep.mubr.msk.f32.mxu0 %vm17406_vm0, %v14204_v10  ;;  %11038 = vmatpush3.msra.mxu0 %v9477_v2  ;;  %v14238_v2 = vld [vmem:[#allocation2 + $0x78] sm:$0xff] }
 0x1bb   : > { %10987 = vmatmul.mubr.msk.f32.gmra.mxu1 %vm17406_vm0, %v3523_v55  ;;  %11039 = vmatprep.subr.mxu0 %v9476_v35  ;;  %v14243_v55 = vld [vmem:[%s17275_s6 + $0x238] sm:$0xff] }
 0x1bc   : > { %10989 = vmatprep.mubr.msk.f32.mxu1 %vm17406_vm0, %v13874_v31  ;;  %11090 = vmatpush3.msra.mxu1 %v13972_v14  ;;  %v3525_v31 = vsel %vm13848_vm7, %v13880_v50, 0.0  ;;  %v9520_v14 = vld [vmem:[%s17275_s6 + $0x1e0] sm:$0xff] }
 0x1bd   : > { %10926 = vmatmul.mubr.msk.f32.gmra.mxu0 %vm17406_vm0, %v14217_v5  ;;  %11091 = vmatprep.subr.mxu1 %v9522_v48  ;;  %v14247_v50 = vld [vmem:[#allocation2 + $0x80] sm:$0xff] }
 0x1be   : > { %10928 = vmatprep.mubr.msk.f32.mxu0 %vm17406_vm0, %v14225_v16  ;;  %11092 = vmatpush3.msra.mxu1 %v9522_v48  ;;  %v9519_v48 = vld [vmem:[%s17275_s6 + $0x1d8] sm:$0xff] }
 0x1bf   : > { %10990 = vmatmul.mubr.msk.f32.gmra.mxu1 %vm17406_vm0, %v3525_v31  ;;  %11093 = vmatprep.subr.mxu1 %v9521_v39  ;;  %v9518_v31 = vld [vmem:[%s17275_s6 + $0x1d0] sm:$0xff] }
 0x1c0   : > { %10992 = vmatprep.mubr.msk.f32.mxu1 %vm17406_vm0, %v13903_v49  ;;  %11094 = vmatpush3.msra.mxu1 %v9521_v39  ;;  %v3527_v49 = vsel %vm13876_vm13, %v13909_v59, 0.0  ;;  %v14261_v39 = vld [vmem:[#allocation2 + $0x88] sm:$0xff]  ;;  %v14268_v59 = vld [vmem:[#allocation2 + $0x90] sm:$0xff] }
 0x1c1   : > { %10929 = vmatmul.mubr.msk.f32.gmra.mxu0 %vm17406_vm0, %v14238_v2  ;;  %11095 = vmatprep.subr.mxu1 %v9520_v14 }
 0x1c2   : > { %10931 = vmatprep.mubr.msk.f32.mxu0 %vm17406_vm0, %v14247_v50  ;;  %11040 = vmatpush3.msra.mxu0 %v9476_v35  ;;  %v9517_v35 = vld [vmem:[%s17275_s6 + $0x1c8] sm:$0xff] }
 0x1c3   : > { %10993 = vmatmul.mubr.msk.f32.gmra.mxu1 %vm17406_vm0, %v3527_v49  ;;  %11153 = vmatprep.subr.mxu0 %v14243_v55  ;;  %v9516_v49 = vld [vmem:[%s17275_s6 + $0x1c0] sm:$0xff] }
 0x1c4   : > { %10995 = vmatprep.mubr.msk.f32.mxu1 %vm17406_vm0, %v13931_v21  ;;  %11096 = vmatpush3.msra.mxu1 %v9520_v14  ;;  %v3529_v21 = vsel %vm13905_vm3, %v13937_v46, 0.0  ;;  %v14281_v14 = vld [vmem:[#allocation2 + $0x98] sm:$0xff]  ;;  %v14288_v46 = vld [vmem:[#allocation2 + $0xa0] sm:$0xff] }
 0x1c5   : > { %10932 = vmatmul.mubr.msk.f32.gmra.mxu0 %vm17406_vm0, %v14261_v39  ;;  %11097 = vmatprep.subr.mxu1 %v9519_v48 }
 0x1c6   : > { %10934 = vmatprep.mubr.msk.f32.mxu0 %vm17406_vm0, %v14268_v59  ;;  %11098 = vmatpush3.msra.mxu1 %v9519_v48  ;;  %v14298_v48 = vld [vmem:[#allocation2 + $0xa8] sm:$0xff] }
 0x1c7   : > { %10996 = vmatmul.mubr.msk.f32.gmra.mxu1 %vm17406_vm0, %v3529_v21  ;;  %11099 = vmatprep.subr.mxu1 %v9518_v31  ;;  %v14304_v21 = vld [vmem:[#allocation3] sm:$0xff] }
 0x1c8   : > { %10998 = vmatprep.mubr.msk.f32.mxu1 %vm17406_vm0, %v13958_v38  ;;  %11100 = vmatpush3.msra.mxu1 %v9518_v31  ;;  %v3531_v38 = vsel %vm13933_vm9, %v13964_v26, 0.0  ;;  %v14302_v31 = vld [vmem:[#allocation2 + $0xb0] sm:$0xff]  ;;  %v3533_v26 = vsel %vm13960_vm11, %v13990_v27, 0.0  ;;  %v14329_v27 = vld [vmem:[#allocation2 + $0xc8] sm:$0xff] }
 0x1c9   : > { %10935 = vmatmul.mubr.msk.f32.gmra.mxu0 %vm17406_vm0, %v14281_v14  ;;  %11101 = vmatprep.subr.mxu1 %v9517_v35 }
 0x1ca   : > { %10937 = vmatprep.mubr.msk.f32.mxu0 %vm17406_vm0, %v14288_v46  ;;  %11102 = vmatpush3.msra.mxu1 %v9517_v35  ;;  %v14319_v35 = vld [vmem:[#allocation2 + $0xc0] sm:$0xff] }
 0x1cb   : > { %10999 = vmatmul.mubr.msk.f32.gmra.mxu1 %vm17406_vm0, %v3531_v38  ;;  %11103 = vmatprep.subr.mxu1 %v9516_v49  ;;  %v3537_v38 = vsel %vm14008_vm14, %v14033_v53, 0.0  ;;  %vm17570_vm14 = vnez %v17556_v24  ;;  %v14375_v53 = vld [vmem:[#allocation2 + $0x110] sm:$0xff] }
 0x1cc   : > { %11001 = vmatprep.mubr.msk.f32.mxu1 %vm17406_vm0, %v13984_v61  ;;  %11104 = vmatpush3.msra.mxu1 %v9516_v49  ;;  %v14315_v61 = vld [vmem:[#allocation2 + $0xb8] sm:$0xff]  ;;  %v3535_v49 = vsel %vm13986_vm6, %v14012_v15, 0.0  ;;  %v3539_v15 = vsel %vm14029_vm10, %v14054_v11, 0.0  ;;  %vm17573_vm10 = vnez %v17559_v6  ;;  %v3910_v11 = vld [vmem:[#allocation2 + $0x2f] sm:$0xff] }
 0x1cd   : > { %10938 = vmatmul.mubr.msk.f32.gmra.mxu0 %vm17406_vm0, %v14298_v48  ;;  %11217 = vmatprep.subr.mxu1 %v14304_v21 }
 0x1ce   : > { %10940 = vmatprep.mubr.msk.f32.mxu0 %vm17406_vm0, %v14302_v31 }
 0x1cf   : > { %11002 = vmatmul.mubr.msk.f32.gmra.mxu1 %vm17406_vm0, %v3533_v26  ;;  %v3912_v26 = vld [vmem:[#allocation2 + $0x3f] sm:$0xff] }
 0x1d0   : > { %11004 = vmatprep.mubr.msk.f32.mxu1 %vm17406_vm0, %v14006_v52  ;;  %v14333_v52 = vld [vmem:[#allocation2 + $0xd0] sm:$0xff] }
 0x1d1   : > { %10941 = vmatmul.mubr.msk.f32.gmra.mxu0 %vm17406_vm0, %v14315_v61 }
 0x1d2   : > { %10943 = vmatprep.mubr.msk.f32.mxu0 %vm17406_vm0, %v14319_v35 }
 0x1d3   : > { %11005 = vmatmul.mubr.msk.f32.gmra.mxu1 %vm17406_vm0, %v3535_v49  ;;  %v3911_v49 = vld [vmem:[#allocation2 + $0x37] sm:$0xff] }
 0x1d4   : > { %11007 = vmatprep.mubr.msk.f32.mxu1 %vm17406_vm0, %v14027_v1  ;;  %v17572_v1 = vld [vmem:[#allocation38_spill] sm:$0xff] }
 0x1d5   : > { %10944 = vmatmul.mubr.msk.f32.gmra.mxu0 %vm17406_vm0, %v14329_v27 }
 0x1d6   : > { %10946 = vmatprep.mubr.msk.f32.mxu0 %vm17406_vm0, %v14333_v52 }
 0x1d7   : > { %11008 = vmatmul.mubr.msk.f32.gmra.mxu1 %vm17406_vm0, %v3537_v38  ;;  %v9562_v38 = vld [vmem:[%s17275_s6 + $0x230] sm:$0xff] }
 0x1d8   : > { %11010 = vmatprep.mubr.msk.f32.mxu1 %vm17406_vm0, %v14048_v17  ;;  %v3545_v17 = vsel %vm14092_vm12, %v14118_v47, 0.0 }
 0x1d9   : > { %10947 = vmatmul.mubr.msk.f32.gmra.mxu0 %vm17406_vm0, %v13676_v20  ;;  %v3541_v20 = vsel %vm17570_vm14, %v14075_v0, 0.0  ;;  %v14385_v0 = vld [vmem:[#allocation2 + $0x119] sm:$0xff] }
 0x1da   : > { %10949 = vmatprep.mubr.msk.f32.mxu0 %vm17406_vm0, %v13680_v34  ;;  %v17571_v34 = vld [vmem:[#allocation37_spill] sm:$0xff]  ;;  %v3547_v47 = vsel %vm14114_vm15, %v14385_v0, 0.0 }
 0x1db   : > { %11011 = vmatmul.mubr.msk.f32.gmra.mxu1 %vm17406_vm0, %v3539_v15 }
 0x1dc   : > { %11013 = vmatprep.mubr.msk.f32.mxu1 %vm17406_vm0, %v14069_v18  ;;  %v14383_v18 = vld [vmem:[#allocation2 + $0x111] sm:$0xff] }
 0x1dd   : > { %10950 = vmatmul.mubr.msk.f32.gmra.mxu0 %vm17406_vm0, %v13698_v7  ;;  %v3543_v7 = vsel %vm17573_vm10, %v14096_v3, 0.0  ;;  %v17575_v3 = vld [vmem:[#allocation20_spill] sm:$0xff] }
 0x1de   : > { %10952 = vmatprep.mubr.msk.f32.mxu0 %vm17406_vm0, %v13702_v45  ;;  %v17574_v45 = vld [vmem:[#allocation39_spill] sm:$0xff]  ;;  %vm17576_vm10 = vnez %v17575_v3 }
 0x1df   : > { %11014 = vmatmul.mubr.msk.f32.gmra.mxu1 %vm17406_vm0, %v3541_v20  ;;  %v3914_v20 = vld [vmem:[#allocation2 + $0x4f] sm:$0xff] }
 0x1e0   : > { %11016 = vmatprep.mubr.msk.f32.mxu1 %vm17406_vm0, %v14090_v56  ;;  %v14389_v56 = vld [vmem:[#allocation2 + $0x118] sm:$0xff] }
 0x1e1   : > { %10953 = vmatmul.mubr.msk.f32.gmra.mxu0 %vm17406_vm0, %v17571_v34  ;;  %v9561_v34 = vld [vmem:[%s17275_s6 + $0x228] sm:$0xff] }
 0x1e2   : > { %10955 = vmatprep.mubr.msk.f32.mxu0 %vm17406_vm0, %v17572_v1  ;;  %v14417_v1 = vpop.f32.mrf.mxu1 }
 0x1e3   : > { %11017 = vmatmul.mubr.msk.f32.gmra.mxu1 %vm17406_vm0, %v3543_v7  ;;  %v3913_v7 = vld [vmem:[#allocation2 + $0x47] sm:$0xff] }
 0x1e4   : > { %11019 = vmatprep.mubr.msk.f32.mxu1 %vm17406_vm0, %v14112_v8  ;;  %v3942_v8 = vsel %vm17576_vm10, %v3910_v11, 0.0  ;;  %vm17577_vm10 = vnez %v17469_v44  ;;  %v3916_v11 = vld [vmem:[#allocation2 + $0x5f] sm:$0xff] }
 0x1e5   : > { %10956 = vmatmul.mubr.msk.f32.gmra.mxu0 %vm17406_vm0, %v17574_v45  ;;  %v3944_v15 = vsel %vm17577_vm10, %v3912_v26, 0.0  ;;  %vm17578_vm10 = vnez %v17472_v9  ;;  %v4362_v44 = vld [vmem:[#allocation2 + $0x100] sm:$0xff] }
 0x1e6   : > { %10958 = vmatprep.mubr.msk.f32.mxu0 %vm17406_vm0, %v14375_v53 }
 0x1e7   : > { %11020 = vmatmul.mubr.msk.f32.gmra.mxu1 %vm17406_vm0, %v3545_v17  ;;  %v3946_v17 = vsel %vm17578_vm10, %v3914_v20, 0.0 }
 0x1e8   : > { %11022 = vmatprep.mubr.msk.f32.mxu1 %vm17406_vm0, %v14383_v18 }
 0x1e9   : > { %10959 = vmatmul.mubr.msk.f32.gmra.mxu0 %vm17406_vm0, %v14389_v56 }
 0x1ea   : > { %11041 = vmatprep.mubr.msk.f32.mxu0 %vm17406_vm0, %v3942_v8 }
 0x1eb   : > { %11023 = vmatmul.mubr.msk.f32.gmra.mxu1 %vm17406_vm0, %v3547_v47 }
 0x1ec   : > { %11105 = vmatprep.mubr.msk.f32.mxu1 %vm17406_vm0, %v14143_v12  ;;  %v14413_v12 = vpop.f32.mrf.mxu0 }
 0x1ed   : > { %11042 = vmatmul.mubr.msk.f32.vlgmr.msra.gmra.mxu0 %vm17406_vm0, %v3911_v49  ;;  %v3915_v49 = vld [vmem:[#allocation2 + $0x57] sm:$0xff] }
 0x1ee   : > { %11154 = vmatpush3.msra.mxu0 %v14243_v55  ;;  %11044 = vmatprep.mubr.msk.f32.mxu0 %vm17406_vm0, %v3944_v15  ;;  %v9560_v55 = vld [vmem:[%s17275_s6 + $0x220] sm:$0xff] }
 0x1ef   : > { %11106 = vmatmul.mubr.msk.f32.vlgmr.msra.gmra.mxu1 %vm17406_vm0, %v14157_v36  ;;  %11155 = vmatprep.subr.mxu0 %v9562_v38  ;;  %v10662_v45 = vpop.f32.mrf.mxu0 }
 0x1f0   : > { %11108 = vmatprep.mubr.msk.f32.mxu1 %vm17406_vm0, %v14164_v32  ;;  %11156 = vmatpush3.msra.mxu0 %v9562_v38  ;;  %v9559_v32 = vld [vmem:[%s17275_s6 + $0x218] sm:$0xff]  ;;  %v9558_v38 = vld [vmem:[%s17275_s6 + $0x210] sm:$0xff] }
 0x1f1   : > { %11045 = vmatmul.mubr.msk.f32.gmra.mxu0 %vm17406_vm0, %v3913_v7  ;;  %11157 = vmatprep.subr.mxu0 %v9561_v34  ;;  %v10726_v36 = vpop.f32.mrf.mxu1  ;;  %v1704_v47 = vpop.f32.mrf.mxu0 }
 0x1f2   : > { %11047 = vmatprep.mubr.msk.f32.mxu0 %vm17406_vm0, %v3946_v17  ;;  %11158 = vmatpush3.msra.mxu0 %v9561_v34  ;;  %v14431_v8 = vadd.f32 %v10726_v36, %v10662_v45  ;;  %v17579_v34 = vld [vmem:[#allocation24_spill] sm:$0xff] }
 0x1f3   : > { %11109 = vmatmul.mubr.msk.f32.gmra.mxu1 %vm17406_vm0, %v14177_v51  ;;  %11159 = vmatprep.subr.mxu0 %v9560_v55  ;;  %v2025_v26 = vpop.f32.mrf.mxu1  ;;  %v10665_v20 = vpop.f32.mrf.mxu0  ;;  %vm17580_vm10 = vnez %v17579_v34 }
 0x1f4   : > { %11111 = vmatprep.mubr.msk.f32.mxu1 %vm17406_vm0, %v14184_v28  ;;  %11160 = vmatpush3.msra.mxu0 %v9560_v55  ;;  %v14440_v15 = vadd.f32 %v2025_v26, %v1704_v47  ;;  %v3948_v51 = vsel %vm17580_vm10, %v3916_v11, 0.0  ;;  %v3918_v28 = vld [vmem:[#allocation2 + $0x6f] sm:$0xff]  ;;  %v3917_v11 = vld [vmem:[#allocation2 + $0x67] sm:$0xff] }
 0x1f5   : > { %11048 = vmatmul.mubr.msk.f32.gmra.mxu0 %vm17406_vm0, %v3915_v49  ;;  %11161 = vmatprep.subr.mxu0 %v9559_v32  ;;  %v10729_v7 = vpop.f32.mrf.mxu1  ;;  %v9557_v55 = vld [vmem:[%s17275_s6 + $0x208] sm:$0xff]  ;;  %v1714_v17 = vpop.f32.mrf.mxu0 }
 0x1f6   : > { %11050 = vmatprep.mubr.msk.f32.mxu0 %vm17406_vm0, %v3948_v51  ;;  %11162 = vmatpush3.msra.mxu0 %v9559_v32  ;;  %v14449_v45 = vadd.f32 %v10729_v7, %v10665_v20  ;;  %v9556_v32 = vld [vmem:[%s17275_s6 + $0x200] sm:$0xff]  ;;  %v17581_v49 = vld [vmem:[#allocation25_spill] sm:$0xff] }
 0x1f7   : > { %11112 = vmatmul.mubr.msk.f32.gmra.mxu1 %vm17406_vm0, %v14197_v40  ;;  %11163 = vmatprep.subr.mxu0 %v9558_v38  ;;  %v2035_v36 = vpop.f32.mrf.mxu1  ;;  %v10668_v26 = vpop.f32.mrf.mxu0  ;;  %vm17582_vm10 = vnez %v17581_v49 }
 0x1f8   : > { %11114 = vmatprep.mubr.msk.f32.mxu1 %vm17406_vm0, %v14204_v10  ;;  %11164 = vmatpush3.msra.mxu0 %v9558_v38  ;;  %v14458_v47 = vadd.f32 %v2035_v36, %v1714_v17  ;;  %v3950_v40 = vsel %vm17582_vm10, %v3918_v28, 0.0  ;;  %v3920_v10 = vld [vmem:[#allocation2 + $0x7f] sm:$0xff]  ;;  %v3919_v17 = vld [vmem:[#allocation2 + $0x77] sm:$0xff] }
 0x1f9   : > { %11051 = vmatmul.mubr.msk.f32.gmra.mxu0 %vm17406_vm0, %v3917_v11  ;;  %11165 = vmatprep.subr.mxu0 %v9557_v55  ;;  %v10732_v20 = vpop.f32.mrf.mxu1  ;;  %v1724_v38 = vpop.f32.mrf.mxu0  ;;  %v17583_v11 = vld [vmem:[#allocation26_spill] sm:$0xff] }
 0x1fa   : > { %11053 = vmatprep.mubr.msk.f32.mxu0 %vm17406_vm0, %v3950_v40  ;;  %11166 = vmatpush3.msra.mxu0 %v9557_v55  ;;  %v14464_v51 = vadd.f32 %v10732_v20, %v10668_v26  ;;  %vm17584_vm10 = vnez %v17583_v11  ;;  %v3921_v20 = vld [vmem:[#allocation2 + $0x87] sm:$0xff] }
 0x1fb   : > { %11115 = vmatmul.mubr.msk.f32.gmra.mxu1 %vm17406_vm0, %v14217_v5  ;;  %11167 = vmatprep.subr.mxu0 %v9556_v32  ;;  %v2045_v7 = vpop.f32.mrf.mxu1  ;;  %v10671_v36 = vpop.f32.mrf.mxu0  ;;  %v3952_v55 = vsel %vm17584_vm10, %v3920_v10, 0.0  ;;  %v3922_v5 = vld [vmem:[#allocation2 + $0x8f] sm:$0xff]  ;;  %v17585_v10 = vld [vmem:[#allocation27_spill] sm:$0xff]  ;;  %v4358_v11 = vld [vmem:[#allocation2 + $0xe0] sm:$0xff] }
 0x1fc   : > { %11117 = vmatprep.mubr.msk.f32.mxu1 %vm17406_vm0, %v14225_v16  ;;  %11168 = vmatpush3.msra.mxu0 %v9556_v32  ;;  %v14470_v28 = vadd.f32 %v2045_v7, %v1724_v38  ;;  %vm17586_vm10 = vnez %v17585_v10 }
 0x1fd   : > { %11054 = vmatmul.mubr.msk.f32.gmra.mxu0 %vm17406_vm0, %v3919_v17  ;;  %v10735_v26 = vpop.f32.mrf.mxu1  ;;  %v1734_v16 = vpop.f32.mrf.mxu0  ;;  %v3954_v17 = vsel %vm17586_vm10, %v3922_v5, 0.0  ;;  %v17587_v5 = vld [vmem:[#allocation28_spill] sm:$0xff] }
 0x1fe   : > { %11056 = vmatprep.mubr.msk.f32.mxu0 %vm17406_vm0, %v3952_v55  ;;  %v14476_v40 = vadd.f32 %v10735_v26, %v10671_v36  ;;  %v3924_v36 = vld [vmem:[#allocation2 + $0x9f] sm:$0xff]  ;;  %vm17588_vm10 = vnez %v17587_v5 }
 0x1ff   : > { %11118 = vmatmul.mubr.msk.f32.gmra.mxu1 %vm17406_vm0, %v14238_v2  ;;  %v2055_v32 = vpop.f32.mrf.mxu1 }
 0x200   : > { %11120 = vmatprep.mubr.msk.f32.mxu1 %vm17406_vm0, %v14247_v50  ;;  %v14482_v38 = vadd.f32 %v2055_v32, %v1734_v16  ;;  %v10674_v7 = vpop.f32.mrf.mxu0  ;;  %v3923_v16 = vld [vmem:[#allocation2 + $0x97] sm:$0xff] }
 0x201   : > { %11057 = vmatmul.mubr.msk.f32.gmra.mxu0 %vm17406_vm0, %v3921_v20 }
 0x202   : > { %v10738_v55 = vpop.f32.mrf.mxu1  ;;  %11059 = vmatprep.mubr.msk.f32.mxu0 %vm17406_vm0, %v3954_v17  ;;  %v1744_v2 = vpop.f32.mrf.mxu0  ;;  %v3956_v17 = vsel %vm17588_vm10, %v3924_v36, 0.0  ;;  %v17589_v36 = vld [vmem:[#allocation29_spill] sm:$0xff] }
 0x203   : > { %v14488_v26 = vadd.f32 %v10738_v55, %v10674_v7  ;;  %11121 = vmatmul.mubr.msk.f32.gmra.mxu1 %vm17406_vm0, %v14261_v39  ;;  %v3926_v7 = vld [vmem:[#allocation2 + $0xaf] sm:$0xff]  ;;  %vm17590_vm10 = vnez %v17589_v36 }
 0x204   : > { %11123 = vmatprep.mubr.msk.f32.mxu1 %vm17406_vm0, %v14268_v59  ;;  %v2065_v50 = vpop.f32.mrf.mxu1  ;;  %v10677_v20 = vpop.f32.mrf.mxu0 }
 0x205   : > { %v14494_v32 = vadd.f32 %v2065_v50, %v1744_v2  ;;  %11060 = vmatmul.mubr.msk.f32.gmra.mxu0 %vm17406_vm0, %v3923_v16  ;;  %v3925_v2 = vld [vmem:[#allocation2 + $0xa7] sm:$0xff] }
 0x206   : > { %11062 = vmatprep.mubr.msk.f32.mxu0 %vm17406_vm0, %v3956_v17  ;;  %v1754_v39 = vpop.f32.mrf.mxu0  ;;  %v3958_v17 = vsel %vm17590_vm10, %v3926_v7, 0.0  ;;  %v17591_v7 = vld [vmem:[#allocation30_spill] sm:$0xff] }
 0x207   : > { %v10741_v10 = vpop.f32.mrf.mxu1  ;;  %11124 = vmatmul.mubr.msk.f32.gmra.mxu1 %vm17406_vm0, %v14281_v14  ;;  %vm17592_vm10 = vnez %v17591_v7 }
 0x208   : > { %v14500_v55 = vadd.f32 %v10741_v10, %v10677_v20  ;;  %11126 = vmatprep.mubr.msk.f32.mxu1 %vm17406_vm0, %v14288_v46  ;;  %v10680_v16 = vpop.f32.mrf.mxu0  ;;  %v3928_v10 = vld [vmem:[#allocation2 + $0xbf] sm:$0xff] }
 0x209   : > { %v2075_v59 = vpop.f32.mrf.mxu1  ;;  %11063 = vmatmul.mubr.msk.f32.gmra.mxu0 %vm17406_vm0, %v3925_v2 }
 0x20a   : > { %v14506_v50 = vadd.f32 %v2075_v59, %v1754_v39  ;;  %11065 = vmatprep.mubr.msk.f32.mxu0 %vm17406_vm0, %v3958_v17  ;;  %v1764_v14 = vpop.f32.mrf.mxu0  ;;  %v3927_v39 = vld [vmem:[#allocation2 + $0xb7] sm:$0xff]  ;;  %v3960_v17 = vsel %vm17592_vm10, %v3928_v10, 0.0 }
 0x20b   : > { %v10744_v5 = vpop.f32.mrf.mxu1  ;;  %11127 = vmatmul.mubr.msk.f32.gmra.mxu1 %vm17406_vm0, %v14298_v48  ;;  %v17594_v10 = vld [vmem:[#allocation31_spill] sm:$0xff] }
 0x20c   : > { %v14512_v20 = vadd.f32 %v10744_v5, %v10680_v16  ;;  %11129 = vmatprep.mubr.msk.f32.mxu1 %vm17406_vm0, %v14302_v31  ;;  %v10683_v2 = vpop.f32.mrf.mxu0  ;;  %v3930_v5 = vld [vmem:[#allocation2 + $0xcf] sm:$0xff]  ;;  %vm17595_vm10 = vnez %v17594_v10 }
 0x20d   : > { %v2085_v46 = vpop.f32.mrf.mxu1  ;;  %11066 = vmatmul.mubr.msk.f32.gmra.mxu0 %vm17406_vm0, %v3927_v39 }
 0x20e   : > { %v14518_v59 = vadd.f32 %v2085_v46, %v1764_v14  ;;  %11068 = vmatprep.mubr.msk.f32.mxu0 %vm17406_vm0, %v3960_v17  ;;  %v1774_v48 = vpop.f32.mrf.mxu0  ;;  %v3929_v14 = vld [vmem:[#allocation2 + $0xc7] sm:$0xff]  ;;  %v3962_v17 = vsel %vm17595_vm10, %v3930_v5, 0.0  ;;  %v5202_v5 = vld [vmem:[%s17277_s8 + $0x38] sm:$0xff] }
 0x20f   : > { %v10747_v36 = vpop.f32.mrf.mxu1  ;;  %11130 = vmatmul.mubr.msk.f32.gmra.mxu1 %vm17406_vm0, %v14315_v61 }
 0x210   : > { %v14524_v16 = vadd.f32 %v10747_v36, %v10683_v2  ;;  %11132 = vmatprep.mubr.msk.f32.mxu1 %vm17406_vm0, %v14319_v35  ;;  %v10686_v39 = vpop.f32.mrf.mxu0  ;;  %v3932_v36 = vld [vmem:[#allocation2 + $0xdf] sm:$0xff]  ;;  %11218 = vmatpush3.msra.mxu1 %v5202_v5 }
 0x211   : > { %v2095_v31 = vpop.f32.mrf.mxu1  ;;  %11069 = vmatmul.mubr.msk.f32.gmra.mxu0 %vm17406_vm0, %v3929_v14  ;;  %11219 = vmatprep.subr.mxu1 %v14304_v21 }
 0x212   : > { %v14530_v46 = vadd.f32 %v2095_v31, %v1774_v48  ;;  %11071 = vmatprep.mubr.msk.f32.mxu0 %vm17406_vm0, %v3962_v17  ;;  %v14540_v61 = vpop.f32.mrf.mxu0  ;;  %v3931_v48 = vld [vmem:[#allocation2 + $0xd7] sm:$0xff]  ;;  %v3934_v17 = vld [vmem:[#allocation2 + $0xef] sm:$0xff] }
 0x213   : > { %v10750_v7 = vpop.f32.mrf.mxu1  ;;  %11133 = vmatmul.mubr.msk.f32.gmra.mxu1 %vm17406_vm0, %v14329_v27  ;;  %17596 = vst [vmem:[#allocation38_spill] sm:$0xff] %v14540_v61 }
 0x214   : > { %17593 = vst [vmem:[#allocation37_spill] sm:$0xff] %v14530_v46  ;;  %v14536_v2 = vadd.f32 %v10750_v7, %v10686_v39  ;;  %11135 = vmatprep.mubr.msk.f32.mxu1 %vm17406_vm0, %v14333_v52  ;;  %v10689_v31 = vpop.f32.mrf.mxu0  ;;  %v17598_v7 = vld [vmem:[#allocation32_spill] sm:$0xff]  ;;  %v4357_v39 = vld [vmem:[#allocation2 + $0xd8] sm:$0xff] }
 0x215   : > { %v14544_v35 = vpop.f32.mrf.mxu1  ;;  %11072 = vmatmul.mubr.msk.f32.gmra.mxu0 %vm17406_vm0, %v3931_v48  ;;  %vm17599_vm10 = vnez %v17598_v7 }
 0x216   : > { %17597 = vst [vmem:[#allocation39_spill] sm:$0xff] %v14544_v35  ;;  %v3964_v14 = vsel %vm17599_vm10, %v3932_v36, 0.0  ;;  %v14557_v10 = vpop.f32.mrf.mxu0  ;;  %v3933_v36 = vld [vmem:[#allocation2 + $0xe7] sm:$0xff] }
 0x217   : > { %v10753_v27 = vpop.f32.mrf.mxu1  ;;  %11074 = vmatprep.mubr.msk.f32.mxu0 %vm17406_vm0, %v3964_v14  ;;  %11136 = vmatmul.mubr.msk.f32.gmra.mxu1 %vm17406_vm0, %v4357_v39  ;;  %17600 = vst [vmem:[#allocation57_spill] sm:$0xff] %v14557_v10  ;;  %v17602_v14 = vld [vmem:[#allocation33_spill] sm:$0xff] }
 0x218   : > { %v14554_v52 = vadd.f32 %v10753_v27, %v10689_v31  ;;  %11138 = vmatprep.mubr.msk.f32.mxu1 %vm17406_vm0, %v4358_v11  ;;  %v10692_v5 = vpop.f32.mrf.mxu0  ;;  %vm17603_vm10 = vnez %v17602_v14  ;;  %v4359_v31 = vld [vmem:[#allocation2 + $0xe8] sm:$0xff]  ;;  %v3936_v27 = vld [vmem:[#allocation2 + $0xff] sm:$0xff]  ;;  %v4360_v11 = vld [vmem:[#allocation2 + $0xf0] sm:$0xff] }
 0x219   : > { %v14560_v48 = vpop.f32.mrf.mxu1  ;;  %11075 = vmatmul.mubr.msk.f32.gmra.mxu0 %vm17406_vm0, %v3933_v36  ;;  %v3966_v7 = vsel %vm17603_vm10, %v3934_v17, 0.0  ;;  %v3935_v36 = vld [vmem:[#allocation2 + $0xf7] sm:$0xff]  ;;  %vm17606_vm10 = vnez %v17507_v57  ;;  %v3937_v57 = vld [vmem:[#allocation2 + $0x107] sm:$0xff] }
 0x21a   : > { %17601 = vst [vmem:[#allocation58_spill] sm:$0xff] %v14560_v48  ;;  %11077 = vmatprep.mubr.msk.f32.mxu0 %vm17406_vm0, %v3966_v7  ;;  %v14569_v34 = vpop.f32.mrf.mxu0  ;;  %v5201_v17 = vld [vmem:[%s17277_s8 + $0x30] sm:$0xff] }
 0x21b   : > { %v10756_v49 = vpop.f32.mrf.mxu1  ;;  %11139 = vmatmul.mubr.msk.f32.gmra.mxu1 %vm17406_vm0, %v4359_v31  ;;  %17604 = vst [vmem:[#allocation59_spill] sm:$0xff] %v14569_v34 }
 0x21c   : > { %v14566_v39 = vadd.f32 %v10756_v49, %v10692_v5  ;;  %11141 = vmatprep.mubr.msk.f32.mxu1 %vm17406_vm0, %v4360_v11  ;;  %v10695_v14 = vpop.f32.mrf.mxu0  ;;  %v3968_v49 = vsel %vm17606_vm10, %v3936_v27, 0.0  ;;  %11220 = vmatpush3.msra.mxu1 %v5201_v17  ;;  %v4361_v5 = vld [vmem:[#allocation2 + $0xf8] sm:$0xff]  ;;  %vm17609_vm10 = vnez %v17510_v4 }
 0x21d   : > { %v14572_v9 = vpop.f32.mrf.mxu1  ;;  %11078 = vmatmul.mubr.msk.f32.gmra.mxu0 %vm17406_vm0, %v3935_v36  ;;  %11221 = vmatprep.subr.mxu1 %v14304_v21  ;;  %v3970_v17 = vsel %vm17609_vm10, %v14109_v22, 0.0 }
 0x21e   : > { %17605 = vst [vmem:[#allocation60_spill] sm:$0xff] %v14572_v9  ;;  %11080 = vmatprep.mubr.msk.f32.mxu0 %vm17406_vm0, %v3968_v49  ;;  %v14585_v11 = vpop.f32.mrf.mxu0 }
 0x21f   : > { %v10759_v7 = vpop.f32.mrf.mxu1  ;;  %11142 = vmatmul.mubr.msk.f32.gmra.mxu1 %vm17406_vm0, %v4361_v5  ;;  %17607 = vst [vmem:[#allocation61_spill] sm:$0xff] %v14585_v11  ;;  %v5280_v11 = vld [vmem:[#allocation4 + $0x30] sm:$0xff] }
 0x220   : > { %v14582_v31 = vadd.f32 %v10759_v7, %v10695_v14  ;;  %11144 = vmatprep.mubr.msk.f32.mxu1 %vm17406_vm0, %v4362_v44  ;;  %v10698_v27 = vpop.f32.mrf.mxu0  ;;  %v4363_v14 = vld [vmem:[#allocation2 + $0x108] sm:$0xff]  ;;  %v3940_v7 = vld [vmem:[#allocation2 + $0x11f] sm:$0xff] }
 0x221   : > { %v14588_v36 = vpop.f32.mrf.mxu1  ;;  %11081 = vmatmul.mubr.msk.f32.gmra.mxu0 %vm17406_vm0, %v3937_v57  ;;  %v5200_v57 = vld [vmem:[%s17277_s8 + $0x28] sm:$0xff] }
 0x222   : > { %17608 = vst [vmem:[#allocation62_spill] sm:$0xff] %v14588_v36  ;;  %11083 = vmatprep.mubr.msk.f32.mxu0 %vm17406_vm0, %v3970_v17  ;;  %v14598_v44 = vpop.f32.mrf.mxu0  ;;  %v4366_v17 = vld [vmem:[#allocation2 + $0x120] sm:$0xff]  ;;  %11222 = vmatpush3.msra.mxu1 %v5200_v57  ;;  %v4730_v57 = vld [vmem:[#allocation2 + $0x31] sm:$0xff] }
 0x223   : > { %v10762_v49 = vpop.f32.mrf.mxu1  ;;  %11145 = vmatmul.mubr.msk.f32.gmra.mxu1 %vm17406_vm0, %v4363_v14  ;;  %17610 = vst [vmem:[#allocation63_spill] sm:$0xff] %v14598_v44  ;;  %v3941_v14 = vld [vmem:[#allocation2 + $0x127] sm:$0xff]  ;;  %11223 = vmatprep.subr.mxu1 %v14304_v21  ;;  %v4735_v44 = vld [vmem:[#allocation2 + $0x59] sm:$0xff] }
 0x224   : > { %v14595_v5 = vadd.f32 %v10762_v49, %v10698_v27  ;;  %11147 = vmatprep.mubr.msk.f32.mxu1 %vm17406_vm0, %v14375_v53  ;;  %v10701_v22 = vpop.f32.mrf.mxu0  ;;  %v3972_v27 = vsel %vm17569_vm1, %v3940_v7, 0.0  ;;  %vm17616_vm1 = vmmov 0  }
 0x225   : > { %v14602_v3 = vpop.f32.mrf.mxu1  ;;  %11084 = vmatmul.mubr.msk.f32.gmra.mxu0 %vm17406_vm0, %v14132_v60  ;;  %v4367_v60 = vld [vmem:[#allocation2 + $0x128] sm:$0xff] }
 0x226   : > { %17611 = vst [vmem:[#allocation64_spill] sm:$0xff] %v14602_v3  ;;  %11086 = vmatprep.mubr.msk.f32.mxu0 %vm17406_vm0, %v3972_v27  ;;  %v14617_v4 = vpop.f32.mrf.mxu0  ;;  %v4731_v27 = vld [vmem:[#allocation2 + $0x39] sm:$0xff] }
 0x227   : > { %v10765_v49 = vpop.f32.mrf.mxu1  ;;  %11148 = vmatmul.mubr.msk.f32.gmra.mxu1 %vm17406_vm0, %v14389_v56  ;;  %17612 = vst [vmem:[#allocation65_spill] sm:$0xff] %v14617_v4 }
 0x228   : > { %v14613_v53 = vadd.f32 %v10765_v49, %v10701_v22  ;;  %11150 = vmatprep.mubr.msk.f32.mxu1 %vm17406_vm0, %v4366_v17  ;;  %v10704_v7 = vpop.f32.mrf.mxu0  ;;  %v4763_v17 = vsel %vm13744_vm8, %v4731_v27, 0.0 }
 0x229   : > { %v14619_v3 = vpop.f32.mrf.mxu1  ;;  %11087 = vmatmul.mubr.msk.f32.gmra.mxu0 %vm17406_vm0, %v3941_v14  ;;  %v5199_v14 = vld [vmem:[%s17277_s8 + $0x20] sm:$0xff] }
 0x22a   : > { %17613 = vst [vmem:[#allocation66_spill] sm:$0xff] %v14619_v3  ;;  %11169 = vmatprep.mubr.msk.f32.mxu0 %vm17406_vm0, %v4730_v57  ;;  %v14626_v49 = vpop.f32.mrf.mxu0  ;;  %11224 = vmatpush3.msra.mxu1 %v5199_v14  ;;  %v17617_v57 = vld [vmem:[#allocation42_spill] sm:$0xff] }
 0x22b   : > { %v10768_v13 = vpop.f32.mrf.mxu1  ;;  %17614 = vst [vmem:[#allocation67_spill] sm:$0xff] %v14626_v49  ;;  %11151 = vmatmul.mubr.msk.f32.gmra.mxu1 %vm17406_vm0, %v4367_v60  ;;  %11225 = vmatprep.subr.mxu1 %v14304_v21  ;;  %v4734_v14 = vld [vmem:[#allocation2 + $0x51] sm:$0xff] }
 0x22c   : > { %v14624_v22 = vadd.f32 %v10768_v13, %v10704_v7  ;;  %11233 = vmatprep.mubr.msk.f32.mxu1 %vm17616_vm1, %v14304_v21  ;;  %v10787_v3 = vpop.f32.mrf.mxu0  ;;  %v4732_v13 = vld [vmem:[#allocation2 + $0x41] sm:$0xff]  ;;  %v4733_v7 = vld [vmem:[#allocation2 + $0x49] sm:$0xff] }
 0x22d   : > { %v14629_v56 = vpop.f32.mrf.mxu1  ;;  %11170 = vmatmul.mubr.msk.f32.vlgmr.msra.gmra.mxu0 %vm17406_vm0, %v4763_v17  ;;  %v2633_v60 = vadd.f32 %v10787_v3, %v17617_v57  ;;  %v4765_v49 = vsel %vm13764_vm4, %v4733_v7, 0.0  ;;  %v4767_v7 = vsel %vm13794_vm2, %v4735_v44, 0.0 }
 0x22e   : > { %17615 = vst [vmem:[#allocation68_spill] sm:$0xff] %v14629_v56  ;;  %11172 = vmatprep.mubr.msk.f32.mxu0 %vm17406_vm0, %v4732_v13  ;;  %v14642_v41 = vpop.f32.mrf.mxu0 }
 0x22f   : > { %v10851_v27 = vpop.f32.mrf.mxu1 }
 0x230   : > { %v14644_v56 = vadd.f32 %v10851_v27, %v2633_v60  ;;  %v10790_v17 = vpop.f32.mrf.mxu0 }
 0x231   : > { %v14648_v4 = vpop.f32.mrf.mxu1  ;;  %11173 = vmatmul.mubr.msk.f32.gmra.mxu0 %vm17406_vm0, %v4765_v49  ;;  %v2635_v3 = vadd.f32 %v10790_v17, %v14431_v8  ;;  %v5198_v49 = vld [vmem:[%s17277_s8 + $0x18] sm:$0xff]  ;;  %v4736_v8 = vld [vmem:[#allocation2 + $0x61] sm:$0xff]  ;;  %v4737_v17 = vld [vmem:[#allocation2 + $0x69] sm:$0xff] }
 0x232   : > { %11175 = vmatprep.mubr.msk.f32.mxu0 %vm17406_vm0, %v4734_v14  ;;  %v2483_v57 = vpop.f32.mrf.mxu0  ;;  %11226 = vmatpush3.msra.mxu1 %v5198_v49 }
 0x233   : > { %v10854_v13 = vpop.f32.mrf.mxu1  ;;  %v14656_v60 = vadd.f32 %v2483_v57, %v14440_v15  ;;  %11227 = vmatprep.subr.mxu1 %v14304_v21  ;;  %v4769_v57 = vsel %vm13821_vm5, %v4737_v17, 0.0 }
 0x234   : > { %v14653_v36 = vadd.f32 %v10854_v13, %v2635_v3 }
 0x235   : > { %v14663_v27 = vpop.f32.mrf.mxu1  ;;  %v10793_v54 = vpop.f32.mrf.mxu0  ;;  %11176 = vmatmul.mubr.msk.f32.gmra.mxu0 %vm17406_vm0, %v4767_v7 }
 0x236   : > { %v2637_v14 = vadd.f32 %v10793_v54, %v14449_v45  ;;  %11178 = vmatprep.mubr.msk.f32.mxu0 %vm17406_vm0, %v4736_v8  ;;  %v4738_v54 = vld [vmem:[#allocation2 + $0x71] sm:$0xff]  ;;  %v4739_v45 = vld [vmem:[#allocation2 + $0x79] sm:$0xff] }
 0x237   : > { %v10857_v15 = vpop.f32.mrf.mxu1  ;;  %v2493_v44 = vpop.f32.mrf.mxu0  ;;  %v4771_v17 = vsel %vm13848_vm7, %v4739_v45, 0.0 }
 0x238   : > { %v14669_v3 = vadd.f32 %v10857_v15, %v2637_v14  ;;  %v14672_v13 = vadd.f32 %v2493_v44, %v14458_v47  ;;  %v5197_v44 = vld [vmem:[%s17277_s8 + $0x10] sm:$0xff] }
 0x239   : > { %v14676_v7 = vpop.f32.mrf.mxu1  ;;  %v10796_v58 = vpop.f32.mrf.mxu0  ;;  %11179 = vmatmul.mubr.msk.f32.gmra.mxu0 %vm17406_vm0, %v4769_v57  ;;  %11228 = vmatpush3.msra.mxu1 %v5197_v44 }
 0x23a   : > { %v2639_v49 = vadd.f32 %v10796_v58, %v14464_v51  ;;  %11181 = vmatprep.mubr.msk.f32.mxu0 %vm17406_vm0, %v4738_v54  ;;  %v4740_v58 = vld [vmem:[#allocation2 + $0x81] sm:$0xff]  ;;  %v4741_v51 = vld [vmem:[#allocation2 + $0x89] sm:$0xff]  ;;  %11229 = vmatprep.subr.mxu1 %v14304_v21 }
 0x23b   : > { %v10860_v8 = vpop.f32.mrf.mxu1  ;;  %v2503_v14 = vpop.f32.mrf.mxu0 }
 0x23c   : > { %v14681_v15 = vadd.f32 %v10860_v8, %v2639_v49  ;;  %v14684_v47 = vadd.f32 %v2503_v14, %v14470_v28  ;;  %v4773_v14 = vsel %vm13876_vm13, %v4741_v51, 0.0 }
 0x23d   : > { %v14691_v57 = vpop.f32.mrf.mxu1  ;;  %v10799_v25 = vpop.f32.mrf.mxu0  ;;  %11182 = vmatmul.mubr.msk.f32.gmra.mxu0 %vm17406_vm0, %v4771_v17 }
 0x23e   : > { %v2641_v54 = vadd.f32 %v10799_v25, %v14476_v40  ;;  %11184 = vmatprep.mubr.msk.f32.mxu0 %vm17406_vm0, %v4740_v58  ;;  %v4742_v25 = vld [vmem:[#allocation2 + $0x91] sm:$0xff]  ;;  %v4743_v40 = vld [vmem:[#allocation2 + $0x99] sm:$0xff] }
 0x23f   : > { %v10863_v28 = vpop.f32.mrf.mxu1  ;;  %v2513_v45 = vpop.f32.mrf.mxu0  ;;  %v4775_v51 = vsel %vm13905_vm3, %v4743_v40, 0.0 }
 0x240   : > { %v14697_v49 = vadd.f32 %v10863_v28, %v2641_v54  ;;  %v14700_v8 = vadd.f32 %v2513_v45, %v14482_v38  ;;  %v5196_v45 = vld [vmem:[%s17277_s8 + $0x8] sm:$0xff] }
 0x241   : > { %v14704_v17 = vpop.f32.mrf.mxu1  ;;  %v10802_v63 = vpop.f32.mrf.mxu0  ;;  %11185 = vmatmul.mubr.msk.f32.gmra.mxu0 %vm17406_vm0, %v4773_v14  ;;  %11230 = vmatpush3.msra.mxu1 %v5196_v45 }
 0x242   : > { %v2643_v44 = vadd.f32 %v10802_v63, %v14488_v26  ;;  %11187 = vmatprep.mubr.msk.f32.mxu0 %vm17406_vm0, %v4742_v25  ;;  %v4744_v63 = vld [vmem:[#allocation2 + $0xa1] sm:$0xff]  ;;  %v4745_v26 = vld [vmem:[#allocation2 + $0xa9] sm:$0xff]  ;;  %11231 = vmatprep.subr.mxu1 %v14304_v21 }
 0x243   : > { %v10866_v58 = vpop.f32.mrf.mxu1  ;;  %v2523_v54 = vpop.f32.mrf.mxu0 }
 0x244   : > { %v14709_v28 = vadd.f32 %v10866_v58, %v2643_v44  ;;  %v14712_v38 = vadd.f32 %v2523_v54, %v14494_v32  ;;  %v4777_v54 = vsel %vm13933_vm9, %v4745_v26, 0.0 }
 0x245   : > { %v14719_v14 = vpop.f32.mrf.mxu1  ;;  %v10805_v30 = vpop.f32.mrf.mxu0  ;;  %11188 = vmatmul.mubr.msk.f32.gmra.mxu0 %vm17406_vm0, %v4775_v51 }
 0x246   : > { %v2645_v25 = vadd.f32 %v10805_v30, %v14500_v55  ;;  %11190 = vmatprep.mubr.msk.f32.mxu0 %vm17406_vm0, %v4744_v63  ;;  %v4746_v30 = vld [vmem:[#allocation2 + $0xb1] sm:$0xff]  ;;  %v4747_v55 = vld [vmem:[#allocation2 + $0xb9] sm:$0xff] }
 0x247   : > { %v10869_v32 = vpop.f32.mrf.mxu1  ;;  %v2533_v40 = vpop.f32.mrf.mxu0  ;;  %v4779_v26 = vsel %vm13960_vm11, %v4747_v55, 0.0 }
 0x248   : > { %v14725_v44 = vadd.f32 %v10869_v32, %v2645_v25  ;;  %v14728_v58 = vadd.f32 %v2533_v40, %v14506_v50  ;;  %v5195_v40 = vld [vmem:[%s17277_s8] sm:$0xff] }
 0x249   : > { %v14732_v51 = vpop.f32.mrf.mxu1  ;;  %v10808_v42 = vpop.f32.mrf.mxu0  ;;  %11191 = vmatmul.mubr.msk.f32.gmra.mxu0 %vm17406_vm0, %v4777_v54  ;;  %11232 = vmatpush3.msra.mxu1 %v5195_v40 }
 0x24a   : > { %v2647_v45 = vadd.f32 %v10808_v42, %v14512_v20  ;;  %11193 = vmatprep.mubr.msk.f32.mxu0 %vm17406_vm0, %v4746_v30  ;;  %v4748_v20 = vld [vmem:[#allocation2 + $0xc1] sm:$0xff]  ;;  %v4749_v30 = vld [vmem:[#allocation2 + $0xc9] sm:$0xff]  ;;  %11236 = vmatprep.subr.mxu1 %v14304_v21 }
 0x24b   : > { %v10872_v63 = vpop.f32.mrf.mxu1  ;;  %v2543_v25 = vpop.f32.mrf.mxu0 }
 0x24c   : > { %v14737_v32 = vadd.f32 %v10872_v63, %v2647_v45  ;;  %v14740_v50 = vadd.f32 %v2543_v25, %v14518_v59  ;;  %v14756_v63 = vld [vmem:[%s12684_s23] sm:$0x1] }
 0x24d   : > { %v14747_v54 = vpop.f32.mrf.mxu1  ;;  %v10811_v42 = vpop.f32.mrf.mxu0  ;;  %11194 = vmatmul.mubr.msk.f32.gmra.mxu0 %vm17406_vm0, %v4779_v26  ;;  %11234 = vmatmul.mubr.msk.f32.vlgmr.msra.gmra.mxu1 %vm17406_vm0, %v14756_v63  ;;  %v4781_v26 = vsel %vm13986_vm6, %v4749_v30, 0.0 }
 0x24e   : > { %17618 = vst [vmem:[#allocation42_spill] sm:$0xff] %v14740_v50  ;;  %17619 = vst [vmem:[#allocation69_spill] sm:$0xff] %v14747_v54  ;;  %v2649_v45 = vadd.f32 %v10811_v42, %v14524_v16  ;;  %11196 = vmatprep.mubr.msk.f32.mxu0 %vm17406_vm0, %v4748_v20  ;;  %11252 = vmatprep.mubr.msk.f32.mxu1 %vm17616_vm1, %v14304_v21  ;;  %v4750_v42 = vld [vmem:[#allocation2 + $0xd1] sm:$0xff]  ;;  %v4751_v20 = vld [vmem:[#allocation2 + $0xd9] sm:$0xff]  ;;  %vm17623_vm1 = vnez %v17550_v23 }
 0x24f   : > { %v10875_v59 = vpop.f32.mrf.mxu1  ;;  %v14753_v55 = vpop.f32.mrf.mxu0  ;;  %11237 = vmatpush3.msra.mxu1 %v5281_v43  ;;  %v4783_v37 = vsel %vm17623_vm1, %v4751_v20, 0.0  ;;  %v5279_v43 = vld [vmem:[#allocation4 + $0x28] sm:$0xff]  ;;  %vm17626_vm1 = vnez %v17553_v33 }
 0x250   : > { %17620 = vst [vmem:[#allocation70_spill] sm:$0xff] %v14753_v55  ;;  %v14760_v25 = vadd.f32 %v10875_v59, %v2649_v45  ;;  %11238 = vmatprep.subr.mxu1 %v14304_v21 }
 0x251   : > { %v14766_v16 = vpop.f32.mrf.mxu1  ;;  %v10814_v40 = vpop.f32.mrf.mxu0  ;;  %11197 = vmatmul.mubr.msk.f32.gmra.mxu0 %vm17406_vm0, %v4781_v26  ;;  %11239 = vmatpush3.msra.mxu1 %v5280_v11 }
 0x252   : > { %17621 = vst [vmem:[#allocation71_spill] sm:$0xff] %v14766_v16  ;;  %v2651_v19 = vadd.f32 %v10814_v40, %v14536_v2  ;;  %11199 = vmatprep.mubr.msk.f32.mxu0 %vm17406_vm0, %v4750_v42  ;;  %v4752_v2 = vld [vmem:[#allocation2 + $0xe1] sm:$0xff]  ;;  %v4753_v40 = vld [vmem:[#allocation2 + $0xe9] sm:$0xff]  ;;  %11240 = vmatprep.subr.mxu1 %v14304_v21 }
 0x253   : > { %v10878_v45 = vpop.f32.mrf.mxu1  ;;  %v14771_v59 = vpop.f32.mrf.mxu0  ;;  %11241 = vmatpush3.msra.mxu1 %v5279_v43  ;;  %v4785_v23 = vsel %vm17626_vm1, %v4753_v40, 0.0 }
 0x254   : > { %17622 = vst [vmem:[#allocation72_spill] sm:$0xff] %v14771_v59  ;;  %v14773_v30 = vadd.f32 %v10878_v45, %v2651_v19  ;;  %11242 = vmatprep.subr.mxu1 %v14304_v21 }
 0x255   : > { %v14778_v26 = vpop.f32.mrf.mxu1  ;;  %v10817_v9 = vpop.f32.mrf.mxu0  ;;  %11200 = vmatmul.mubr.msk.f32.gmra.mxu0 %vm17406_vm0, %v4783_v37  ;;  %v5278_v37 = vld [vmem:[#allocation4 + $0x20] sm:$0xff] }
 0x256   : > { %17624 = vst [vmem:[#allocation73_spill] sm:$0xff] %v14778_v26  ;;  %v2653_v42 = vadd.f32 %v10817_v9, %v14554_v52  ;;  %11202 = vmatprep.mubr.msk.f32.mxu0 %vm17406_vm0, %v4752_v2  ;;  %v4754_v52 = vld [vmem:[#allocation2 + $0xf1] sm:$0xff]  ;;  %v4755_v2 = vld [vmem:[#allocation2 + $0xf9] sm:$0xff]  ;;  %11243 = vmatpush3.msra.mxu1 %v5278_v37 }
 0x257   : > { %v10881_v19 = vpop.f32.mrf.mxu1  ;;  %v14784_v20 = vpop.f32.mrf.mxu0  ;;  %11244 = vmatprep.subr.mxu1 %v14304_v21  ;;  %v4787_v33 = vsel %vm17570_vm14, %v4755_v2, 0.0  ;;  %vm17631_vm14 = vnez %v17559_v6 }
 0x258   : > { %17625 = vst [vmem:[#allocation74_spill] sm:$0xff] %v14784_v20  ;;  %v14786_v45 = vadd.f32 %v10881_v19, %v2653_v42  ;;  %v5277_v42 = vld [vmem:[#allocation4 + $0x18] sm:$0xff] }
 0x259   : > { %v14791_v11 = vpop.f32.mrf.mxu1  ;;  %v10820_v9 = vpop.f32.mrf.mxu0  ;;  %11203 = vmatmul.mubr.msk.f32.gmra.mxu0 %vm17406_vm0, %v4785_v23  ;;  %11245 = vmatpush3.msra.mxu1 %v5277_v42  ;;  %v5276_v23 = vld [vmem:[#allocation4 + $0x10] sm:$0xff] }
 0x25a   : > { %17627 = vst [vmem:[#allocation75_spill] sm:$0xff] %v14791_v11  ;;  %v2655_v34 = vadd.f32 %v10820_v9, %v14566_v39  ;;  %11205 = vmatprep.mubr.msk.f32.mxu0 %vm17406_vm0, %v4754_v52  ;;  %11246 = vmatprep.subr.mxu1 %v14304_v21  ;;  %v4756_v9 = vld [vmem:[#allocation2 + $0x101] sm:$0xff]  ;;  %v4757_v52 = vld [vmem:[#allocation2 + $0x109] sm:$0xff] }
 0x25b   : > { %v10884_v43 = vpop.f32.mrf.mxu1  ;;  %v14797_v40 = vpop.f32.mrf.mxu0  ;;  %11247 = vmatpush3.msra.mxu1 %v5276_v23  ;;  %v4789_v24 = vsel %vm17631_vm14, %v4757_v52, 0.0  ;;  %v4760_v52 = vld [vmem:[#allocation2 + $0x121] sm:$0xff] }
 0x25c   : > { %17628 = vst [vmem:[#allocation76_spill] sm:$0xff] %v14797_v40  ;;  %v14799_v19 = vadd.f32 %v10884_v43, %v2655_v34  ;;  %11248 = vmatprep.subr.mxu1 %v14304_v21  ;;  %v5275_v34 = vld [vmem:[#allocation4 + $0x8] sm:$0xff] }
 0x25d   : > { %v14804_v37 = vpop.f32.mrf.mxu1  ;;  %v10823_v39 = vpop.f32.mrf.mxu0  ;;  %11206 = vmatmul.mubr.msk.f32.gmra.mxu0 %vm17406_vm0, %v4787_v33  ;;  %11249 = vmatpush3.msra.mxu1 %v5275_v34  ;;  %v5274_v33 = vld [vmem:[#allocation4] sm:$0xff]  ;;  %v4761_v34 = vld [vmem:[#allocation2 + $0x129] sm:$0xff] }
 0x25e   : > { %17629 = vst [vmem:[#allocation77_spill] sm:$0xff] %v14804_v37  ;;  %v2657_v11 = vadd.f32 %v10823_v39, %v14582_v31  ;;  %11208 = vmatprep.mubr.msk.f32.mxu0 %vm17406_vm0, %v4756_v9  ;;  %11250 = vmatprep.subr.mxu1 %v14304_v21 }
 0x25f   : > { %v10887_v42 = vpop.f32.mrf.mxu1  ;;  %v14810_v2 = vpop.f32.mrf.mxu0  ;;  %11251 = vmatpush3.msra.mxu1 %v5274_v33 }
 0x260   : > { %17630 = vst [vmem:[#allocation78_spill] sm:$0xff] %v14810_v2  ;;  %v14812_v43 = vadd.f32 %v10887_v42, %v2657_v11  ;;  %11253 = vmatmul.mubr.msk.f32.vlgmr.msra.gmra.mxu1 %vm17406_vm0, %v14756_v63  ;;  %v4793_v63 = vsel %vm14114_vm15, %v4761_v34, 0.0 }
 0x261   : > { %v14817_v23 = vpop.f32.mrf.mxu1  ;;  %v10826_v31 = vpop.f32.mrf.mxu0  ;;  %11209 = vmatmul.mubr.msk.f32.gmra.mxu0 %vm17406_vm0, %v4789_v24  ;;  %11287 = vmatprep.mubr.f32.mxu1 %v14304_v21  ;;  %v4791_v24 = vsel %vm14092_vm12, %v14385_v0, 0.0 }
 0x262   : > { %17632 = vst [vmem:[#allocation79_spill] sm:$0xff] %v14817_v23  ;;  %v2659_v39 = vadd.f32 %v10826_v31, %v14595_v5  ;;  %11211 = vmatprep.mubr.msk.f32.mxu0 %vm17406_vm0, %v14383_v18 }
 0x263   : > { %v10890_v11 = vpop.f32.mrf.mxu1  ;;  %v14825_v9 = vpop.f32.mrf.mxu0 }
 0x264   : > { %17633 = vst [vmem:[#allocation80_spill] sm:$0xff] %v14825_v9  ;;  %v14828_v42 = vadd.f32 %v10890_v11, %v2659_v39 }
 0x265   : > { %v14833_v5 = vpop.f32.mrf.mxu1  ;;  %v10829_v33 = vpop.f32.mrf.mxu0  ;;  %11212 = vmatmul.mubr.msk.f32.gmra.mxu0 %vm17406_vm0, %v4791_v24 }
 0x266   : > { %17634 = vst [vmem:[#allocation81_spill] sm:$0xff] %v14833_v5  ;;  %v2661_v18 = vadd.f32 %v10829_v33, %v14613_v53  ;;  %11214 = vmatprep.mubr.msk.f32.mxu0 %vm17406_vm0, %v4760_v52 }
 0x267   : > { %v10893_v31 = vpop.f32.mrf.mxu1  ;;  %v14840_v21 = vpop.f32.mrf.mxu0 }
 0x268   : > { %17635 = vst [vmem:[#allocation82_spill] sm:$0xff] %v14840_v21  ;;  %v14842_v39 = vadd.f32 %v10893_v31, %v2661_v18 }
 0x269   : > { %v14844_v11 = vpop.f32.mrf.mxu1  ;;  %v10832_v0 = vpop.f32.mrf.mxu0  ;;  %11215 = vmatmul.mubr.msk.f32.gmra.mxu0 %vm17406_vm0, %v4793_v63 }
 0x26a   : > { %17636 = vst [vmem:[#allocation83_spill] sm:$0xff] %v14844_v11  ;;  %v2663_v29 = vadd.f32 %v10832_v0, %v14624_v22 }
 0x26b   : > { %v10896_v24 = vpop.f32.mrf.mxu1  ;;  %v14848_v6 = vpop.f32.mrf.mxu0 }
 0x26c   : > { %17637 = vst [vmem:[#allocation84_spill] sm:$0xff] %v14848_v6  ;;  %v14850_v53 = vadd.f32 %v10896_v24, %v2663_v29 }
 0x26d   : > { %v14852_v52 = vpop.f32.mrf.mxu1  ;;  %v10915_v34 = vpop.f32.mrf.mxu0 }
 0x26e   : > { %17638 = vst [vmem:[#allocation85_spill] sm:$0xff] %v14852_v52  ;;  %v3453_v33 = vadd.f32 %v10915_v34, %v14644_v56 }
 0x26f   : > { %v10979_v62 = vpop.f32.mrf.mxu1  ;;  %v14855_v18 = vpop.f32.mrf.mxu0 }
 0x270   : > { %v14857_v31 = vadd.f32 %v10979_v62, %v3453_v33 }
 0x271   : > { %v14859_v11 = vpop.f32.mrf.mxu1  ;;  %v10918_v63 = vpop.f32.mrf.mxu0 }
 0x272   : > { %v3455_v22 = vadd.f32 %v10918_v63, %v14653_v36 }
 0x273   : > { %v10982_v0 = vpop.f32.mrf.mxu1  ;;  %v14862_v21 = vpop.f32.mrf.mxu0 }
 0x274   : > { %v14864_v29 = vadd.f32 %v10982_v0, %v3455_v22 }
 0x275   : > { %v14866_v24 = vpop.f32.mrf.mxu1  ;;  %v10921_v52 = vpop.f32.mrf.mxu0 }
 0x276   : > { %v3457_v56 = vadd.f32 %v10921_v52, %v14669_v3 }
 0x277   : > { %v10985_v34 = vpop.f32.mrf.mxu1  ;;  %v14869_v6 = vpop.f32.mrf.mxu0 }
 0x278   : > { %v14871_v62 = vadd.f32 %v10985_v34, %v3457_v56 }
 0x279   : > { %v14873_v33 = vpop.f32.mrf.mxu1  ;;  %v10924_v5 = vpop.f32.mrf.mxu0 }
 0x27a   : > { %v3459_v36 = vadd.f32 %v10924_v5, %v14681_v15 }
 0x27b   : > { %v10988_v63 = vpop.f32.mrf.mxu1  ;;  %v14876_v9 = vpop.f32.mrf.mxu0 }
 0x27c   : > { %v14878_v22 = vadd.f32 %v10988_v63, %v3459_v36 }
 0x27d   : > { %v14880_v0 = vpop.f32.mrf.mxu1  ;;  %v10927_v23 = vpop.f32.mrf.mxu0 }
 0x27e   : > { %v3461_v3 = vadd.f32 %v10927_v23, %v14697_v49 }
 0x27f   : > { %v10991_v52 = vpop.f32.mrf.mxu1  ;;  %v14883_v2 = vpop.f32.mrf.mxu0 }
 0x280   : > { %v14885_v56 = vadd.f32 %v10991_v52, %v3461_v3 }
 0x281   : > { %v14887_v34 = vpop.f32.mrf.mxu1  ;;  %v10930_v37 = vpop.f32.mrf.mxu0 }
 0x282   : > { %v3463_v15 = vadd.f32 %v10930_v37, %v14709_v28 }
 0x283   : > { %v10994_v5 = vpop.f32.mrf.mxu1  ;;  %v14890_v40 = vpop.f32.mrf.mxu0 }
 0x284   : > { %v14892_v36 = vadd.f32 %v10994_v5, %v3463_v15 }
 0x285   : > { %v14894_v63 = vpop.f32.mrf.mxu1  ;;  %v10933_v20 = vpop.f32.mrf.mxu0 }
 0x286   : > { %17639 = vst [vmem:[#allocation86_spill] sm:$0xff] %v14894_v63  ;;  %v3465_v49 = vadd.f32 %v10933_v20, %v14725_v44 }
 0x287   : > { %v10997_v23 = vpop.f32.mrf.mxu1  ;;  %v14897_v26 = vpop.f32.mrf.mxu0 }
 0x288   : > { %17640 = vst [vmem:[#allocation87_spill] sm:$0xff] %v14897_v26  ;;  %v14899_v3 = vadd.f32 %v10997_v23, %v3465_v49 }
 0x289   : > { %v14901_v52 = vpop.f32.mrf.mxu1  ;;  %v10936_v48 = vpop.f32.mrf.mxu0 }
 0x28a   : > { %17641 = vst [vmem:[#allocation88_spill] sm:$0xff] %v14901_v52  ;;  %v3467_v28 = vadd.f32 %v10936_v48, %v14737_v32 }
 0x28b   : > { %v11000_v37 = vpop.f32.mrf.mxu1  ;;  %v14904_v10 = vpop.f32.mrf.mxu0 }
 0x28c   : > { %17642 = vst [vmem:[#allocation89_spill] sm:$0xff] %v14904_v10  ;;  %v14906_v15 = vadd.f32 %v11000_v37, %v3467_v28 }
 0x28d   : > { %v14908_v5 = vpop.f32.mrf.mxu1  ;;  %v10939_v59 = vpop.f32.mrf.mxu0 }
 0x28e   : > { %17643 = vst [vmem:[#allocation90_spill] sm:$0xff] %v14908_v5  ;;  %v3469_v44 = vadd.f32 %v10939_v59, %v14760_v25 }
 0x28f   : > { %v11003_v20 = vpop.f32.mrf.mxu1  ;;  %v14911_v16 = vpop.f32.mrf.mxu0 }
 0x290   : > { %17644 = vst [vmem:[#allocation91_spill] sm:$0xff] %v14911_v16  ;;  %v14913_v49 = vadd.f32 %v11003_v20, %v3469_v44 }
 0x291   : > { %v14915_v23 = vpop.f32.mrf.mxu1  ;;  %v10942_v52 = vpop.f32.mrf.mxu0 }
 0x292   : > { %17645 = vst [vmem:[#allocation92_spill] sm:$0xff] %v14915_v23  ;;  %v3471_v48 = vadd.f32 %v10942_v52, %v14773_v30 }
 0x293   : > { %v11006_v32 = vpop.f32.mrf.mxu1  ;;  %v14918_v35 = vpop.f32.mrf.mxu0 }
 0x294   : > { %17646 = vst [vmem:[#allocation93_spill] sm:$0xff] %v14918_v35  ;;  %v14920_v28 = vadd.f32 %v11006_v32, %v3471_v48 }
 0x295   : > { %v14922_v37 = vpop.f32.mrf.mxu1  ;;  %v10945_v5 = vpop.f32.mrf.mxu0 }
 0x296   : > { %17647 = vst [vmem:[#allocation94_spill] sm:$0xff] %v14922_v37  ;;  %v3473_v25 = vadd.f32 %v10945_v5, %v14786_v45 }
 0x297   : > { %v11009_v59 = vpop.f32.mrf.mxu1  ;;  %v14925_v10 = vpop.f32.mrf.mxu0 }
 0x298   : > { %17648 = vst [vmem:[#allocation95_spill] sm:$0xff] %v14925_v10  ;;  %v14927_v44 = vadd.f32 %v11009_v59, %v3473_v25 }
 0x299   : > { %v14929_v20 = vpop.f32.mrf.mxu1  ;;  %v10948_v23 = vpop.f32.mrf.mxu0 }
 0x29a   : > { %17649 = vst [vmem:[#allocation96_spill] sm:$0xff] %v14929_v20  ;;  %v3475_v30 = vadd.f32 %v10948_v23, %v14799_v19 }
 0x29b   : > { %v11012_v52 = vpop.f32.mrf.mxu1  ;;  %v14932_v16 = vpop.f32.mrf.mxu0 }
 0x29c   : > { %17650 = vst [vmem:[#allocation97_spill] sm:$0xff] %v14932_v16  ;;  %v14934_v48 = vadd.f32 %v11012_v52, %v3475_v30 }
 0x29d   : > { %v14936_v32 = vpop.f32.mrf.mxu1  ;;  %v10951_v37 = vpop.f32.mrf.mxu0 }
 0x29e   : > { %17651 = vst [vmem:[#allocation98_spill] sm:$0xff] %v14936_v32  ;;  %v3477_v45 = vadd.f32 %v10951_v37, %v14812_v43 }
 0x29f   : > { %v11015_v5 = vpop.f32.mrf.mxu1  ;;  %v14939_v35 = vpop.f32.mrf.mxu0 }
 0x2a0   : > { %17652 = vst [vmem:[#allocation99_spill] sm:$0xff] %v14939_v35  ;;  %v14941_v25 = vadd.f32 %v11015_v5, %v3477_v45 }
 0x2a1   : > { %v14943_v59 = vpop.f32.mrf.mxu1  ;;  %v10954_v20 = vpop.f32.mrf.mxu0 }
 0x2a2   : > { %17653 = vst [vmem:[#allocation100_spill] sm:$0xff] %v14943_v59  ;;  %v3479_v19 = vadd.f32 %v10954_v20, %v14828_v42 }
 0x2a3   : > { %v11018_v23 = vpop.f32.mrf.mxu1  ;;  %v14946_v10 = vpop.f32.mrf.mxu0 }
 0x2a4   : > { %17654 = vst [vmem:[#allocation101_spill] sm:$0xff] %v14946_v10  ;;  %v14948_v30 = vadd.f32 %v11018_v23, %v3479_v19 }
 0x2a5   : > { %v14950_v52 = vpop.f32.mrf.mxu1  ;;  %v10957_v32 = vpop.f32.mrf.mxu0 }
 0x2a6   : > { %17655 = vst [vmem:[#allocation102_spill] sm:$0xff] %v14950_v52  ;;  %v3481_v43 = vadd.f32 %v10957_v32, %v14842_v39 }
 0x2a7   : > { %v11021_v37 = vpop.f32.mrf.mxu1  ;;  %v14953_v16 = vpop.f32.mrf.mxu0 }
 0x2a8   : > { %17656 = vst [vmem:[#allocation103_spill] sm:$0xff] %v14953_v16  ;;  %v14955_v45 = vadd.f32 %v11021_v37, %v3481_v43 }
 0x2a9   : > { %v14957_v5 = vpop.f32.mrf.mxu1  ;;  %v10960_v59 = vpop.f32.mrf.mxu0 }
 0x2aa   : > { %17657 = vst [vmem:[#allocation104_spill] sm:$0xff] %v14957_v5  ;;  %v3483_v42 = vadd.f32 %v10960_v59, %v14850_v53 }
 0x2ab   : > { %v11024_v20 = vpop.f32.mrf.mxu1  ;;  %v14960_v35 = vpop.f32.mrf.mxu0 }
 0x2ac   : > { %17658 = vst [vmem:[#allocation105_spill] sm:$0xff] %v14960_v35  ;;  %v14962_v19 = vadd.f32 %v11024_v20, %v3483_v42 }
 0x2ad   : > { %v14964_v23 = vpop.f32.mrf.mxu1  ;;  %v11043_v52 = vpop.f32.mrf.mxu0 }
 0x2ae   : > { %17659 = vst [vmem:[#allocation106_spill] sm:$0xff] %v14964_v23  ;;  %v14967_v39 = vadd.f32 %v11043_v52, %v14857_v31 }
 0x2af   : > { %v14969_v32 = vpop.f32.mrf.mxu1  ;;  %v14971_v43 = vpop.f32.mrf.mxu0 }
 0x2b1   : > { %v14973_v37 = vpop.f32.mrf.mxu1  ;;  %v11046_v5 = vpop.f32.mrf.mxu0 }
 0x2b2   : > { %v14976_v53 = vadd.f32 %v11046_v5, %v14864_v29 }
 0x2b3   : > { %v14978_v59 = vpop.f32.mrf.mxu1  ;;  %v14980_v42 = vpop.f32.mrf.mxu0 }
 0x2b5   : > { %v11049_v20 = vpop.f32.mrf.mxu0  ;;  %v14985_v31 = vpop.f32.mrf.mxu1 }
 0x2b6   : > { %v14983_v23 = vadd.f32 %v11049_v20, %v14871_v62 }
 0x2b7   : > { %v14987_v52 = vpop.f32.mrf.mxu0  ;;  %v14992_v10 = vpop.f32.mrf.mxu1 }
 0x2b9   : > { %v11052_v35 = vpop.f32.mrf.mxu0  ;;  %v14999_v55 = vpop.f32.mrf.mxu1 }
 0x2ba   : > { %v14990_v16 = vadd.f32 %v11052_v35, %v14878_v22 }
 0x2bb   : > { %v14994_v29 = vpop.f32.mrf.mxu0  ;;  %v15006_v54 = vpop.f32.mrf.mxu1 }
 0x2bd   : > { %v11055_v5 = vpop.f32.mrf.mxu0  ;;  %v15013_v26 = vpop.f32.mrf.mxu1 }
 0x2be   : > { %v14997_v61 = vadd.f32 %v11055_v5, %v14885_v56 }
 0x2bf   : > { %v15001_v62 = vpop.f32.mrf.mxu0  ;;  %v15020_v63 = vpop.f32.mrf.mxu1 }
 0x2c0   : > { %17660 = vst [vmem:[#allocation107_spill] sm:$0xff] %v14997_v61 }
 0x2c1   : > { %v11058_v20 = vpop.f32.mrf.mxu0 }
 0x2c2   : > { %v15004_v46 = vadd.f32 %v11058_v20, %v14892_v36 }
 0x2c3   : > { %v15008_v35 = vpop.f32.mrf.mxu0 }
 0x2c4   : > { %17661 = vst [vmem:[#allocation108_spill] sm:$0xff] %v15004_v46  ;;  %17662 = vst [vmem:[#allocation109_spill] sm:$0xff] %v15008_v35  ;;  %v15027_v35 = vpop.f32.mrf.mxu1 }
 0x2c5   : > { %v11061_v22 = vpop.f32.mrf.mxu0 }
 0x2c6   : > { %v15011_v50 = vadd.f32 %v11061_v22, %v14899_v3 }
 0x2c7   : > { %v15015_v56 = vpop.f32.mrf.mxu0 }
 0x2c8   : > { %17663 = vst [vmem:[#allocation110_spill] sm:$0xff] %v15011_v50  ;;  %17664 = vst [vmem:[#allocation111_spill] sm:$0xff] %v15015_v56  ;;  %v15034_v56 = vpop.f32.mrf.mxu1 }
 0x2c9   : > { %v11064_v5 = vpop.f32.mrf.mxu0 }
 0x2ca   : > { %v15018_v61 = vadd.f32 %v11064_v5, %v14906_v15 }
 0x2cb   : > { %v15022_v36 = vpop.f32.mrf.mxu0 }
 0x2cc   : > { %17665 = vst [vmem:[#allocation112_spill] sm:$0xff] %v15018_v61  ;;  %17666 = vst [vmem:[#allocation113_spill] sm:$0xff] %v15022_v36  ;;  %v15041_v36 = vpop.f32.mrf.mxu1 }
 0x2cd   : > { %v11067_v20 = vpop.f32.mrf.mxu0 }
 0x2ce   : > { %v15025_v46 = vadd.f32 %v11067_v20, %v14913_v49 }
 0x2cf   : > { %v15029_v3 = vpop.f32.mrf.mxu0 }
 0x2d0   : > { %17667 = vst [vmem:[#allocation114_spill] sm:$0xff] %v15025_v46  ;;  %17668 = vst [vmem:[#allocation115_spill] sm:$0xff] %v15029_v3  ;;  %v15048_v3 = vpop.f32.mrf.mxu1 }
 0x2d1   : > { %v11070_v22 = vpop.f32.mrf.mxu0 }
 0x2d2   : > { %v15032_v50 = vadd.f32 %v11070_v22, %v14920_v28  ;;  %v2016_v22 = vadd.f32 %v14417_v1, %v14413_v12  ;;  %v3060_v1 = vadd.f32 %v14663_v27, %v14656_v60 }
 0x2d3   : > { %v15036_v15 = vpop.f32.mrf.mxu0 }
 0x2d4   : > { %17669 = vst [vmem:[#allocation116_spill] sm:$0xff] %v15032_v50  ;;  %17670 = vst [vmem:[#allocation117_spill] sm:$0xff] %v15036_v15  ;;  %v2632_v15 = vadd.f32 %v14642_v41, %v2016_v22 }
 0x2d5   : > { %v11073_v5 = vpop.f32.mrf.mxu0 }
 0x2d6   : > { %v15039_v61 = vadd.f32 %v11073_v5, %v14927_v44  ;;  %v15058_v5 = vpop.f32.mrf.mxu1 }
 0x2d7   : > { %v15043_v49 = vpop.f32.mrf.mxu0 }
 0x2d8   : > { %17671 = vst [vmem:[#allocation118_spill] sm:$0xff] %v15039_v61  ;;  %17672 = vst [vmem:[#allocation119_spill] sm:$0xff] %v15043_v49 }
 0x2d9   : > { %v11076_v20 = vpop.f32.mrf.mxu0 }
 0x2da   : > { %v15046_v46 = vadd.f32 %v11076_v20, %v14934_v48  ;;  %v3058_v48 = vadd.f32 %v14648_v4, %v2632_v15 }
 0x2db   : > { %v15050_v28 = vpop.f32.mrf.mxu0 }
 0x2dc   : > { %17673 = vst [vmem:[#allocation120_spill] sm:$0xff] %v15046_v46  ;;  %17674 = vst [vmem:[#allocation121_spill] sm:$0xff] %v15050_v28  ;;  %v15066_v46 = vpop.f32.mrf.mxu1  ;;  %v3452_v12 = vadd.f32 %v14855_v18, %v3058_v48 }
 0x2dd   : > { %v11079_v50 = vpop.f32.mrf.mxu0 }
 0x2de   : > { %v15056_v44 = vadd.f32 %v11079_v50, %v14941_v25  ;;  %v15076_v25 = vpop.f32.mrf.mxu1  ;;  %v3878_v4 = vadd.f32 %v14859_v11, %v3452_v12 }
 0x2df   : > { %v15060_v61 = vpop.f32.mrf.mxu0 }
 0x2e0   : > { %v4304_v18 = vadd.f32 %v14971_v43, %v3878_v4  ;;  %v15088_v60 = vpop.f32.mrf.mxu1 }
 0x2e1   : > { %v11082_v49 = vpop.f32.mrf.mxu0 }
 0x2e2   : > { %v15064_v20 = vadd.f32 %v11082_v49, %v14948_v30  ;;  %v3454_v30 = vadd.f32 %v14862_v21, %v3060_v1  ;;  %v3062_v49 = vadd.f32 %v14676_v7, %v14672_v13  ;;  %v3064_v21 = vadd.f32 %v14691_v57, %v14684_v47  ;;  %v15100_v43 = vpop.f32.mrf.mxu1  ;;  %v15109_v47 = vld [vmem:[%s17276_s7] ss:$0 sm:$0xff] }
 0x2e3   : > { %v15068_v28 = vpop.f32.mrf.mxu0  ;;  %v4699_v13 = vadd.f32 %v14969_v32, %v14967_v39  ;;  %v4698_v7 = vadd.f32 %v14973_v37, %v4304_v18  ;;  %v4701_v39 = vadd.f32 %v14978_v59, %v14976_v53  ;;  %v3068_v53 = vadd.f32 %v14719_v14, %v14712_v38 }
 0x2e4   : > { %v4703_v59 = vadd.f32 %v14992_v10, %v14983_v23 }
 0x2e5   : > { %v11085_v41 = vpop.f32.mrf.mxu0 }
 0x2e6   : > { %v15074_v50 = vadd.f32 %v11085_v41, %v14955_v45  ;;  %v3880_v45 = vadd.f32 %v14866_v24, %v3454_v30  ;;  %v3456_v41 = vadd.f32 %v14869_v6, %v3062_v49  ;;  %v3458_v24 = vadd.f32 %v14876_v9, %v3064_v21 }
 0x2e7   : > { %v15078_v22 = vpop.f32.mrf.mxu0  ;;  %v3066_v30 = vadd.f32 %v14704_v17, %v14700_v8 }
 0x2e8   : > { %v3882_v1 = vadd.f32 %v14873_v33, %v3456_v41  ;;  %v3884_v17 = vadd.f32 %v14880_v0, %v3458_v24 }
 0x2e9   : > { %v11088_v15 = vpop.f32.mrf.mxu0  ;;  %v3460_v37 = vadd.f32 %v14883_v2, %v3066_v30 }
 0x2ea   : > { %v15086_v48 = vadd.f32 %v11088_v15, %v14962_v19  ;;  %v4306_v19 = vadd.f32 %v14980_v42, %v3880_v45  ;;  %v4308_v33 = vadd.f32 %v14987_v52, %v3882_v1  ;;  %v15119_v42 = vpop.f32.mrf.mxu1  ;;  %v4310_v2 = vadd.f32 %v14994_v29, %v3884_v17  ;;  %v17675_v1 = vld [vmem:[#allocation86_spill] sm:$0xff] }
 0x2eb   : > { %v15090_v27 = vpop.f32.mrf.mxu0  ;;  %v3886_v41 = vadd.f32 %v14887_v34, %v3460_v37  ;;  %v3070_v29 = vadd.f32 %v14732_v51, %v14728_v58 }
 0x2ec   : > { %v4700_v32 = vadd.f32 %v14985_v31, %v4306_v19  ;;  %v4702_v52 = vadd.f32 %v14999_v55, %v4308_v33  ;;  %v15138_v21 = vpop.f32.mrf.mxu1  ;;  %v4704_v34 = vadd.f32 %v15013_v26, %v4310_v2  ;;  %v17680_v33 = vld [vmem:[#allocation70_spill] sm:$0xff] }
 0x2ed   : > { %v11171_v11 = vpop.f32.mrf.mxu0  ;;  %v17683_v2 = vld [vmem:[#allocation38_spill] sm:$0xff] }
 0x2ee   : > { %v5125_v4 = vadd.f32 %v11171_v11, %v4699_v13  ;;  %v3462_v11 = vadd.f32 %v14890_v40, %v3068_v53  ;;  %v4705_v13 = vadd.f32 %v15006_v54, %v14990_v16  ;;  %v4312_v40 = vadd.f32 %v15001_v62, %v3886_v41  ;;  %v15156_v30 = vpop.f32.mrf.mxu1  ;;  %v17677_v62 = vld [vmem:[#allocation42_spill] sm:$0xff]  ;;  %v17682_v53 = vld [vmem:[#allocation109_spill] sm:$0xff] }
 0x2ef   : > { %v4965_v12 = vpop.f32.mrf.mxu0 }
 0x2f0   : > { %v5124_v6 = vadd.f32 %v4965_v12, %v4698_v7  ;;  %v15123_v15 = vadd.f32 %v15109_v47, %v5125_v4  ;;  %v3888_v24 = vadd.f32 %v17675_v1, %v3462_v11  ;;  %v17676_v4 = vld [vmem:[#allocation87_spill] sm:$0xff]  ;;  %v17685_v11 = vld [vmem:[#allocation88_spill] sm:$0xff] }
 0x2f1   : > { %v11174_v57 = vpop.f32.mrf.mxu0 }
 0x2f2   : > { %v15116_v9 = vadd.f32 %v15109_v47, %v5124_v6  ;;  %v5127_v49 = vadd.f32 %v11174_v57, %v4701_v39  ;;  %v3464_v6 = vadd.f32 %v17676_v4, %v3070_v29  ;;  %v17678_v57 = vld [vmem:[#allocation69_spill] sm:$0xff] }
 0x2f3   : > { %v4975_v8 = vpop.f32.mrf.mxu0  ;;  %v3072_v39 = vadd.f32 %v17678_v57, %v17677_v62  ;;  %v17691_v57 = vld [vmem:[#allocation57_spill] sm:$0xff] }
 0x2f4   : > { %v5126_v18 = vadd.f32 %v4975_v8, %v4700_v32  ;;  %v5353_v45 = vadd.f32 %v15123_v15, %v15116_v9  ;;  %v15141_v10 = vadd.f32 %v15109_v47, %v5127_v49  ;;  %v17679_v32 = vld [vmem:[#allocation37_spill] sm:$0xff]  ;;  %v17681_v8 = vld [vmem:[#allocation107_spill] sm:$0xff] }
 0x2f5   : > { %v11177_v31 = vpop.f32.mrf.mxu0  ;;  %v2648_v37 = vadd.f32 %v17680_v33, %v17679_v32  ;;  %v4707_v17 = vadd.f32 %v15020_v63, %v17681_v8  ;;  %v17693_v33 = vld [vmem:[#allocation90_spill] sm:$0xff]  ;;  %v17694_v8 = vld [vmem:[#allocation91_spill] sm:$0xff] }
 0x2f6   : > { %v15134_v0 = vadd.f32 %v15109_v47, %v5126_v18  ;;  %v5129_v55 = vadd.f32 %v11177_v31, %v4703_v59  ;;  %v4706_v18 = vadd.f32 %v15027_v35, %v4312_v40  ;;  %v4314_v59 = vadd.f32 %v17682_v53, %v3888_v24  ;;  %v17689_v24 = vld [vmem:[#allocation108_spill] sm:$0xff] }
 0x2f7   : > { %v4985_v38 = vpop.f32.mrf.mxu0  ;;  %v4709_v4 = vadd.f32 %v15034_v56, %v17689_v24  ;;  %v17701_v24 = vld [vmem:[#allocation92_spill] sm:$0xff] }
 0x2f8   : > { %v5354_v14 = vadd.f32 %v5353_v45, %v15134_v0  ;;  %v5128_v23 = vadd.f32 %v4985_v38, %v4702_v52  ;;  %v15159_v51 = vadd.f32 %v15109_v47, %v5129_v55  ;;  %v17684_v45 = vld [vmem:[#allocation39_spill] sm:$0xff]  ;;  %v3890_v38 = vadd.f32 %v17685_v11, %v3464_v6  ;;  %v17697_v11 = vld [vmem:[#allocation110_spill] sm:$0xff] }
 0x2f9   : > { %v11180_v7 = vpop.f32.mrf.mxu0  ;;  %v2106_v41 = vadd.f32 %v17684_v45, %v17683_v2  ;;  %v17696_v45 = vld [vmem:[#allocation74_spill] sm:$0xff] }
 0x2fa   : > { %v15151_v19 = vadd.f32 %v15109_v47, %v5128_v23  ;;  %v5355_v12 = vadd.f32 %v5354_v14, %v15141_v10  ;;  %v5131_v16 = vadd.f32 %v11180_v7, %v4705_v13  ;;  %v17686_v14 = vld [vmem:[#allocation89_spill] sm:$0xff]  ;;  %v15178_v23 = vpop.f32.mrf.mxu1 }
 0x2fb   : > { %v4995_v58 = vpop.f32.mrf.mxu0  ;;  %v3466_v55 = vadd.f32 %v17686_v14, %v3072_v39  ;;  %v17692_v39 = vld [vmem:[#allocation58_spill] sm:$0xff] }
 0x2fc   : > { %v5356_v54 = vadd.f32 %v5355_v12, %v15151_v19  ;;  %v5130_v26 = vadd.f32 %v4995_v58, %v4704_v34  ;;  %v15181_v29 = vadd.f32 %v15109_v47, %v5131_v16  ;;  %v17687_v34 = vld [vmem:[#allocation71_spill] sm:$0xff]  ;;  %v17688_v12 = vld [vmem:[#allocation72_spill] sm:$0xff]  ;;  %v4708_v58 = vadd.f32 %v15041_v36, %v4314_v59 }
 0x2fd   : > { %v11183_v49 = vpop.f32.mrf.mxu0  ;;  %v3074_v40 = vadd.f32 %v17687_v34, %v2648_v37  ;;  %v2650_v1 = vadd.f32 %v17688_v12, %v2106_v41  ;;  %v2116_v32 = vadd.f32 %v17692_v39, %v17691_v57  ;;  %v3892_v37 = vadd.f32 %v17693_v33, %v3466_v55  ;;  %v17699_v34 = vld [vmem:[#allocation59_spill] sm:$0xff] }
 0x2fe   : > { %v15171_v31 = vadd.f32 %v15109_v47, %v5130_v26  ;;  %v5357_v52 = vadd.f32 %v5356_v54, %v15159_v51  ;;  %v5133_v13 = vadd.f32 %v11183_v49, %v4707_v17  ;;  %v17690_v54 = vld [vmem:[#allocation111_spill] sm:$0xff]  ;;  %v15198_v49 = vpop.f32.mrf.mxu1 }
 0x2ff   : > { %v5005_v63 = vpop.f32.mrf.mxu0  ;;  %v4316_v26 = vadd.f32 %v17690_v54, %v3890_v38  ;;  %v3468_v17 = vadd.f32 %v17694_v8, %v3074_v40  ;;  %v2652_v41 = vadd.f32 %v17696_v45, %v2116_v32  ;;  %v4711_v38 = vadd.f32 %v15048_v3, %v17697_v11  ;;  %v17700_v40 = vld [vmem:[#allocation60_spill] sm:$0xff]  ;;  %v17703_v57 = vld [vmem:[#allocation75_spill] sm:$0xff]  ;;  %v17708_v45 = vld [vmem:[#allocation62_spill] sm:$0xff] }
 0x300   : > { %v5358_v35 = vadd.f32 %v5357_v52, %v15171_v31  ;;  %v5132_v7 = vadd.f32 %v5005_v63, %v4706_v18  ;;  %v15201_v18 = vadd.f32 %v15109_v47, %v5133_v13  ;;  %v17695_v52 = vld [vmem:[#allocation73_spill] sm:$0xff]  ;;  %v2126_v12 = vadd.f32 %v17700_v40, %v17699_v34  ;;  %v17704_v32 = vld [vmem:[#allocation76_spill] sm:$0xff] }
 0x301   : > { %v11186_v6 = vpop.f32.mrf.mxu0  ;;  %v3076_v2 = vadd.f32 %v17695_v52, %v2650_v1  ;;  %v4710_v55 = vadd.f32 %v15058_v5, %v4316_v26  ;;  %v17698_v63 = vld [vmem:[#allocation113_spill] sm:$0xff]  ;;  %v3894_v1 = vadd.f32 %v17701_v24, %v3468_v17  ;;  %v3078_v39 = vadd.f32 %v17703_v57, %v2652_v41  ;;  %v17712_v24 = vld [vmem:[#allocation78_spill] sm:$0xff] }
 0x302   : > { %v15191_v62 = vadd.f32 %v15109_v47, %v5132_v7  ;;  %v5359_v16 = vadd.f32 %v5358_v35, %v15181_v29  ;;  %v5135_v53 = vadd.f32 %v11186_v6, %v4709_v4  ;;  %v4318_v35 = vadd.f32 %v17698_v63, %v3892_v37  ;;  %v17702_v4 = vld [vmem:[#allocation93_spill] sm:$0xff]  ;;  %v17705_v37 = vld [vmem:[#allocation112_spill] sm:$0xff] }
 0x303   : > { %v5015_v56 = vpop.f32.mrf.mxu0  ;;  %v3470_v6 = vadd.f32 %v17702_v4, %v3076_v2  ;;  %v2654_v33 = vadd.f32 %v17704_v32, %v2126_v12  ;;  %v4713_v8 = vadd.f32 %v15066_v46, %v17705_v37  ;;  %v17707_v2 = vld [vmem:[#allocation61_spill] sm:$0xff]  ;;  %v17713_v4 = vld [vmem:[#allocation114_spill] sm:$0xff]  ;;  %v17715_v32 = vld [vmem:[#allocation63_spill] sm:$0xff] }
 0x304   : > { %v5360_v36 = vadd.f32 %v5359_v16, %v15191_v62  ;;  %v5134_v59 = vadd.f32 %v5015_v56, %v4708_v58  ;;  %v15218_v58 = vpop.f32.mrf.mxu1  ;;  %v15221_v54 = vadd.f32 %v15109_v47, %v5135_v53  ;;  %v4712_v56 = vadd.f32 %v15076_v25, %v4318_v35  ;;  %v17711_v40 = vld [vmem:[#allocation77_spill] sm:$0xff]  ;;  %v17716_v37 = vld [vmem:[#allocation64_spill] sm:$0xff] }
 0x305   : > { %v11189_v14 = vpop.f32.mrf.mxu0  ;;  %v2136_v11 = vadd.f32 %v17708_v45, %v17707_v2  ;;  %v3080_v12 = vadd.f32 %v17711_v40, %v2654_v33  ;;  %v17722_v40 = vld [vmem:[#allocation119_spill] sm:$0xff] }
 0x306   : > { %v15211_v7 = vadd.f32 %v15109_v47, %v5134_v59  ;;  %v5361_v13 = vadd.f32 %v5360_v36, %v15201_v18  ;;  %v5137_v26 = vadd.f32 %v11189_v14, %v4711_v38  ;;  %v17706_v36 = vld [vmem:[#allocation115_spill] sm:$0xff]  ;;  %v17709_v38 = vld [vmem:[#allocation94_spill] sm:$0xff]  ;;  %v15238_v63 = vpop.f32.mrf.mxu1 }
 0x307   : > { %v5025_v3 = vpop.f32.mrf.mxu0  ;;  %v4320_v59 = vadd.f32 %v17706_v36, %v3894_v1  ;;  %v3896_v41 = vadd.f32 %v17709_v38, %v3470_v6  ;;  %v17710_v14 = vld [vmem:[#allocation95_spill] sm:$0xff]  ;;  %v2656_v1 = vadd.f32 %v17712_v24, %v2136_v11 }
 0x308   : > { %v5362_v5 = vadd.f32 %v5361_v13, %v15211_v7  ;;  %v5136_v16 = vadd.f32 %v5025_v3, %v4710_v55  ;;  %v3472_v55 = vadd.f32 %v17710_v14, %v3078_v39  ;;  %v15241_v13 = vadd.f32 %v15109_v47, %v5137_v26  ;;  %v17719_v11 = vld [vmem:[#allocation79_spill] sm:$0xff] }
 0x309   : > { %v11192_v17 = vpop.f32.mrf.mxu0  ;;  %v4715_v3 = vadd.f32 %v15088_v60, %v17713_v4  ;;  %v3082_v38 = vadd.f32 %v17719_v11, %v2656_v1  ;;  %v17723_v4 = vld [vmem:[#allocation65_spill] sm:$0xff] }
 0x30a   : > { %v15231_v52 = vadd.f32 %v15109_v47, %v5136_v16  ;;  %v5363_v53 = vadd.f32 %v5362_v5, %v15221_v54  ;;  %v5139_v35 = vadd.f32 %v11192_v17, %v4713_v8  ;;  %v4714_v5 = vadd.f32 %v15100_v43, %v4320_v59  ;;  %v17714_v16 = vld [vmem:[#allocation117_spill] sm:$0xff]  ;;  %v17717_v17 = vld [vmem:[#allocation96_spill] sm:$0xff] }
 0x30b   : > { %v5035_v46 = vpop.f32.mrf.mxu0  ;;  %v4322_v57 = vadd.f32 %v17714_v16, %v3896_v41  ;;  %v2146_v8 = vadd.f32 %v17716_v37, %v17715_v32  ;;  %v3898_v33 = vadd.f32 %v17717_v17, %v3472_v55  ;;  %v17720_v41 = vld [vmem:[#allocation80_spill] sm:$0xff]  ;;  %v17726_v16 = vld [vmem:[#allocation99_spill] sm:$0xff]  ;;  %v17727_v17 = vld [vmem:[#allocation81_spill] sm:$0xff] }
 0x30c   : > { %v5364_v25 = vadd.f32 %v5363_v53, %v15231_v52  ;;  %v5138_v34 = vadd.f32 %v5035_v46, %v4712_v56  ;;  %v17718_v56 = vld [vmem:[#allocation97_spill] sm:$0xff]  ;;  %v4659_v53 = vpop.f32.mrf.mxu1  ;;  %v15259_v60 = vadd.f32 %v15109_v47, %v5139_v35  ;;  %v17721_v46 = vld [vmem:[#allocation116_spill] sm:$0xff] }
 0x30d   : > { %v11195_v6 = vpop.f32.mrf.mxu0  ;;  %v3474_v36 = vadd.f32 %v17718_v56, %v3080_v12  ;;  %v2658_v14 = vadd.f32 %v17720_v41, %v2146_v8  ;;  %v4716_v55 = vadd.f32 %v15138_v21, %v4322_v57  ;;  %v4324_v12 = vadd.f32 %v17722_v40, %v3898_v33  ;;  %v17728_v56 = vld [vmem:[#allocation82_spill] sm:$0xff]  ;;  %v17731_v40 = vld [vmem:[#allocation67_spill] sm:$0xff] }
 0x30e   : > { %v15251_v39 = vadd.f32 %v15109_v47, %v5138_v34  ;;  %v5365_v26 = vadd.f32 %v5364_v25, %v15241_v13  ;;  %v5141_v59 = vadd.f32 %v11195_v6, %v4715_v3  ;;  %v4717_v25 = vadd.f32 %v15119_v42, %v17721_v46  ;;  %v17724_v3 = vld [vmem:[#allocation66_spill] sm:$0xff]  ;;  %v11146_v32 = vpop.f32.mrf.mxu1 }
 0x30f   : > { %v5045_v2 = vpop.f32.mrf.mxu0  ;;  %v2156_v6 = vadd.f32 %v17724_v3, %v17723_v4  ;;  %v3084_v33 = vadd.f32 %v17727_v17, %v2658_v14 }
 0x310   : > { %v5366_v43 = vadd.f32 %v5365_v26, %v15251_v39  ;;  %v5140_v45 = vadd.f32 %v5045_v2, %v4714_v5  ;;  %v17725_v5 = vld [vmem:[#allocation98_spill] sm:$0xff]  ;;  %v3476_v26 = vadd.f32 %v17726_v16, %v3082_v38  ;;  %v15277_v42 = vadd.f32 %v15109_v47, %v5141_v59  ;;  %v17730_v38 = vld [vmem:[#allocation121_spill] sm:$0xff]  ;;  %v4669_v3 = vpop.f32.mrf.mxu1 }
 0x311   : > { %v11198_v34 = vpop.f32.mrf.mxu0  ;;  %v3900_v1 = vadd.f32 %v17725_v5, %v3474_v36  ;;  %v2660_v2 = vadd.f32 %v17728_v56, %v2156_v6  ;;  %v4718_v36 = vadd.f32 %v15178_v23, %v4324_v12 }
 0x312   : > { %v15269_v24 = vadd.f32 %v15109_v47, %v5140_v45  ;;  %v5367_v35 = vadd.f32 %v5366_v43, %v15259_v60  ;;  %v5143_v57 = vadd.f32 %v11198_v34, %v4717_v25  ;;  %v17729_v43 = vld [vmem:[#allocation118_spill] sm:$0xff]  ;;  %v17732_v25 = vld [vmem:[#allocation68_spill] sm:$0xff] }
 0x313   : > { %v5055_v37 = vpop.f32.mrf.mxu0  ;;  %v4719_v45 = vadd.f32 %v15156_v30, %v17729_v43  ;;  %v4326_v41 = vadd.f32 %v17730_v38, %v3900_v1  ;;  %v2166_v34 = vadd.f32 %v17732_v25, %v17731_v40  ;;  %v17735_v1 = vld [vmem:[#allocation83_spill] sm:$0xff]  ;;  %v17738_v38 = vld [vmem:[#allocation102_spill] sm:$0xff] }
 0x314   : > { %v5368_v21 = vadd.f32 %v5367_v35, %v15269_v24  ;;  %v5142_v8 = vadd.f32 %v5055_v37, %v4716_v55  ;;  %v17733_v55 = vld [vmem:[#allocation100_spill] sm:$0xff]  ;;  %v17734_v35 = vld [vmem:[#allocation101_spill] sm:$0xff]  ;;  %v15295_v30 = vadd.f32 %v15109_v47, %v5143_v57  ;;  %v3086_v16 = vadd.f32 %v17735_v1, %v2660_v2  ;;  %v11149_v2 = vpop.f32.mrf.mxu1 }
 0x315   : > { %v11201_v11 = vpop.f32.mrf.mxu0  ;;  %v3902_v14 = vadd.f32 %v17733_v55, %v3476_v26  ;;  %v3478_v4 = vadd.f32 %v17734_v35, %v3084_v33  ;;  %v17736_v37 = vld [vmem:[#allocation84_spill] sm:$0xff]  ;;  %v4720_v26 = vadd.f32 %v15218_v58, %v4326_v41  ;;  %v17740_v41 = vld [vmem:[#allocation85_spill] sm:$0xff] }
 0x316   : > { %v15287_v46 = vadd.f32 %v15109_v47, %v5142_v8  ;;  %v5369_v59 = vadd.f32 %v5368_v21, %v15277_v42  ;;  %v5145_v12 = vadd.f32 %v11201_v11, %v4719_v45  ;;  %v2662_v21 = vadd.f32 %v17736_v37, %v2166_v34  ;;  %v17737_v8 = vld [vmem:[#allocation120_spill] sm:$0xff]  ;;  %v17739_v11 = vld [vmem:[#allocation103_spill] sm:$0xff] }
 0x317   : > { %v5065_v6 = vpop.f32.mrf.mxu0  ;;  %v4721_v17 = vadd.f32 %v15198_v49, %v17737_v8  ;;  %v4328_v33 = vadd.f32 %v15060_v61, %v3902_v14  ;;  %v3904_v45 = vadd.f32 %v17738_v38, %v3478_v4  ;;  %v4723_v34 = vadd.f32 %v15238_v63, %v15056_v44 }
 0x318   : > { %v5370_v23 = vadd.f32 %v5369_v59, %v15287_v46  ;;  %v5144_v5 = vadd.f32 %v5065_v6, %v4718_v36  ;;  %v3480_v36 = vadd.f32 %v17739_v11, %v3086_v16  ;;  %v15311_v40 = vadd.f32 %v15109_v47, %v5145_v12  ;;  %v4679_v16 = vpop.f32.mrf.mxu1 }
 0x319   : > { %v11204_v56 = vpop.f32.mrf.mxu0  ;;  %v3088_v61 = vadd.f32 %v17740_v41, %v2662_v21  ;;  %v4722_v14 = vadd.f32 %v4659_v53, %v4328_v33  ;;  %v4330_v35 = vadd.f32 %v15068_v28, %v3904_v45  ;;  %v4725_v28 = vadd.f32 %v11146_v32, %v15064_v20 }
 0x31a   : > { %v15305_v43 = vadd.f32 %v15109_v47, %v5144_v5  ;;  %v5371_v57 = vadd.f32 %v5370_v23, %v15295_v30  ;;  %v5147_v25 = vadd.f32 %v11204_v56, %v4721_v17  ;;  %v17741_v23 = vld [vmem:[#allocation104_spill] sm:$0xff]  ;;  %v17742_v5 = vld [vmem:[#allocation105_spill] sm:$0xff]  ;;  %v11152_v45 = vpop.f32.mrf.mxu1  ;;  %v4727_v32 = vadd.f32 %v11149_v2, %v15074_v50 }
 0x31b   : > { %v5075_v59 = vpop.f32.mrf.mxu0  ;;  %v3906_v12 = vadd.f32 %v17741_v23, %v3480_v36  ;;  %v3482_v1 = vadd.f32 %v17742_v5, %v3088_v61  ;;  %v4724_v17 = vadd.f32 %v4669_v3, %v4330_v35  ;;  %v4729_v50 = vadd.f32 %v11152_v45, %v15086_v48  ;;  %v5896_v45 = vld [vmem:[#allocation7 + $0xf8] sm:$0xff] }
 0x31c   : > { %v5372_v49 = vadd.f32 %v5371_v57, %v15305_v43  ;;  %v5146_v58 = vadd.f32 %v5075_v59, %v4720_v26  ;;  %v15325_v21 = vadd.f32 %v15109_v47, %v5147_v25  ;;  %v17743_v57 = vld [vmem:[#allocation106_spill] sm:$0xff]  ;;  %v4689_v61 = vpop.f32.mrf.mxu1  ;;  %11255 = vmatprep.subr.mxu1 %v5896_v45 }
 0x31d   : > { %v11207_v55 = vpop.f32.mrf.mxu0  ;;  %v4332_v56 = vadd.f32 %v15078_v22, %v3906_v12  ;;  %v3908_v38 = vadd.f32 %v17743_v57, %v3482_v1  ;;  %11256 = vmatpush3.msra.mxu1 %v5896_v45 }
 0x31e   : > { %v15319_v4 = vadd.f32 %v15109_v47, %v5146_v58  ;;  %v5373_v6 = vadd.f32 %v5372_v49, %v15311_v40  ;;  %v5149_v63 = vadd.f32 %v11207_v55, %v4723_v34  ;;  %v15367_v57 = vpop.f32.mrf.mxu1 }
 0x31f   : > { %v5085_v37 = vpop.f32.mrf.mxu0  ;;  %v4726_v22 = vadd.f32 %v4679_v16, %v4332_v56  ;;  %v4334_v25 = vadd.f32 %v15090_v27, %v3908_v38  ;;  %v5847_v56 = vld [vmem:[#allocation7 + $0x78] sm:$0xff] }
 0x320   : > { %v5374_v44 = vadd.f32 %v5373_v6, %v15319_v4  ;;  %v5148_v53 = vadd.f32 %v5085_v37, %v4722_v14  ;;  %v15336_v36 = vadd.f32 %v15109_v47, %v5149_v63  ;;  %11335 = vmatprep.subr.mxu0 %v5847_v56 }
 0x321   : > { %v11210_v8 = vpop.f32.mrf.mxu0  ;;  %v4728_v2 = vadd.f32 %v4689_v61, %v4334_v25  ;;  %11336 = vmatpush3.msra.mxu0 %v5847_v56  ;;  %v5894_v25 = vld [vmem:[#allocation7 + $0xe8] sm:$0xff] }
 0x322   : > { %v15331_v26 = vadd.f32 %v15109_v47, %v5148_v53  ;;  %v5375_v33 = vadd.f32 %v5374_v44, %v15325_v21  ;;  %v5151_v49 = vadd.f32 %v11210_v8, %v4725_v28 }
 0x323   : > { %v5095_v11 = vpop.f32.mrf.mxu0 }
 0x324   : > { %v5376_v59 = vadd.f32 %v5375_v33, %v15331_v26  ;;  %v5150_v20 = vadd.f32 %v5095_v11, %v4724_v17  ;;  %v15346_v55 = vadd.f32 %v15109_v47, %v5151_v49  ;;  %v5846_v33 = vld [vmem:[#allocation7 + $0x70] sm:$0xff]  ;;  %v5845_v11 = vld [vmem:[#allocation7 + $0x68] sm:$0xff] }
 0x325   : > { %v11213_v3 = vpop.f32.mrf.mxu0  ;;  %11337 = vmatprep.subr.mxu0 %v5846_v33 }
 0x326   : > { %v15342_v58 = vadd.f32 %v15109_v47, %v5150_v20  ;;  %v5377_v41 = vadd.f32 %v5376_v59, %v15336_v36  ;;  %v5153_v35 = vadd.f32 %v11213_v3, %v4727_v32  ;;  %v11235_v59 = vpop.f32.mrf.mxu1  ;;  %11338 = vmatpush3.msra.mxu0 %v5846_v33  ;;  %v5843_v32 = vld [vmem:[#allocation7 + $0x58] sm:$0xff] }
 0x327   : > { %v5105_v34 = vpop.f32.mrf.mxu0  ;;  %11339 = vmatprep.subr.mxu0 %v5845_v11 }
 0x328   : > { %v5378_v14 = vadd.f32 %v5377_v41, %v15342_v58  ;;  %v5152_v6 = vadd.f32 %v5105_v34, %v4726_v22  ;;  %v15355_v1 = vadd.f32 %v15109_v47, %v5153_v35  ;;  %11340 = vmatpush3.msra.mxu0 %v5845_v11  ;;  %v5895_v22 = vld [vmem:[#allocation7 + $0xf0] sm:$0xff]  ;;  %v15369_v61 = vpop.f32.mrf.mxu1 }
 0x329   : > { %v11216_v23 = vpop.f32.mrf.mxu0  ;;  %v5842_v41 = vld [vmem:[#allocation7 + $0x50] sm:$0xff]  ;;  %11257 = vmatprep.subr.mxu1 %v5895_v22 }
 0x32a   : > { %v15351_v27 = vadd.f32 %v15109_v47, %v5152_v6  ;;  %v5379_v12 = vadd.f32 %v5378_v14, %v15346_v55  ;;  %v5155_v37 = vadd.f32 %v11216_v23, %v4729_v50  ;;  %11258 = vmatpush3.msra.mxu1 %v5895_v22  ;;  %v5893_v14 = vld [vmem:[#allocation7 + $0xe0] sm:$0xff]  ;;  %v11254_v35 = vpop.f32.mrf.mxu1  ;;  %v5892_v23 = vld [vmem:[#allocation7 + $0xd8] sm:$0xff]  ;;  %v5841_v50 = vld [vmem:[#allocation7 + $0x48] sm:$0xff] }
 0x32b   : > { %v5115_v5 = vpop.f32.mrf.mxu0  ;;  %11259 = vmatprep.subr.mxu1 %v5894_v25 }
 0x32c   : > { %v5380_v16 = vadd.f32 %v5379_v12, %v15351_v27  ;;  %v5154_v44 = vadd.f32 %v5115_v5, %v4728_v2  ;;  %v15363_v48 = vadd.f32 %v15109_v47, %v5155_v37  ;;  %11260 = vmatpush3.msra.mxu1 %v5894_v25  ;;  %v5891_v37 = vld [vmem:[#allocation7 + $0xd0] sm:$0xff] }
 0x32d   : > { %11261 = vmatprep.subr.mxu1 %v5893_v14 }
 0x32e   : > { %v15359_v63 = vadd.f32 %v15109_v47, %v5154_v44  ;;  %v5381_v53 = vadd.f32 %v5380_v16, %v15355_v1  ;;  %v5844_v47 = vld [vmem:[#allocation7 + $0x60] sm:$0xff]  ;;  %11262 = vmatpush3.msra.mxu1 %v5893_v14 }
 0x32f   : > { %11341 = vmatprep.subr.mxu0 %v5844_v47  ;;  %11263 = vmatprep.subr.mxu1 %v5892_v23 }
 0x330   : > { %v5382_v28 = vadd.f32 %v5381_v53, %v15359_v63  ;;  %11342 = vmatpush3.msra.mxu0 %v5844_v47  ;;  %11264 = vmatpush3.msra.mxu1 %v5892_v23  ;;  %v5885_v23 = vld [vmem:[#allocation7 + $0xa0] sm:$0xff] }
 0x331   : > { %11343 = vmatprep.subr.mxu0 %v5843_v32  ;;  %11265 = vmatprep.subr.mxu1 %v5891_v37 }
 0x332   : > { %v5383_v8 = vadd.f32 %v5382_v28, %v15363_v48  ;;  %11344 = vmatpush3.msra.mxu0 %v5843_v32  ;;  %11266 = vmatpush3.msra.mxu1 %v5891_v37 }
 0x333   : > { %11345 = vmatprep.subr.mxu0 %v5842_v41 }
 0x334   : > { %v5384_v17 = vrot.slane %v5383_v8, 4  ;;  %11346 = vmatpush3.msra.mxu0 %v5842_v41  ;;  %v5887_v41 = vld [vmem:[#allocation7 + $0xb0] sm:$0xff] }
 0x335   : > { %11347 = vmatprep.subr.mxu0 %v5841_v50 }
 0x336   : > { %v5385_v38 = vadd.f32 %v5384_v17, %v5383_v8  ;;  %11348 = vmatpush3.msra.mxu0 %v5841_v50  ;;  %v5839_v17 = vld [vmem:[#allocation7 + $0x38] sm:$0xff]  ;;  %v5836_v50 = vld [vmem:[#allocation7 + $0x20] sm:$0xff] }
 0x338   : > { %v5386_v49 = vrot.slane %v5385_v38, 2 }
 0x33a   : > { %v5387_v20 = vadd.f32 %v5386_v49, %v5385_v38 }
 0x33c   : > { %v5388_v3 = vrot.slane %v5387_v20, 1 }
 0x33e   : > { %v5389_v34 = vadd.f32 %v5388_v3, %v5387_v20 }
 0x340   : > { %v15371_v6 = vmul.f32 0.00390625, %v5389_v34  ;;  %v5838_v34 = vld [vmem:[#allocation7 + $0x30] sm:$0xff] }
 0x342   : > { %v15375_v2 = vsub.f32 %v15191_v62, %v15371_v6  ;;  %v15379_v12 = vsub.f32 %v15201_v18, %v15371_v6  ;;  %v15383_v5 = vsub.f32 %v15211_v7, %v15371_v6  ;;  %v15387_v16 = vsub.f32 %v15221_v54, %v15371_v6 }
 0x343   : > { %v15391_v44 = vsub.f32 %v15231_v52, %v15371_v6  ;;  %v15395_v62 = vsub.f32 %v15241_v13, %v15371_v6  ;;  %v15399_v18 = vsub.f32 %v15251_v39, %v15371_v6  ;;  %v15403_v7 = vsub.f32 %v15259_v60, %v15371_v6 }
 0x344   : > { %v15407_v54 = vsub.f32 %v15269_v24, %v15371_v6  ;;  %v15411_v52 = vsub.f32 %v15277_v42, %v15371_v6  ;;  %v15415_v13 = vsub.f32 %v15287_v46, %v15371_v6  ;;  %v15419_v39 = vsub.f32 %v15295_v30, %v15371_v6  ;;  %v5890_v30 = vld [vmem:[#allocation7 + $0xc8] sm:$0xff] }
 0x345   : > { %v15423_v60 = vsub.f32 %v15305_v43, %v15371_v6  ;;  %v15427_v24 = vsub.f32 %v15311_v40, %v15371_v6  ;;  %v15431_v42 = vsub.f32 %v15319_v4, %v15371_v6  ;;  %v15435_v46 = vsub.f32 %v15325_v21, %v15371_v6  ;;  %11267 = vmatprep.subr.mxu1 %v5890_v30 }
 0x346   : > { %v15439_v53 = vsub.f32 %v15331_v26, %v15371_v6  ;;  %v15443_v43 = vsub.f32 %v15336_v36, %v15371_v6  ;;  %v15447_v40 = vsub.f32 %v15342_v58, %v15371_v6  ;;  %v15451_v4 = vsub.f32 %v15346_v55, %v15371_v6  ;;  %v5840_v55 = vld [vmem:[#allocation7 + $0x40] sm:$0xff]  ;;  %11268 = vmatpush3.msra.mxu1 %v5890_v30 }
 0x347   : > { %v15455_v21 = vsub.f32 %v15351_v27, %v15371_v6  ;;  %v15459_v26 = vsub.f32 %v15355_v1, %v15371_v6  ;;  %v15463_v36 = vsub.f32 %v15359_v63, %v15371_v6  ;;  %v15467_v58 = vsub.f32 %v15363_v48, %v15371_v6  ;;  %v5889_v1 = vld [vmem:[#allocation7 + $0xc0] sm:$0xff]  ;;  %11349 = vmatprep.subr.mxu0 %v5840_v55  ;;  %v5888_v63 = vld [vmem:[#allocation7 + $0xb8] sm:$0xff] }
 0x348   : > { %v15471_v28 = vsub.f32 %v15116_v9, %v15371_v6  ;;  %v15475_v27 = vsub.f32 %v15123_v15, %v15371_v6  ;;  %11269 = vmatprep.subr.mxu1 %v5889_v1  ;;  %v15479_v48 = vsub.f32 %v15134_v0, %v15371_v6  ;;  %11350 = vmatpush3.msra.mxu0 %v5840_v55  ;;  %v5884_v55 = vld [vmem:[#allocation7 + $0x98] sm:$0xff] }
 0x349   : > { %11270 = vmatpush3.msra.mxu1 %v5889_v1  ;;  %v15487_v15 = vsub.f32 %v15141_v10, %v15371_v6  ;;  %11351 = vmatprep.subr.mxu0 %v5839_v17  ;;  %v15491_v56 = vsub.f32 %v15151_v19, %v15371_v6  ;;  %v15497_v38 = vsub.f32 %v15159_v51, %v15371_v6  ;;  %v5835_v1 = vld [vmem:[#allocation7 + $0x18] sm:$0xff] }
 0x34a   : > { %v5423_v8 = vmul.f32 %v15471_v28, %v15471_v28  ;;  %v5424_v9 = vmul.f32 %v15475_v27, %v15475_v27  ;;  %11271 = vmatprep.subr.mxu1 %v5888_v63  ;;  %v5425_v0 = vmul.f32 %v15479_v48, %v15479_v48  ;;  %11352 = vmatpush3.msra.mxu0 %v5839_v17  ;;  %v5834_v17 = vld [vmem:[#allocation7 + $0x10] sm:$0xff] }
 0x34b   : > { %11272 = vmatpush3.msra.mxu1 %v5888_v63  ;;  %v5426_v10 = vmul.f32 %v15487_v15, %v15487_v15  ;;  %v15503_v11 = vsub.f32 %v15171_v31, %v15371_v6  ;;  %v5427_v19 = vmul.f32 %v15491_v56, %v15491_v56  ;;  %v15509_v49 = vsub.f32 %v15181_v29, %v15371_v6  ;;  %v5886_v29 = vld [vmem:[#allocation7 + $0xa8] sm:$0xff] }
 0x34c   : > { %v5455_v33 = vadd.f32 %v5424_v9, %v5423_v8  ;;  %v5428_v51 = vmul.f32 %v15497_v38, %v15497_v38  ;;  %v5431_v22 = vmul.f32 %v15375_v2, %v15375_v2  ;;  %v5432_v14 = vmul.f32 %v15379_v12, %v15379_v12  ;;  %11273 = vmatprep.subr.mxu1 %v5887_v41  ;;  %v5837_v6 = vld [vmem:[#allocation7 + $0x28] sm:$0xff]  ;;  %v5883_v9 = vld [vmem:[#allocation7 + $0x90] sm:$0xff] }
 0x34d   : > { %v5429_v20 = vmul.f32 %v15503_v11, %v15503_v11  ;;  %v5430_v31 = vmul.f32 %v15509_v49, %v15509_v49  ;;  %11353 = vmatprep.subr.mxu0 %v5838_v34  ;;  %11274 = vmatpush3.msra.mxu1 %v5887_v41  ;;  %v5433_v37 = vmul.f32 %v15383_v5, %v15383_v5  ;;  %v6427_v41 = vld [vmem:[#allocation7 + $0x178] sm:$0xff] }
 0x34e   : > { %v5456_v45 = vadd.f32 %v5455_v33, %v5425_v0  ;;  %11354 = vmatpush3.msra.mxu0 %v5838_v34  ;;  %11275 = vmatprep.subr.mxu1 %v5886_v29  ;;  %v5434_v63 = vmul.f32 %v15387_v16, %v15387_v16  ;;  %v5435_v0 = vmul.f32 %v15391_v44, %v15391_v44  ;;  %v6765_v34 = vld [vmem:[#allocation7 + $0x1f8] sm:$0xff] }
 0x34f   : > { %11355 = vmatprep.subr.mxu0 %v5837_v6  ;;  %11276 = vmatpush3.msra.mxu1 %v5886_v29  ;;  %v5439_v29 = vmul.f32 %v15407_v54, %v15407_v54 }
 0x350   : > { %v5457_v59 = vadd.f32 %v5456_v45, %v5426_v10  ;;  %11356 = vmatpush3.msra.mxu0 %v5837_v6  ;;  %11277 = vmatprep.subr.mxu1 %v5885_v23  ;;  %v5882_v10 = vld [vmem:[#allocation7 + $0x88] sm:$0xff]  ;;  %v12137_v6 = vld [vmem:[#allocation3] sm:$0xff] }
 0x351   : > { %11357 = vmatprep.subr.mxu0 %v5836_v50  ;;  %11278 = vmatpush3.msra.mxu1 %v5885_v23  ;;  %v5833_v45 = vld [vmem:[#allocation7 + $0x8] sm:$0xff]  ;;  %v6426_v23 = vld [vmem:[#allocation7 + $0x170] sm:$0xff] }
 0x352   : > { %v5458_v47 = vadd.f32 %v5457_v59, %v5427_v19  ;;  %11358 = vmatpush3.msra.mxu0 %v5836_v50  ;;  %11279 = vmatprep.subr.mxu1 %v5884_v55  ;;  %v5436_v19 = vmul.f32 %v15395_v62, %v15395_v62  ;;  %v6764_v50 = vld [vmem:[#allocation7 + $0x1f0] sm:$0xff] }
 0x353   : > { %11359 = vmatprep.subr.mxu0 %v5835_v1  ;;  %11280 = vmatpush3.msra.mxu1 %v5884_v55  ;;  %v6425_v55 = vld [vmem:[#allocation7 + $0x168] sm:$0xff] }
 0x354   : > { %v5459_v32 = vadd.f32 %v5458_v47, %v5428_v51  ;;  %11360 = vmatpush3.msra.mxu0 %v5835_v1  ;;  %11281 = vmatprep.subr.mxu1 %v5883_v9  ;;  %v5881_v51 = vld [vmem:[#allocation7 + $0x80] sm:$0xff]  ;;  %v6763_v1 = vld [vmem:[#allocation7 + $0x1e8] sm:$0xff] }
 0x355   : > { %11361 = vmatprep.subr.mxu0 %v5834_v17  ;;  %11282 = vmatpush3.msra.mxu1 %v5883_v9  ;;  %v5832_v47 = vld [vmem:[#allocation7] sm:$0xff] }
 0x356   : > { %v5460_v3 = vadd.f32 %v5459_v32, %v5429_v20  ;;  %11362 = vmatpush3.msra.mxu0 %v5834_v17  ;;  %v5437_v20 = vmul.f32 %v15399_v18, %v15399_v18  ;;  %11283 = vmatprep.subr.mxu1 %v5882_v10  ;;  %v6424_v9 = vld [vmem:[#allocation7 + $0x160] sm:$0xff] }
 0x357   : > { %11363 = vmatprep.subr.mxu0 %v5833_v45  ;;  %11284 = vmatpush3.msra.mxu1 %v5882_v10  ;;  %v6762_v17 = vld [vmem:[#allocation7 + $0x1e0] sm:$0xff]  ;;  %v6423_v10 = vld [vmem:[#allocation7 + $0x158] sm:$0xff] }
 0x358   : > { %v5461_v25 = vadd.f32 %v5460_v3, %v5430_v31  ;;  %11364 = vmatpush3.msra.mxu0 %v5833_v45  ;;  %v5768_v31 = vld [vmem:[#allocation3 + $0xf] sm:$0xff]  ;;  %v5438_v3 = vmul.f32 %v15403_v7, %v15403_v7  ;;  %11285 = vmatprep.subr.mxu1 %v5881_v51  ;;  %v6761_v45 = vld [vmem:[#allocation7 + $0x1d8] sm:$0xff] }
 0x359   : > { %11365 = vmatprep.subr.mxu0 %v5832_v47  ;;  %11286 = vmatpush3.msra.mxu1 %v5881_v51  ;;  %v6422_v51 = vld [vmem:[#allocation7 + $0x150] sm:$0xff] }
 0x35a   : > { %v5462_v35 = vadd.f32 %v5461_v25, %v5431_v22  ;;  %v5769_v25 = vld [vmem:[#allocation3 + $0x17] sm:$0xff]  ;;  %11366 = vmatpush3.msra.mxu0 %v5832_v47  ;;  %11288 = vmatmul.mubr.f32.vlgmr.msra.gmra.mxu1 %v12137_v6  ;;  %v5447_v6 = vmul.f32 %v15439_v53, %v15439_v53 }
 0x35b   : > { %11415 = vmatprep.subr.mxu1 %v6427_v41  ;;  %11495 = vmatprep.subr.mxu0 %v6765_v34  ;;  %v6760_v47 = vld [vmem:[#allocation7 + $0x1d0] sm:$0xff] }
 0x35c   : > { %v5463_v30 = vadd.f32 %v5462_v35, %v5432_v14  ;;  %v17744_v35 = vld [vmem:[#allocation20_spill] sm:$0xff]  ;;  %11416 = vmatpush3.msra.mxu1 %v6427_v41  ;;  %v6759_v41 = vld [vmem:[#allocation7 + $0x1c8] sm:$0xff] }
 0x35d   : > { %vm17745_vm0 = vnez %v17744_v35  ;;  %11417 = vmatprep.subr.mxu1 %v6426_v23 }
 0x35e   : > { %v5464_v8 = vadd.f32 %v5463_v30, %v5433_v37  ;;  %11367 = vmatprep.mubr.msk.f32.mxu0 %vm17745_vm0, %v5768_v31  ;;  %v5440_v37 = vmul.f32 %v15411_v52, %v15411_v52  ;;  %11418 = vmatpush3.msra.mxu1 %v6426_v23  ;;  %v6421_v31 = vld [vmem:[#allocation7 + $0x148] sm:$0xff] }
 0x35f   : > { %11368 = vmatmul.mubr.f32.vlgmr.msra.gmra.mxu0 %v5769_v25  ;;  %11419 = vmatprep.subr.mxu1 %v6425_v55  ;;  %v6420_v25 = vld [vmem:[#allocation7 + $0x140] sm:$0xff] }
 0x360   : > { %v5465_v33 = vadd.f32 %v5464_v8, %v5434_v63  ;;  %11496 = vmatpush3.msra.mxu0 %v6765_v34  ;;  %v5441_v63 = vmul.f32 %v15415_v13, %v15415_v13  ;;  %11420 = vmatpush3.msra.mxu1 %v6425_v55  ;;  %v5446_v34 = vmul.f32 %v15435_v46, %v15435_v46 }
 0x361   : > { %11497 = vmatprep.subr.mxu0 %v6764_v50  ;;  %11421 = vmatprep.subr.mxu1 %v6424_v9 }
 0x362   : > { %v5466_v59 = vadd.f32 %v5465_v33, %v5435_v0  ;;  %11498 = vmatpush3.msra.mxu0 %v6764_v50  ;;  %v5442_v0 = vmul.f32 %v15419_v39, %v15419_v39  ;;  %11422 = vmatpush3.msra.mxu1 %v6424_v9  ;;  %v6418_v50 = vld [vmem:[#allocation7 + $0x130] sm:$0xff]  ;;  %v6416_v9 = vld [vmem:[#allocation7 + $0x120] sm:$0xff] }
 0x363   : > { %11499 = vmatprep.subr.mxu0 %v6763_v1  ;;  %11423 = vmatprep.subr.mxu1 %v6423_v10 }
 0x364   : > { %v5467_v32 = vadd.f32 %v5466_v59, %v5436_v19  ;;  %11500 = vmatpush3.msra.mxu0 %v6763_v1  ;;  %v5443_v19 = vmul.f32 %v15423_v60, %v15423_v60  ;;  %11424 = vmatpush3.msra.mxu1 %v6423_v10  ;;  %v6417_v1 = vld [vmem:[#allocation7 + $0x128] sm:$0xff]  ;;  %v6415_v10 = vld [vmem:[#allocation7 + $0x118] sm:$0xff] }
 0x365   : > { %11501 = vmatprep.subr.mxu0 %v6762_v17  ;;  %11425 = vmatprep.subr.mxu1 %v6422_v51 }
 0x366   : > { %v5468_v22 = vadd.f32 %v5467_v32, %v5437_v20  ;;  %11502 = vmatpush3.msra.mxu0 %v6762_v17  ;;  %v5444_v20 = vmul.f32 %v15427_v24, %v15427_v24  ;;  %11426 = vmatpush3.msra.mxu1 %v6422_v51  ;;  %v6757_v17 = vld [vmem:[#allocation7 + $0x1b8] sm:$0xff]  ;;  %v6414_v51 = vld [vmem:[#allocation7 + $0x110] sm:$0xff] }
 0x367   : > { %11503 = vmatprep.subr.mxu0 %v6761_v45  ;;  %11427 = vmatprep.subr.mxu1 %v6421_v31 }
 0x368   : > { %v5469_v14 = vadd.f32 %v5468_v22, %v5438_v3  ;;  %11504 = vmatpush3.msra.mxu0 %v6761_v45  ;;  %v5445_v3 = vmul.f32 %v15431_v42, %v15431_v42  ;;  %11428 = vmatpush3.msra.mxu1 %v6421_v31  ;;  %v5451_v45 = vmul.f32 %v15455_v21, %v15455_v21 }
 0x369   : > { %11505 = vmatprep.subr.mxu0 %v6760_v47  ;;  %11429 = vmatprep.subr.mxu1 %v6420_v25 }
 0x36a   : > { %v5470_v30 = vadd.f32 %v5469_v14, %v5439_v29  ;;  %11506 = vmatpush3.msra.mxu0 %v6760_v47  ;;  %v6419_v14 = vld [vmem:[#allocation7 + $0x138] sm:$0xff]  ;;  %11430 = vmatpush3.msra.mxu1 %v6420_v25  ;;  %v5452_v47 = vmul.f32 %v15459_v26, %v15459_v26  ;;  %v6413_v25 = vld [vmem:[#allocation7 + $0x108] sm:$0xff] }
 0x36b   : > { %11507 = vmatprep.subr.mxu0 %v6759_v41  ;;  %11431 = vmatprep.subr.mxu1 %v6419_v14 }
 0x36c   : > { %v5471_v8 = vadd.f32 %v5470_v30, %v5440_v37  ;;  %11508 = vmatpush3.msra.mxu0 %v6759_v41  ;;  %v6758_v37 = vld [vmem:[#allocation7 + $0x1c0] sm:$0xff]  ;;  %v5448_v30 = vmul.f32 %v15443_v43, %v15443_v43  ;;  %11432 = vmatpush3.msra.mxu1 %v6419_v14  ;;  %v5454_v41 = vmul.f32 %v15467_v58, %v15467_v58  ;;  %v6753_v14 = vld [vmem:[#allocation7 + $0x198] sm:$0xff] }
 0x36d   : > { %11509 = vmatprep.subr.mxu0 %v6758_v37  ;;  %11433 = vmatprep.subr.mxu1 %v6418_v50 }
 0x36e   : > { %v5472_v33 = vadd.f32 %v5471_v8, %v5441_v63  ;;  %11510 = vmatpush3.msra.mxu0 %v6758_v37  ;;  %v5449_v63 = vmul.f32 %v15447_v40, %v15447_v40  ;;  %11434 = vmatpush3.msra.mxu1 %v6418_v50 }
 0x36f   : > { %11435 = vmatprep.subr.mxu1 %v6417_v1  ;;  %11511 = vmatprep.subr.mxu0 %v6757_v17 }
 0x370   : > { %v5473_v59 = vadd.f32 %v5472_v33, %v5442_v0  ;;  %v5450_v0 = vmul.f32 %v15451_v4, %v15451_v4  ;;  %11436 = vmatpush3.msra.mxu1 %v6417_v1  ;;  %11512 = vmatpush3.msra.mxu0 %v6757_v17  ;;  %v15567_v1 = vld [vmem:[#allocation7 + $0x278] sm:$0xff] }
 0x371   : > { %11437 = vmatprep.subr.mxu1 %v6416_v9 }
 0x372   : > { %v5474_v32 = vadd.f32 %v5473_v59, %v5443_v19  ;;  %11438 = vmatpush3.msra.mxu1 %v6416_v9  ;;  %v6756_v59 = vld [vmem:[#allocation7 + $0x1b0] sm:$0xff] }
 0x373   : > { %11439 = vmatprep.subr.mxu1 %v6415_v10  ;;  %11513 = vmatprep.subr.mxu0 %v6756_v59 }
 0x374   : > { %v5475_v22 = vadd.f32 %v5474_v32, %v5444_v20  ;;  %11440 = vmatpush3.msra.mxu1 %v6415_v10  ;;  %11514 = vmatpush3.msra.mxu0 %v6756_v59  ;;  %v5453_v32 = vmul.f32 %v15463_v36, %v15463_v36  ;;  %v5203_v10 = vld [vmem:[%s17278_s9] sm:$0x1] }
 0x375   : > { %11441 = vmatprep.subr.mxu1 %v6414_v51  ;;  %v5282_v59 = vld [vmem:[%s17280_s11] sm:$0x1] }
 0x376   : > { %v5476_v29 = vadd.f32 %v5475_v22, %v5445_v3  ;;  %11442 = vmatpush3.msra.mxu1 %v6414_v51  ;;  %v6755_v3 = vld [vmem:[#allocation7 + $0x1a8] sm:$0xff]  ;;  %v6754_v22 = vld [vmem:[#allocation7 + $0x1a0] sm:$0xff] }
 0x377   : > { %11515 = vmatprep.subr.mxu0 %v6755_v3  ;;  %11443 = vmatprep.subr.mxu1 %v6413_v25 }
 0x378   : > { %v5477_v23 = vadd.f32 %v5476_v29, %v5446_v34  ;;  %11516 = vmatpush3.msra.mxu0 %v6755_v3  ;;  %11444 = vmatpush3.msra.mxu1 %v6413_v25 }
 0x379   : > { %11517 = vmatprep.subr.mxu0 %v6754_v22 }
 0x37a   : > { %v5478_v55 = vadd.f32 %v5477_v23, %v5447_v6  ;;  %11518 = vmatpush3.msra.mxu0 %v6754_v22  ;;  %v6752_v6 = vld [vmem:[#allocation7 + $0x190] sm:$0xff]  ;;  %v6412_v23 = vld [vmem:[#allocation7 + $0x100] sm:$0xff] }
 0x37b   : > { %11519 = vmatprep.subr.mxu0 %v6753_v14  ;;  %11445 = vmatprep.subr.mxu1 %v6412_v23 }
 0x37c   : > { %v5479_v8 = vadd.f32 %v5478_v55, %v5448_v30  ;;  %11520 = vmatpush3.msra.mxu0 %v6753_v14  ;;  %11446 = vmatpush3.msra.mxu1 %v6412_v23  ;;  %v6751_v30 = vld [vmem:[#allocation7 + $0x188] sm:$0xff]  ;;  %v6750_v55 = vld [vmem:[#allocation7 + $0x180] sm:$0xff] }
 0x37d   : > { %11521 = vmatprep.subr.mxu0 %v6752_v6  ;;  %11575 = vmatprep.subr.mxu1 %v15567_v1 }
 0x37e   : > { %v5480_v33 = vadd.f32 %v5479_v8, %v5449_v63  ;;  %11522 = vmatpush3.msra.mxu0 %v6752_v6 }
 0x37f   : > { %11523 = vmatprep.subr.mxu0 %v6751_v30 }
 0x380   : > { %v5481_v19 = vadd.f32 %v5480_v33, %v5450_v0  ;;  %11524 = vmatpush3.msra.mxu0 %v6751_v30 }
 0x381   : > { %11525 = vmatprep.subr.mxu0 %v6750_v55 }
 0x382   : > { %v5482_v20 = vadd.f32 %v5481_v19, %v5451_v45  ;;  %11526 = vmatpush3.msra.mxu0 %v6750_v55  ;;  %v15573_v45 = vld [vmem:[#allocation7 + $0x2f8] sm:$0xff]  ;;  %v5271_v19 = vadd.f32 %v15367_v57, %v5203_v10 }
 0x383   : > { %11655 = vmatprep.subr.mxu0 %v15573_v45 }
 0x384   : > { %v5483_v31 = vadd.f32 %v5482_v20, %v5452_v47  ;;  %v5493_v51 = vadd.f32 1.0, %v5271_v19  ;;  %v5350_v47 = vadd.f32 %v15369_v61, %v5282_v59 }
 0x386   : > { %v5484_v34 = vadd.f32 %v5483_v31, %v5453_v32  ;;  %v17746_v32 = vld [vmem:[#allocation21_spill] sm:$0xff] }
 0x387   : > { %v15582_v31 = vrot.slane %v5493_v51, %v17746_v32  ;;  %v15585_v3 = vrot.slane %v5350_v47, %v17746_v32 }
 0x388   : > { %v5485_v29 = vadd.f32 %v5484_v34, %v5454_v41 }
 0x38a   : > { %v5486_v50 = vrot.slane %v5485_v29, 4 }
 0x38c   : > { %v5487_v37 = vadd.f32 %v5486_v50, %v5485_v29 }
 0x38e   : > { %v5488_v63 = vrot.slane %v5487_v37, 2 }
 0x390   : > { %v5489_v8 = vadd.f32 %v5488_v63, %v5487_v37 }
 0x392   : > { %v5490_v9 = vrot.slane %v5489_v8, 1 }
 0x394   : > { %v5491_v17 = vadd.f32 %v5490_v9, %v5489_v8 }
 0x396   : > { %v5492_v0 = vmul.f32 0.00390625, %v5491_v17 }
 0x398   : > { %v5494_v33 = vadd.f32 1e-05, %v5492_v0 }
 0x39a   : > { %12133 = vrsqrt.f32 %v5494_v33 }
 0x3a7   : > { %v12134_v20 = vpop.eup %12133 }
 0x3a8   : > { %v5526_v22 = vmul.f32 %v12134_v20, %v15463_v36  ;;  %v5496_v25 = vmul.f32 %v12134_v20, %v15471_v28  ;;  %v5497_v57 = vmul.f32 %v12134_v20, %v15475_v27  ;;  %v5498_v41 = vmul.f32 %v12134_v20, %v15479_v48 }
 0x3a9   : > { %v5499_v34 = vmul.f32 %v12134_v20, %v15487_v15  ;;  %v5500_v29 = vmul.f32 %v12134_v20, %v15491_v56  ;;  %v5501_v61 = vmul.f32 %v12134_v20, %v15497_v38  ;;  %v5502_v14 = vmul.f32 %v12134_v20, %v15503_v11 }
 0x3aa   : > { %v5503_v6 = vmul.f32 %v12134_v20, %v15509_v49  ;;  %v5504_v23 = vmul.f32 %v12134_v20, %v15375_v2  ;;  %v5505_v36 = vmul.f32 %v12134_v20, %v15379_v12  ;;  %v5506_v28 = vmul.f32 %v12134_v20, %v15383_v5 }
 0x3ab   : > { %v5507_v27 = vmul.f32 %v12134_v20, %v15387_v16  ;;  %v5508_v48 = vmul.f32 %v12134_v20, %v15391_v44  ;;  %v5509_v15 = vmul.f32 %v12134_v20, %v15395_v62  ;;  %v5510_v56 = vmul.f32 %v12134_v20, %v15399_v18 }
 0x3ac   : > { %v5511_v38 = vmul.f32 %v12134_v20, %v15403_v7  ;;  %v5512_v11 = vmul.f32 %v12134_v20, %v15407_v54  ;;  %v5513_v49 = vmul.f32 %v12134_v20, %v15411_v52  ;;  %v5514_v2 = vmul.f32 %v12134_v20, %v15415_v13 }
 0x3ad   : > { %v5515_v12 = vmul.f32 %v12134_v20, %v15419_v39  ;;  %v5516_v5 = vmul.f32 %v12134_v20, %v15423_v60  ;;  %v5517_v16 = vmul.f32 %v12134_v20, %v15427_v24  ;;  %v5518_v44 = vmul.f32 %v12134_v20, %v15431_v42 }
 0x3ae   : > { %v5519_v62 = vmul.f32 %v12134_v20, %v15435_v46  ;;  %v5520_v18 = vmul.f32 %v12134_v20, %v15439_v53  ;;  %v5521_v7 = vmul.f32 %v12134_v20, %v15443_v43  ;;  %v5522_v54 = vmul.f32 %v12134_v20, %v15447_v40 }
 0x3af   : > { %v5523_v52 = vmul.f32 %v12134_v20, %v15451_v4  ;;  %v5524_v13 = vmul.f32 %v12134_v20, %v15455_v21  ;;  %v5525_v39 = vmul.f32 %v12134_v20, %v15459_v26  ;;  %v5527_v60 = vmul.f32 %v12134_v20, %v15467_v58 }
 0x3b0   : > { %v5532_v24 = vmul.f32 %v15582_v31, %v5496_v25  ;;  %v5533_v42 = vmul.f32 %v15582_v31, %v5497_v57  ;;  %v5534_v46 = vmul.f32 %v15582_v31, %v5498_v41  ;;  %v5535_v53 = vmul.f32 %v15582_v31, %v5499_v34 }
 0x3b1   : > { %v5536_v43 = vmul.f32 %v15582_v31, %v5500_v29  ;;  %v5537_v40 = vmul.f32 %v15582_v31, %v5501_v61  ;;  %v5538_v4 = vmul.f32 %v15582_v31, %v5502_v14  ;;  %v5539_v21 = vmul.f32 %v15582_v31, %v5503_v6 }
 0x3b2   : > { %v5540_v26 = vmul.f32 %v15582_v31, %v5504_v23  ;;  %v5541_v58 = vmul.f32 %v15582_v31, %v5505_v36  ;;  %v5542_v50 = vmul.f32 %v15582_v31, %v5506_v28  ;;  %v5543_v37 = vmul.f32 %v15582_v31, %v5507_v27 }
 0x3b3   : > { %v5544_v30 = vmul.f32 %v15582_v31, %v5508_v48  ;;  %v5545_v55 = vmul.f32 %v15582_v31, %v5509_v15  ;;  %v5546_v63 = vmul.f32 %v15582_v31, %v5510_v56  ;;  %v5547_v8 = vmul.f32 %v15582_v31, %v5511_v38 }
 0x3b4   : > { %v5548_v9 = vmul.f32 %v15582_v31, %v5512_v11  ;;  %v5549_v17 = vmul.f32 %v15582_v31, %v5513_v49  ;;  %v5550_v0 = vmul.f32 %v15582_v31, %v5514_v2  ;;  %v5551_v33 = vmul.f32 %v15582_v31, %v5515_v12 }
 0x3b5   : > { %v5552_v10 = vmul.f32 %v15582_v31, %v5516_v5  ;;  %v5553_v19 = vmul.f32 %v15582_v31, %v5517_v16  ;;  %v5554_v59 = vmul.f32 %v15582_v31, %v5518_v44  ;;  %v5555_v51 = vmul.f32 %v15582_v31, %v5519_v62 }
 0x3b6   : > { %v5556_v47 = vmul.f32 %v15582_v31, %v5520_v18  ;;  %v5557_v20 = vmul.f32 %v15582_v31, %v5521_v7  ;;  %v5558_v32 = vmul.f32 %v15582_v31, %v5522_v54  ;;  %v5559_v25 = vmul.f32 %v15582_v31, %v5523_v52 }
 0x3b7   : > { %v5560_v57 = vmul.f32 %v15582_v31, %v5524_v13  ;;  %v5561_v41 = vmul.f32 %v15582_v31, %v5525_v39  ;;  %v5562_v34 = vmul.f32 %v15582_v31, %v5526_v22  ;;  %v5563_v29 = vmul.f32 %v15582_v31, %v5527_v60 }
 0x3b8   : > { %v15652_v61 = vadd.f32 %v15585_v3, %v5532_v24  ;;  %v15655_v14 = vadd.f32 %v15585_v3, %v5533_v42  ;;  %v15658_v6 = vadd.f32 %v15585_v3, %v5534_v46  ;;  %v15661_v23 = vadd.f32 %v15585_v3, %v5535_v53 }
 0x3b9   : > { %v15664_v36 = vadd.f32 %v15585_v3, %v5536_v43  ;;  %v15667_v28 = vadd.f32 %v15585_v3, %v5537_v40  ;;  %v15670_v31 = vadd.f32 %v15585_v3, %v5538_v4  ;;  %v15673_v22 = vadd.f32 %v15585_v3, %v5539_v21 }
 0x3ba   : > { %v15676_v27 = vadd.f32 %v15585_v3, %v5540_v26  ;;  %v15679_v48 = vadd.f32 %v15585_v3, %v5541_v58  ;;  %v15682_v15 = vadd.f32 %v15585_v3, %v5542_v50  ;;  %v15685_v56 = vadd.f32 %v15585_v3, %v5543_v37 }
 0x3bb   : > { %v15688_v38 = vadd.f32 %v15585_v3, %v5544_v30  ;;  %v15691_v11 = vadd.f32 %v15585_v3, %v5545_v55  ;;  %v15694_v49 = vadd.f32 %v15585_v3, %v5546_v63  ;;  %v15697_v2 = vadd.f32 %v15585_v3, %v5547_v8 }
 0x3bc   : > { %v15700_v12 = vadd.f32 %v15585_v3, %v5548_v9  ;;  %v15703_v5 = vadd.f32 %v15585_v3, %v5549_v17  ;;  %v15706_v16 = vadd.f32 %v15585_v3, %v5550_v0  ;;  %v15709_v44 = vadd.f32 %v15585_v3, %v5551_v33 }
 0x3bd   : > { %v15712_v62 = vadd.f32 %v15585_v3, %v5552_v10  ;;  %v15715_v18 = vadd.f32 %v15585_v3, %v5553_v19  ;;  %v15718_v7 = vadd.f32 %v15585_v3, %v5554_v59  ;;  %v15721_v54 = vadd.f32 %v15585_v3, %v5555_v51 }
 0x3be   : > { %v15724_v52 = vadd.f32 %v15585_v3, %v5556_v47  ;;  %v15727_v13 = vadd.f32 %v15585_v3, %v5557_v20  ;;  %v15730_v39 = vadd.f32 %v15585_v3, %v5558_v32  ;;  %v15733_v60 = vadd.f32 %v15585_v3, %v5559_v25 }
 0x3bf   : > { %v15736_v24 = vadd.f32 %v15585_v3, %v5560_v57  ;;  %v15739_v42 = vadd.f32 %v15585_v3, %v5561_v41  ;;  %v15742_v46 = vadd.f32 %v15585_v3, %v5562_v34  ;;  %v15745_v53 = vadd.f32 %v15585_v3, %v5563_v29 }
 0x3c0   : > { %vm5604_vm6 = vcmp.ge.f32.partialorder %v15664_v36, 0.0  ;;  %vm5605_vm11 = vcmp.ge.f32.partialorder %v15667_v28, 0.0  ;;  %vm5606_vm9 = vcmp.ge.f32.partialorder %v15670_v31, 0.0  ;;  %v5632_v3 = vmul.f32 0.2, %v15652_v61 }
 0x3c1   : > { %v5633_v43 = vmul.f32 0.2, %v15655_v14  ;;  %v5634_v40 = vmul.f32 0.2, %v15658_v6  ;;  %vm5615_vm13 = vcmp.ge.f32.partialorder %v15697_v2, 0.0  ;;  %vm17747_vm15 = vcmp.ge.f32.partialorder %v15652_v61, 0.0 }
 0x3c2   : > { %v5635_v4 = vmul.f32 0.2, %v15661_v23  ;;  %v5636_v21 = vmul.f32 0.2, %v15664_v36  ;;  %v5637_v26 = vmul.f32 0.2, %v15667_v28  ;;  %v5664_v30 = vsel %vm17747_vm15, %v15652_v61, %v5632_v3 }
 0x3c3   : > { %v5638_v58 = vmul.f32 0.2, %v15670_v31  ;;  %v5639_v50 = vmul.f32 0.2, %v15673_v22  ;;  %v5640_v37 = vmul.f32 0.2, %v15676_v27  ;;  %11290 = vmatprep.mubr.f32.mxu1 %v5664_v30 }
 0x3c4   : > { %v5641_v55 = vmul.f32 0.2, %v15679_v48  ;;  %v5642_v63 = vmul.f32 0.2, %v15682_v15  ;;  %v5643_v8 = vmul.f32 0.2, %v15685_v56  ;;  %v5668_v57 = vsel %vm5604_vm6, %v15664_v36, %v5636_v21 }
 0x3c5   : > { %vm17748_vm3 = vcmp.ge.f32.partialorder %v15655_v14, 0.0  ;;  %5736 = vst [vmem:[#allocation3 + $0x20] sm:$0xff] %v5664_v30  ;;  %vm5626_vm15 = vcmp.ge.f32.partialorder %v15730_v39, 0.0  ;;  %vm5628_vm14 = vcmp.ge.f32.partialorder %v15736_v24, 0.0  ;;  %v5644_v17 = vmul.f32 0.2, %v15688_v38 }
 0x3c6   : > { %v5665_v9 = vsel %vm17748_vm3, %v15655_v14, %v5633_v43  ;;  %v5645_v0 = vmul.f32 0.2, %v15691_v11  ;;  %v5646_v33 = vmul.f32 0.2, %v15694_v49  ;;  %vm17749_vm7 = vcmp.ge.f32.partialorder %v15658_v6, 0.0  ;;  %5740 = vst [vmem:[#allocation3 + $0x40] sm:$0xff] %v5668_v57 }
 0x3c7   : > { %v5666_v10 = vsel %vm17749_vm7, %v15658_v6, %v5634_v40  ;;  %5737 = vst [vmem:[#allocation3 + $0x28] sm:$0xff] %v5665_v9  ;;  %11291 = vmatmul.mubr.f32.gmra.mxu1 %v5665_v9  ;;  %vm5630_vm3 = vcmp.ge.f32.partialorder %v15742_v46, 0.0  ;;  %vm5631_vm1 = vcmp.ge.f32.partialorder %v15745_v53, 0.0  ;;  %v5647_v19 = vmul.f32 0.2, %v15697_v2  ;;  %v17777_v9 = vld [vmem:[#allocation25_spill] sm:$0xff] }
 0x3c8   : > { %v5648_v59 = vmul.f32 0.2, %v15700_v12  ;;  %v5649_v51 = vmul.f32 0.2, %v15703_v5  ;;  %vm17750_vm12 = vcmp.ge.f32.partialorder %v15661_v23, 0.0  ;;  %5738 = vst [vmem:[#allocation3 + $0x30] sm:$0xff] %v5666_v10  ;;  %11293 = vmatprep.mubr.f32.mxu1 %v5666_v10  ;;  %v5669_v61 = vsel %vm5605_vm11, %v15667_v28, %v5637_v26 }
 0x3c9   : > { %v5667_v47 = vsel %vm17750_vm12, %v15661_v23, %v5635_v4  ;;  %v5650_v20 = vmul.f32 0.2, %v15706_v16  ;;  %v5651_v32 = vmul.f32 0.2, %v15709_v44  ;;  %v5652_v25 = vmul.f32 0.2, %v15712_v62 }
 0x3ca   : > { %5739 = vst [vmem:[#allocation3 + $0x38] sm:$0xff] %v5667_v47  ;;  %v5653_v41 = vmul.f32 0.2, %v15715_v18  ;;  %v5654_v34 = vmul.f32 0.2, %v15718_v7  ;;  %v5670_v36 = vsel %vm5606_vm9, %v15670_v31, %v5638_v58  ;;  %5741 = vst [vmem:[#allocation3 + $0x48] sm:$0xff] %v5669_v61 }
 0x3cb   : > { %v5655_v29 = vmul.f32 0.2, %v15721_v54  ;;  %v5656_v14 = vmul.f32 0.2, %v15724_v52  ;;  %v5657_v6 = vmul.f32 0.2, %v15727_v13  ;;  %11294 = vmatmul.mubr.f32.gmra.mxu1 %v5667_v47 }
 0x3cc   : > { %v5658_v23 = vmul.f32 0.2, %v15730_v39  ;;  %v5659_v3 = vmul.f32 0.2, %v15733_v60  ;;  %v5660_v43 = vmul.f32 0.2, %v15736_v24  ;;  %11296 = vmatprep.mubr.f32.mxu1 %v5668_v57 }
 0x3cd   : > { %v5661_v40 = vmul.f32 0.2, %v15739_v42  ;;  %vm17751_vm7 = vcmp.ge.f32.partialorder %v15673_v22, 0.0  ;;  %5742 = vst [vmem:[#allocation3 + $0x50] sm:$0xff] %v5670_v36  ;;  %v5662_v4 = vmul.f32 0.2, %v15742_v46 }
 0x3ce   : > { %v15833_v28 = vsel %vm17751_vm7, %v15673_v22, %v5639_v50  ;;  %v5663_v21 = vmul.f32 0.2, %v15745_v53  ;;  %vm17752_vm9 = vcmp.ge.f32.partialorder %v15676_v27, 0.0  ;;  %vm17753_vm11 = vcmp.ge.f32.partialorder %v15679_v48, 0.0  ;;  %v15846_v58 = vld [vmem:[#allocation3 + $0x1f] sm:$0xff]  ;;  %v17785_v57 = vld [vmem:[#allocation29_spill] sm:$0xff] }
 0x3cf   : > { %v5672_v31 = vsel %vm17752_vm9, %v15676_v27, %v5640_v37  ;;  %v15843_v26 = vsel %vm17753_vm11, %v15679_v48, %v5641_v55  ;;  %5743 = vst [vmem:[#allocation3 + $0x58] sm:$0xff] %v15833_v28  ;;  %vm17754_vm6 = vcmp.ge.f32.partialorder %v15682_v15, 0.0  ;;  %vm17755_vm12 = vcmp.ge.f32.partialorder %v15685_v56, 0.0  ;;  %v15872_v37 = vld [vmem:[#allocation3 + $0x27] sm:$0xff]  ;;  %11297 = vmatmul.mubr.f32.gmra.mxu1 %v5669_v61 }
 0x3d0   : > { %v15851_v22 = vsel %vm17754_vm6, %v15682_v15, %v5642_v63  ;;  %v15856_v50 = vsel %vm17755_vm12, %v15685_v56, %v5643_v8  ;;  %vm17756_vm7 = vcmp.ge.f32.partialorder %v15688_v38, 0.0  ;;  %vm17757_vm9 = vcmp.ge.f32.partialorder %v15691_v11, 0.0  ;;  %5744 = vst [vmem:[#allocation3 + $0x60] sm:$0xff] %v5672_v31  ;;  %5745 = vst [vmem:[#allocation3 + $0x68] sm:$0xff] %v15843_v26  ;;  %v17758_v15 = vld [vmem:[#allocation22_spill] sm:$0xff]  ;;  %11299 = vmatprep.mubr.f32.mxu1 %v5670_v36 }
 0x3d1   : > { %v15861_v27 = vsel %vm17756_vm7, %v15688_v38, %v5644_v17  ;;  %v15866_v48 = vsel %vm17757_vm9, %v15691_v11, %v5645_v0  ;;  %vm17759_vm11 = vnez %v17758_v15  ;;  %vm17760_vm6 = vcmp.ge.f32.partialorder %v15694_v49, 0.0  ;;  %5746 = vst [vmem:[#allocation3 + $0x70] sm:$0xff] %v15851_v22  ;;  %5747 = vst [vmem:[#allocation3 + $0x78] sm:$0xff] %v15856_v50 }
 0x3d2   : > { %11370 = vmatprep.mubr.msk.f32.mxu0 %vm17759_vm11, %v15846_v58  ;;  %v15877_v56 = vsel %vm17760_vm6, %v15694_v49, %v5646_v33  ;;  %v15882_v38 = vsel %vm5615_vm13, %v15697_v2, %v5647_v19  ;;  %vm17761_vm12 = vcmp.ge.f32.partialorder %v15700_v12, 0.0  ;;  %vm17762_vm7 = vcmp.ge.f32.partialorder %v15703_v5, 0.0  ;;  %5748 = vst [vmem:[#allocation3 + $0x80] sm:$0xff] %v15861_v27  ;;  %5749 = vst [vmem:[#allocation3 + $0x88] sm:$0xff] %v15866_v48  ;;  %v15899_v49 = vld [vmem:[#allocation3 + $0x2f] sm:$0xff] }
 0x3d3   : > { %v15887_v11 = vsel %vm17761_vm12, %v15700_v12, %v5648_v59  ;;  %v15892_v30 = vsel %vm17762_vm7, %v15703_v5, %v5649_v51  ;;  %11371 = vmatmul.mubr.f32.gmra.mxu0 %v15872_v37  ;;  %vm17763_vm13 = vcmp.ge.f32.partialorder %v15706_v16, 0.0  ;;  %vm17764_vm9 = vcmp.ge.f32.partialorder %v15709_v44, 0.0  ;;  %5750 = vst [vmem:[#allocation3 + $0x90] sm:$0xff] %v15877_v56  ;;  %5751 = vst [vmem:[#allocation3 + $0x98] sm:$0xff] %v15882_v38  ;;  %v17779_v33 = vld [vmem:[#allocation26_spill] sm:$0xff]  ;;  %v17781_v59 = vld [vmem:[#allocation27_spill] sm:$0xff] }
 0x3d4   : > { %v15904_v2 = vsel %vm17763_vm13, %v15706_v16, %v5650_v20  ;;  %v15909_v12 = vsel %vm17764_vm9, %v15709_v44, %v5651_v32  ;;  %vm17765_vm6 = vcmp.ge.f32.partialorder %v15712_v62, 0.0  ;;  %vm17766_vm12 = vcmp.ge.f32.partialorder %v15715_v18, 0.0  ;;  %5752 = vst [vmem:[#allocation3 + $0xa0] sm:$0xff] %v15887_v11  ;;  %5753 = vst [vmem:[#allocation3 + $0xa8] sm:$0xff] %v15892_v30  ;;  %v17767_v16 = vld [vmem:[#allocation23_spill] sm:$0xff]  ;;  %11300 = vmatmul.mubr.f32.gmra.mxu1 %v15833_v28  ;;  %v15998_v8 = vld [vmem:[#allocation3 + $0x4f] sm:$0xff] }
 0x3d5   : > { %v15914_v5 = vsel %vm17765_vm6, %v15712_v62, %v5652_v25  ;;  %v15919_v55 = vsel %vm17766_vm12, %v15715_v18, %v5653_v41  ;;  %vm17768_vm7 = vnez %v17767_v16  ;;  %vm17769_vm13 = vcmp.ge.f32.partialorder %v15718_v7, 0.0  ;;  %5754 = vst [vmem:[#allocation3 + $0xb0] sm:$0xff] %v15904_v2  ;;  %5755 = vst [vmem:[#allocation3 + $0xb8] sm:$0xff] %v15909_v12  ;;  %11302 = vmatprep.mubr.f32.mxu1 %v5672_v31  ;;  %v17783_v20 = vld [vmem:[#allocation28_spill] sm:$0xff]  ;;  %v17793_v28 = vld [vmem:[#allocation33_spill] sm:$0xff] }
 0x3d6   : > { %11373 = vmatprep.mubr.msk.f32.mxu0 %vm17768_vm7, %v15899_v49  ;;  %v15931_v44 = vsel %vm17769_vm13, %v15718_v7, %v5654_v34  ;;  %vm17770_vm9 = vcmp.ge.f32.partialorder %v15721_v54, 0.0  ;;  %vm17771_vm6 = vcmp.ge.f32.partialorder %v15724_v52, 0.0  ;;  %vm17772_vm12 = vcmp.ge.f32.partialorder %v15727_v13, 0.0  ;;  %5756 = vst [vmem:[#allocation3 + $0xc0] sm:$0xff] %v15914_v5  ;;  %5757 = vst [vmem:[#allocation3 + $0xc8] sm:$0xff] %v15919_v55  ;;  %v16004_v17 = vld [vmem:[#allocation3 + $0x57] sm:$0xff] }
 0x3d7   : > { %v15936_v62 = vsel %vm17770_vm9, %v15721_v54, %v5655_v29  ;;  %v15941_v18 = vsel %vm17771_vm6, %v15724_v52, %v5656_v14  ;;  %v15946_v63 = vsel %vm17772_vm12, %v15727_v13, %v5657_v6  ;;  %v15955_v7 = vsel %vm5626_vm15, %v15730_v39, %v5658_v23  ;;  %5758 = vst [vmem:[#allocation3 + $0xd0] sm:$0xff] %v15931_v44  ;;  %v15976_v39 = vld [vmem:[#allocation3 + $0x37] sm:$0xff]  ;;  %v16008_v0 = vld [vmem:[#allocation3 + $0x5f] sm:$0xff]  ;;  %v16014_v10 = vld [vmem:[#allocation3 + $0x67] sm:$0xff] }
 0x3d8   : > { %vm17773_vm13 = vcmp.ge.f32.partialorder %v15733_v60, 0.0  ;;  %v15965_v52 = vsel %vm5628_vm14, %v15736_v24, %v5660_v43  ;;  %vm17774_vm9 = vcmp.ge.f32.partialorder %v15739_v42, 0.0  ;;  %5759 = vst [vmem:[#allocation3 + $0xd8] sm:$0xff] %v15936_v62  ;;  %5760 = vst [vmem:[#allocation3 + $0xe0] sm:$0xff] %v15941_v18  ;;  %v5695_v24 = vsel %vm5631_vm1, %v15745_v53, %v5663_v21  ;;  %11374 = vmatmul.mubr.f32.gmra.mxu0 %v15976_v39  ;;  %v15995_v53 = vld [vmem:[#allocation3 + $0x47] sm:$0xff]  ;;  %v16018_v19 = vld [vmem:[#allocation3 + $0x6f] sm:$0xff] }
 0x3d9   : > { %v15960_v54 = vsel %vm17773_vm13, %v15733_v60, %v5659_v3  ;;  %v15970_v13 = vsel %vm17774_vm9, %v15739_v42, %v5661_v40  ;;  %5761 = vst [vmem:[#allocation3 + $0xe8] sm:$0xff] %v15946_v63  ;;  %v5694_v60 = vsel %vm5630_vm3, %v15742_v46, %v5662_v4  ;;  %5762 = vst [vmem:[#allocation3 + $0xf0] sm:$0xff] %v15955_v7  ;;  %v15989_v42 = vld [vmem:[#allocation3 + $0x3f] sm:$0xff]  ;;  %vm17778_vm1 = vnez %v17777_v9  ;;  %v16024_v51 = vld [vmem:[#allocation3 + $0x77] sm:$0xff] }
 0x3da   : > { %5763 = vst [vmem:[#allocation3 + $0xf8] sm:$0xff] %v15960_v54  ;;  %5764 = vst [vmem:[#allocation3 + $0x100] sm:$0xff] %v15965_v52  ;;  %v17775_v46 = vld [vmem:[#allocation24_spill] sm:$0xff]  ;;  %11303 = vmatmul.mubr.f32.gmra.mxu1 %v15843_v26  ;;  %vm17780_vm15 = vnez %v17779_v33  ;;  %vm17782_vm3 = vnez %v17781_v59  ;;  %vm17784_vm6 = vnez %v17783_v20  ;;  %v16038_v25 = vld [vmem:[#allocation3 + $0x8f] sm:$0xff]  ;;  %vm17786_vm12 = vnez %v17785_v57 }
 0x3db   : > { %5765 = vst [vmem:[#allocation3 + $0x108] sm:$0xff] %v15970_v13  ;;  %5766 = vst [vmem:[#allocation3 + $0x110] sm:$0xff] %v5694_v60  ;;  %vm17776_vm14 = vnez %v17775_v46  ;;  %11305 = vmatprep.mubr.f32.mxu1 %v15851_v22  ;;  %v16028_v47 = vld [vmem:[#allocation3 + $0x7f] sm:$0xff]  ;;  %v16034_v32 = vld [vmem:[#allocation3 + $0x87] sm:$0xff] }
 0x3dc   : > { %5767 = vst [vmem:[#allocation3 + $0x118] sm:$0xff] %v5695_v24  ;;  %11376 = vmatprep.mubr.msk.f32.mxu0 %vm17776_vm14, %v15989_v42  ;;  %v16044_v41 = vld [vmem:[#allocation3 + $0x97] sm:$0xff]  ;;  %v16048_v34 = vld [vmem:[#allocation3 + $0x9f] sm:$0xff]  ;;  %v16054_v61 = vld [vmem:[#allocation3 + $0xa7] sm:$0xff] }
 0x3dd   : > { %11377 = vmatmul.mubr.f32.gmra.mxu0 %v15995_v53  ;;  %v17787_v29 = vld [vmem:[#allocation30_spill] sm:$0xff]  ;;  %v17789_v6 = vld [vmem:[#allocation31_spill] sm:$0xff]  ;;  %v17791_v3 = vld [vmem:[#allocation32_spill] sm:$0xff] }
 0x3de   : > { %11379 = vmatprep.mubr.msk.f32.mxu0 %vm17778_vm1, %v15998_v8  ;;  %11306 = vmatmul.mubr.f32.gmra.mxu1 %v15856_v50  ;;  %vm17788_vm13 = vnez %v17787_v29  ;;  %v16058_v14 = vld [vmem:[#allocation3 + $0xaf] sm:$0xff]  ;;  %vm17790_vm9 = vnez %v17789_v6  ;;  %v16064_v23 = vld [vmem:[#allocation3 + $0xb7] sm:$0xff]  ;;  %v16068_v36 = vld [vmem:[#allocation3 + $0xbf] sm:$0xff] }
 0x3df   : > { %11308 = vmatprep.mubr.f32.mxu1 %v15861_v27  ;;  %v16074_v43 = vld [vmem:[#allocation3 + $0xc7] sm:$0xff]  ;;  %v16078_v40 = vld [vmem:[#allocation3 + $0xcf] sm:$0xff]  ;;  %v16084_v4 = vld [vmem:[#allocation3 + $0xd7] sm:$0xff] }
 0x3e0   : > { %v16088_v21 = vld [vmem:[#allocation3 + $0xdf] sm:$0xff]  ;;  %v17795_v31 = vld [vmem:[#allocation34_spill] sm:$0xff]  ;;  %v16094_v26 = vld [vmem:[#allocation3 + $0xe7] sm:$0xff] }
 0x3e1   : > { %11380 = vmatmul.mubr.f32.gmra.mxu0 %v16004_v17  ;;  %v16098_v22 = vld [vmem:[#allocation3 + $0xef] sm:$0xff]  ;;  %v16214_v33 = vld [vmem:[#allocation3 + $0xa1] sm:$0xff] }
 0x3e2   : > { %11382 = vmatprep.mubr.msk.f32.mxu0 %vm17780_vm15, %v16008_v0  ;;  %11309 = vmatmul.mubr.f32.gmra.mxu1 %v15866_v48  ;;  %v6347_v50 = vld [vmem:[#allocation3 + $0x11] sm:$0xff]  ;;  %v17812_v59 = vld [vmem:[#allocation49_spill] sm:$0xff] }
 0x3e3   : > { %11311 = vmatprep.mubr.f32.mxu1 %v15877_v56  ;;  %v16104_v48 = vld [vmem:[#allocation3 + $0xf7] sm:$0xff]  ;;  %v16107_v56 = vld [vmem:[#allocation3 + $0xff] sm:$0xff] }
 0x3e4   : > { %v16154_v24 = vld [vmem:[#allocation3 + $0x51] sm:$0xff] }
 0x3e5   : > { %11383 = vmatmul.mubr.f32.gmra.mxu0 %v16014_v10  ;;  %v17815_v20 = vld [vmem:[#allocation50_spill] sm:$0xff] }
 0x3e6   : > { %11385 = vmatprep.mubr.msk.f32.mxu0 %vm17782_vm3, %v16018_v19  ;;  %11312 = vmatmul.mubr.f32.gmra.mxu1 %v15882_v38  ;;  %v17798_v38 = vld [vmem:[#allocation36_spill] sm:$0xff]  ;;  %v16306_v27 = vld [vmem:[#allocation3 + $0x30] sm:$0xff] }
 0x3e7   : > { %11314 = vmatprep.mubr.f32.mxu1 %v15887_v11  ;;  %v6348_v11 = vld [vmem:[#allocation3 + $0x19] sm:$0xff] }
 0x3e9   : > { %11386 = vmatmul.mubr.f32.gmra.mxu0 %v16024_v51 }
 0x3ea   : > { %11388 = vmatprep.mubr.msk.f32.mxu0 %vm17784_vm6, %v16028_v47  ;;  %11315 = vmatmul.mubr.f32.gmra.mxu1 %v15892_v30  ;;  %v7070_v30 = vld [vmem:[#allocation7 + $0x270] sm:$0xff] }
 0x3eb   : > { %11317 = vmatprep.mubr.f32.mxu1 %v15904_v2  ;;  %v8314_v2 = vld [vmem:[#allocation3 + $0x49] sm:$0xff] }
 0x3ed   : > { %11389 = vmatmul.mubr.f32.gmra.mxu0 %v16034_v32 }
 0x3ee   : > { %11391 = vmatprep.mubr.msk.f32.mxu0 %vm17786_vm12, %v16038_v25  ;;  %11318 = vmatmul.mubr.f32.gmra.mxu1 %v15909_v12  ;;  %v16114_v12 = vld [vmem:[#allocation3 + $0x21] sm:$0xff] }
 0x3ef   : > { %11320 = vmatprep.mubr.f32.mxu1 %v15914_v5  ;;  %v16116_v5 = vld [vmem:[#allocation3 + $0x107] sm:$0xff] }
 0x3f1   : > { %11392 = vmatmul.mubr.f32.gmra.mxu0 %v16044_v41 }
 0x3f2   : > { %11394 = vmatprep.mubr.msk.f32.mxu0 %vm17788_vm13, %v16048_v34  ;;  %11321 = vmatmul.mubr.f32.gmra.mxu1 %v15919_v55  ;;  %vm17792_vm13 = vnez %v17791_v3  ;;  %v7069_v55 = vld [vmem:[#allocation7 + $0x268] sm:$0xff] }
 0x3f3   : > { %11323 = vmatprep.mubr.f32.mxu1 %v15931_v44  ;;  %v16124_v44 = vld [vmem:[#allocation3 + $0x29] sm:$0xff] }
 0x3f5   : > { %11395 = vmatmul.mubr.f32.gmra.mxu0 %v16054_v61 }
 0x3f6   : > { %11397 = vmatprep.mubr.msk.f32.mxu0 %vm17790_vm9, %v16058_v14  ;;  %11324 = vmatmul.mubr.f32.gmra.mxu1 %v15936_v62  ;;  %vm17794_vm9 = vnez %v17793_v28  ;;  %v7068_v62 = vld [vmem:[#allocation7 + $0x260] sm:$0xff] }
 0x3f7   : > { %11326 = vmatprep.mubr.f32.mxu1 %v15941_v18  ;;  %v16288_v28 = vld [vmem:[#allocation3 + $0x101] sm:$0xff] }
 0x3f9   : > { %11398 = vmatmul.mubr.f32.gmra.mxu0 %v16064_v23 }
 0x3fa   : > { %11400 = vmatprep.mubr.msk.f32.mxu0 %vm17792_vm13, %v16068_v36  ;;  %11327 = vmatmul.mubr.f32.gmra.mxu1 %v15946_v63  ;;  %vm17796_vm13 = vnez %v17795_v31  ;;  %v16129_v63 = vld [vmem:[#allocation3 + $0x31] sm:$0xff] }
 0x3fb   : > { %11329 = vmatprep.mubr.f32.mxu1 %v15955_v7  ;;  %v7066_v7 = vld [vmem:[#allocation7 + $0x250] sm:$0xff] }
 0x3fd   : > { %11401 = vmatmul.mubr.f32.gmra.mxu0 %v16074_v43 }
 0x3fe   : > { %11403 = vmatprep.mubr.msk.f32.mxu0 %vm17794_vm9, %v16078_v40  ;;  %11330 = vmatmul.mubr.f32.gmra.mxu1 %v15960_v54 }
 0x3ff   : > { %11332 = vmatprep.mubr.f32.mxu1 %v15965_v52  ;;  %v16141_v52 = vld [vmem:[#allocation3 + $0x41] sm:$0xff] }
 0x401   : > { %11404 = vmatmul.mubr.f32.gmra.mxu0 %v16084_v4 }
 0x402   : > { %11406 = vmatprep.mubr.msk.f32.mxu0 %vm17796_vm13, %v16088_v21  ;;  %11333 = vmatmul.mubr.f32.gmra.mxu1 %v15970_v13  ;;  %vm17799_vm13 = vnez %v17798_v38  ;;  %v7065_v13 = vld [vmem:[#allocation7 + $0x248] sm:$0xff]  ;;  %v16326_v38 = vld [vmem:[#allocation3 + $0x50] sm:$0xff] }
 0x403   : > { %11447 = vmatprep.mubr.f32.mxu1 %v6347_v50  ;;  %v17804_v50 = vld [vmem:[#allocation45_spill] sm:$0xff] }
 0x405   : > { %11407 = vmatmul.mubr.f32.gmra.mxu0 %v16094_v26 }
 0x406   : > { %11409 = vmatprep.mubr.msk.f32.mxu0 %vm17609_vm10, %v16098_v22  ;;  %11448 = vmatmul.mubr.msk.f32.vlgmr.msra.gmra.mxu1 %vm13744_vm8, %v6348_v11  ;;  %v16166_v11 = vld [vmem:[#allocation3 + $0x61] sm:$0xff] }
 0x407   : > { %11576 = vmatpush3.msra.mxu1 %v15567_v1  ;;  %11450 = vmatprep.mubr.f32.mxu1 %v16114_v12  ;;  %v7067_v1 = vld [vmem:[#allocation7 + $0x258] sm:$0xff] }
 0x408   : > { %11577 = vmatprep.subr.mxu1 %v7070_v30 }
 0x409   : > { %11410 = vmatmul.mubr.f32.gmra.mxu0 %v16104_v48  ;;  %11578 = vmatpush3.msra.mxu1 %v7070_v30  ;;  %v7063_v30 = vld [vmem:[#allocation7 + $0x238] sm:$0xff] }
 0x40a   : > { %11412 = vmatprep.mubr.msk.f32.mxu0 %vm17799_vm13, %v16107_v56  ;;  %11451 = vmatmul.mubr.msk.f32.gmra.mxu1 %vm13764_vm4, %v16124_v44 }
 0x40b   : > { %11579 = vmatprep.subr.mxu1 %v7069_v55  ;;  %11453 = vmatprep.mubr.f32.mxu1 %v16129_v63 }
 0x40c   : > { %11580 = vmatpush3.msra.mxu1 %v7069_v55  ;;  %v17806_v55 = vld [vmem:[#allocation46_spill] sm:$0xff] }
 0x40d   : > { %11413 = vmatmul.mubr.f32.gmra.mxu0 %v16116_v5  ;;  %11581 = vmatprep.subr.mxu1 %v7068_v62 }
 0x40e   : > { %11527 = vmatprep.mubr.msk.f32.mxu0 %vm17745_vm0, %v15846_v58  ;;  %v16136_v58 = vld [vmem:[#allocation3 + $0x39] sm:$0xff]  ;;  %11582 = vmatpush3.msra.mxu1 %v7068_v62  ;;  %v16178_v62 = vld [vmem:[#allocation3 + $0x71] sm:$0xff] }
 0x40f   : > { %11454 = vmatmul.mubr.msk.f32.gmra.mxu1 %vm13794_vm2, %v16136_v58  ;;  %11583 = vmatprep.subr.mxu1 %v7067_v1 }
 0x410   : > { %11456 = vmatprep.mubr.f32.mxu1 %v16141_v52  ;;  %11584 = vmatpush3.msra.mxu1 %v7067_v1  ;;  %v7062_v1 = vld [vmem:[#allocation7 + $0x230] sm:$0xff] }
 0x411   : > { %11528 = vmatmul.mubr.f32.vlgmr.msra.gmra.mxu0 %v15872_v37  ;;  %v7408_v37 = vld [vmem:[#allocation7 + $0x2f0] sm:$0xff]  ;;  %11585 = vmatprep.subr.mxu1 %v7066_v7 }
 0x412   : > { %11530 = vmatprep.mubr.msk.f32.mxu0 %vm17759_vm11, %v15899_v49  ;;  %v16148_v49 = vld [vmem:[#allocation3 + $0x49] sm:$0xff]  ;;  %11656 = vmatpush3.msra.mxu0 %v15573_v45  ;;  %v16161_v45 = vld [vmem:[#allocation3 + $0x59] sm:$0xff] }
 0x413   : > { %11457 = vmatmul.mubr.msk.f32.gmra.mxu1 %vm13821_vm5, %v16148_v49  ;;  %11657 = vmatprep.subr.mxu0 %v7408_v37 }
 0x414   : > { %11459 = vmatprep.mubr.f32.mxu1 %v16154_v24  ;;  %11586 = vmatpush3.msra.mxu1 %v7066_v7  ;;  %v17808_v7 = vld [vmem:[#allocation47_spill] sm:$0xff] }
 0x415   : > { %11531 = vmatmul.mubr.f32.gmra.mxu0 %v15976_v39  ;;  %v7407_v39 = vld [vmem:[#allocation7 + $0x2e8] sm:$0xff]  ;;  %11587 = vmatprep.subr.mxu1 %v7065_v13 }
 0x416   : > { %11533 = vmatprep.mubr.msk.f32.mxu0 %vm17768_vm7, %v15989_v42  ;;  %11658 = vmatpush3.msra.mxu0 %v7408_v37  ;;  %v7064_v42 = vld [vmem:[#allocation7 + $0x240] sm:$0xff]  ;;  %vm17805_vm7 = vnez %v17804_v50  ;;  %v8322_v50 = vld [vmem:[#allocation3 + $0x89] sm:$0xff] }
 0x417   : > { %11460 = vmatmul.mubr.msk.f32.gmra.mxu1 %vm17805_vm7, %v16161_v45  ;;  %11659 = vmatprep.subr.mxu0 %v7407_v39  ;;  %v16190_v37 = vld [vmem:[#allocation3 + $0x81] sm:$0xff] }
 0x418   : > { %11462 = vmatprep.mubr.f32.mxu1 %v16166_v11  ;;  %11588 = vmatpush3.msra.mxu1 %v7065_v13  ;;  %v7061_v13 = vld [vmem:[#allocation7 + $0x228] sm:$0xff] }
 0x419   : > { %11534 = vmatmul.mubr.f32.gmra.mxu0 %v15995_v53  ;;  %v7406_v53 = vld [vmem:[#allocation7 + $0x2e0] sm:$0xff]  ;;  %11589 = vmatprep.subr.mxu1 %v7064_v42 }
 0x41a   : > { %11536 = vmatprep.mubr.msk.f32.mxu0 %vm17776_vm14, %v15998_v8  ;;  %v16173_v8 = vld [vmem:[#allocation3 + $0x69] sm:$0xff]  ;;  %11660 = vmatpush3.msra.mxu0 %v7407_v39  ;;  %vm17807_vm14 = vnez %v17806_v55  ;;  %v17810_v39 = vld [vmem:[#allocation48_spill] sm:$0xff] }
 0x41b   : > { %11463 = vmatmul.mubr.msk.f32.gmra.mxu1 %vm17807_vm14, %v16173_v8  ;;  %11661 = vmatprep.subr.mxu0 %v7406_v53  ;;  %v8324_v55 = vld [vmem:[#allocation3 + $0x99] sm:$0xff] }
 0x41c   : > { %11465 = vmatprep.mubr.f32.mxu1 %v16178_v62  ;;  %11590 = vmatpush3.msra.mxu1 %v7064_v42  ;;  %v16202_v42 = vld [vmem:[#allocation3 + $0x91] sm:$0xff] }
 0x41d   : > { %11537 = vmatmul.mubr.f32.gmra.mxu0 %v16004_v17  ;;  %v7405_v17 = vld [vmem:[#allocation7 + $0x2d8] sm:$0xff]  ;;  %11591 = vmatprep.subr.mxu1 %v7063_v30 }
 0x41e   : > { %11539 = vmatprep.mubr.msk.f32.mxu0 %vm17778_vm1, %v16008_v0  ;;  %v16185_v0 = vld [vmem:[#allocation3 + $0x79] sm:$0xff]  ;;  %11662 = vmatpush3.msra.mxu0 %v7406_v53  ;;  %vm17809_vm1 = vnez %v17808_v7  ;;  %v8326_v7 = vld [vmem:[#allocation3 + $0xa9] sm:$0xff] }
 0x41f   : > { %11466 = vmatmul.mubr.msk.f32.gmra.mxu1 %vm17809_vm1, %v16185_v0  ;;  %11663 = vmatprep.subr.mxu0 %v7405_v17  ;;  %v7060_v53 = vld [vmem:[#allocation7 + $0x220] sm:$0xff] }
 0x420   : > { %11468 = vmatprep.mubr.f32.mxu1 %v16190_v37  ;;  %11592 = vmatpush3.msra.mxu1 %v7063_v30  ;;  %v11289_v30 = vpop.f32.mrf.mxu1 }
 0x421   : > { %11540 = vmatmul.mubr.f32.gmra.mxu0 %v16014_v10  ;;  %v7404_v10 = vld [vmem:[#allocation7 + $0x2d0] sm:$0xff]  ;;  %11593 = vmatprep.subr.mxu1 %v7062_v1 }
 0x422   : > { %11542 = vmatprep.mubr.msk.f32.mxu0 %vm17780_vm15, %v16018_v19  ;;  %v16197_v19 = vld [vmem:[#allocation3 + $0x89] sm:$0xff]  ;;  %11664 = vmatpush3.msra.mxu0 %v7405_v17  ;;  %vm17811_vm15 = vnez %v17810_v39  ;;  %v11369_v17 = vpop.f32.mrf.mxu0  ;;  %v8328_v39 = vld [vmem:[#allocation3 + $0xb9] sm:$0xff] }
 0x423   : > { %11469 = vmatmul.mubr.msk.f32.gmra.mxu1 %vm17811_vm15, %v16197_v19  ;;  %11665 = vmatprep.subr.mxu0 %v7404_v10 }
 0x424   : > { %11471 = vmatprep.mubr.f32.mxu1 %v16202_v42  ;;  %11594 = vmatpush3.msra.mxu1 %v7062_v1  ;;  %v16216_v1 = vadd.f32 %v11369_v17, %v11289_v30  ;;  %v16228_v30 = vld [vmem:[#allocation3 + $0xb1] sm:$0xff]  ;;  %v16240_v17 = vld [vmem:[#allocation3 + $0xc1] sm:$0xff] }
 0x425   : > { %11543 = vmatmul.mubr.f32.gmra.mxu0 %v16024_v51  ;;  %v7403_v51 = vld [vmem:[#allocation7 + $0x2c8] sm:$0xff]  ;;  %11595 = vmatprep.subr.mxu1 %v7061_v13 }
 0x426   : > { %11545 = vmatprep.mubr.msk.f32.mxu0 %vm17782_vm3, %v16028_v47  ;;  %v16209_v47 = vld [vmem:[#allocation3 + $0x99] sm:$0xff]  ;;  %11666 = vmatpush3.msra.mxu0 %v7404_v10  ;;  %vm17813_vm3 = vnez %v17812_v59  ;;  %17814 = vst [vmem:[#allocation86_spill] sm:$0xff] %v16216_v1  ;;  %v7399_v1 = vld [vmem:[#allocation7 + $0x2a8] sm:$0xff] }
 0x427   : > { %11472 = vmatmul.mubr.msk.f32.gmra.mxu1 %vm17813_vm3, %v16209_v47  ;;  %11667 = vmatprep.subr.mxu0 %v7403_v51  ;;  %v7059_v10 = vld [vmem:[#allocation7 + $0x218] sm:$0xff]  ;;  %v8330_v59 = vld [vmem:[#allocation3 + $0xc9] sm:$0xff] }
 0x428   : > { %11474 = vmatprep.mubr.f32.mxu1 %v16214_v33  ;;  %11596 = vmatpush3.msra.mxu1 %v7061_v13  ;;  %v7058_v13 = vld [vmem:[#allocation7 + $0x210] sm:$0xff] }
 0x429   : > { %11546 = vmatmul.mubr.f32.gmra.mxu0 %v16034_v32  ;;  %v7402_v32 = vld [vmem:[#allocation7 + $0x2c0] sm:$0xff]  ;;  %11597 = vmatprep.subr.mxu1 %v7060_v53 }
 0x42a   : > { %11548 = vmatprep.mubr.msk.f32.mxu0 %vm17784_vm6, %v16038_v25  ;;  %v16223_v25 = vld [vmem:[#allocation3 + $0xa9] sm:$0xff]  ;;  %11668 = vmatpush3.msra.mxu0 %v7403_v51  ;;  %vm17816_vm6 = vnez %v17815_v20  ;;  %v17818_v51 = vld [vmem:[#allocation51_spill] sm:$0xff] }
 0x42b   : > { %11475 = vmatmul.mubr.msk.f32.gmra.mxu1 %vm17816_vm6, %v16223_v25  ;;  %11669 = vmatprep.subr.mxu0 %v7402_v32  ;;  %vm17819_vm11 = vnez %v17818_v51  ;;  %v8332_v20 = vld [vmem:[#allocation3 + $0xd9] sm:$0xff] }
 0x42c   : > { %11477 = vmatprep.mubr.f32.mxu1 %v16228_v30  ;;  %11598 = vmatpush3.msra.mxu1 %v7060_v53  ;;  %v17821_v53 = vld [vmem:[#allocation52_spill] sm:$0xff] }
 0x42d   : > { %11549 = vmatmul.mubr.f32.gmra.mxu0 %v16044_v41  ;;  %v7401_v41 = vld [vmem:[#allocation7 + $0x2b8] sm:$0xff]  ;;  %11599 = vmatprep.subr.mxu1 %v7059_v10  ;;  %vm17822_vm0 = vnez %v17821_v53 }
 0x42e   : > { %11551 = vmatprep.mubr.msk.f32.mxu0 %vm17786_vm12, %v16048_v34  ;;  %vm17817_vm12 = vnez %v17787_v29  ;;  %v16235_v34 = vld [vmem:[#allocation3 + $0xb9] sm:$0xff]  ;;  %11670 = vmatpush3.msra.mxu0 %v7402_v32  ;;  %v16252_v32 = vld [vmem:[#allocation3 + $0xd1] sm:$0xff] }
 0x42f   : > { %11478 = vmatmul.mubr.msk.f32.gmra.mxu1 %vm17819_vm11, %v16235_v34  ;;  %11671 = vmatprep.subr.mxu0 %v7401_v41 }
 0x430   : > { %11480 = vmatprep.mubr.f32.mxu1 %v16240_v17  ;;  %11600 = vmatpush3.msra.mxu1 %v7059_v10  ;;  %v7057_v10 = vld [vmem:[#allocation7 + $0x208] sm:$0xff] }
 0x431   : > { %11552 = vmatmul.mubr.f32.gmra.mxu0 %v16054_v61  ;;  %v7400_v61 = vld [vmem:[#allocation7 + $0x2b0] sm:$0xff]  ;;  %11601 = vmatprep.subr.mxu1 %v7058_v13 }
 0x432   : > { %11554 = vmatprep.mubr.msk.f32.mxu0 %vm17817_vm12, %v16058_v14  ;;  %vm17820_vm12 = vnez %v17789_v6  ;;  %v16247_v14 = vld [vmem:[#allocation3 + $0xc9] sm:$0xff]  ;;  %11672 = vmatpush3.msra.mxu0 %v7401_v41  ;;  %v16264_v6 = vld [vmem:[#allocation3 + $0xe1] sm:$0xff] }
 0x433   : > { %11481 = vmatmul.mubr.msk.f32.gmra.mxu1 %vm17822_vm0, %v16247_v14  ;;  %11673 = vmatprep.subr.mxu0 %v7400_v61  ;;  %v17824_v41 = vld [vmem:[#allocation53_spill] sm:$0xff] }
 0x434   : > { %11483 = vmatprep.mubr.f32.mxu1 %v16252_v32  ;;  %11674 = vmatpush3.msra.mxu0 %v7400_v61  ;;  %vm17825_vm0 = vnez %v17824_v41  ;;  %v17826_v61 = vld [vmem:[#allocation54_spill] sm:$0xff] }
 0x435   : > { %11555 = vmatmul.mubr.f32.gmra.mxu0 %v16064_v23  ;;  %11602 = vmatpush3.msra.mxu1 %v7058_v13  ;;  %v7398_v23 = vld [vmem:[#allocation7 + $0x2a0] sm:$0xff] }
 0x436   : > { %11557 = vmatprep.mubr.msk.f32.mxu0 %vm17820_vm12, %v16068_v36  ;;  %vm17823_vm12 = vnez %v17791_v3  ;;  %v16259_v36 = vld [vmem:[#allocation3 + $0xd9] sm:$0xff]  ;;  %11675 = vmatprep.subr.mxu0 %v7399_v1  ;;  %v7395_v3 = vld [vmem:[#allocation7 + $0x288] sm:$0xff] }
 0x437   : > { %11484 = vmatmul.mubr.msk.f32.gmra.mxu1 %vm17825_vm0, %v16259_v36  ;;  %11676 = vmatpush3.msra.mxu0 %v7399_v1  ;;  %v7056_v13 = vld [vmem:[#allocation7 + $0x200] sm:$0xff]  ;;  %v16276_v1 = vld [vmem:[#allocation3 + $0xf1] sm:$0xff] }
 0x438   : > { %11486 = vmatprep.mubr.f32.mxu1 %v16264_v6  ;;  %11677 = vmatprep.subr.mxu0 %v7398_v23 }
 0x439   : > { %11558 = vmatmul.mubr.f32.gmra.mxu0 %v16074_v43  ;;  %v7397_v43 = vld [vmem:[#allocation7 + $0x298] sm:$0xff]  ;;  %11603 = vmatprep.subr.mxu1 %v7057_v10 }
 0x43a   : > { %11560 = vmatprep.mubr.msk.f32.mxu0 %vm17823_vm12, %v16078_v40  ;;  %v16271_v40 = vld [vmem:[#allocation3 + $0xe9] sm:$0xff]  ;;  %11678 = vmatpush3.msra.mxu0 %v7398_v23  ;;  %vm17827_vm12 = vnez %v17826_v61  ;;  %v17829_v23 = vld [vmem:[#allocation55_spill] sm:$0xff] }
 0x43b   : > { %11487 = vmatmul.mubr.msk.f32.gmra.mxu1 %vm17827_vm12, %v16271_v40  ;;  %11679 = vmatprep.subr.mxu0 %v7397_v43  ;;  %vm17830_vm12 = vnez %v17829_v23 }
 0x43c   : > { %11489 = vmatprep.mubr.f32.mxu1 %v16276_v1  ;;  %11604 = vmatpush3.msra.mxu1 %v7057_v10  ;;  %v7747_v10 = vld [vmem:[#allocation7 + $0x378] sm:$0xff] }
 0x43d   : > { %11561 = vmatmul.mubr.f32.gmra.mxu0 %v16084_v4  ;;  %v7396_v4 = vld [vmem:[#allocation7 + $0x290] sm:$0xff]  ;;  %11605 = vmatprep.subr.mxu1 %v7056_v13 }
 0x43e   : > { %11563 = vmatprep.mubr.msk.f32.mxu0 %vm17794_vm9, %v16088_v21  ;;  %vm17828_vm9 = vnez %v17795_v31  ;;  %v16283_v21 = vld [vmem:[#allocation3 + $0xf9] sm:$0xff]  ;;  %11680 = vmatpush3.msra.mxu0 %v7397_v43 }
 0x43f   : > { %11490 = vmatmul.mubr.msk.f32.gmra.mxu1 %vm17830_vm12, %v16283_v21  ;;  %11681 = vmatprep.subr.mxu0 %v7396_v4  ;;  %v17831_v43 = vld [vmem:[#allocation56_spill] sm:$0xff] }
 0x440   : > { %11492 = vmatprep.mubr.f32.mxu1 %v16288_v28  ;;  %11682 = vmatpush3.msra.mxu0 %v7396_v4  ;;  %v7023_v31 = vld [vmem:[#allocation3 + $0x20] sm:$0xff]  ;;  %v8053_v4 = vld [vmem:[#allocation7 + $0x3f8] sm:$0xff] }
 0x441   : > { %11564 = vmatmul.mubr.f32.gmra.mxu0 %v16094_v26  ;;  %11606 = vmatpush3.msra.mxu1 %v7056_v13  ;;  %v7394_v26 = vld [vmem:[#allocation7 + $0x280] sm:$0xff]  ;;  %v7746_v13 = vld [vmem:[#allocation7 + $0x370] sm:$0xff] }
 0x442   : > { %11566 = vmatprep.mubr.msk.f32.mxu0 %vm17828_vm9, %v16098_v22  ;;  %v16295_v22 = vld [vmem:[#allocation3 + $0x109] sm:$0xff]  ;;  %11683 = vmatprep.subr.mxu0 %v7395_v3  ;;  %vm17832_vm9 = vnez %v17831_v43 }
 0x443   : > { %11493 = vmatmul.mubr.msk.f32.gmra.mxu1 %vm17832_vm9, %v16295_v22  ;;  %11684 = vmatpush3.msra.mxu0 %v7395_v3  ;;  %v16308_v3 = vld [vmem:[#allocation3 + $0x117] sm:$0xff] }
 0x444   : > { %11607 = vmatprep.mubr.f32.mxu1 %v7023_v31  ;;  %11685 = vmatprep.subr.mxu0 %v7394_v26  ;;  %v7745_v31 = vld [vmem:[#allocation7 + $0x368] sm:$0xff] }
 0x445   : > { %11567 = vmatmul.mubr.f32.gmra.mxu0 %v16104_v48  ;;  %v16301_v48 = vld [vmem:[#allocation3 + $0x10f] sm:$0xff]  ;;  %11735 = vmatprep.subr.mxu1 %v7747_v10 }
 0x446   : > { %11569 = vmatprep.mubr.msk.f32.mxu0 %vm17609_vm10, %v16107_v56  ;;  %11686 = vmatpush3.msra.mxu0 %v7394_v26  ;;  %v7024_v56 = vld [vmem:[#allocation3 + $0x28] sm:$0xff]  ;;  %v7744_v26 = vld [vmem:[#allocation7 + $0x360] sm:$0xff] }
 0x447   : > { %11608 = vmatmul.mubr.f32.vlgmr.msra.gmra.mxu1 %v7024_v56  ;;  %11815 = vmatprep.subr.mxu0 %v8053_v4  ;;  %v16316_v56 = vld [vmem:[#allocation3 + $0x40] sm:$0xff] }
 0x448   : > { %11736 = vmatpush3.msra.mxu1 %v7747_v10  ;;  %11610 = vmatprep.mubr.f32.mxu1 %v16306_v27  ;;  %v7743_v10 = vld [vmem:[#allocation7 + $0x358] sm:$0xff] }
 0x449   : > { %11570 = vmatmul.mubr.f32.gmra.mxu0 %v16116_v5  ;;  %11737 = vmatprep.subr.mxu1 %v7746_v13  ;;  %v16313_v5 = vld [vmem:[#allocation3 + $0x38] sm:$0xff] }
 0x44a   : > { %11572 = vmatprep.mubr.msk.f32.mxu0 %vm17799_vm13, %v16301_v48  ;;  %11738 = vmatpush3.msra.mxu1 %v7746_v13  ;;  %v7742_v13 = vld [vmem:[#allocation7 + $0x350] sm:$0xff] }
 0x44b   : > { %11611 = vmatmul.mubr.f32.gmra.mxu1 %v16313_v5  ;;  %11739 = vmatprep.subr.mxu1 %v7745_v31 }
 0x44c   : > { %11613 = vmatprep.mubr.f32.mxu1 %v16316_v56  ;;  %11740 = vmatpush3.msra.mxu1 %v7745_v31  ;;  %v8052_v31 = vld [vmem:[#allocation7 + $0x3f0] sm:$0xff] }
 0x44d   : > { %11573 = vmatmul.mubr.f32.gmra.mxu0 %v16308_v3  ;;  %11741 = vmatprep.subr.mxu1 %v7744_v26 }
 0x44e   : > { %11687 = vmatprep.mubr.f32.mxu0 %v16114_v12  ;;  %v16323_v12 = vld [vmem:[#allocation3 + $0x48] sm:$0xff]  ;;  %11742 = vmatpush3.msra.mxu1 %v7744_v26  ;;  %v16336_v26 = vld [vmem:[#allocation3 + $0x60] sm:$0xff] }
 0x44f   : > { %11614 = vmatmul.mubr.f32.gmra.mxu1 %v16323_v12  ;;  %11743 = vmatprep.subr.mxu1 %v7743_v10 }
 0x450   : > { %11616 = vmatprep.mubr.f32.mxu1 %v16326_v38  ;;  %11744 = vmatpush3.msra.mxu1 %v7743_v10  ;;  %v8051_v10 = vld [vmem:[#allocation7 + $0x3e8] sm:$0xff] }
 0x451   : > { %11688 = vmatmul.mubr.msk.f32.vlgmr.msra.gmra.mxu0 %vm13744_vm8, %v16124_v44  ;;  %11745 = vmatprep.subr.mxu1 %v7742_v13  ;;  %v16333_v44 = vld [vmem:[#allocation3 + $0x58] sm:$0xff] }
 0x452   : > { %11690 = vmatprep.mubr.f32.mxu0 %v16129_v63  ;;  %11816 = vmatpush3.msra.mxu0 %v8053_v4  ;;  %v7741_v63 = vld [vmem:[#allocation7 + $0x348] sm:$0xff]  ;;  %v16346_v4 = vld [vmem:[#allocation3 + $0x70] sm:$0xff] }
 0x453   : > { %11617 = vmatmul.mubr.f32.gmra.mxu1 %v16333_v44  ;;  %11817 = vmatprep.subr.mxu0 %v8052_v31 }
 0x454   : > { %11619 = vmatprep.mubr.f32.mxu1 %v16336_v26  ;;  %11746 = vmatpush3.msra.mxu1 %v7742_v13  ;;  %v8050_v13 = vld [vmem:[#allocation7 + $0x3e0] sm:$0xff] }
 0x455   : > { %11691 = vmatmul.mubr.msk.f32.gmra.mxu0 %vm13764_vm4, %v16136_v58  ;;  %11747 = vmatprep.subr.mxu1 %v7741_v63  ;;  %v16343_v58 = vld [vmem:[#allocation3 + $0x68] sm:$0xff] }
 0x456   : > { %11693 = vmatprep.mubr.f32.mxu0 %v16141_v52  ;;  %11818 = vmatpush3.msra.mxu0 %v8052_v31  ;;  %v7740_v52 = vld [vmem:[#allocation7 + $0x340] sm:$0xff] }
 0x457   : > { %11620 = vmatmul.mubr.f32.gmra.mxu1 %v16343_v58  ;;  %11819 = vmatprep.subr.mxu0 %v8051_v10  ;;  %v16356_v31 = vld [vmem:[#allocation3 + $0x80] sm:$0xff] }
 0x458   : > { %11622 = vmatprep.mubr.f32.mxu1 %v16346_v4  ;;  %11748 = vmatpush3.msra.mxu1 %v7741_v63  ;;  %v8049_v63 = vld [vmem:[#allocation7 + $0x3d8] sm:$0xff] }
 0x459   : > { %11694 = vmatmul.mubr.msk.f32.gmra.mxu0 %vm13794_vm2, %v16148_v49  ;;  %11749 = vmatprep.subr.mxu1 %v7740_v52  ;;  %v16353_v49 = vld [vmem:[#allocation3 + $0x78] sm:$0xff] }
 0x45a   : > { %11696 = vmatprep.mubr.f32.mxu0 %v16154_v24  ;;  %11820 = vmatpush3.msra.mxu0 %v8051_v10  ;;  %v7739_v24 = vld [vmem:[#allocation7 + $0x338] sm:$0xff]  ;;  %v16366_v10 = vld [vmem:[#allocation3 + $0x90] sm:$0xff] }
 0x45b   : > { %11623 = vmatmul.mubr.f32.gmra.mxu1 %v16353_v49  ;;  %11821 = vmatprep.subr.mxu0 %v8050_v13 }
 0x45c   : > { %11625 = vmatprep.mubr.f32.mxu1 %v16356_v31  ;;  %11750 = vmatpush3.msra.mxu1 %v7740_v52  ;;  %v8048_v52 = vld [vmem:[#allocation7 + $0x3d0] sm:$0xff] }
 0x45d   : > { %11697 = vmatmul.mubr.msk.f32.gmra.mxu0 %vm13821_vm5, %v16161_v45  ;;  %11751 = vmatprep.subr.mxu1 %v7739_v24  ;;  %v16363_v45 = vld [vmem:[#allocation3 + $0x88] sm:$0xff] }
 0x45e   : > { %11699 = vmatprep.mubr.f32.mxu0 %v16166_v11  ;;  %11822 = vmatpush3.msra.mxu0 %v8050_v13  ;;  %v7738_v11 = vld [vmem:[#allocation7 + $0x330] sm:$0xff]  ;;  %v16376_v13 = vld [vmem:[#allocation3 + $0xa0] sm:$0xff] }
 0x45f   : > { %11626 = vmatmul.mubr.f32.gmra.mxu1 %v16363_v45  ;;  %11823 = vmatprep.subr.mxu0 %v8049_v63 }
 0x460   : > { %11628 = vmatprep.mubr.f32.mxu1 %v16366_v10  ;;  %11752 = vmatpush3.msra.mxu1 %v7739_v24  ;;  %v8047_v24 = vld [vmem:[#allocation7 + $0x3c8] sm:$0xff] }
 0x461   : > { %11700 = vmatmul.mubr.msk.f32.gmra.mxu0 %vm17805_vm7, %v16173_v8  ;;  %11753 = vmatprep.subr.mxu1 %v7738_v11  ;;  %v16373_v8 = vld [vmem:[#allocation3 + $0x98] sm:$0xff] }
 0x462   : > { %11702 = vmatprep.mubr.f32.mxu0 %v16178_v62  ;;  %11824 = vmatpush3.msra.mxu0 %v8049_v63  ;;  %v7737_v62 = vld [vmem:[#allocation7 + $0x328] sm:$0xff]  ;;  %v16386_v63 = vld [vmem:[#allocation3 + $0xb0] sm:$0xff] }
 0x463   : > { %11629 = vmatmul.mubr.f32.gmra.mxu1 %v16373_v8  ;;  %11825 = vmatprep.subr.mxu0 %v8048_v52 }
 0x464   : > { %11631 = vmatprep.mubr.f32.mxu1 %v16376_v13  ;;  %11754 = vmatpush3.msra.mxu1 %v7738_v11  ;;  %v8046_v11 = vld [vmem:[#allocation7 + $0x3c0] sm:$0xff] }
 0x465   : > { %11703 = vmatmul.mubr.msk.f32.gmra.mxu0 %vm17807_vm14, %v16185_v0  ;;  %11755 = vmatprep.subr.mxu1 %v7737_v62  ;;  %v16383_v0 = vld [vmem:[#allocation3 + $0xa8] sm:$0xff] }
 0x466   : > { %11705 = vmatprep.mubr.f32.mxu0 %v16190_v37  ;;  %11826 = vmatpush3.msra.mxu0 %v8048_v52  ;;  %v7736_v37 = vld [vmem:[#allocation7 + $0x320] sm:$0xff] }
 0x467   : > { %11632 = vmatmul.mubr.f32.gmra.mxu1 %v16383_v0  ;;  %11827 = vmatprep.subr.mxu0 %v8047_v24  ;;  %v16396_v52 = vld [vmem:[#allocation3 + $0xc0] sm:$0xff] }
 0x468   : > { %11634 = vmatprep.mubr.f32.mxu1 %v16386_v63  ;;  %11756 = vmatpush3.msra.mxu1 %v7737_v62  ;;  %v8045_v62 = vld [vmem:[#allocation7 + $0x3b8] sm:$0xff] }
 0x469   : > { %11706 = vmatmul.mubr.msk.f32.gmra.mxu0 %vm17809_vm1, %v16197_v19  ;;  %11757 = vmatprep.subr.mxu1 %v7736_v37  ;;  %v16393_v19 = vld [vmem:[#allocation3 + $0xb8] sm:$0xff] }
 0x46a   : > { %11708 = vmatprep.mubr.f32.mxu0 %v16202_v42  ;;  %11828 = vmatpush3.msra.mxu0 %v8047_v24  ;;  %v7735_v42 = vld [vmem:[#allocation7 + $0x318] sm:$0xff]  ;;  %v16406_v24 = vld [vmem:[#allocation3 + $0xd0] sm:$0xff] }
 0x46b   : > { %11635 = vmatmul.mubr.f32.gmra.mxu1 %v16393_v19  ;;  %11829 = vmatprep.subr.mxu0 %v8046_v11 }
 0x46c   : > { %11637 = vmatprep.mubr.f32.mxu1 %v16396_v52  ;;  %11758 = vmatpush3.msra.mxu1 %v7736_v37  ;;  %v8044_v37 = vld [vmem:[#allocation7 + $0x3b0] sm:$0xff] }
 0x46d   : > { %11709 = vmatmul.mubr.msk.f32.gmra.mxu0 %vm17811_vm15, %v16209_v47  ;;  %11759 = vmatprep.subr.mxu1 %v7735_v42  ;;  %v7734_v47 = vld [vmem:[#allocation7 + $0x310] sm:$0xff] }
 0x46e   : > { %11711 = vmatprep.mubr.f32.mxu0 %v16214_v33  ;;  %v16403_v33 = vld [vmem:[#allocation3 + $0xc8] sm:$0xff]  ;;  %11830 = vmatpush3.msra.mxu0 %v8046_v11 }
 0x46f   : > { %11638 = vmatmul.mubr.f32.gmra.mxu1 %v16403_v33  ;;  %11831 = vmatprep.subr.mxu0 %v8045_v62  ;;  %v8043_v11 = vld [vmem:[#allocation7 + $0x3a8] sm:$0xff] }
 0x470   : > { %11640 = vmatprep.mubr.f32.mxu1 %v16406_v24  ;;  %11760 = vmatpush3.msra.mxu1 %v7735_v42  ;;  %v7733_v42 = vld [vmem:[#allocation7 + $0x308] sm:$0xff] }
 0x471   : > { %11712 = vmatmul.mubr.msk.f32.gmra.mxu0 %vm17813_vm3, %v16223_v25  ;;  %11761 = vmatprep.subr.mxu1 %v7734_v47  ;;  %v16413_v25 = vld [vmem:[#allocation3 + $0xd8] sm:$0xff] }
 0x472   : > { %11714 = vmatprep.mubr.f32.mxu0 %v16228_v30  ;;  %11832 = vmatpush3.msra.mxu0 %v8045_v62  ;;  %v16416_v30 = vld [vmem:[#allocation3 + $0xe0] sm:$0xff]  ;;  %v16426_v62 = vld [vmem:[#allocation3 + $0xf0] sm:$0xff] }
 0x473   : > { %11641 = vmatmul.mubr.f32.gmra.mxu1 %v16413_v25  ;;  %11833 = vmatprep.subr.mxu0 %v8044_v37 }
 0x474   : > { %11643 = vmatprep.mubr.f32.mxu1 %v16416_v30  ;;  %11834 = vmatpush3.msra.mxu0 %v8044_v37  ;;  %v8041_v37 = vld [vmem:[#allocation7 + $0x398] sm:$0xff] }
 0x475   : > { %11715 = vmatmul.mubr.msk.f32.gmra.mxu0 %vm17816_vm6, %v16235_v34  ;;  %11762 = vmatpush3.msra.mxu1 %v7734_v47  ;;  %v8042_v34 = vld [vmem:[#allocation7 + $0x3a0] sm:$0xff] }
 0x476   : > { %11717 = vmatprep.mubr.f32.mxu0 %v16240_v17  ;;  %v16423_v17 = vld [vmem:[#allocation3 + $0xe8] sm:$0xff]  ;;  %11835 = vmatprep.subr.mxu0 %v8043_v11  ;;  %v16436_v47 = vld [vmem:[#allocation3 + $0x100] sm:$0xff] }
 0x477   : > { %11644 = vmatmul.mubr.f32.gmra.mxu1 %v16423_v17  ;;  %11836 = vmatpush3.msra.mxu0 %v8043_v11  ;;  %v8040_v11 = vld [vmem:[#allocation7 + $0x390] sm:$0xff] }
 0x478   : > { %11646 = vmatprep.mubr.f32.mxu1 %v16426_v62  ;;  %11837 = vmatprep.subr.mxu0 %v8042_v34 }
 0x479   : > { %11718 = vmatmul.mubr.msk.f32.gmra.mxu0 %vm17819_vm11, %v16247_v14  ;;  %vm17833_vm11 = vnez %v17821_v53  ;;  %11763 = vmatprep.subr.mxu1 %v7733_v42  ;;  %v16433_v14 = vld [vmem:[#allocation3 + $0xf8] sm:$0xff] }
 0x47a   : > { %11720 = vmatprep.mubr.f32.mxu0 %v16252_v32  ;;  %11838 = vmatpush3.msra.mxu0 %v8042_v34  ;;  %v7732_v32 = vld [vmem:[#allocation7 + $0x300] sm:$0xff]  ;;  %v8039_v34 = vld [vmem:[#allocation7 + $0x388] sm:$0xff] }
 0x47b   : > { %11647 = vmatmul.mubr.f32.gmra.mxu1 %v16433_v14  ;;  %11839 = vmatprep.subr.mxu0 %v8041_v37 }
 0x47c   : > { %11649 = vmatprep.mubr.f32.mxu1 %v16436_v47  ;;  %11764 = vmatpush3.msra.mxu1 %v7733_v42  ;;  %v8391_v42 = vld [vmem:[#allocation7 + $0x478] sm:$0xff] }
 0x47d   : > { %11721 = vmatmul.mubr.msk.f32.gmra.mxu0 %vm17833_vm11, %v16259_v36  ;;  %11765 = vmatprep.subr.mxu1 %v7732_v32  ;;  %v16446_v36 = vld [vmem:[#allocation3 + $0x110] sm:$0xff]  ;;  %vm17834_vm11 = vnez %v17826_v61  ;;  %v16463_v61 = vpop.f32.mrf.mxu1 }
 0x47e   : > { %11723 = vmatprep.mubr.f32.mxu0 %v16264_v6  ;;  %v16443_v6 = vld [vmem:[#allocation3 + $0x108] sm:$0xff]  ;;  %11840 = vmatpush3.msra.mxu0 %v8041_v37 }
 0x47f   : > { %11650 = vmatmul.mubr.f32.gmra.mxu1 %v16443_v6  ;;  %11841 = vmatprep.subr.mxu0 %v8040_v11  ;;  %v7667_v37 = vld [vmem:[#allocation3 + $0x2f] sm:$0xff] }
 0x480   : > { %11652 = vmatprep.mubr.f32.mxu1 %v16446_v36  ;;  %11842 = vmatpush3.msra.mxu0 %v8040_v11  ;;  %v16458_v11 = vld [vmem:[#allocation9 + $0x38] sm:$0xff] }
 0x481   : > { %11724 = vmatmul.mubr.msk.f32.gmra.mxu0 %vm17825_vm0, %v16271_v40  ;;  %11766 = vmatpush3.msra.mxu1 %v7732_v32  ;;  %v8038_v40 = vld [vmem:[#allocation7 + $0x380] sm:$0xff]  ;;  %vm17835_vm0 = vnez %v17744_v35  ;;  %v8390_v32 = vld [vmem:[#allocation7 + $0x470] sm:$0xff] }
 0x482   : > { %11726 = vmatprep.mubr.f32.mxu0 %v16276_v1  ;;  %v16453_v1 = vld [vmem:[#allocation3 + $0x118] sm:$0xff]  ;;  %11843 = vmatprep.subr.mxu0 %v8039_v34 }
 0x483   : > { %11653 = vmatmul.mubr.f32.gmra.mxu1 %v16453_v1  ;;  %11844 = vmatpush3.msra.mxu0 %v8039_v34  ;;  %v7669_v34 = vld [vmem:[#allocation3 + $0x3f] sm:$0xff] }
 0x484   : > { %11767 = vmatprep.mubr.msk.f32.mxu1 %vm17835_vm0, %v7667_v37  ;;  %11845 = vmatprep.subr.mxu0 %v8038_v40  ;;  %v7360_v35 = vld [vmem:[#allocation3 + $0x119] sm:$0xff]  ;;  %vm17836_vm0 = vnez %v17758_v15  ;;  %v8389_v37 = vld [vmem:[#allocation7 + $0x468] sm:$0xff] }
 0x485   : > { %11727 = vmatmul.mubr.msk.f32.gmra.mxu0 %vm17834_vm11, %v16283_v21  ;;  %v7359_v21 = vld [vmem:[#allocation3 + $0x111] sm:$0xff]  ;;  %11895 = vmatprep.subr.mxu1 %v8391_v42 }
 0x486   : > { %11729 = vmatprep.mubr.f32.mxu0 %v16288_v28  ;;  %11846 = vmatpush3.msra.mxu0 %v8038_v40  ;;  %v7668_v28 = vld [vmem:[#allocation3 + $0x37] sm:$0xff]  ;;  %v7670_v40 = vld [vmem:[#allocation3 + $0x47] sm:$0xff] }
 0x487   : > { %11768 = vmatmul.mubr.f32.vlgmr.msra.gmra.mxu1 %v7668_v28  ;;  %11975 = vmatprep.subr.mxu0 %v16458_v11  ;;  %v7671_v28 = vld [vmem:[#allocation3 + $0x4f] sm:$0xff]  ;;  %v8387_v15 = vld [vmem:[#allocation7 + $0x458] sm:$0xff] }
 0x488   : > { %11896 = vmatpush3.msra.mxu1 %v8391_v42  ;;  %11770 = vmatprep.mubr.msk.f32.mxu1 %vm17836_vm0, %v7669_v34  ;;  %v7672_v34 = vld [vmem:[#allocation3 + $0x57] sm:$0xff]  ;;  %vm17838_vm0 = vnez %v17775_v46  ;;  %v7675_v46 = vld [vmem:[#allocation3 + $0x6f] sm:$0xff] }
 0x489   : > { %11730 = vmatmul.mubr.msk.f32.gmra.mxu0 %vm17830_vm12, %v16295_v22  ;;  %11897 = vmatprep.subr.mxu1 %v8390_v32  ;;  %v11292_v22 = vpop.f32.mrf.mxu1  ;;  %vm17837_vm12 = vnez %v17767_v16  ;;  %v16479_v16 = vld [vmem:[#allocation9 + $0x30] sm:$0xff] }
 0x48a   : > { %11732 = vmatprep.mubr.f32.mxu0 %v7359_v21  ;;  %11898 = vmatpush3.msra.mxu1 %v8390_v32  ;;  %v8388_v21 = vld [vmem:[#allocation7 + $0x460] sm:$0xff]  ;;  %v16475_v32 = vpop.f32.mrf.mxu0 }
 0x48b   : > { %11771 = vmatmul.mubr.f32.gmra.mxu1 %v7670_v40  ;;  %v5973_v23 = vpop.f32.mrf.mxu1  ;;  %11899 = vmatprep.subr.mxu1 %v8389_v37 }
 0x48c   : > { %11773 = vmatprep.mubr.msk.f32.mxu1 %vm17837_vm12, %v7671_v28  ;;  %11900 = vmatpush3.msra.mxu1 %v8389_v37  ;;  %v7674_v37 = vld [vmem:[#allocation3 + $0x67] sm:$0xff]  ;;  %vm17839_vm12 = vnez %v17777_v9  ;;  %v8383_v9 = vld [vmem:[#allocation7 + $0x438] sm:$0xff] }
 0x48d   : > { %11733 = vmatmul.mubr.msk.f32.gmra.mxu0 %vm17832_vm9, %v7360_v35  ;;  %v11295_v42 = vpop.f32.mrf.mxu1  ;;  %11901 = vmatprep.subr.mxu1 %v8388_v21  ;;  %v7673_v35 = vld [vmem:[#allocation3 + $0x5f] sm:$0xff] }
 0x48e   : > { %11847 = vmatprep.mubr.f32.mxu0 %v16306_v27  ;;  %11902 = vmatpush3.msra.mxu1 %v8388_v21  ;;  %v8386_v27 = vld [vmem:[#allocation7 + $0x450] sm:$0xff]  ;;  %v8385_v21 = vld [vmem:[#allocation7 + $0x448] sm:$0xff] }
 0x48f   : > { %11774 = vmatmul.mubr.f32.gmra.mxu1 %v7672_v34  ;;  %v5983_v40 = vpop.f32.mrf.mxu1  ;;  %11903 = vmatprep.subr.mxu1 %v8387_v15 }
 0x490   : > { %11776 = vmatprep.mubr.msk.f32.mxu1 %vm17838_vm0, %v7673_v35  ;;  %11904 = vmatpush3.msra.mxu1 %v8387_v15 }
 0x491   : > { %11848 = vmatmul.mubr.f32.vlgmr.msra.gmra.mxu0 %v16313_v5  ;;  %11905 = vmatprep.subr.mxu1 %v8386_v27  ;;  %v11298_v34 = vpop.f32.mrf.mxu1 }
 0x492   : > { %11850 = vmatprep.mubr.f32.mxu0 %v16316_v56  ;;  %11976 = vmatpush3.msra.mxu0 %v16458_v11 }
 0x493   : > { %v11372_v5 = vpop.f32.mrf.mxu0  ;;  %11777 = vmatmul.mubr.f32.gmra.mxu1 %v7674_v37  ;;  %11977 = vmatprep.subr.mxu0 %v16479_v16 }
 0x494   : > { %v16482_v56 = vadd.f32 %v11372_v5, %v11292_v22  ;;  %11779 = vmatprep.mubr.msk.f32.mxu1 %vm17839_vm12, %v7675_v46  ;;  %11906 = vmatpush3.msra.mxu1 %v8386_v27  ;;  %v8384_v22 = vld [vmem:[#allocation7 + $0x440] sm:$0xff]  ;;  %v7676_v5 = vld [vmem:[#allocation3 + $0x77] sm:$0xff] }
 0x495   : > { %11851 = vmatmul.mubr.f32.gmra.mxu0 %v16323_v12  ;;  %v6198_v28 = vpop.f32.mrf.mxu0  ;;  %11907 = vmatprep.subr.mxu1 %v8385_v21  ;;  %v7678_v46 = vld [vmem:[#allocation3 + $0x87] sm:$0xff] }
 0x496   : > { %11853 = vmatprep.mubr.f32.mxu0 %v16326_v38  ;;  %v16487_v15 = vadd.f32 %v6198_v28, %v5973_v23  ;;  %v5993_v38 = vpop.f32.mrf.mxu1  ;;  %11908 = vmatpush3.msra.mxu1 %v8385_v21  ;;  %v7677_v23 = vld [vmem:[#allocation3 + $0x7f] sm:$0xff]  ;;  %v17840_v28 = vld [vmem:[#allocation26_spill] sm:$0xff] }
 0x497   : > { %11780 = vmatmul.mubr.f32.gmra.mxu1 %v7676_v5  ;;  %11978 = vmatpush3.msra.mxu0 %v16479_v16  ;;  %vm17841_vm0 = vnez %v17840_v28  ;;  %v17842_v28 = vld [vmem:[#allocation27_spill] sm:$0xff] }
 0x498   : > { %v11375_v12 = vpop.f32.mrf.mxu0  ;;  %v11301_v43 = vpop.f32.mrf.mxu1  ;;  %11782 = vmatprep.mubr.msk.f32.mxu1 %vm17841_vm0, %v7677_v23  ;;  %11909 = vmatprep.subr.mxu1 %v8384_v22  ;;  %vm17843_vm12 = vnez %v17842_v28  ;;  %v17844_v28 = vld [vmem:[#allocation28_spill] sm:$0xff] }
 0x499   : > { %11854 = vmatmul.mubr.f32.gmra.mxu0 %v16333_v44  ;;  %v16492_v35 = vadd.f32 %v11375_v12, %v11295_v42  ;;  %v16500_v44 = vld [vmem:[#allocation9 + $0x28] sm:$0xff]  ;;  %11910 = vmatpush3.msra.mxu1 %v8384_v22  ;;  %v8382_v12 = vld [vmem:[#allocation7 + $0x430] sm:$0xff]  ;;  %vm17845_vm0 = vnez %v17844_v28 }
 0x49a   : > { %11856 = vmatprep.mubr.f32.mxu0 %v16336_v26  ;;  %v6208_v37 = vpop.f32.mrf.mxu0  ;;  %v6003_v26 = vpop.f32.mrf.mxu1  ;;  %11911 = vmatprep.subr.mxu1 %v8383_v9  ;;  %v8378_v28 = vld [vmem:[#allocation7 + $0x410] sm:$0xff] }
 0x49b   : > { %v16496_v27 = vadd.f32 %v6208_v37, %v5983_v40  ;;  %11783 = vmatmul.mubr.f32.gmra.mxu1 %v7678_v46  ;;  %v7679_v37 = vld [vmem:[#allocation3 + $0x8f] sm:$0xff]  ;;  %11979 = vmatprep.subr.mxu0 %v16500_v44 }
 0x49c   : > { %v11304_v5 = vpop.f32.mrf.mxu1  ;;  %11785 = vmatprep.mubr.msk.f32.mxu1 %vm17843_vm12, %v7679_v37  ;;  %11912 = vmatpush3.msra.mxu1 %v8383_v9  ;;  %v7681_v37 = vld [vmem:[#allocation3 + $0x9f] sm:$0xff]  ;;  %vm17846_vm12 = vnez %v17785_v57 }
 0x49d   : > { %v11378_v42 = vpop.f32.mrf.mxu0  ;;  %11857 = vmatmul.mubr.f32.gmra.mxu0 %v16343_v58  ;;  %v16511_v58 = vld [vmem:[#allocation9 + $0x20] sm:$0xff]  ;;  %11913 = vmatprep.subr.mxu1 %v8382_v12 }
 0x49e   : > { %v16503_v21 = vadd.f32 %v11378_v42, %v11298_v34  ;;  %11859 = vmatprep.mubr.f32.mxu0 %v16346_v4  ;;  %v6013_v4 = vpop.f32.mrf.mxu1  ;;  %v7680_v42 = vld [vmem:[#allocation3 + $0x97] sm:$0xff]  ;;  %11980 = vmatpush3.msra.mxu0 %v16500_v44  ;;  %v7685_v57 = vld [vmem:[#allocation3 + $0xbf] sm:$0xff] }
 0x49f   : > { %v6218_v40 = vpop.f32.mrf.mxu0  ;;  %11786 = vmatmul.mubr.f32.gmra.mxu1 %v7680_v42  ;;  %11981 = vmatprep.subr.mxu0 %v16511_v58  ;;  %v7682_v42 = vld [vmem:[#allocation3 + $0xa7] sm:$0xff] }
 0x4a0   : > { %v16507_v23 = vadd.f32 %v6218_v40, %v5993_v38  ;;  %v8381_v38 = vld [vmem:[#allocation7 + $0x428] sm:$0xff]  ;;  %v11307_v40 = vpop.f32.mrf.mxu1  ;;  %11788 = vmatprep.mubr.msk.f32.mxu1 %vm17845_vm0, %v7681_v37  ;;  %11914 = vmatpush3.msra.mxu1 %v8382_v12  ;;  %v7684_v37 = vld [vmem:[#allocation3 + $0xb7] sm:$0xff]  ;;  %vm17847_vm0 = vnez %v17787_v29 }
 0x4a1   : > { %v11381_v34 = vpop.f32.mrf.mxu0  ;;  %11860 = vmatmul.mubr.f32.gmra.mxu0 %v16353_v49  ;;  %11915 = vmatprep.subr.mxu1 %v8381_v38  ;;  %v7687_v29 = vld [vmem:[#allocation3 + $0xcf] sm:$0xff] }
 0x4a2   : > { %v16514_v22 = vadd.f32 %v11381_v34, %v11301_v43  ;;  %11862 = vmatprep.mubr.f32.mxu0 %v16356_v31  ;;  %v6023_v49 = vpop.f32.mrf.mxu1  ;;  %v8380_v31 = vld [vmem:[#allocation7 + $0x420] sm:$0xff]  ;;  %11916 = vmatpush3.msra.mxu1 %v8381_v38 }
 0x4a3   : > { %v6228_v46 = vpop.f32.mrf.mxu0  ;;  %11789 = vmatmul.mubr.f32.gmra.mxu1 %v7682_v42  ;;  %11982 = vmatpush3.msra.mxu0 %v16511_v58  ;;  %v7686_v42 = vld [vmem:[#allocation3 + $0xc7] sm:$0xff] }
 0x4a4   : > { %v16519_v9 = vadd.f32 %v6228_v46, %v6003_v26  ;;  %v11310_v53 = vpop.f32.mrf.mxu1  ;;  %v7683_v26 = vld [vmem:[#allocation3 + $0xaf] sm:$0xff]  ;;  %v8379_v46 = vld [vmem:[#allocation7 + $0x418] sm:$0xff]  ;;  %11917 = vmatprep.subr.mxu1 %v8380_v31 }
 0x4a5   : > { %v11384_v43 = vpop.f32.mrf.mxu0  ;;  %11863 = vmatmul.mubr.f32.gmra.mxu0 %v16363_v45  ;;  %11791 = vmatprep.mubr.msk.f32.mxu1 %vm17846_vm12, %v7683_v26  ;;  %v16532_v45 = vld [vmem:[#allocation9 + $0x18] sm:$0xff] }
 0x4a6   : > { %v16524_v34 = vadd.f32 %v11384_v43, %v11304_v5  ;;  %11865 = vmatprep.mubr.f32.mxu0 %v16366_v10  ;;  %v6033_v10 = vpop.f32.mrf.mxu1  ;;  %11918 = vmatpush3.msra.mxu1 %v8380_v31 }
 0x4a7   : > { %v6238_v41 = vpop.f32.mrf.mxu0  ;;  %11919 = vmatprep.subr.mxu1 %v8379_v46  ;;  %11792 = vmatmul.mubr.f32.gmra.mxu1 %v7684_v37  ;;  %v17848_v37 = vld [vmem:[#allocation31_spill] sm:$0xff] }
 0x4a8   : > { %v16528_v12 = vadd.f32 %v6238_v41, %v6013_v4  ;;  %v11313_v4 = vpop.f32.mrf.mxu1  ;;  %11983 = vmatprep.subr.mxu0 %v16532_v45  ;;  %11794 = vmatprep.mubr.msk.f32.mxu1 %vm17847_vm0, %v7685_v57  ;;  %vm17849_vm12 = vnez %v17848_v37  ;;  %v7688_v57 = vld [vmem:[#allocation3 + $0xd7] sm:$0xff] }
 0x4a9   : > { %v11387_v5 = vpop.f32.mrf.mxu0  ;;  %11866 = vmatmul.mubr.f32.gmra.mxu0 %v16373_v8  ;;  %11920 = vmatpush3.msra.mxu1 %v8379_v46  ;;  %v16543_v8 = vld [vmem:[#allocation9 + $0x10] sm:$0xff] }
 0x4aa   : > { %v16535_v38 = vadd.f32 %v11387_v5, %v11307_v40  ;;  %11868 = vmatprep.mubr.f32.mxu0 %v16376_v13  ;;  %v6043_v13 = vpop.f32.mrf.mxu1  ;;  %11921 = vmatprep.subr.mxu1 %v8378_v28 }
 0x4ab   : > { %v6248_v41 = vpop.f32.mrf.mxu0  ;;  %11984 = vmatpush3.msra.mxu0 %v16532_v45  ;;  %11795 = vmatmul.mubr.f32.gmra.mxu1 %v7686_v42 }
 0x4ac   : > { %v16539_v43 = vadd.f32 %v6248_v41, %v6023_v49  ;;  %v8377_v49 = vld [vmem:[#allocation7 + $0x408] sm:$0xff]  ;;  %v11316_v5 = vpop.f32.mrf.mxu1  ;;  %11985 = vmatprep.subr.mxu0 %v16543_v8  ;;  %11797 = vmatprep.mubr.msk.f32.mxu1 %vm17849_vm12, %v7687_v29 }
 0x4ad   : > { %v11390_v40 = vpop.f32.mrf.mxu0  ;;  %11869 = vmatmul.mubr.f32.gmra.mxu0 %v16383_v0  ;;  %11922 = vmatpush3.msra.mxu1 %v8378_v28  ;;  %v17850_v28 = vld [vmem:[#allocation32_spill] sm:$0xff] }
 0x4ae   : > { %v16546_v31 = vadd.f32 %v11390_v40, %v11310_v53  ;;  %11871 = vmatprep.mubr.f32.mxu0 %v16386_v63  ;;  %v6053_v0 = vpop.f32.mrf.mxu1  ;;  %11923 = vmatprep.subr.mxu1 %v8377_v49  ;;  %v8376_v63 = vld [vmem:[#allocation7 + $0x400] sm:$0xff]  ;;  %vm17851_vm0 = vnez %v17850_v28 }
 0x4af   : > { %v6258_v26 = vpop.f32.mrf.mxu0  ;;  %11924 = vmatpush3.msra.mxu1 %v8377_v49  ;;  %11986 = vmatpush3.msra.mxu0 %v16543_v8  ;;  %v7690_v29 = vld [vmem:[#allocation3 + $0xe7] sm:$0xff] }
 0x4b0   : > { %v16551_v46 = vadd.f32 %v6258_v26, %v6033_v10  ;;  %v11319_v42 = vpop.f32.mrf.mxu1  ;;  %11798 = vmatmul.mubr.f32.gmra.mxu1 %v7688_v57  ;;  %v7689_v10 = vld [vmem:[#allocation3 + $0xdf] sm:$0xff]  ;;  %11925 = vmatprep.subr.mxu1 %v8376_v63  ;;  %v7691_v57 = vld [vmem:[#allocation3 + $0xef] sm:$0xff] }
 0x4b1   : > { %v11393_v53 = vpop.f32.mrf.mxu0  ;;  %11872 = vmatmul.mubr.f32.gmra.mxu0 %v16393_v19  ;;  %11800 = vmatprep.mubr.msk.f32.mxu1 %vm17851_vm0, %v7689_v10  ;;  %v16564_v19 = vld [vmem:[#allocation9 + $0x8] sm:$0xff]  ;;  %v7692_v10 = vld [vmem:[#allocation3 + $0xf7] sm:$0xff] }
 0x4b2   : > { %v16556_v41 = vadd.f32 %v11393_v53, %v11313_v4  ;;  %11874 = vmatprep.mubr.f32.mxu0 %v16396_v52  ;;  %v6063_v52 = vpop.f32.mrf.mxu1  ;;  %11926 = vmatpush3.msra.mxu1 %v8376_v63 }
 0x4b3   : > { %v6268_v40 = vpop.f32.mrf.mxu0  ;;  %12039 = vmatprep.subr.mxu1 %v16458_v11  ;;  %11987 = vmatprep.subr.mxu0 %v16564_v19 }
 0x4b4   : > { %v16560_v26 = vadd.f32 %v6268_v40, %v6043_v13  ;;  %v16571_v13 = vld [vmem:[#allocation9] sm:$0xff]  ;;  %v11322_v53 = vpop.f32.mrf.mxu1  ;;  %11801 = vmatmul.mubr.f32.gmra.mxu1 %v7690_v29  ;;  %11988 = vmatpush3.msra.mxu0 %v16564_v19 }
 0x4b5   : > { %v11396_v4 = vpop.f32.mrf.mxu0  ;;  %11875 = vmatmul.mubr.f32.gmra.mxu0 %v16403_v33  ;;  %v17852_v33 = vld [vmem:[#allocation33_spill] sm:$0xff]  ;;  %11989 = vmatprep.subr.mxu0 %v16571_v13 }
 0x4b6   : > { %v16567_v49 = vadd.f32 %v11396_v4, %v11316_v5  ;;  %11877 = vmatprep.mubr.f32.mxu0 %v16406_v24  ;;  %vm17853_vm12 = vnez %v17852_v33  ;;  %v6073_v24 = vpop.f32.mrf.mxu1  ;;  %11990 = vmatpush3.msra.mxu0 %v16571_v13  ;;  %v7693_v4 = vld [vmem:[#allocation3 + $0xff] sm:$0xff] }
 0x4b7   : > { %v6278_v37 = vpop.f32.mrf.mxu0  ;;  %11803 = vmatprep.mubr.msk.f32.mxu1 %vm17853_vm12, %v7691_v57 }
 0x4b8   : > { %v16574_v40 = vadd.f32 %v6278_v37, %v6053_v0  ;;  %v11325_v28 = vpop.f32.mrf.mxu1  ;;  %11804 = vmatmul.mubr.f32.gmra.mxu1 %v7692_v10  ;;  %v17855_v37 = vld [vmem:[#allocation34_spill] sm:$0xff] }
 0x4b9   : > { %v11399_v5 = vpop.f32.mrf.mxu0  ;;  %11878 = vmatmul.mubr.f32.gmra.mxu0 %v16413_v25  ;;  %vm17856_vm0 = vnez %v17855_v37 }
 0x4ba   : > { %v16581_v63 = vadd.f32 %v11399_v5, %v11319_v42  ;;  %11880 = vmatprep.mubr.f32.mxu0 %v16416_v30  ;;  %11806 = vmatprep.mubr.msk.f32.mxu1 %vm17856_vm0, %v7693_v4  ;;  %v6083_v57 = vpop.f32.mrf.mxu1  ;;  %v7694_v30 = vld [vmem:[#allocation3 + $0x107] sm:$0xff]  ;;  %v7697_v4 = vld [vmem:[#allocation3 + $0x11f] sm:$0xff] }
 0x4bb   : > { %v6288_v0 = vpop.f32.mrf.mxu0 }
 0x4bc   : > { %17854 = vst [vmem:[#allocation87_spill] sm:$0xff] %v16581_v63  ;;  %v16585_v29 = vadd.f32 %v6288_v0, %v6063_v52  ;;  %v11328_v5 = vpop.f32.mrf.mxu1  ;;  %11807 = vmatmul.mubr.f32.gmra.mxu1 %v7694_v30 }
 0x4bd   : > { %v11402_v25 = vpop.f32.mrf.mxu0  ;;  %11881 = vmatmul.mubr.f32.gmra.mxu0 %v16423_v17  ;;  %11809 = vmatprep.mubr.msk.f32.mxu1 %vm17609_vm10, %v16301_v48  ;;  %vm17860_vm10 = vcmask 523264  }
 0x4be   : > { %v16590_v42 = vadd.f32 %v11402_v25, %v11322_v53  ;;  %11883 = vmatprep.mubr.f32.mxu0 %v16426_v62  ;;  %v6093_v0 = vpop.f32.mrf.mxu1  ;;  %v7698_v25 = vld [vmem:[#allocation3 + $0x127] sm:$0xff] }
 0x4bf   : > { %v6298_v33 = vpop.f32.mrf.mxu0 }
 0x4c0   : > { %v16593_v63 = vadd.f32 %v6298_v33, %v6073_v24  ;;  %v11331_v62 = vpop.f32.mrf.mxu1  ;;  %11810 = vmatmul.mubr.f32.gmra.mxu1 %v16308_v3  ;;  %v8311_v33 = vld [vmem:[#allocation3 + $0x31] sm:$0xff] }
 0x4c1   : > { %v11405_v10 = vpop.f32.mrf.mxu0  ;;  %11884 = vmatmul.mubr.f32.gmra.mxu0 %v16433_v14  ;;  %11812 = vmatprep.mubr.msk.f32.mxu1 %vm17799_vm13, %v7697_v4 }
 0x4c2   : > { %v16599_v17 = vadd.f32 %v11405_v10, %v11325_v28  ;;  %11886 = vmatprep.mubr.f32.mxu0 %v16436_v47  ;;  %v6103_v14 = vpop.f32.mrf.mxu1 }
 0x4c3   : > { %v6308_v53 = vpop.f32.mrf.mxu0 }
 0x4c4   : > { %v16603_v37 = vadd.f32 %v6308_v53, %v6083_v57  ;;  %v11334_v28 = vpop.f32.mrf.mxu1  ;;  %11813 = vmatmul.mubr.f32.gmra.mxu1 %v7698_v25  ;;  %v12138_v53 = vld [vmem:[#allocation3] sm:$0xff] }
 0x4c5   : > { %v11408_v48 = vpop.f32.mrf.mxu0  ;;  %11887 = vmatmul.mubr.f32.gmra.mxu0 %v16443_v6  ;;  %11927 = vmatprep.mubr.f32.mxu1 %v8311_v33  ;;  %v8312_v6 = vld [vmem:[#allocation3 + $0x39] sm:$0xff] }
 0x4c6   : > { %v16608_v30 = vadd.f32 %v11408_v48, %v11328_v5  ;;  %11889 = vmatprep.mubr.f32.mxu0 %v16446_v36  ;;  %v6113_v52 = vpop.f32.mrf.mxu1  ;;  %v8313_v36 = vld [vmem:[#allocation3 + $0x41] sm:$0xff] }
 0x4c7   : > { %v6318_v47 = vpop.f32.mrf.mxu0 }
 0x4c8   : > { %v16611_v3 = vadd.f32 %v6318_v47, %v6093_v0  ;;  %v11449_v4 = vpop.f32.mrf.mxu1  ;;  %11928 = vmatmul.mubr.msk.f32.vlgmr.msra.gmra.mxu1 %vm13744_vm8, %v8312_v6  ;;  %v17859_v0 = vld [vmem:[#allocation86_spill] sm:$0xff]  ;;  %v12139_v47 = vld [vmem:[%s12623_s16] sm:$0xff]  ;;  %v12140_v6 = vld [vmem:[%s12623_s16 + $0x8] sm:$0xff] }
 0x4c9   : > { %v11411_v57 = vpop.f32.mrf.mxu0  ;;  %11890 = vmatmul.mubr.f32.gmra.mxu0 %v16453_v1  ;;  %v6654_v25 = vadd.f32 %v11449_v4, %v17859_v0  ;;  %12047 = vmatpush3.msra.mxu1 %v16458_v11  ;;  %v8315_v11 = vld [vmem:[#allocation3 + $0x51] sm:$0xff]  ;;  %vm17861_vm8 = vmmov %vm17860_vm10 }
 0x4ca   : > { %v16614_v10 = vadd.f32 %v11411_v57, %v11331_v62  ;;  %11892 = vmatprep.mubr.f32.mxu0 %v12138_v53  ;;  %11930 = vmatprep.mubr.f32.mxu1 %v8313_v36  ;;  %v6494_v62 = vpop.f32.mrf.mxu1  ;;  %v8317_v36 = vld [vmem:[#allocation3 + $0x61] sm:$0xff] }
 0x4cb   : > { %v6328_v5 = vpop.f32.mrf.mxu0  ;;  %12040 = vmatprep.subr.mxu1 %v16479_v16 }
 0x4cc   : > { %v16618_v24 = vadd.f32 %v6328_v5, %v6103_v14  ;;  %12048 = vmatpush3.msra.mxu1 %v16479_v16  ;;  %v11452_v33 = vpop.f32.mrf.mxu1 }
 0x4cd   : > { %v11414_v1 = vpop.f32.mrf.mxu0  ;;  %11893 = vmatmul.mubr.f32.gmra.mxu0 %v12138_v53  ;;  %11931 = vmatmul.mubr.msk.f32.gmra.mxu1 %vm13764_vm4, %v8314_v2  ;;  %v6656_v53 = vadd.f32 %v11452_v33, %v16482_v56  ;;  %vm17862_vm4 = vmmov %vm17861_vm8  ;;  %v8316_v56 = vld [vmem:[#allocation3 + $0x59] sm:$0xff]  ;;  %v8318_v2 = vld [vmem:[#allocation3 + $0x69] sm:$0xff] }
 0x4ce   : > { %v16623_v48 = vadd.f32 %v11414_v1, %v11334_v28  ;;  %11991 = vmatprep.mubr.msk.f32.mxu0 %vm17860_vm10, %v12139_v47  ;;  %12041 = vmatprep.subr.mxu1 %v16500_v44  ;;  %v6189_v28 = vadd.f32 %v16475_v32, %v16463_v61  ;;  %v6504_v18 = vpop.f32.mrf.mxu1  ;;  %v12141_v32 = vld [vmem:[%s12623_s16 + $0x10] sm:$0xff]  ;;  %v12142_v1 = vld [vmem:[%s12623_s16 + $0x18] sm:$0xff]  ;;  %vm17863_vm13 = vmmov %vm17862_vm4 }
 0x4cf   : > { %v6338_v14 = vpop.f32.mrf.mxu0  ;;  %11933 = vmatprep.mubr.f32.mxu1 %v8315_v11  ;;  %12049 = vmatpush3.msra.mxu1 %v16500_v44  ;;  %v6655_v61 = vadd.f32 %v6504_v18, %v16487_v15  ;;  %v12143_v47 = vld [vmem:[%s12623_s16 + $0x20] sm:$0xff] }
 0x4d0   : > { %v16633_v57 = vadd.f32 %v6338_v14, %v6113_v52  ;;  %12042 = vmatprep.subr.mxu1 %v16511_v58  ;;  %v6653_v4 = vadd.f32 %v6494_v62, %v6189_v28  ;;  %v11455_v52 = vpop.f32.mrf.mxu1  ;;  %v8319_v14 = vld [vmem:[#allocation3 + $0x71] sm:$0xff]  ;;  %v12144_v28 = vld [vmem:[%s12623_s16 + $0x28] sm:$0xff] }
 0x4d1   : > { %v11529_v16 = vpop.f32.mrf.mxu0  ;;  %11992 = vmatmul.mubr.msk.f32.vlgmr.msra.gmra.mxu0 %vm17861_vm8, %v12140_v6  ;;  %12050 = vmatpush3.msra.mxu1 %v16511_v58  ;;  %v8321_v18 = vld [vmem:[#allocation3 + $0x81] sm:$0xff] }
 0x4d2   : > { %v16640_v5 = vadd.f32 %v11529_v16, %v6654_v25  ;;  %11994 = vmatprep.mubr.msk.f32.mxu0 %vm17862_vm4, %v12141_v32  ;;  %11934 = vmatmul.mubr.msk.f32.gmra.mxu1 %vm13794_vm2, %v8316_v56  ;;  %v6658_v25 = vadd.f32 %v11455_v52, %v16492_v35  ;;  %v6514_v58 = vpop.f32.mrf.mxu1  ;;  %vm17864_vm2 = vmmov %vm17862_vm4  ;;  %v12145_v16 = vld [vmem:[%s12623_s16 + $0x30] sm:$0xff]  ;;  %v12147_v52 = vld [vmem:[%s12623_s16 + $0x40] sm:$0xff] }
 0x4d3   : > { %v6832_v44 = vpop.f32.mrf.mxu0  ;;  %12043 = vmatprep.subr.mxu1 %v16532_v45  ;;  %11936 = vmatprep.mubr.f32.mxu1 %v8317_v36  ;;  %v6657_v54 = vadd.f32 %v6514_v58, %v16496_v27  ;;  %vm17865_vm12 = vmmov %vm17864_vm2 }
 0x4d4   : > { %v16649_v0 = vadd.f32 %v6832_v44, %v6653_v4  ;;  %12051 = vmatpush3.msra.mxu1 %v16532_v45  ;;  %v11458_v45 = vpop.f32.mrf.mxu1  ;;  %vm17867_vm0 = vmmov %vm17864_vm2 }
 0x4d5   : > { %v11532_v15 = vpop.f32.mrf.mxu0  ;;  %11995 = vmatmul.mubr.msk.f32.gmra.mxu0 %vm17863_vm13, %v12142_v1  ;;  %12044 = vmatprep.subr.mxu1 %v16543_v8  ;;  %v6660_v11 = vadd.f32 %v11458_v45, %v16503_v21  ;;  %v8320_v21 = vld [vmem:[#allocation3 + $0x79] sm:$0xff]  ;;  %vm17868_vm10 = vmmov %vm17867_vm0 }
 0x4d6   : > { %v16656_v62 = vadd.f32 %v11532_v15, %v6656_v53  ;;  %11997 = vmatprep.mubr.msk.f32.mxu0 %vm17864_vm2, %v12143_v47  ;;  %12052 = vmatpush3.msra.mxu1 %v16543_v8  ;;  %v6524_v8 = vpop.f32.mrf.mxu1  ;;  %vm17870_vm8 = vmmov %vm17867_vm0 }
 0x4d7   : > { %v6842_v35 = vpop.f32.mrf.mxu0  ;;  %11937 = vmatmul.mubr.msk.f32.gmra.mxu1 %vm13821_vm5, %v8318_v2  ;;  %12045 = vmatprep.subr.mxu1 %v16564_v19  ;;  %v6659_v53 = vadd.f32 %v6524_v8, %v16507_v23  ;;  %vm17866_vm5 = vmmov %vm17864_vm2  ;;  %v12146_v23 = vld [vmem:[%s12623_s16 + $0x38] sm:$0xff] }
 0x4d8   : > { %v16665_v33 = vadd.f32 %v6842_v35, %v6655_v61  ;;  %11939 = vmatprep.mubr.f32.mxu1 %v8319_v14  ;;  %12053 = vmatpush3.msra.mxu1 %v16564_v19  ;;  %v11461_v6 = vpop.f32.mrf.mxu1  ;;  %v12149_v35 = vld [vmem:[%s12623_s16 + $0x50] sm:$0xff]  ;;  %v12150_v8 = vld [vmem:[%s12623_s16 + $0x58] sm:$0xff]  ;;  %vm17872_vm4 = vmmov %vm17867_vm0 }
 0x4d9   : > { %v11535_v27 = vpop.f32.mrf.mxu0  ;;  %11998 = vmatmul.mubr.msk.f32.gmra.mxu0 %vm17865_vm12, %v12144_v28  ;;  %12046 = vmatprep.subr.mxu1 %v16571_v13  ;;  %v6662_v61 = vadd.f32 %v11461_v6, %v16514_v22  ;;  %v8323_v22 = vld [vmem:[#allocation3 + $0x91] sm:$0xff]  ;;  %vm17874_vm13 = vmmov %vm17867_vm0 }
 0x4da   : > { %v16672_v60 = vadd.f32 %v11535_v27, %v6658_v25  ;;  %12000 = vmatprep.mubr.msk.f32.mxu0 %vm17866_vm5, %v12145_v16  ;;  %12054 = vmatpush3.msra.mxu1 %v16571_v13  ;;  %v6534_v56 = vpop.f32.mrf.mxu1  ;;  %vm17876_vm2 = vmmov %vm17867_vm0 }
 0x4db   : > { %v6852_v19 = vpop.f32.mrf.mxu0  ;;  %11940 = vmatmul.mubr.msk.f32.gmra.mxu1 %vm17805_vm7, %v8320_v21  ;;  %v6661_v13 = vadd.f32 %v6534_v56, %v16519_v9  ;;  %vm17869_vm7 = vmmov %vm17867_vm0  ;;  %v12151_v21 = vld [vmem:[%s12623_s16 + $0x60] sm:$0xff] }
 0x4dc   : > { %v16680_v4 = vadd.f32 %v6852_v19, %v6657_v54  ;;  %11942 = vmatprep.mubr.f32.mxu1 %v8321_v18  ;;  %v11464_v25 = vpop.f32.mrf.mxu1  ;;  %v12148_v54 = vld [vmem:[%s12623_s16 + $0x48] sm:$0xff]  ;;  %vm17878_vm12 = vmmov %vm17867_vm0 }
 0x4dd   : > { %v11538_v32 = vpop.f32.mrf.mxu0  ;;  %12001 = vmatmul.mubr.msk.f32.gmra.mxu0 %vm17867_vm0, %v12146_v23  ;;  %v6664_v1 = vadd.f32 %v11464_v25, %v16524_v34  ;;  %v8325_v34 = vld [vmem:[#allocation3 + $0xa1] sm:$0xff]  ;;  %vm17881_vm5 = vmmov %vm17867_vm0 }
 0x4de   : > { %v16685_v44 = vadd.f32 %v11538_v32, %v6660_v11  ;;  %12003 = vmatprep.mubr.msk.f32.mxu0 %vm17868_vm10, %v12147_v52  ;;  %v6544_v9 = vpop.f32.mrf.mxu1  ;;  %v12152_v23 = vld [vmem:[%s12623_s16 + $0x68] sm:$0xff]  ;;  %v12153_v52 = vld [vmem:[%s12623_s16 + $0x70] sm:$0xff] }
 0x4df   : > { %v6862_v36 = vpop.f32.mrf.mxu0  ;;  %11943 = vmatmul.mubr.msk.f32.gmra.mxu1 %vm17807_vm14, %v8322_v50  ;;  %v6663_v2 = vadd.f32 %v6544_v9, %v16528_v12  ;;  %vm17871_vm14 = vmmov %vm17867_vm0 }
 0x4e0   : > { %v16692_v15 = vadd.f32 %v6862_v36, %v6659_v53  ;;  %11945 = vmatprep.mubr.f32.mxu1 %v8323_v22  ;;  %v11467_v14 = vpop.f32.mrf.mxu1 }
 0x4e1   : > { %v11541_v58 = vpop.f32.mrf.mxu0  ;;  %12004 = vmatmul.mubr.msk.f32.gmra.mxu0 %vm17869_vm7, %v12148_v54  ;;  %v6666_v27 = vadd.f32 %v11467_v14, %v16535_v38  ;;  %v8327_v38 = vld [vmem:[#allocation3 + $0xb1] sm:$0xff]  ;;  %vm17884_vm7 = vmmov %vm17867_vm0 }
 0x4e2   : > { %v16697_v47 = vadd.f32 %v11541_v58, %v6662_v61  ;;  %12006 = vmatprep.mubr.msk.f32.mxu0 %vm17870_vm8, %v12149_v35  ;;  %v6554_v12 = vpop.f32.mrf.mxu1  ;;  %v12154_v58 = vld [vmem:[%s12623_s16 + $0x78] sm:$0xff]  ;;  %vm17885_vm8 = vmmov %vm17867_vm0 }
 0x4e3   : > { %v6872_v45 = vpop.f32.mrf.mxu0  ;;  %11946 = vmatmul.mubr.msk.f32.gmra.mxu1 %vm17809_vm1, %v8324_v55  ;;  %v6665_v16 = vadd.f32 %v6554_v12, %v16539_v43  ;;  %vm17873_vm1 = vmmov %vm17867_vm0  ;;  %v12157_v12 = vld [vmem:[%s12623_s16 + $0x90] sm:$0xff] }
 0x4e4   : > { %v16704_v11 = vadd.f32 %v6872_v45, %v6661_v13  ;;  %11948 = vmatprep.mubr.f32.mxu1 %v8325_v34  ;;  %v11470_v6 = vpop.f32.mrf.mxu1 }
 0x4e5   : > { %v11544_v28 = vpop.f32.mrf.mxu0  ;;  %12007 = vmatmul.mubr.msk.f32.gmra.mxu0 %vm17871_vm14, %v12150_v8  ;;  %v6668_v61 = vadd.f32 %v11470_v6, %v16546_v31  ;;  %v8329_v31 = vld [vmem:[#allocation3 + $0xc1] sm:$0xff] }
 0x4e6   : > { %v16709_v53 = vadd.f32 %v11544_v28, %v6664_v1  ;;  %12009 = vmatprep.mubr.msk.f32.mxu0 %vm17872_vm4, %v12151_v21  ;;  %v6564_v43 = vpop.f32.mrf.mxu1  ;;  %vm17888_vm4 = vmmov %vm17867_vm0 }
 0x4e7   : > { %v6882_v19 = vpop.f32.mrf.mxu0  ;;  %11949 = vmatmul.mubr.msk.f32.gmra.mxu1 %vm17811_vm15, %v8326_v7  ;;  %v6667_v13 = vadd.f32 %v6564_v43, %v16551_v46  ;;  %vm17875_vm15 = vmmov %vm17867_vm0  ;;  %v12159_v43 = vld [vmem:[%s12623_s16 + $0xa0] sm:$0xff] }
 0x4e8   : > { %v16716_v18 = vadd.f32 %v6882_v19, %v6663_v2  ;;  %11951 = vmatprep.mubr.f32.mxu1 %v8327_v38  ;;  %v11473_v36 = vpop.f32.mrf.mxu1  ;;  %v12155_v2 = vld [vmem:[%s12623_s16 + $0x80] sm:$0xff]  ;;  %v17880_v19 = vld [vmem:[#allocation87_spill] sm:$0xff] }
 0x4e9   : > { %v11547_v32 = vpop.f32.mrf.mxu0  ;;  %12010 = vmatmul.mubr.msk.f32.gmra.mxu0 %vm17873_vm1, %v12152_v23  ;;  %v6670_v22 = vadd.f32 %v11473_v36, %v16556_v41  ;;  %v8331_v41 = vld [vmem:[#allocation3 + $0xd1] sm:$0xff]  ;;  %vm17889_vm1 = vmmov %vm17867_vm0 }
 0x4ea   : > { %v16721_v56 = vadd.f32 %v11547_v32, %v6666_v27  ;;  %12012 = vmatprep.mubr.msk.f32.mxu0 %vm17874_vm13, %v12153_v52  ;;  %v6574_v46 = vpop.f32.mrf.mxu1  ;;  %v12156_v27 = vld [vmem:[%s12623_s16 + $0x88] sm:$0xff]  ;;  %vm17891_vm13 = vmmov %vm17867_vm0 }
 0x4eb   : > { %v6892_v50 = vpop.f32.mrf.mxu0  ;;  %11952 = vmatmul.mubr.msk.f32.gmra.mxu1 %vm17813_vm3, %v8328_v39  ;;  %v6669_v9 = vadd.f32 %v6574_v46, %v16560_v26  ;;  %vm17877_vm3 = vmmov %vm17867_vm0  ;;  %v17882_v39 = vld [vmem:[#allocation52_spill] sm:$0xff] }
 0x4ec   : > { %v16728_v25 = vadd.f32 %v6892_v50, %v6665_v16  ;;  %11954 = vmatprep.mubr.f32.mxu1 %v8329_v31  ;;  %v11476_v55 = vpop.f32.mrf.mxu1  ;;  %vm17883_vm10 = vnez %v17882_v39  ;;  %v8335_v50 = vld [vmem:[#allocation3 + $0xf1] sm:$0xff] }
 0x4ed   : > { %v11550_v1 = vpop.f32.mrf.mxu0  ;;  %12013 = vmatmul.mubr.msk.f32.gmra.mxu0 %vm17875_vm15, %v12154_v58  ;;  %v6672_v14 = vadd.f32 %v11476_v55, %v16567_v49  ;;  %v8333_v49 = vld [vmem:[#allocation3 + $0xe1] sm:$0xff]  ;;  %vm17892_vm15 = vmmov %vm17867_vm0 }
 0x4ee   : > { %v16733_v54 = vadd.f32 %v11550_v1, %v6668_v61  ;;  %12015 = vmatprep.mubr.msk.f32.mxu0 %vm17876_vm2, %v12155_v2  ;;  %v6584_v26 = vpop.f32.mrf.mxu1  ;;  %v12158_v61 = vld [vmem:[%s12623_s16 + $0x98] sm:$0xff]  ;;  %v12160_v1 = vld [vmem:[%s12623_s16 + $0xa8] sm:$0xff]  ;;  %vm17895_vm2 = vmmov %vm17867_vm0 }
 0x4ef   : > { %v6902_v35 = vpop.f32.mrf.mxu0  ;;  %11955 = vmatmul.mubr.msk.f32.gmra.mxu1 %vm17816_vm6, %v8330_v59  ;;  %v6671_v8 = vadd.f32 %v6584_v26, %v16574_v40  ;;  %vm17879_vm6 = vnez %v17818_v51  ;;  %v8334_v51 = vld [vmem:[#allocation3 + $0xe9] sm:$0xff]  ;;  %v8336_v2 = vld [vmem:[#allocation3 + $0xf9] sm:$0xff] }
 0x4f0   : > { %v16740_v45 = vadd.f32 %v6902_v35, %v6667_v13  ;;  %11957 = vmatprep.mubr.f32.mxu1 %v8331_v41  ;;  %v11479_v21 = vpop.f32.mrf.mxu1  ;;  %v17886_v55 = vld [vmem:[#allocation53_spill] sm:$0xff] }
 0x4f1   : > { %v11553_v34 = vpop.f32.mrf.mxu0  ;;  %12016 = vmatmul.mubr.msk.f32.gmra.mxu0 %vm17877_vm3, %v12156_v27  ;;  %v6674_v6 = vadd.f32 %v11479_v21, %v17880_v19  ;;  %vm17887_vm14 = vnez %v17886_v55  ;;  %v12162_v27 = vld [vmem:[%s12623_s16 + $0xb8] sm:$0xff]  ;;  %vm17897_vm3 = vmmov %vm17867_vm0 }
 0x4f2   : > { %v16745_v28 = vadd.f32 %v11553_v34, %v6670_v22  ;;  %12018 = vmatprep.mubr.msk.f32.mxu0 %vm17878_vm12, %v12157_v12  ;;  %v6594_v40 = vpop.f32.mrf.mxu1  ;;  %v12163_v12 = vld [vmem:[%s12623_s16 + $0xc0] sm:$0xff]  ;;  %vm17898_vm12 = vmmov %vm17867_vm0 }
 0x4f3   : > { %v6912_v16 = vpop.f32.mrf.mxu0  ;;  %11958 = vmatmul.mubr.msk.f32.gmra.mxu1 %vm17879_vm6, %v8332_v20  ;;  %v6673_v23 = vadd.f32 %v6594_v40, %v16585_v29  ;;  %v8338_v20 = vld [vmem:[#allocation3 + $0x109] sm:$0xff]  ;;  %v8341_v40 = vld [vmem:[#allocation3 + $0x121] sm:$0xff]  ;;  %vm17900_vm6 = vmmov %vm17867_vm0 }
 0x4f4   : > { %v16752_v7 = vadd.f32 %v6912_v16, %v6669_v9  ;;  %11960 = vmatprep.mubr.f32.mxu1 %v8333_v49  ;;  %v11482_v52 = vpop.f32.mrf.mxu1  ;;  %v12161_v9 = vld [vmem:[%s12623_s16 + $0xb0] sm:$0xff] }
 0x4f5   : > { %v11556_v38 = vpop.f32.mrf.mxu0  ;;  %12019 = vmatmul.mubr.msk.f32.gmra.mxu0 %vm17881_vm5, %v12158_v61  ;;  %v6676_v31 = vadd.f32 %v11482_v52, %v16590_v42  ;;  %v8337_v42 = vld [vmem:[#allocation3 + $0x101] sm:$0xff] }
 0x4f6   : > { %v16757_v32 = vadd.f32 %v11556_v38, %v6672_v14  ;;  %12021 = vmatprep.mubr.msk.f32.mxu0 %vm17867_vm0, %v12159_v43  ;;  %v6604_v29 = vpop.f32.mrf.mxu1  ;;  %v12164_v61 = vld [vmem:[%s12623_s16 + $0xc8] sm:$0xff] }
 0x4f7   : > { %v6922_v13 = vpop.f32.mrf.mxu0  ;;  %11961 = vmatmul.mubr.msk.f32.gmra.mxu1 %vm17883_vm10, %v8334_v51  ;;  %v6675_v46 = vadd.f32 %v6604_v29, %v16593_v63  ;;  %v12165_v51 = vld [vmem:[%s12623_s16 + $0xd0] sm:$0xff]  ;;  %v12166_v29 = vld [vmem:[%s12623_s16 + $0xd8] sm:$0xff] }
 0x4f8   : > { %v16764_v36 = vadd.f32 %v6922_v13, %v6671_v8  ;;  %11963 = vmatprep.mubr.f32.mxu1 %v8335_v50  ;;  %v11485_v35 = vpop.f32.mrf.mxu1  ;;  %v8340_v13 = vld [vmem:[#allocation3 + $0x119] sm:$0xff] }
 0x4f9   : > { %v11559_v22 = vpop.f32.mrf.mxu0  ;;  %12022 = vmatmul.mubr.msk.f32.gmra.mxu0 %vm17884_vm7, %v12160_v1  ;;  %v6678_v14 = vadd.f32 %v11485_v35, %v16599_v17  ;;  %v8339_v17 = vld [vmem:[#allocation3 + $0x111] sm:$0xff] }
 0x4fa   : > { %v16769_v58 = vadd.f32 %v11559_v22, %v6674_v6  ;;  %12024 = vmatprep.mubr.msk.f32.mxu0 %vm17885_vm8, %v12161_v9  ;;  %v6614_v63 = vpop.f32.mrf.mxu1  ;;  %v17893_v50 = vld [vmem:[#allocation55_spill] sm:$0xff]  ;;  %v8342_v22 = vld [vmem:[#allocation3 + $0x129] sm:$0xff] }
 0x4fb   : > { %v6932_v59 = vpop.f32.mrf.mxu0  ;;  %11964 = vmatmul.mubr.msk.f32.gmra.mxu1 %vm17887_vm14, %v8336_v2  ;;  %v6677_v8 = vadd.f32 %v6614_v63, %v16603_v37 }
 0x4fc   : > { %v16776_v41 = vadd.f32 %v6932_v59, %v6673_v23  ;;  %11966 = vmatprep.mubr.f32.mxu1 %v8337_v42  ;;  %v11488_v21 = vpop.f32.mrf.mxu1  ;;  %v12167_v42 = vld [vmem:[%s12623_s16 + $0xe0] sm:$0xff] }
 0x4fd   : > { %v11562_v34 = vpop.f32.mrf.mxu0  ;;  %12025 = vmatmul.mubr.msk.f32.gmra.mxu0 %vm17888_vm4, %v12162_v27  ;;  %v6680_v6 = vadd.f32 %v11488_v21, %v16608_v30 }
 0x4fe   : > { %v16781_v26 = vadd.f32 %v11562_v34, %v6676_v31  ;;  %12027 = vmatprep.mubr.msk.f32.mxu0 %vm17889_vm1, %v12163_v12  ;;  %v6624_v37 = vpop.f32.mrf.mxu1  ;;  %v12168_v12 = vld [vmem:[%s12623_s16 + $0xe8] sm:$0xff] }
 0x4ff   : > { %v6942_v16 = vpop.f32.mrf.mxu0  ;;  %11967 = vmatmul.mubr.msk.f32.gmra.mxu1 %vm17834_vm11, %v8338_v20  ;;  %v6679_v43 = vadd.f32 %v6624_v37, %v16611_v3  ;;  %vm17894_vm11 = vnez %v17893_v50 }
 0x500   : > { %v16788_v19 = vadd.f32 %v6942_v16, %v6675_v46  ;;  %11969 = vmatprep.mubr.f32.mxu1 %v8339_v17  ;;  %v11491_v39 = vpop.f32.mrf.mxu1 }
 0x501   : > { %v11565_v38 = vpop.f32.mrf.mxu0  ;;  %12028 = vmatmul.mubr.msk.f32.gmra.mxu0 %vm17891_vm13, %v12164_v61  ;;  %v6682_v31 = vadd.f32 %v11491_v39, %v16614_v10  ;;  %v12170_v61 = vld [vmem:[%s12623_s16 + $0xf8] sm:$0xff] }
 0x502   : > { %v16793_v23 = vadd.f32 %v11565_v38, %v6678_v14  ;;  %12030 = vmatprep.mubr.msk.f32.mxu0 %vm17892_vm15, %v12165_v51  ;;  %v6634_v3 = vpop.f32.mrf.mxu1 }
 0x503   : > { %v6952_v52 = vpop.f32.mrf.mxu0  ;;  %11970 = vmatmul.mubr.msk.f32.gmra.mxu1 %vm17894_vm11, %v8340_v13  ;;  %v6681_v9 = vadd.f32 %v6634_v3, %v16618_v24 }
 0x504   : > { %v16800_v30 = vadd.f32 %v6952_v52, %v6677_v8  ;;  %11972 = vmatprep.mubr.f32.mxu1 %v8341_v40  ;;  %v11494_v59 = vpop.f32.mrf.mxu1 }
 0x505   : > { %v11568_v1 = vpop.f32.mrf.mxu0  ;;  %12031 = vmatmul.mubr.msk.f32.gmra.mxu0 %vm17895_vm2, %v12166_v29  ;;  %v6684_v10 = vadd.f32 %v11494_v59, %v16623_v48  ;;  %v12169_v48 = vld [vmem:[%s12623_s16 + $0xf0] sm:$0xff]  ;;  %s540_s16 = sand.u32 1, %s12309_s19  }
 0x506   : > { %v16805_v46 = vadd.f32 %v11568_v1, %v6680_v6  ;;  %v6644_v34 = vpop.f32.mrf.mxu1  ;;  %s9239_s18 = sshll.u32 %s540_s16, 8  ;;  %s17229_s22 = scalar_lea.sflag [#allocation6], %s540_s16 }
 0x507   : > { %v6962_v2 = vpop.f32.mrf.mxu0  ;;  %11973 = vmatmul.mubr.msk.f32.gmra.mxu1 %vm17832_vm9, %v8342_v22  ;;  %v6683_v24 = vadd.f32 %v6644_v34, %v16633_v57  ;;  %vm17899_vm9 = vmmov %vm17867_vm0  ;;  %s17086_s27 = scalar_lea.vmem [#allocation10], %s9239_s18 }
 0x508   : > { %v16810_v55 = vadd.f32 %v6962_v2, %v6679_v43  ;;  %12033 = vmatprep.mubr.msk.f32.mxu1 %vm17897_vm3, %v12167_v42  ;;  %v11609_v8 = vpop.f32.mrf.mxu1  ;;  %s9127_s23 = sshll.u32 %s17086_s27, 4  ;;  %s17223_s23 = int_to_ptr.vmem [resolvable:$true] %s9127_s23 }
 0x509   : > { %v11571_v14 = vpop.f32.mrf.mxu0  ;;  %v7298_v16 = vadd.f32 %v11609_v8, %v16640_v5  ;;  %s12249_s25 = scalar_lea.vmem %s17223_s23, 4096  ;;  %p12256_p7 = scmp.lt.s32.totalorder %s17223_s23, %s12254_s24 }
 0x50a   : > { %v16815_v27 = vadd.f32 %v11571_v14, %v6682_v31  ;;  %v7138_v49 = vpop.f32.mrf.mxu1  ;;  %p12250_p12 = scmp.ne.s32.totalorder %s17223_s23, %s12249_s25  ;;  %p12257_p8 = scmp.lt.s32.totalorder %s12255_s29, %s12249_s25 }
 0x50b   : > { %v6972_v63 = vpop.f32.mrf.mxu0  ;;  %12034 = vmatmul.mubr.msk.f32.vlgmr.msra.gmra.mxu1 %vm17898_vm12, %v12168_v12  ;;  %v7297_v6 = vadd.f32 %v7138_v49, %v16649_v0 }
 0x50c   : > { %v16820_v20 = vadd.f32 %v6972_v63, %v6681_v9  ;;  %12036 = vmatprep.mubr.msk.f32.mxu1 %vm17899_vm9, %v12169_v48  ;;  %v11612_v57 = vpop.f32.mrf.mxu1  ;;  %p12251_p2 = pnand %p12250_p12, %p17971_p3  ;;  %p12258_p11 = por %p12257_p8, %p12256_p7 }
 0x50d   : > { %v11574_v21 = vpop.f32.mrf.mxu0  ;;  %v7300_v40 = vadd.f32 %v11612_v57, %v16656_v62 }
 0x50e   : > { %v16825_v17 = vadd.f32 %v11574_v21, %v6684_v10  ;;  %v7148_v5 = vpop.f32.mrf.mxu1  ;;  %p12252_p4 = pneg %p12251_p2 }
 0x50f   : > { %v6982_v38 = vpop.f32.mrf.mxu0  ;;  %12037 = vmatmul.mubr.msk.f32.gmra.mxu1 %vm17900_vm6, %v12170_v61  ;;  %v7299_v13 = vadd.f32 %v7148_v5, %v16665_v33 }
 0x510   : > { %v16830_v37 = vadd.f32 %v6982_v38, %v6683_v24  ;;  %v11615_v39 = vpop.f32.mrf.mxu1  ;;  %p12259_p0 = pnand %p12258_p11, %p12252_p4 }
 0x511   : > { %v11689_v43 = vpop.f32.mrf.mxu0  ;;  %v7302_v0 = vadd.f32 %v11615_v39, %v16672_v60 }
 0x512   : > { %v16833_v51 = vadd.f32 %v11689_v43, %v7298_v16  ;;  %v7158_v22 = vpop.f32.mrf.mxu1 }
 0x513   : > { %v7476_v52 = vpop.f32.mrf.mxu0  ;;  %v7301_v29 = vadd.f32 %v7158_v22, %v16680_v4 }
 0x514   : > { %v16836_v50 = vadd.f32 %v7476_v52, %v7297_v6  ;;  %v11618_v62 = vpop.f32.mrf.mxu1 }
 0x515   : > { %v11692_v31 = vpop.f32.mrf.mxu0  ;;  %v7304_v2 = vadd.f32 %v11618_v62, %v16685_v44 }
 0x516   : > { %v16839_v1 = vadd.f32 %v11692_v31, %v7300_v40  ;;  %v7168_v33 = vpop.f32.mrf.mxu1 }
 0x517   : > { %v7486_v3 = vpop.f32.mrf.mxu0  ;;  %v7303_v10 = vadd.f32 %v7168_v33, %v16692_v15 }
 0x518   : > { %v16842_v9 = vadd.f32 %v7486_v3, %v7299_v13  ;;  %v11621_v60 = vpop.f32.mrf.mxu1 }
 0x519   : > { %v11695_v59 = vpop.f32.mrf.mxu0  ;;  %v7306_v34 = vadd.f32 %v11621_v60, %v16697_v47 }
 0x51a   : > { %v16845_v35 = vadd.f32 %v11695_v59, %v7302_v0  ;;  %v7178_v4 = vpop.f32.mrf.mxu1 }
 0x51b   : > { %v7496_v42 = vpop.f32.mrf.mxu0  ;;  %v7305_v8 = vadd.f32 %v7178_v4, %v16704_v11 }
 0x51c   : > { %v16848_v14 = vadd.f32 %v7496_v42, %v7301_v29  ;;  %v11624_v44 = vpop.f32.mrf.mxu1 }
 0x51d   : > { %v11698_v24 = vpop.f32.mrf.mxu0  ;;  %v7308_v48 = vadd.f32 %v11624_v44, %v16709_v53 }
 0x51e   : > { %v16851_v63 = vadd.f32 %v11698_v24, %v7304_v2  ;;  %v7188_v15 = vpop.f32.mrf.mxu1 }
 0x51f   : > { %v7506_v12 = vpop.f32.mrf.mxu0  ;;  %v7307_v6 = vadd.f32 %v7188_v15, %v16716_v18 }
 0x520   : > { %v16854_v16 = vadd.f32 %v7506_v12, %v7303_v10  ;;  %v11627_v47 = vpop.f32.mrf.mxu1 }
 0x521   : > { %v11701_v21 = vpop.f32.mrf.mxu0  ;;  %v7310_v61 = vadd.f32 %v11627_v47, %v16721_v56 }
 0x522   : > { %v16857_v49 = vadd.f32 %v11701_v21, %v7306_v34  ;;  %v7198_v11 = vpop.f32.mrf.mxu1 }
 0x523   : > { %v7516_v38 = vpop.f32.mrf.mxu0  ;;  %v7309_v5 = vadd.f32 %v7198_v11, %v16728_v25 }
 0x524   : > { %v16860_v57 = vadd.f32 %v7516_v38, %v7305_v8  ;;  %v11630_v53 = vpop.f32.mrf.mxu1 }
 0x525   : > { %v11704_v40 = vpop.f32.mrf.mxu0  ;;  %v7312_v39 = vadd.f32 %v11630_v53, %v16733_v54 }
 0x526   : > { %v16863_v43 = vadd.f32 %v11704_v40, %v7308_v48  ;;  %v7208_v18 = vpop.f32.mrf.mxu1 }
 0x527   : > { %v7526_v13 = vpop.f32.mrf.mxu0  ;;  %v7311_v22 = vadd.f32 %v7208_v18, %v16740_v45 }
 0x528   : > { %v16866_v52 = vadd.f32 %v7526_v13, %v7307_v6  ;;  %v11633_v56 = vpop.f32.mrf.mxu1 }
 0x529   : > { %v11707_v0 = vpop.f32.mrf.mxu0  ;;  %v7314_v62 = vadd.f32 %v11633_v56, %v16745_v28 }
 0x52a   : > { %v16869_v31 = vadd.f32 %v11707_v0, %v7310_v61  ;;  %v7218_v25 = vpop.f32.mrf.mxu1 }
 0x52b   : > { %v7536_v29 = vpop.f32.mrf.mxu0  ;;  %v7313_v33 = vadd.f32 %v7218_v25, %v16752_v7 }
 0x52c   : > { %v16872_v3 = vadd.f32 %v7536_v29, %v7309_v5  ;;  %v11636_v54 = vpop.f32.mrf.mxu1 }
 0x52d   : > { %v11710_v2 = vpop.f32.mrf.mxu0  ;;  %v7316_v60 = vadd.f32 %v11636_v54, %v16757_v32 }
 0x52e   : > { %v16875_v59 = vadd.f32 %v11710_v2, %v7312_v39  ;;  %v7228_v45 = vpop.f32.mrf.mxu1 }
 0x52f   : > { %v7546_v10 = vpop.f32.mrf.mxu0  ;;  %v7315_v4 = vadd.f32 %v7228_v45, %v16764_v36 }
 0x530   : > { %v16878_v42 = vadd.f32 %v7546_v10, %v7311_v22  ;;  %v11639_v28 = vpop.f32.mrf.mxu1 }
 0x531   : > { %v11713_v34 = vpop.f32.mrf.mxu0  ;;  %v7318_v44 = vadd.f32 %v11639_v28, %v16769_v58 }
 0x532   : > { %v16881_v24 = vadd.f32 %v11713_v34, %v7314_v62  ;;  %v7238_v7 = vpop.f32.mrf.mxu1 }
 0x533   : > { %v7556_v8 = vpop.f32.mrf.mxu0  ;;  %v7317_v15 = vadd.f32 %v7238_v7, %v16776_v41 }
 0x534   : > { %v16884_v12 = vadd.f32 %v7556_v8, %v7313_v33  ;;  %v11642_v32 = vpop.f32.mrf.mxu1 }
 0x535   : > { %v11716_v48 = vpop.f32.mrf.mxu0  ;;  %v7320_v47 = vadd.f32 %v11642_v32, %v16781_v26 }
 0x536   : > { %17901 = vst [vmem:[#allocation42_spill] sm:$0xff] %v16884_v12  ;;  %v16887_v21 = vadd.f32 %v11716_v48, %v7316_v60  ;;  %v7248_v36 = vpop.f32.mrf.mxu1 }
 0x537   : > { %v7566_v6 = vpop.f32.mrf.mxu0  ;;  %v7319_v11 = vadd.f32 %v7248_v36, %v16788_v19 }
 0x538   : > { %17902 = vst [vmem:[#allocation69_spill] sm:$0xff] %v16887_v21  ;;  %v16890_v38 = vadd.f32 %v7566_v6, %v7315_v4  ;;  %v11645_v58 = vpop.f32.mrf.mxu1 }
 0x539   : > { %v11719_v61 = vpop.f32.mrf.mxu0  ;;  %v7322_v53 = vadd.f32 %v11645_v58, %v16793_v23 }
 0x53a   : > { %17903 = vst [vmem:[#allocation37_spill] sm:$0xff] %v16890_v38  ;;  %v16893_v40 = vadd.f32 %v11719_v61, %v7318_v44  ;;  %v7258_v41 = vpop.f32.mrf.mxu1 }
 0x53b   : > { %v7576_v5 = vpop.f32.mrf.mxu0  ;;  %v7321_v18 = vadd.f32 %v7258_v41, %v16800_v30 }
 0x53c   : > { %17904 = vst [vmem:[#allocation70_spill] sm:$0xff] %v16893_v40  ;;  %v16896_v13 = vadd.f32 %v7576_v5, %v7317_v15  ;;  %v11648_v26 = vpop.f32.mrf.mxu1 }
 0x53d   : > { %v11722_v39 = vpop.f32.mrf.mxu0  ;;  %v7324_v56 = vadd.f32 %v11648_v26, %v16805_v46 }
 0x53e   : > { %17905 = vst [vmem:[#allocation107_spill] sm:$0xff] %v16896_v13  ;;  %v16899_v0 = vadd.f32 %v11722_v39, %v7320_v47  ;;  %v7268_v19 = vpop.f32.mrf.mxu1 }
 0x53f   : > { %v7586_v22 = vpop.f32.mrf.mxu0  ;;  %v7323_v25 = vadd.f32 %v7268_v19, %v16810_v55 }
 0x540   : > { %17906 = vst [vmem:[#allocation109_spill] sm:$0xff] %v16899_v0  ;;  %v16902_v29 = vadd.f32 %v7586_v22, %v7319_v11  ;;  %v11651_v23 = vpop.f32.mrf.mxu1 }
 0x541   : > { %v11725_v62 = vpop.f32.mrf.mxu0  ;;  %v7326_v54 = vadd.f32 %v11651_v23, %v16815_v27 }
 0x542   : > { %17907 = vst [vmem:[#allocation38_spill] sm:$0xff] %v16902_v29  ;;  %v16905_v2 = vadd.f32 %v11725_v62, %v7322_v53  ;;  %v7278_v30 = vpop.f32.mrf.mxu1 }
 0x543   : > { %v7596_v33 = vpop.f32.mrf.mxu0  ;;  %v7325_v45 = vadd.f32 %v7278_v30, %v16820_v20 }
 0x544   : > { %17908 = vst [vmem:[#allocation39_spill] sm:$0xff] %v16905_v2  ;;  %v16908_v10 = vadd.f32 %v7596_v33, %v7321_v18  ;;  %v11654_v46 = vpop.f32.mrf.mxu1 }
 0x545   : > { %v11728_v60 = vpop.f32.mrf.mxu0  ;;  %v7328_v28 = vadd.f32 %v11654_v46, %v16825_v17 }
 0x546   : > { %17909 = vst [vmem:[#allocation88_spill] sm:$0xff] %v16908_v10  ;;  %v16911_v34 = vadd.f32 %v11728_v60, %v7324_v56  ;;  %v7288_v55 = vpop.f32.mrf.mxu1 }
 0x547   : > { %v7606_v4 = vpop.f32.mrf.mxu0  ;;  %v7327_v7 = vadd.f32 %v7288_v55, %v16830_v37 }
 0x548   : > { %17910 = vst [vmem:[#allocation89_spill] sm:$0xff] %v16911_v34  ;;  %v16914_v8 = vadd.f32 %v7606_v4, %v7323_v25  ;;  %v16920_v27 = vpop.f32.mrf.mxu1 }
 0x549   : > { %v11731_v44 = vpop.f32.mrf.mxu0 }
 0x54a   : > { %17911 = vst [vmem:[#allocation71_spill] sm:$0xff] %v16914_v8  ;;  %v16917_v48 = vadd.f32 %v11731_v44, %v7326_v54  ;;  %v16922_v47 = vpop.f32.mrf.mxu1 }
 0x54b   : > { %v7616_v15 = vpop.f32.mrf.mxu0 }
 0x54c   : > { %v7663_v6 = vadd.f32 %v7616_v15, %v7325_v45  ;;  %v16926_v36 = vpop.f32.mrf.mxu1 }
 0x54d   : > { %v11734_v32 = vpop.f32.mrf.mxu0 }
 0x54e   : > { %v16924_v20 = vadd.f32 %v11734_v32, %v7328_v28  ;;  %v16930_v5 = vpop.f32.mrf.mxu1 }
 0x54f   : > { %v7626_v61 = vpop.f32.mrf.mxu0 }
 0x550   : > { %v16928_v11 = vadd.f32 %v7626_v61, %v7327_v7  ;;  %v16934_v37 = vpop.f32.mrf.mxu1 }
 0x551   : > { %v11849_v17 = vpop.f32.mrf.mxu0 }
 0x552   : > { %v16938_v39 = vpop.f32.mrf.mxu1 }
 0x553   : > { %v16932_v58 = vpop.f32.mrf.mxu0 }
 0x554   : > { %v16942_v18 = vpop.f32.mrf.mxu1 }
 0x555   : > { %v16936_v53 = vpop.f32.mrf.mxu0 }
 0x556   : > { %v16946_v26 = vpop.f32.mrf.mxu1 }
 0x557   : > { %v16940_v41 = vpop.f32.mrf.mxu0 }
 0x558   : > { %v16950_v62 = vpop.f32.mrf.mxu1 }
 0x559   : > { %v16944_v22 = vpop.f32.mrf.mxu0 }
 0x55a   : > { %v16954_v25 = vpop.f32.mrf.mxu1 }
 0x55b   : > { %v16948_v56 = vpop.f32.mrf.mxu0 }
 0x55c   : > { %v16958_v23 = vpop.f32.mrf.mxu1 }
 0x55d   : > { %v16952_v19 = vpop.f32.mrf.mxu0 }
 0x55e   : > { %v16962_v60 = vpop.f32.mrf.mxu1 }
 0x55f   : > { %v16956_v33 = vpop.f32.mrf.mxu0 }
 0x560   : > { %v16966_v45 = vpop.f32.mrf.mxu1 }
 0x561   : > { %v16960_v54 = vpop.f32.mrf.mxu0 }
 0x562   : > { %v16970_v46 = vpop.f32.mrf.mxu1 }
 0x563   : > { %v16964_v30 = vpop.f32.mrf.mxu0 }
 0x564   : > { %v16974_v44 = vpop.f32.mrf.mxu1 }
 0x565   : > { %v16968_v4 = vpop.f32.mrf.mxu0 }
 0x566   : > { %v16978_v7 = vpop.f32.mrf.mxu1 }
 0x567   : > { %v16972_v28 = vpop.f32.mrf.mxu0 }
 0x568   : > { %v16982_v32 = vpop.f32.mrf.mxu1 }
 0x569   : > { %v16976_v55 = vpop.f32.mrf.mxu0  ;;  %17912 = vst [vmem:[#allocation72_spill] sm:$0xff] %v16982_v32 }
 0x56a   : > { %v16986_v8 = vpop.f32.mrf.mxu1 }
 0x56b   : > { %v16980_v15 = vpop.f32.mrf.mxu0  ;;  %17913 = vst [vmem:[#allocation108_spill] sm:$0xff] %v16986_v8 }
 0x56c   : > { %v16990_v10 = vpop.f32.mrf.mxu1 }
 0x56d   : > { %v16984_v61 = vpop.f32.mrf.mxu0  ;;  %17914 = vst [vmem:[#allocation111_spill] sm:$0xff] %v16990_v10 }
 0x56e   : > { %v16994_v29 = vpop.f32.mrf.mxu1 }
 0x56f   : > { %v16988_v34 = vpop.f32.mrf.mxu0  ;;  %17916 = vst [vmem:[#allocation58_spill] sm:$0xff] %v16994_v29 }
 0x570   : > { %v16998_v13 = vpop.f32.mrf.mxu1 }
 0x571   : > { %v16992_v2 = vpop.f32.mrf.mxu0  ;;  %17918 = vst [vmem:[#allocation91_spill] sm:$0xff] %v16998_v13 }
 0x572   : > { %17915 = vst [vmem:[#allocation57_spill] sm:$0xff] %v16992_v2  ;;  %v17002_v38 = vpop.f32.mrf.mxu1 }
 0x573   : > { %v16996_v0 = vpop.f32.mrf.mxu0  ;;  %17920 = vst [vmem:[#allocation74_spill] sm:$0xff] %v17002_v38 }
 0x574   : > { %17917 = vst [vmem:[#allocation90_spill] sm:$0xff] %v16996_v0  ;;  %v17006_v12 = vpop.f32.mrf.mxu1 }
 0x575   : > { %v17000_v40 = vpop.f32.mrf.mxu0  ;;  %17922 = vst [vmem:[#allocation113_spill] sm:$0xff] %v17006_v12 }
 0x576   : > { %17919 = vst [vmem:[#allocation73_spill] sm:$0xff] %v17000_v40  ;;  %v17010_v32 = vpop.f32.mrf.mxu1 }
 0x577   : > { %v17004_v21 = vpop.f32.mrf.mxu0  ;;  %17924 = vst [vmem:[#allocation60_spill] sm:$0xff] %v17010_v32 }
 0x578   : > { %17921 = vst [vmem:[#allocation110_spill] sm:$0xff] %v17004_v21  ;;  %v17014_v2 = vpop.f32.mrf.mxu1 }
 0x579   : > { %v17008_v8 = vpop.f32.mrf.mxu0  ;;  %17926 = vst [vmem:[#allocation93_spill] sm:$0xff] %v17014_v2 }
 0x57a   : > { %17923 = vst [vmem:[#allocation59_spill] sm:$0xff] %v17008_v8  ;;  %v17018_v0 = vpop.f32.mrf.mxu1 }
 0x57b   : > { %v17012_v10 = vpop.f32.mrf.mxu0  ;;  %17928 = vst [vmem:[#allocation76_spill] sm:$0xff] %v17018_v0 }
 0x57c   : > { %17925 = vst [vmem:[#allocation92_spill] sm:$0xff] %v17012_v10  ;;  %v17022_v40 = vpop.f32.mrf.mxu1 }
 0x57d   : > { %v17016_v29 = vpop.f32.mrf.mxu0  ;;  %17930 = vst [vmem:[#allocation115_spill] sm:$0xff] %v17022_v40  ;;  %v7974_v40 = vadd.f32 %v16920_v27, %v16833_v51  ;;  %v7976_v51 = vadd.f32 %v16926_v36, %v16839_v1 }
 0x57e   : > { %17927 = vst [vmem:[#allocation75_spill] sm:$0xff] %v17016_v29  ;;  %v17026_v21 = vpop.f32.mrf.mxu1 }
 0x57f   : > { %v17020_v13 = vpop.f32.mrf.mxu0  ;;  %17932 = vst [vmem:[#allocation62_spill] sm:$0xff] %v17026_v21 }
 0x580   : > { %17929 = vst [vmem:[#allocation112_spill] sm:$0xff] %v17020_v13  ;;  %v11811_v8 = vpop.f32.mrf.mxu1 }
 0x581   : > { %v17024_v38 = vpop.f32.mrf.mxu0  ;;  %v17031_v32 = vadd.f32 %v11811_v8, %v16917_v48  ;;  %v8280_v8 = vadd.f32 %v11849_v17, %v7974_v40  ;;  %v7973_v48 = vadd.f32 %v16922_v47, %v16836_v50  ;;  %v17062_v50 = vld [vmem:[%s17282_s13] ss:$0 sm:$0xff]  ;;  %v7975_v40 = vadd.f32 %v16930_v5, %v16842_v9 }
 0x582   : > { %17931 = vst [vmem:[#allocation61_spill] sm:$0xff] %v17024_v38  ;;  %v7954_v2 = vpop.f32.mrf.mxu1 }
 0x583   : > { %v17028_v12 = vpop.f32.mrf.mxu0  ;;  %17934 = vst [vmem:[#allocation95_spill] sm:$0xff] %v17031_v32  ;;  %v17035_v29 = vadd.f32 %v7954_v2, %v7663_v6  ;;  %v8279_v32 = vadd.f32 %v16932_v58, %v7973_v48  ;;  %v8281_v1 = vadd.f32 %v16940_v41, %v7975_v40 }
 0x584   : > { %17933 = vst [vmem:[#allocation94_spill] sm:$0xff] %v17028_v12  ;;  %v11814_v13 = vpop.f32.mrf.mxu1 }
 0x585   : > { %v17033_v10 = vpop.f32.mrf.mxu0  ;;  %17935 = vst [vmem:[#allocation77_spill] sm:$0xff] %v17035_v29  ;;  %v17042_v21 = vadd.f32 %v11814_v13, %v16924_v20 }
 0x586   : > { %v7964_v38 = vpop.f32.mrf.mxu1 }
 0x587   : > { %v17037_v0 = vpop.f32.mrf.mxu0  ;;  %v17049_v2 = vadd.f32 %v7964_v38, %v16928_v11  ;;  %v8282_v38 = vadd.f32 %v16936_v53, %v7976_v51  ;;  %v7977_v53 = vadd.f32 %v16938_v39, %v16848_v14 }
 0x588   : > { %v11929_v29 = vpop.f32.mrf.mxu1 }
 0x589   : > { %v17044_v12 = vpop.f32.mrf.mxu0  ;;  %v8618_v13 = vadd.f32 %v11929_v29, %v8280_v8  ;;  %v7978_v29 = vadd.f32 %v16934_v37, %v16845_v35  ;;  %v8283_v41 = vadd.f32 %v16948_v56, %v7977_v53  ;;  %v7980_v35 = vadd.f32 %v16942_v18, %v16851_v63 }
 0x58a   : > { %v8458_v20 = vpop.f32.mrf.mxu1 }
 0x58b   : > { %v17051_v6 = vpop.f32.mrf.mxu0  ;;  %v8617_v47 = vadd.f32 %v8458_v20, %v8279_v32  ;;  %v8657_v58 = vadd.f32 %v17062_v50, %v8618_v13  ;;  %v8284_v9 = vadd.f32 %v16944_v22, %v7978_v29  ;;  %v8286_v39 = vadd.f32 %v16952_v19, %v7980_v35 }
 0x58c   : > { %v7979_v22 = vadd.f32 %v16946_v26, %v16854_v16  ;;  %v7982_v19 = vadd.f32 %v16950_v62, %v16857_v49  ;;  %v7984_v35 = vadd.f32 %v16958_v23, %v16863_v43 }
 0x58d   : > { %v17056_v27 = vpop.f32.mrf.mxu0  ;;  %v11932_v17 = vpop.f32.mrf.mxu1  ;;  %v8656_v51 = vadd.f32 %v17062_v50, %v8617_v47 }
 0x58e   : > { %v8620_v36 = vadd.f32 %v11932_v17, %v8282_v38  ;;  %v8285_v29 = vadd.f32 %v16956_v33, %v7979_v22 }
 0x58f   : > { %v17067_v11 = vpop.f32.mrf.mxu0  ;;  %v8468_v48 = vpop.f32.mrf.mxu1 }
 0x590   : > { %v8619_v32 = vadd.f32 %v8468_v48, %v8281_v1  ;;  %v8659_v14 = vadd.f32 %v17062_v50, %v8620_v36  ;;  %v8288_v48 = vadd.f32 %v16960_v54, %v7982_v19 }
 0x591   : > { %v11993_v8 = vpop.f32.mrf.mxu0 }
 0x592   : > { %v9018_v5 = vadd.f32 %v11993_v8, %v8657_v58  ;;  %v11935_v20 = vpop.f32.mrf.mxu1  ;;  %v8658_v47 = vadd.f32 %v17062_v50, %v8619_v32 }
 0x593   : > { %v8858_v37 = vpop.f32.mrf.mxu0  ;;  %v8622_v40 = vadd.f32 %v11935_v20, %v8284_v9  ;;  %v7981_v9 = vadd.f32 %v16954_v25, %v16860_v57 }
 0x594   : > { %v9050_v38 = vmul.f32 0.70710677, %v9018_v5  ;;  %v9017_v13 = vadd.f32 %v8858_v37, %v8656_v51  ;;  %v8478_v1 = vpop.f32.mrf.mxu1 }
 0x595   : > { %v11996_v17 = vpop.f32.mrf.mxu0  ;;  %v8621_v56 = vadd.f32 %v8478_v1, %v8283_v41  ;;  %v8661_v8 = vadd.f32 %v17062_v50, %v8622_v40  ;;  %v8287_v41 = vadd.f32 %v16964_v30, %v7981_v9  ;;  %v7983_v40 = vadd.f32 %v16962_v60, %v16866_v52 }
 0x596   : > { %9082 = vst [vmem:[%s17086_s27 + $0x8] sm:$0xff] %v9050_v38  ;;  %v9049_v63 = vmul.f32 0.70710677, %v9017_v13  ;;  %v9020_v18 = vadd.f32 %v11996_v17, %v8659_v14  ;;  %v8290_v13 = vadd.f32 %v16968_v4, %v7984_v35  ;;  %v7986_v1 = vadd.f32 %v16966_v45, %v16869_v31 }
 0x597   : > { %v8868_v36 = vpop.f32.mrf.mxu0  ;;  %v11938_v16 = vpop.f32.mrf.mxu1  ;;  %v8660_v62 = vadd.f32 %v17062_v50, %v8621_v56  ;;  %v8289_v17 = vadd.f32 %v16972_v28, %v7983_v40 }
 0x598   : > { %9081 = vst [vmem:[%s17086_s27] sm:$0xff] %v9049_v63  ;;  %v9052_v26 = vmul.f32 0.70710677, %v9020_v18  ;;  %v9019_v58 = vadd.f32 %v8868_v36, %v8658_v47  ;;  %v8624_v53 = vadd.f32 %v11938_v16, %v8286_v39  ;;  %v8292_v47 = vadd.f32 %v16976_v55, %v7986_v1 }
 0x599   : > { %v11999_v5 = vpop.f32.mrf.mxu0  ;;  %v8488_v32 = vpop.f32.mrf.mxu1 }
 0x59a   : > { %9084 = vst [vmem:[%s17086_s27 + $0x18] sm:$0xff] %v9052_v26  ;;  %v9051_v33 = vmul.f32 0.70710677, %v9019_v58  ;;  %v9022_v51 = vadd.f32 %v11999_v5, %v8661_v8  ;;  %v8623_v49 = vadd.f32 %v8488_v32, %v8285_v29  ;;  %v8663_v25 = vadd.f32 %v17062_v50, %v8624_v53 }
 0x59b   : > { %v8878_v37 = vpop.f32.mrf.mxu0  ;;  %v11941_v20 = vpop.f32.mrf.mxu1  ;;  %v7985_v29 = vadd.f32 %v16970_v46, %v16872_v3  ;;  %v7988_v58 = vadd.f32 %v16974_v44, %v16875_v59  ;;  %v7987_v5 = vadd.f32 %v16978_v7, %v16878_v42 }
 0x59c   : > { %9083 = vst [vmem:[%s17086_s27 + $0x10] sm:$0xff] %v9051_v33  ;;  %v9054_v54 = vmul.f32 0.70710677, %v9022_v51  ;;  %v9021_v38 = vadd.f32 %v8878_v37, %v8660_v62  ;;  %v8626_v57 = vadd.f32 %v11941_v20, %v8288_v48  ;;  %v8662_v23 = vadd.f32 %v17062_v50, %v8623_v49  ;;  %v17936_v62 = vld [vmem:[#allocation72_spill] sm:$0xff] }
 0x59d   : > { %v12002_v14 = vpop.f32.mrf.mxu0  ;;  %v8498_v39 = vpop.f32.mrf.mxu1  ;;  %v8291_v26 = vadd.f32 %v16980_v15, %v7985_v29  ;;  %v8294_v9 = vadd.f32 %v16984_v61, %v7988_v58  ;;  %v8293_v49 = vadd.f32 %v16988_v34, %v7987_v5 }
 0x59e   : > { %9086 = vst [vmem:[%s17086_s27 + $0x28] sm:$0xff] %v9054_v54  ;;  %v9053_v30 = vmul.f32 0.70710677, %v9021_v38  ;;  %v9024_v22 = vadd.f32 %v12002_v14, %v8663_v25  ;;  %v8625_v43 = vadd.f32 %v8498_v39, %v8287_v41  ;;  %v8665_v60 = vadd.f32 %v17062_v50, %v8626_v57  ;;  %v17937_v54 = vld [vmem:[#allocation57_spill] sm:$0xff]  ;;  %v17938_v57 = vld [vmem:[#allocation42_spill] sm:$0xff]  ;;  %v17939_v25 = vld [vmem:[#allocation108_spill] sm:$0xff] }
 0x59f   : > { %v8888_v63 = vpop.f32.mrf.mxu0  ;;  %v11944_v18 = vpop.f32.mrf.mxu1  ;;  %v7990_v41 = vadd.f32 %v17936_v62, %v16881_v24  ;;  %v17951_v62 = vld [vmem:[#allocation74_spill] sm:$0xff] }
 0x5a0   : > { %9085 = vst [vmem:[%s17086_s27 + $0x20] sm:$0xff] %v9053_v30  ;;  %v9056_v4 = vmul.f32 0.70710677, %v9024_v22  ;;  %v9023_v56 = vadd.f32 %v8888_v63, %v8662_v23  ;;  %v8628_v52 = vadd.f32 %v11944_v18, %v8290_v13  ;;  %v8664_v45 = vadd.f32 %v17062_v50, %v8625_v43  ;;  %v17940_v22 = vld [vmem:[#allocation90_spill] sm:$0xff]  ;;  %v17941_v23 = vld [vmem:[#allocation69_spill] sm:$0xff] }
 0x5a1   : > { %v12005_v19 = vpop.f32.mrf.mxu0  ;;  %v8508_v36 = vpop.f32.mrf.mxu1  ;;  %v8296_v38 = vadd.f32 %v17937_v54, %v7990_v41  ;;  %v7989_v13 = vadd.f32 %v17939_v25, %v17938_v57  ;;  %v17952_v54 = vld [vmem:[#allocation92_spill] sm:$0xff]  ;;  %v17953_v57 = vld [vmem:[#allocation109_spill] sm:$0xff] }
 0x5a2   : > { %9088 = vst [vmem:[%s17086_s27 + $0x38] sm:$0xff] %v9056_v4  ;;  %v9055_v28 = vmul.f32 0.70710677, %v9023_v56  ;;  %v9026_v16 = vadd.f32 %v12005_v19, %v8665_v60  ;;  %v8627_v31 = vadd.f32 %v8508_v36, %v8289_v17  ;;  %v8667_v46 = vadd.f32 %v17062_v50, %v8628_v52  ;;  %v17942_v17 = vld [vmem:[#allocation111_spill] sm:$0xff]  ;;  %v17944_v19 = vld [vmem:[#allocation37_spill] sm:$0xff]  ;;  %v17945_v36 = vld [vmem:[#allocation58_spill] sm:$0xff] }
 0x5a3   : > { %v8898_v53 = vpop.f32.mrf.mxu0  ;;  %v11947_v8 = vpop.f32.mrf.mxu1  ;;  %v8295_v43 = vadd.f32 %v17940_v22, %v7989_v13  ;;  %v7992_v1 = vadd.f32 %v17942_v17, %v17941_v23  ;;  %v17954_v25 = vld [vmem:[#allocation113_spill] sm:$0xff]  ;;  %v17955_v22 = vld [vmem:[#allocation75_spill] sm:$0xff]  ;;  %v17956_v23 = vld [vmem:[#allocation38_spill] sm:$0xff] }
 0x5a4   : > { %9087 = vst [vmem:[%s17086_s27 + $0x30] sm:$0xff] %v9055_v28  ;;  %v9058_v55 = vmul.f32 0.70710677, %v9026_v16  ;;  %v9025_v48 = vadd.f32 %v8898_v53, %v8664_v45  ;;  %v8630_v3 = vadd.f32 %v11947_v8, %v8292_v47  ;;  %v8666_v44 = vadd.f32 %v17062_v50, %v8627_v31  ;;  %v17943_v47 = vld [vmem:[#allocation73_spill] sm:$0xff]  ;;  %v17946_v8 = vld [vmem:[#allocation110_spill] sm:$0xff]  ;;  %v17957_v17 = vld [vmem:[#allocation60_spill] sm:$0xff] }
 0x5a5   : > { %v12008_v32 = vpop.f32.mrf.mxu0  ;;  %v8518_v33 = vpop.f32.mrf.mxu1  ;;  %v8298_v29 = vadd.f32 %v17943_v47, %v7992_v1  ;;  %v7991_v28 = vadd.f32 %v17945_v36, %v17944_v19  ;;  %v7996_v13 = vadd.f32 %v17954_v25, %v17953_v57  ;;  %v7995_v1 = vadd.f32 %v17957_v17, %v17956_v23  ;;  %v17958_v47 = vld [vmem:[#allocation112_spill] sm:$0xff]  ;;  %v17959_v19 = vld [vmem:[#allocation39_spill] sm:$0xff]  ;;  %v17960_v36 = vld [vmem:[#allocation93_spill] sm:$0xff] }
 0x5a6   : > { %9090 = vst [vmem:[%s17086_s27 + $0x48] sm:$0xff] %v9058_v55  ;;  %v9057_v15 = vmul.f32 0.70710677, %v9025_v48  ;;  %v9028_v51 = vadd.f32 %v12008_v32, %v8667_v46  ;;  %v8629_v59 = vadd.f32 %v8518_v33, %v8291_v26  ;;  %v8669_v7 = vadd.f32 %v17062_v50, %v8630_v3  ;;  %v17947_v48 = vld [vmem:[#allocation70_spill] sm:$0xff]  ;;  %v17948_v3 = vld [vmem:[#allocation91_spill] sm:$0xff] }
 0x5a7   : > { %v8908_v35 = vpop.f32.mrf.mxu0  ;;  %v11950_v37 = vpop.f32.mrf.mxu1  ;;  %v8297_v55 = vadd.f32 %v17946_v8, %v7991_v28  ;;  %v7994_v46 = vadd.f32 %v17948_v3, %v17947_v48  ;;  %v7998_v28 = vadd.f32 %v17960_v36, %v17959_v19  ;;  %v17961_v8 = vld [vmem:[#allocation61_spill] sm:$0xff]  ;;  %v17962_v48 = vld [vmem:[#allocation88_spill] sm:$0xff]  ;;  %v17968_v57 = vld [vmem:[#allocation62_spill] sm:$0xff] }
 0x5a8   : > { %9089 = vst [vmem:[%s17086_s27 + $0x40] sm:$0xff] %v9057_v15  ;;  %v9060_v61 = vmul.f32 0.70710677, %v9028_v51  ;;  %v9027_v20 = vadd.f32 %v8908_v35, %v8666_v44  ;;  %v8632_v42 = vadd.f32 %v11950_v37, %v8294_v9  ;;  %v8668_v30 = vadd.f32 %v17062_v50, %v8629_v59  ;;  %v17949_v59 = vld [vmem:[#allocation59_spill] sm:$0xff]  ;;  %v17963_v3 = vld [vmem:[#allocation76_spill] sm:$0xff] }
 0x5a9   : > { %v12011_v40 = vpop.f32.mrf.mxu0  ;;  %v8528_v14 = vpop.f32.mrf.mxu1  ;;  %v8300_v44 = vadd.f32 %v17949_v59, %v7994_v46  ;;  %v7997_v46 = vadd.f32 %v17963_v3, %v17962_v48  ;;  %v17964_v59 = vld [vmem:[#allocation94_spill] sm:$0xff] }
 0x5aa   : > { %9092 = vst [vmem:[%s17086_s27 + $0x58] sm:$0xff] %v9060_v61  ;;  %v9059_v34 = vmul.f32 0.70710677, %v9027_v20  ;;  %v9030_v39 = vadd.f32 %v12011_v40, %v8669_v7  ;;  %v8631_v24 = vadd.f32 %v8528_v14, %v8293_v49  ;;  %v8671_v60 = vadd.f32 %v17062_v50, %v8632_v42  ;;  %v17950_v49 = vld [vmem:[#allocation107_spill] sm:$0xff] }
 0x5ab   : > { %v8918_v63 = vpop.f32.mrf.mxu0  ;;  %v11953_v18 = vpop.f32.mrf.mxu1  ;;  %v7993_v41 = vadd.f32 %v17951_v62, %v17950_v49  ;;  %v17965_v49 = vld [vmem:[#allocation89_spill] sm:$0xff]  ;;  %v17966_v62 = vld [vmem:[#allocation115_spill] sm:$0xff] }
 0x5ac   : > { %9091 = vst [vmem:[%s17086_s27 + $0x50] sm:$0xff] %v9059_v34  ;;  %v9062_v4 = vmul.f32 0.70710677, %v9030_v39  ;;  %v9029_v56 = vadd.f32 %v8918_v63, %v8668_v30  ;;  %v8634_v52 = vadd.f32 %v11953_v18, %v8296_v38  ;;  %v8670_v53 = vadd.f32 %v17062_v50, %v8631_v24 }
 0x5ad   : > { %v12014_v16 = vpop.f32.mrf.mxu0  ;;  %v8538_v31 = vpop.f32.mrf.mxu1  ;;  %v8299_v38 = vadd.f32 %v17952_v54, %v7993_v41  ;;  %v8000_v41 = vadd.f32 %v17966_v62, %v17965_v49 }
 0x5ae   : > { %9094 = vst [vmem:[%s17086_s27 + $0x68] sm:$0xff] %v9062_v4  ;;  %v9061_v45 = vmul.f32 0.70710677, %v9029_v56  ;;  %v9032_v26 = vadd.f32 %v12014_v16, %v8671_v60  ;;  %v8633_v58 = vadd.f32 %v8538_v31, %v8295_v43  ;;  %v8673_v51 = vadd.f32 %v17062_v50, %v8634_v52 }
 0x5af   : > { %v8928_v9 = vpop.f32.mrf.mxu0  ;;  %v11956_v5 = vpop.f32.mrf.mxu1  ;;  %v8302_v43 = vadd.f32 %v17955_v22, %v7996_v13  ;;  %v8306_v54 = vadd.f32 %v17033_v10, %v8000_v41 }
 0x5b0   : > { %9093 = vst [vmem:[%s17086_s27 + $0x60] sm:$0xff] %v9061_v45  ;;  %v9064_v32 = vmul.f32 0.70710677, %v9032_v26  ;;  %v9031_v33 = vadd.f32 %v8928_v9, %v8670_v53  ;;  %v8636_v15 = vadd.f32 %v11956_v5, %v8298_v29  ;;  %v8672_v7 = vadd.f32 %v17062_v50, %v8633_v58 }
 0x5b1   : > { %v12017_v35 = vpop.f32.mrf.mxu0  ;;  %v8548_v37 = vpop.f32.mrf.mxu1  ;;  %v8301_v29 = vadd.f32 %v17958_v47, %v7995_v1 }
 0x5b2   : > { %9096 = vst [vmem:[%s17086_s27 + $0x78] sm:$0xff] %v9064_v32  ;;  %v9063_v61 = vmul.f32 0.70710677, %v9031_v33  ;;  %v9034_v20 = vadd.f32 %v12017_v35, %v8673_v51  ;;  %v8635_v42 = vadd.f32 %v8548_v37, %v8297_v55  ;;  %v8675_v30 = vadd.f32 %v17062_v50, %v8636_v15 }
 0x5b3   : > { %v8938_v40 = vpop.f32.mrf.mxu0  ;;  %v11959_v14 = vpop.f32.mrf.mxu1  ;;  %v8304_v55 = vadd.f32 %v17961_v8, %v7998_v28 }
 0x5b4   : > { %9095 = vst [vmem:[%s17086_s27 + $0x70] sm:$0xff] %v9063_v61  ;;  %v9066_v34 = vmul.f32 0.70710677, %v9034_v20  ;;  %v9033_v39 = vadd.f32 %v8938_v40, %v8672_v7  ;;  %v8638_v24 = vadd.f32 %v11959_v14, %v8300_v44  ;;  %v8674_v60 = vadd.f32 %v17062_v50, %v8635_v42 }
 0x5b5   : > { %v12020_v63 = vpop.f32.mrf.mxu0  ;;  %v8558_v18 = vpop.f32.mrf.mxu1  ;;  %v8303_v44 = vadd.f32 %v17964_v59, %v7997_v46 }
 0x5b6   : > { %9098 = vst [vmem:[%s17086_s27 + $0x88] sm:$0xff] %v9066_v34  ;;  %v9065_v4 = vmul.f32 0.70710677, %v9033_v39  ;;  %v9036_v56 = vadd.f32 %v12020_v63, %v8675_v30  ;;  %v8637_v52 = vadd.f32 %v8558_v18, %v8299_v38  ;;  %v8677_v53 = vadd.f32 %v17062_v50, %v8638_v24  ;;  %v17967_v38 = vld [vmem:[#allocation71_spill] sm:$0xff] }
 0x5b7   : > { %v8948_v16 = vpop.f32.mrf.mxu0  ;;  %v11962_v31 = vpop.f32.mrf.mxu1  ;;  %v7999_v25 = vadd.f32 %v17968_v57, %v17967_v38 }
 0x5b8   : > { %9097 = vst [vmem:[%s17086_s27 + $0x80] sm:$0xff] %v9065_v4  ;;  %v9068_v45 = vmul.f32 0.70710677, %v9036_v56  ;;  %v9035_v26 = vadd.f32 %v8948_v16, %v8674_v60  ;;  %v8640_v58 = vadd.f32 %v11962_v31, %v8302_v43  ;;  %v8676_v51 = vadd.f32 %v17062_v50, %v8637_v52  ;;  %v17970_v31 = vld [vmem:[#allocation77_spill] sm:$0xff] }
 0x5b9   : > { %v12023_v9 = vpop.f32.mrf.mxu0  ;;  %v8568_v5 = vpop.f32.mrf.mxu1  ;;  %v8305_v30 = vadd.f32 %v17037_v0, %v7999_v25 }
 0x5ba   : > { %9100 = vst [vmem:[%s17086_s27 + $0x98] sm:$0xff] %v9068_v45  ;;  %v9067_v32 = vmul.f32 0.70710677, %v9035_v26  ;;  %v9038_v33 = vadd.f32 %v12023_v9, %v8677_v53  ;;  %v8639_v15 = vadd.f32 %v8568_v5, %v8301_v29  ;;  %v8679_v7 = vadd.f32 %v17062_v50, %v8640_v58  ;;  %v17969_v29 = vld [vmem:[#allocation95_spill] sm:$0xff] }
 0x5bb   : > { %v8958_v35 = vpop.f32.mrf.mxu0  ;;  %v11965_v37 = vpop.f32.mrf.mxu1  ;;  %v8308_v19 = vadd.f32 %v17044_v12, %v17969_v29  ;;  %v8307_v45 = vadd.f32 %v17051_v6, %v17970_v31  ;;  %v8310_v12 = vadd.f32 %v17056_v27, %v17042_v21  ;;  %v8309_v9 = vadd.f32 %v17067_v11, %v17049_v2 }
 0x5bc   : > { %9099 = vst [vmem:[%s17086_s27 + $0x90] sm:$0xff] %v9067_v32  ;;  %v9070_v61 = vmul.f32 0.70710677, %v9038_v33  ;;  %v9037_v20 = vadd.f32 %v8958_v35, %v8676_v51  ;;  %v8642_v42 = vadd.f32 %v11965_v37, %v8304_v55  ;;  %v8678_v24 = vadd.f32 %v17062_v50, %v8639_v15 }
 0x5bd   : > { %v12026_v13 = vpop.f32.mrf.mxu0  ;;  %v8578_v40 = vpop.f32.mrf.mxu1 }
 0x5be   : > { %9102 = vst [vmem:[%s17086_s27 + $0xa8] sm:$0xff] %v9070_v61  ;;  %v9069_v14 = vmul.f32 0.70710677, %v9037_v20  ;;  %v9040_v34 = vadd.f32 %v12026_v13, %v8679_v7  ;;  %v8641_v39 = vadd.f32 %v8578_v40, %v8303_v44  ;;  %v8681_v1 = vadd.f32 %v17062_v50, %v8642_v42 }
 0x5bf   : > { %v8968_v22 = vpop.f32.mrf.mxu0  ;;  %v11968_v43 = vpop.f32.mrf.mxu1 }
 0x5c0   : > { %9101 = vst [vmem:[%s17086_s27 + $0xa0] sm:$0xff] %v9069_v14  ;;  %v9072_v23 = vmul.f32 0.70710677, %v9040_v34  ;;  %v9039_v10 = vadd.f32 %v8968_v22, %v8678_v24  ;;  %v8644_v17 = vadd.f32 %v11968_v43, %v8306_v54  ;;  %v8680_v60 = vadd.f32 %v17062_v50, %v8641_v39 }
 0x5c1   : > { %v12029_v63 = vpop.f32.mrf.mxu0  ;;  %v8588_v18 = vpop.f32.mrf.mxu1 }
 0x5c2   : > { %9104 = vst [vmem:[%s17086_s27 + $0xb8] sm:$0xff] %v9072_v23  ;;  %v9071_v4 = vmul.f32 0.70710677, %v9039_v10  ;;  %v9042_v56 = vadd.f32 %v12029_v63, %v8681_v1  ;;  %v8643_v52 = vadd.f32 %v8588_v18, %v8305_v30  ;;  %v8683_v16 = vadd.f32 %v17062_v50, %v8644_v17 }
 0x5c3   : > { %v8978_v47 = vpop.f32.mrf.mxu0  ;;  %v11971_v0 = vpop.f32.mrf.mxu1 }
 0x5c4   : > { %9103 = vst [vmem:[%s17086_s27 + $0xb0] sm:$0xff] %v9071_v4  ;;  %v9074_v36 = vmul.f32 0.70710677, %v9042_v56  ;;  %v9041_v28 = vadd.f32 %v8978_v47, %v8680_v60  ;;  %v8646_v8 = vadd.f32 %v11971_v0, %v8308_v19  ;;  %v8682_v48 = vadd.f32 %v17062_v50, %v8643_v52 }
 0x5c5   : > { %v12032_v26 = vpop.f32.mrf.mxu0  ;;  %v8598_v58 = vpop.f32.mrf.mxu1 }
 0x5c6   : > { %9106 = vst [vmem:[%s17086_s27 + $0xc8] sm:$0xff] %v9074_v36  ;;  %v9073_v53 = vmul.f32 0.70710677, %v9041_v28  ;;  %v9044_v55 = vadd.f32 %v12032_v26, %v8683_v16  ;;  %v8645_v5 = vadd.f32 %v8598_v58, %v8307_v45  ;;  %v8685_v44 = vadd.f32 %v17062_v50, %v8646_v8 }
 0x5c7   : > { %v8988_v3 = vpop.f32.mrf.mxu0  ;;  %v11974_v46 = vpop.f32.mrf.mxu1 }
 0x5c8   : > { %9105 = vst [vmem:[%s17086_s27 + $0xc0] sm:$0xff] %v9073_v53  ;;  %v9076_v6 = vmul.f32 0.70710677, %v9044_v55  ;;  %v9043_v32 = vadd.f32 %v8988_v3, %v8682_v48  ;;  %v8648_v51 = vadd.f32 %v11974_v46, %v8310_v12  ;;  %v8684_v2 = vadd.f32 %v17062_v50, %v8645_v5 }
 0x5c9   : > { %v8608_v33 = vpop.f32.mrf.mxu1 }
 0x5ca   : > { %9108 = vst [vmem:[%s17086_s27 + $0xd8] sm:$0xff] %v9076_v6  ;;  %v9075_v15 = vmul.f32 0.70710677, %v9043_v32  ;;  %v8647_v59 = vadd.f32 %v8608_v33, %v8309_v9  ;;  %v8687_v35 = vadd.f32 %v17062_v50, %v8648_v51 }
 0x5cb   : > { %v12035_v21 = vpop.f32.mrf.mxu1 }
 0x5cc   : > { %9107 = vst [vmem:[%s17086_s27 + $0xd0] sm:$0xff] %v9075_v15  ;;  %v9046_v27 = vadd.f32 %v12035_v21, %v8685_v44  ;;  %v8686_v11 = vadd.f32 %v17062_v50, %v8647_v59 }
 0x5cd   : > { %v8998_v49 = vpop.f32.mrf.mxu1 }
 0x5ce   : > { %v9078_v62 = vmul.f32 0.70710677, %v9046_v27  ;;  %v9045_v41 = vadd.f32 %v8998_v49, %v8684_v2 }
 0x5cf   : > { %v12038_v37 = vpop.f32.mrf.mxu1 }
 0x5d0   : > { %9110 = vst [vmem:[%s17086_s27 + $0xe8] sm:$0xff] %v9078_v62  ;;  %v9077_v61 = vmul.f32 0.70710677, %v9045_v41  ;;  %v9048_v20 = vadd.f32 %v12038_v37, %v8687_v35 }
 0x5d1   : > { %v9008_v42 = vpop.f32.mrf.mxu1 }
 0x5d2   : > { %9109 = vst [vmem:[%s17086_s27 + $0xe0] sm:$0xff] %v9077_v61  ;;  %v9080_v7 = vmul.f32 0.70710677, %v9048_v20  ;;  %v9047_v54 = vadd.f32 %v9008_v42, %v8686_v11 }
 0x5d4   : > { %9112 = vst [vmem:[%s17086_s27 + $0xf8] sm:$0xff] %v9080_v7  ;;  %v9079_v50 = vmul.f32 0.70710677, %v9047_v54 }
 0x5d6   : > { %9111 = vst [vmem:[%s17086_s27 + $0xf0] sm:$0xff] %v9079_v50 }
 0x5d7   : > { %12262 = shalt.err (!%p12259_p0)
}
 0x5d8   : > { %s12263_s16 = scalar_lea.hbm %s17221_s26, 4096  ;;  %s12267_s17 = scalar_lea.hbm %s17284_s15, 8192 }
 0x5d9   : > { %p12264_p6 = scmp.ne.s32.totalorder %s17221_s26, %s12263_s16  ;;  %p12268_p1 = scmp.lt.s32.totalorder %s17221_s26, %s17284_s15 }
 0x5da   : > { %p12269_p5 = scmp.lt.s32.totalorder %s12267_s17, %s12263_s16 }
 0x5db   : > { %p12265_p9 = pnand %p12264_p6, %p17971_p3 }
 0x5dc   : > { %p12270_p10 = por %p12269_p5, %p12268_p1 }
 0x5dd   : > { %p12266_p13 = pneg %p12265_p9 }
 0x5df   : > { %p12271_p12 = pnand %p12270_p10, %p12266_p13 }
 0x5e1   : > { %12274 = shalt.err (!%p12271_p12)
}
 0x5e2   : > { %s12327_s25 = smov 128   ;;  %s12328_s20 = smov 8  }
 0x5e3   : > { %12067 = dma.vmem_to_hbm [thread:$0]  (%p17971_p3), %s17223_s23, 4096, %s17221_s26, %s17229_s22, %s12327_s25, %s12327_s25, %s12328_s20  }
 0x5e4 PF: > { %s17972_s24 = sld [smem:[#allocation16_spill]] }
 0x5e5   : > { %s17973_s29 = sld [smem:[#allocation14_spill]] }
 0x5e6   : > { %s17974_s18 = sld [smem:[#allocation19_spill]] }
 0x5ea   : > { %p12089_p2 = scmp.ge.s32.totalorder %s17972_s24, 2 }
 0x5eb   : > { %s9142_s27 = sand.u32 1, %s17973_s29  }
 0x5ec   : > { %p17975_p4 = scmp.ne.s32.totalorder %s17974_s18, 0  ;;  %s9143_s16 = scalar_lea.sflag [#allocation6], %s9142_s27 }
 0x5ee   : > { %p12080_p7 = pnand %p12089_p2, %p17975_p4 }
 0x5f0   : > { %p12081_p8 = pneg %p12080_p7 }
 0x5f2   : > { %12300 = dma.done.wait (%p12081_p8), %s9143_s16, 4096  }
 0x5f3   : > { %12302 = vsyncadd (%p12081_p8), %s9143_s16, 4294963200  ;;  %s17976_s21 = sld [smem:[#allocation17_spill]]  ;;  %s17979_s18 = smov %s12309_s19 }
 0x5f4   : > { %s17977_s17 = sld [smem:[#allocation15_spill]] }
 0x5f5   : > { %s17978_s20 = sld [smem:[#allocation18_spill]] }
 0x5f9   : > { %p27_p11 = scmp.ge.s32.totalorder %s17976_s21, 4  }
 0x5fa   : > { %s17980_s19 = smov %s17977_s17 }
 0x5fb   :  { %29 = sbr.rel (!%p27_p11) target bundleno = 5 (0x5), region = 147 }
 0x600   :  { %9148 = vsyncpa [#allocation5], 1 }
 0x601   :  { %9150 = vsyncpa [#allocation5 + $0x1], 1 }
 0x602   :  { %9151 = vsyncpa [#allocation8], 1 }
 0x603   :  { %9152 = vsyncpa [#allocation6], 1 }
 0x604   :  { %9154 = vsyncpa [#allocation6 + $0x1], 1 }

</bundles_post_ra>
